<compile_context>
chip_gen: v7x
topology: tpu7x:2x2x1
jax: 0.10.0
libtpu: 0.0.40
codegen_flags: <defaults>
</compile_context>

<pallas_src>
import functools

import jax
import jax.numpy as jnp
from jax.experimental import pallas as pl
from jax.experimental.pallas import tpu as pltpu

BN_EPS = 1e-5      # PyTorch BatchNorm2d default (eval-mode / running-stats semantics)
LANE = 128         # channel padding so channels map to the 128-lane axis
ACT_DTYPE = jnp.bfloat16


# --------------------------------------------------------------------------
# small helpers
# --------------------------------------------------------------------------
def _round_up(v, m):
    return ((v + m - 1) // m) * m


def _pick_tile(n, cap=16):
    """Largest divisor of n that is <= cap (row-tile for the H grid axis)."""
    t = min(n, cap)
    while n % t:
        t -= 1
    return t


def _resolve(layer_idx, ref):
    """Resolve a (possibly negative) route/shortcut layer reference to an absolute index."""
    return ref if ref >= 0 else layer_idx + ref


def _pad_channels(x, lane=LANE):
    c = x.shape[-1]
    cp = _round_up(c, lane)
    if cp == c:
        return x
    return jnp.pad(x, ((0, 0),) * (x.ndim - 1) + ((0, cp - c),))


def _materialize(x):
    if isinstance(x, tuple):
        return x[0] if len(x) == 1 else jnp.concatenate(x, axis=-1)
    return x


def _compiler_params():
    return pltpu.CompilerParams(
        dimension_semantics=("parallel", "parallel"),
        vmem_limit_bytes=32 * 1024 * 1024)


# --------------------------------------------------------------------------
# Pallas kernels
# --------------------------------------------------------------------------
def _conv_kernel(*refs, k, n_src, th, wo, coutp, leaky, has_res):
    """Fused conv: load each source's halo window once, build k*k taps as static
    slices of that value, accumulate with one MXU matmul per tap against a K-stacked
    bf16 weight slab (BN scale pre-folded), then shift / LeakyReLU / residual in f32.
    refs = [x_0 .. x_{n_src-1}, w_slab, shift, (residual), out]."""
    o_ref = refs[-1]
    w_ref = refs[n_src]
    shift_ref = refs[n_src + 1]
    r0 = pl.multiple_of(pl.program_id(1) * th, th)

    # Hoisted window loads: one (th+k-1, wp, cinp) load per source, concatenated
    # along lanes so a single matmul per tap covers all route sources.
    wins = [refs[s][pl.ds(r0, th + k - 1), :, :] for s in range(n_src)]
    win = wins[0] if n_src == 1 else jnp.concatenate(wins, axis=-1)
    ksum = win.shape[-1]

    # Accumulator initialized with the (folded-BN / bias) shift row; scale is
    # already folded into the weights, so no epilogue multiply is needed.
    acc = jnp.broadcast_to(shift_ref[...], (th * wo, coutp)).astype(jnp.float32)
    for di in range(k):
        for dj in range(k):
            tap = win[di:di + th, dj:dj + wo, :].reshape(th * wo, ksum)
            acc = acc + jnp.dot(tap, w_ref[di * k + dj, :, :],
                                preferred_element_type=jnp.float32)

    y = acc
    if leaky:
        y = jnp.maximum(y, 0.1 * y)            # LeakyReLU(0.1), single VALU op
    y = y.reshape(th, wo, coutp)
    if has_res:                                # shortcut add happens after the activation
        y = y + refs[n_src + 2][...].astype(jnp.float32)
    o_ref[...] = y.astype(o_ref.dtype)


def _maxpool_kernel(x_ref, o_ref):
    """2x2 stride-2 max pool.  Input block is (th, 2, W/2, 2*C) — a free reshape of the
    NHWC tensor — so the four window taps are static row / lane slices."""
    cp = o_ref.shape[-1]
    top = x_ref[:, 0, :, :]                    # even rows  (th, W/2, 2*C)
    bot = x_ref[:, 1, :, :]                    # odd rows
    m = jnp.maximum(top, bot)
    o_ref[...] = jnp.maximum(m[..., :cp], m[..., cp:])


def _add_kernel(a_ref, b_ref, o_ref):
    """Standalone shortcut add (fallback; normally fused into the preceding conv)."""
    o_ref[...] = a_ref[...] + b_ref[...]


def _yolo_kernel(x_ref, mult_ref, o_ref, *, attrs):
    """YOLO head decode on lane-dense NHWC head output (channel c = anchor*attrs + attr):
       attr 0,1 : (sigmoid(t) + grid) * stride
       attr 2,3 : exp(t) * anchor_dim        (exp only where needed -> no overflow)
       attr 4.. : sigmoid(t)
    All math in f32 (v5e has no bf16 VPU/EUP)."""
    v = x_ref[...].astype(jnp.float32)          # (th, nG, CP)
    th = v.shape[0]
    row = (jax.lax.broadcasted_iota(jnp.int32, v.shape, 0).astype(jnp.float32)
           + (pl.program_id(1) * th).astype(jnp.float32))
    col = jax.lax.broadcasted_iota(jnp.int32, v.shape, 1).astype(jnp.float32)
    c = jax.lax.broadcasted_iota(jnp.int32, v.shape, 2)
    t = c % attrs

    sig = jax.nn.sigmoid(v)
    is_wh = jnp.logical_or(t == 2, t == 3)
    e = jnp.exp(jnp.where(is_wh, v, 0.0))
    grid_add = jnp.where(t == 0, col, 0.0) + jnp.where(t == 1, row, 0.0)
    base = jnp.where(is_wh, e, sig + grid_add)
    o_ref[...] = base * mult_ref[...]


# --------------------------------------------------------------------------
# Layer wrappers
# --------------------------------------------------------------------------
def conv_layer(sources, p, *, k, pad, stride, leaky, residual=None):
    """sources: list of NHWC bf16 arrays (N, H, W, Cpad) forming a virtual channel concat."""
    assert stride == 1  # TODO(synk): strided convolutions (not present in this cfg)
    n, h, w, _ = sources[0].shape
    ho = h + 2 * pad - k + 1
    wo = w + 2 * pad - k + 1
    slab = p['w_slab']                          # (k*k, Kp_total, coutp) bf16
    shift = p['shift2d']                        # (1, coutp) f32
    coutp = slab.shape[-1]
    th = _pick_tile(ho)

    padded = []
    for s in sources:
        if pad:
            s = jnp.pad(s, ((0, 0), (pad, pad), (pad, pad), (0, 0)))
        padded.append(s)

    in_specs, args = [], []
    for s in padded:
        hp, wp, cinp = s.shape[1], s.shape[2], s.shape[3]
        # TODO(synk): switch to a (th+k-1)-row halo window (Element-offset index map)
        #             once feature maps are large enough that full residency matters.
        in_specs.append(pl.BlockSpec((None, hp, wp, cinp), lambda ni, hi: (ni, 0, 0, 0)))
        args.append(s)
    in_specs.append(pl.BlockSpec(slab.shape, lambda ni, hi: (0, 0, 0)))
    args.append(slab)
    in_specs.append(pl.BlockSpec((1, coutp), lambda ni, hi: (0, 0)))
    args.append(shift)

    has_res = residual is not None
    if has_res:
        in_specs.append(pl.BlockSpec((None, th, wo, coutp), lambda ni, hi: (ni, hi, 0, 0)))
        args.append(residual)

    kern = functools.partial(_conv_kernel, k=k, n_src=len(padded), th=th, wo=wo,
                             coutp=coutp, leaky=leaky, has_res=has_res)
    return pl.pallas_call(
        kern,
        grid=(n, ho // th),
        in_specs=in_specs,
        out_specs=pl.BlockSpec((None, th, wo, coutp), lambda ni, hi: (ni, hi, 0, 0)),
        out_shape=jax.ShapeDtypeStruct((n, ho, wo, coutp), ACT_DTYPE),
        compiler_params=_compiler_params(),
    )(*args)


def maxpool_layer(x, size, stride):
    assert size == 2 and stride == 2  # TODO(synk): other maxpool configs (incl. size=2/stride=1 pad)
    n, h, w, cp = x.shape
    ho, wo = h // 2, w // 2
    xr = x.reshape(n, ho, 2, wo, 2 * cp)        # free view of contiguous NHWC memory
    th = _pick_tile(ho)
    return pl.pallas_call(
        _maxpool_kernel,
        grid=(n, ho // th),
        in_specs=[pl.BlockSpec((None, th, 2, wo, 2 * cp), lambda ni, hi: (ni, hi, 0, 0, 0))],
        out_specs=pl.BlockSpec((None, th, wo, cp), lambda ni, hi: (ni, hi, 0, 0)),
        out_shape=jax.ShapeDtypeStruct((n, ho, wo, cp), x.dtype),
        compiler_params=_compiler_params(),
    )(xr)


def add_layer(a, b):
    n, h, w, cp = a.shape
    th = _pick_tile(h)
    spec = pl.BlockSpec((None, th, w, cp), lambda ni, hi: (ni, hi, 0, 0))
    return pl.pallas_call(
        _add_kernel,
        grid=(n, h // th),
        in_specs=[spec, spec],
        out_specs=spec,
        out_shape=jax.ShapeDtypeStruct(a.shape, a.dtype),
        compiler_params=_compiler_params(),
    )(a, b)


def upsample_layer(x, s):
    # TODO(synk): fuse nearest-upsample + route into the consumer conv's input path
    #             (in-kernel row/col replication) instead of materializing in XLA.
    n, h, w, c = x.shape
    x = jnp.broadcast_to(x[:, :, None, :, None, :], (n, h, s, w, s, c))
    return x.reshape(n, h * s, w * s, c)


def yolo_layer(x, anchors, num_classes, img_dim):
    n_b, n_g, _, cp = x.shape
    n_a = len(anchors)
    attrs = 5 + num_classes
    assert n_a * attrs <= cp
    stride = img_dim / n_g

    # Per-lane multiplier: stride for x/y, raw anchor dims for w/h (exp(w)*(a_w/stride)*stride),
    # 1 for conf/cls and padded lanes.
    mult = [1.0] * cp
    for a, (aw, ah) in enumerate(anchors):
        base = a * attrs
        mult[base + 0] = float(stride)
        mult[base + 1] = float(stride)
        mult[base + 2] = float(aw)
        mult[base + 3] = float(ah)
    mult = jnp.asarray(mult, jnp.float32).reshape(1, 1, cp)

    th = _pick_tile(n_g)
    dec = pl.pallas_call(
        functools.partial(_yolo_kernel, attrs=attrs),
        grid=(n_b, n_g // th),
        in_specs=[pl.BlockSpec((None, th, n_g, cp), lambda ni, hi: (ni, hi, 0, 0)),
                  pl.BlockSpec((1, 1, cp), lambda ni, hi: (0, 0, 0))],
        out_specs=pl.BlockSpec((None, th, n_g, cp), lambda ni, hi: (ni, hi, 0, 0)),
        out_shape=jax.ShapeDtypeStruct((n_b, n_g, n_g, cp), jnp.float32),
        compiler_params=_compiler_params(),
    )(x, mult)

    # TODO(synk): emit anchor-major layout directly from the kernel's out_spec; the
    #             attrs=8 last dim would be lane-sparse, so keep this tiny XLA reshuffle.
    dec = dec[..., : n_a * attrs].reshape(n_b, n_g, n_g, n_a, attrs)
    dec = dec.transpose(0, 3, 1, 2, 4).reshape(n_b, n_a * n_g * n_g, attrs)
    return dec


# --------------------------------------------------------------------------
# Network definition (pre-parsed yolo .cfg equivalent) and parameter init
# --------------------------------------------------------------------------
MODULE_DEFS = [
    {'type': 'net', 'channels': '4', 'height': '16'},
    {'type': 'convolutional', 'batch_normalize': '1', 'filters': '8', 'size': '3',
     'stride': '1', 'pad': '1', 'activation': 'leaky'},                       # 0
    {'type': 'maxpool', 'size': '2', 'stride': '2'},                          # 1
    {'type': 'convolutional', 'batch_normalize': '1', 'filters': '16', 'size': '3',
     'stride': '1', 'pad': '1', 'activation': 'leaky'},                       # 2
    {'type': 'convolutional', 'batch_normalize': '1', 'filters': '16', 'size': '1',
     'stride': '1', 'pad': '1', 'activation': 'leaky'},                       # 3
    {'type': 'shortcut', 'from': '-2', 'activation': 'linear'},               # 4
    {'type': 'convolutional', 'batch_normalize': '0', 'filters': '16', 'size': '1',
     'stride': '1', 'pad': '1', 'activation': 'linear'},                      # 5 (head 1)
    {'type': 'yolo', 'mask': '0,1', 'anchors': '10,14, 23,27, 37,58, 81,82',
     'classes': '3', 'layer_no': '0'},                                        # 6
    {'type': 'route', 'layers': '-3'},                                        # 7
    {'type': 'upsample', 'stride': '2'},                                      # 8
    {'type': 'route', 'layers': '-1,-9'},                                     # 9
    {'type': 'convolutional', 'batch_normalize': '1', 'filters': '16', 'size': '3',
     'stride': '1', 'pad': '1', 'activation': 'leaky'},                       # 10
    {'type': 'convolutional', 'batch_normalize': '0', 'filters': '16', 'size': '1',
     'stride': '1', 'pad': '1', 'activation': 'linear'},                      # 11 (head 2)
    {'type': 'yolo', 'mask': '2,3', 'anchors': '10,14, 23,27, 37,58, 81,82',
     'classes': '3', 'layer_no': '1'},                                        # 12
]


def init_params(module_defs, key):
    """Deterministic parameters, pre-packed as a single lane-padded, K-stacked bf16
    weight slab per conv (k*k, sum(Cin_pad), Cout_pad) with the folded BN scale
    multiplied into the weights, plus an f32 shift row (1, Cout_pad)."""
    hyper = module_defs[0]
    mdefs = module_defs[1:]
    params = {}
    layer_sources = []                       # per layer: real channel composition of its output
    prev_sources = [int(hyper['channels'])]  # channel composition of the next conv's input

    for i, mdef in enumerate(mdefs):
        t = mdef['type']
        if t == 'convolutional':
            bn = int(mdef['batch_normalize'])
            filters = int(mdef['filters'])
            k = int(mdef['size'])
            cin_list = list(prev_sources)
            cin = sum(cin_list)
            key, k1, k2, k3, k4, k5 = jax.random.split(key, 6)
            w = 0.1 * jax.random.normal(k1, (filters, cin, k, k), jnp.float32)
            if bn:
                gamma = 1.0 + 0.1 * jax.random.normal(k2, (filters,), jnp.float32)
                beta = 0.1 * jax.random.normal(k3, (filters,), jnp.float32)
                r_mean = 0.1 * jax.random.normal(k4, (filters,), jnp.float32)
                r_var = 0.5 + jax.random.uniform(k5, (filters,), jnp.float32)
                scale = gamma / jnp.sqrt(r_var + BN_EPS)     # folded eval-mode BN
                shift = beta - r_mean * scale
            else:
                bias = 0.1 * jax.random.normal(k2, (filters,), jnp.float32)
                scale = jnp.ones((filters,), jnp.float32)
                shift = bias

            coutp = _round_up(filters, LANE)
            w_khwio = jnp.transpose(w, (2, 3, 1, 0))          # (k, k, cin, cout)
            w_khwio = w_khwio * scale[None, None, None, :]    # fold BN scale into weights
            kp_total = sum(_round_up(cs, LANE) for cs in cin_list)
            slab = jnp.zeros((k * k, kp_total, coutp), jnp.float32)
            off, offp = 0, 0
            for cs in cin_list:
                cinp = _round_up(cs, LANE)
                chunk = w_khwio[:, :, off:off + cs, :].reshape(k * k, cs, filters)
                slab = slab.at[:, offp:offp + cs, :filters].set(chunk)
                off += cs
                offp += cinp
            # padded output lanes get weight=shift=0 -> stay exactly zero downstream
            shift2d = jnp.zeros((1, coutp), jnp.float32).at[0, :filters].set(shift)
            params[i] = dict(w_slab=slab.astype(ACT_DTYPE), shift2d=shift2d)
            out_sources = [filters]
        elif t == 'route':
            idxs = [_resolve(i, int(v)) for v in mdef['layers'].split(',')]
            out_sources = []
            for li in idxs:
                out_sources += layer_sources[li]
        elif t == 'shortcut':
            out_sources = [sum(layer_sources[_resolve(i, int(mdef['from']))])]
        elif t in ('maxpool', 'upsample'):
            out_sources = [sum(prev_sources)]
        else:  # yolo
            out_sources = list(prev_sources)
        layer_sources.append(out_sources)
        prev_sources = out_sources
    return params


def _only_feeds_shortcut(mdefs, conv_idx, shortcut_idx):
    """True if layer `conv_idx`'s raw output is only consumed by the shortcut at `shortcut_idx`
    (and the implicit next layer), so the shortcut add can be fused into the conv epilogue."""
    for j, m in enumerate(mdefs):
        if j == shortcut_idx:
            continue
        if m['type'] == 'route':
            if conv_idx in [_resolve(j, int(v)) for v in m['layers'].split(',')]:
                return False
        elif m['type'] == 'shortcut':
            if _resolve(j, int(m['from'])) == conv_idx:
                return False
    return True


# --------------------------------------------------------------------------
# Darknet.forward (inference path, targets=None)
# --------------------------------------------------------------------------
def darknet_forward(x, params, module_defs):
    hyper = module_defs[0]
    img_dim = int(hyper['height'])
    mdefs = module_defs[1:]

    x = jnp.transpose(x, (0, 2, 3, 1))        # NCHW -> NHWC
    x = _pad_channels(x).astype(ACT_DTYPE)    # channel axis padded to 128 lanes, bf16 storage

    outputs = []
    layer_outputs = []
    skip_next = False
    for i, mdef in enumerate(mdefs):
        if skip_next:                         # shortcut already fused into previous conv
            skip_next = False
            layer_outputs.append(x)
            continue
        t = mdef['type']
        if t == 'convolutional':
            srcs = list(x) if isinstance(x, tuple) else [x]
            residual = None
            if (i + 1 < len(mdefs) and mdefs[i + 1]['type'] == 'shortcut'
                    and _only_feeds_shortcut(mdefs, i, i + 1)):
                frm = _resolve(i + 1, int(mdefs[i + 1]['from']))
                if 0 <= frm < i:
                    residual = _materialize(layer_outputs[frm])
            k = int(mdef['size'])
            x = conv_layer(
                srcs, params[i],
                k=k,
                pad=(k - 1) // 2 if int(mdef['pad']) else 0,
                stride=int(mdef['stride']),
                leaky=(mdef['activation'] == 'leaky'),
                residual=residual)
            if residual is not None:
                skip_next = True
        elif t == 'maxpool':
            # TODO(synk): fuse 2x2/2 maxpool into the preceding conv's epilogue
            #             (needs a sublane-strided select); standalone kernel kept.
            x = maxpool_layer(_materialize(x), int(mdef['size']), int(mdef['stride']))
        elif t == 'upsample':
            x = upsample_layer(_materialize(x), int(mdef['stride']))
        elif t == 'route':
            idxs = [_resolve(i, int(v)) for v in mdef['layers'].split(',')]
            srcs = []
            for li in idxs:
                o = layer_outputs[li]
                if isinstance(o, tuple):
                    srcs.extend(o)
                else:
                    srcs.append(o)
            x = tuple(srcs) if len(srcs) > 1 else srcs[0]   # virtual concat (fused into next conv)
        elif t == 'shortcut':
            frm = _resolve(i, int(mdef['from']))
            x = add_layer(_materialize(x), _materialize(layer_outputs[frm]))
        elif t == 'yolo':
            anchor_idxs = [int(v) for v in mdef['mask'].split(',')]
            av = [float(v) for v in mdef['anchors'].split(',')]
            anchors = [(av[j], av[j + 1]) for j in range(0, len(av), 2)]
            anchors = [anchors[j] for j in anchor_idxs]
            x = yolo_layer(_materialize(x), anchors, int(mdef['classes']), img_dim)
            outputs.append(x)
        layer_outputs.append(x)

    # TODO(synk): training branch (targets != None, boolean-mask BCE/MSE/CE losses) has no
    # clean static-shape Pallas equivalent and is not implemented.
    return jnp.concatenate(outputs, axis=1)


# --------------------------------------------------------------------------
if __name__ == "__main__":
    key = jax.random.PRNGKey(0)
    key, pkey, xkey = jax.random.split(key, 3)

    params = init_params(MODULE_DEFS, pkey)

    # NCHW input, matching nn.Conv2d convention: batch=2, channels=4, 16x16 image.
    x = jax.random.uniform(xkey, (2, 4, 16, 16), jnp.float32)

    fwd = jax.jit(functools.partial(darknet_forward, module_defs=MODULE_DEFS))
    out = jax.block_until_ready(fwd(x, params))

    # yolo head 1: 2 anchors * 8 * 8 = 128 preds; head 2: 2 * 16 * 16 = 512 preds.
    assert out.shape == (2, 640, 8), out.shape
    assert bool(jnp.all(jnp.isfinite(out)))
    print("KERNEL_OK")
</pallas_src>

<mosaic_0001>
module attributes {stable_mosaic.version = 11 : i64} {
  func.func @_conv_kernel(%arg0: i32, %arg1: i32, %arg2: memref<1x18x18x128xbf16, #tpu.memory_space<vmem>>, %arg3: memref<9x128x128xbf16, #tpu.memory_space<vmem>>, %arg4: memref<1x128xf32, #tpu.memory_space<vmem>>, %arg5: memref<1x16x16x128xbf16, #tpu.memory_space<vmem>>) attributes {dimension_semantics = [#tpu.dimension_semantics<parallel>, #tpu.dimension_semantics<parallel>], iteration_bounds = array<i64: 2, 1>, scalar_prefetch = 0 : i64, scratch_operands = 0 : i64, tpu.core_type = #tpu.core_type<tc>, window_params = [{transform_indices = @transform_0, window_bounds = array<i64: 1, 18, 18, 128>}, {pipeline_mode = #tpu.pipeline_mode<synchronous>, transform_indices = @transform_1, window_bounds = array<i64: 9, 128, 128>}, {pipeline_mode = #tpu.pipeline_mode<synchronous>, transform_indices = @transform_2, window_bounds = array<i64: 1, 128>}, {transform_indices = @transform_3, window_bounds = array<i64: 1, 16, 16, 128>}]} {
    %c16_i32 = arith.constant 16 : i32
    %0 = arith.muli %arg1, %c16_i32 : i32
    %1 = tpu.assume_multiple %0, 16 : i32
    %c0 = arith.constant 0 : index
    %2 = arith.index_cast %1 : i32 to index
    %c0_0 = arith.constant 0 : index
    %c0_1 = arith.constant 0 : index
    %3 = vector.load %arg2[%c0, %2, %c0_0, %c0_1] : memref<1x18x18x128xbf16, #tpu.memory_space<vmem>>, vector<1x18x18x128xbf16>
    %4 = vector.shape_cast %3 : vector<1x18x18x128xbf16> to vector<18x18x128xbf16>
    %c0_2 = arith.constant 0 : index
    %c0_3 = arith.constant 0 : index
    %5 = vector.load %arg4[%c0_2, %c0_3] : memref<1x128xf32, #tpu.memory_space<vmem>>, vector<1x128xf32>
    %6 = vector.shape_cast %5 : vector<1x128xf32> to vector<1x128xf32>
    %7 = vector.broadcast %6 : vector<1x128xf32> to vector<256x128xf32>
    %8 = vector.extract_strided_slice %4 {offsets = [0, 0, 0], sizes = [16, 16, 128], strides = [1, 1, 1]} : vector<18x18x128xbf16> to vector<16x16x128xbf16>
    %9 = vector.shape_cast %8 : vector<16x16x128xbf16> to vector<256x128xbf16>
    %c0_4 = arith.constant 0 : index
    %c0_5 = arith.constant 0 : index
    %c0_6 = arith.constant 0 : index
    %10 = vector.load %arg3[%c0_4, %c0_5, %c0_6] : memref<9x128x128xbf16, #tpu.memory_space<vmem>>, vector<1x128x128xbf16>
    %11 = vector.shape_cast %10 : vector<1x128x128xbf16> to vector<128x128xbf16>
    %cst = arith.constant dense<0.000000e+00> : vector<256x128xf32>
    %12 = tpu.matmul %9, %11, %cst {dimension_numbers = #tpu.dot_dimension_numbers<[1], [0], [0], [1], [0, 0, 1, 1], [], []>} : vector<256x128xbf16>, vector<128x128xbf16>, vector<256x128xf32> -> vector<256x128xf32>
    %13 = arith.addf %7, %12 : vector<256x128xf32>
    %14 = vector.extract_strided_slice %4 {offsets = [0, 1, 0], sizes = [16, 16, 128], strides = [1, 1, 1]} : vector<18x18x128xbf16> to vector<16x16x128xbf16>
    %15 = vector.shape_cast %14 : vector<16x16x128xbf16> to vector<256x128xbf16>
    %c1 = arith.constant 1 : index
    %c0_7 = arith.constant 0 : index
    %c0_8 = arith.constant 0 : index
    %16 = vector.load %arg3[%c1, %c0_7, %c0_8] : memref<9x128x128xbf16, #tpu.memory_space<vmem>>, vector<1x128x128xbf16>
    %17 = vector.shape_cast %16 : vector<1x128x128xbf16> to vector<128x128xbf16>
    %cst_9 = arith.constant dense<0.000000e+00> : vector<256x128xf32>
    %18 = tpu.matmul %15, %17, %cst_9 {dimension_numbers = #tpu.dot_dimension_numbers<[1], [0], [0], [1], [0, 0, 1, 1], [], []>} : vector<256x128xbf16>, vector<128x128xbf16>, vector<256x128xf32> -> vector<256x128xf32>
    %19 = arith.addf %13, %18 : vector<256x128xf32>
    %20 = vector.extract_strided_slice %4 {offsets = [0, 2, 0], sizes = [16, 16, 128], strides = [1, 1, 1]} : vector<18x18x128xbf16> to vector<16x16x128xbf16>
    %21 = vector.shape_cast %20 : vector<16x16x128xbf16> to vector<256x128xbf16>
    %c2 = arith.constant 2 : index
    %c0_10 = arith.constant 0 : index
    %c0_11 = arith.constant 0 : index
    %22 = vector.load %arg3[%c2, %c0_10, %c0_11] : memref<9x128x128xbf16, #tpu.memory_space<vmem>>, vector<1x128x128xbf16>
    %23 = vector.shape_cast %22 : vector<1x128x128xbf16> to vector<128x128xbf16>
    %cst_12 = arith.constant dense<0.000000e+00> : vector<256x128xf32>
    %24 = tpu.matmul %21, %23, %cst_12 {dimension_numbers = #tpu.dot_dimension_numbers<[1], [0], [0], [1], [0, 0, 1, 1], [], []>} : vector<256x128xbf16>, vector<128x128xbf16>, vector<256x128xf32> -> vector<256x128xf32>
    %25 = arith.addf %19, %24 : vector<256x128xf32>
    %26 = vector.extract_strided_slice %4 {offsets = [1, 0, 0], sizes = [16, 16, 128], strides = [1, 1, 1]} : vector<18x18x128xbf16> to vector<16x16x128xbf16>
    %27 = vector.shape_cast %26 : vector<16x16x128xbf16> to vector<256x128xbf16>
    %c3 = arith.constant 3 : index
    %c0_13 = arith.constant 0 : index
    %c0_14 = arith.constant 0 : index
    %28 = vector.load %arg3[%c3, %c0_13, %c0_14] : memref<9x128x128xbf16, #tpu.memory_space<vmem>>, vector<1x128x128xbf16>
    %29 = vector.shape_cast %28 : vector<1x128x128xbf16> to vector<128x128xbf16>
    %cst_15 = arith.constant dense<0.000000e+00> : vector<256x128xf32>
    %30 = tpu.matmul %27, %29, %cst_15 {dimension_numbers = #tpu.dot_dimension_numbers<[1], [0], [0], [1], [0, 0, 1, 1], [], []>} : vector<256x128xbf16>, vector<128x128xbf16>, vector<256x128xf32> -> vector<256x128xf32>
    %31 = arith.addf %25, %30 : vector<256x128xf32>
    %32 = vector.extract_strided_slice %4 {offsets = [1, 1, 0], sizes = [16, 16, 128], strides = [1, 1, 1]} : vector<18x18x128xbf16> to vector<16x16x128xbf16>
    %33 = vector.shape_cast %32 : vector<16x16x128xbf16> to vector<256x128xbf16>
    %c4 = arith.constant 4 : index
    %c0_16 = arith.constant 0 : index
    %c0_17 = arith.constant 0 : index
    %34 = vector.load %arg3[%c4, %c0_16, %c0_17] : memref<9x128x128xbf16, #tpu.memory_space<vmem>>, vector<1x128x128xbf16>
    %35 = vector.shape_cast %34 : vector<1x128x128xbf16> to vector<128x128xbf16>
    %cst_18 = arith.constant dense<0.000000e+00> : vector<256x128xf32>
    %36 = tpu.matmul %33, %35, %cst_18 {dimension_numbers = #tpu.dot_dimension_numbers<[1], [0], [0], [1], [0, 0, 1, 1], [], []>} : vector<256x128xbf16>, vector<128x128xbf16>, vector<256x128xf32> -> vector<256x128xf32>
    %37 = arith.addf %31, %36 : vector<256x128xf32>
    %38 = vector.extract_strided_slice %4 {offsets = [1, 2, 0], sizes = [16, 16, 128], strides = [1, 1, 1]} : vector<18x18x128xbf16> to vector<16x16x128xbf16>
    %39 = vector.shape_cast %38 : vector<16x16x128xbf16> to vector<256x128xbf16>
    %c5 = arith.constant 5 : index
    %c0_19 = arith.constant 0 : index
    %c0_20 = arith.constant 0 : index
    %40 = vector.load %arg3[%c5, %c0_19, %c0_20] : memref<9x128x128xbf16, #tpu.memory_space<vmem>>, vector<1x128x128xbf16>
    %41 = vector.shape_cast %40 : vector<1x128x128xbf16> to vector<128x128xbf16>
    %cst_21 = arith.constant dense<0.000000e+00> : vector<256x128xf32>
    %42 = tpu.matmul %39, %41, %cst_21 {dimension_numbers = #tpu.dot_dimension_numbers<[1], [0], [0], [1], [0, 0, 1, 1], [], []>} : vector<256x128xbf16>, vector<128x128xbf16>, vector<256x128xf32> -> vector<256x128xf32>
    %43 = arith.addf %37, %42 : vector<256x128xf32>
    %44 = vector.extract_strided_slice %4 {offsets = [2, 0, 0], sizes = [16, 16, 128], strides = [1, 1, 1]} : vector<18x18x128xbf16> to vector<16x16x128xbf16>
    %45 = vector.shape_cast %44 : vector<16x16x128xbf16> to vector<256x128xbf16>
    %c6 = arith.constant 6 : index
    %c0_22 = arith.constant 0 : index
    %c0_23 = arith.constant 0 : index
    %46 = vector.load %arg3[%c6, %c0_22, %c0_23] : memref<9x128x128xbf16, #tpu.memory_space<vmem>>, vector<1x128x128xbf16>
    %47 = vector.shape_cast %46 : vector<1x128x128xbf16> to vector<128x128xbf16>
    %cst_24 = arith.constant dense<0.000000e+00> : vector<256x128xf32>
    %48 = tpu.matmul %45, %47, %cst_24 {dimension_numbers = #tpu.dot_dimension_numbers<[1], [0], [0], [1], [0, 0, 1, 1], [], []>} : vector<256x128xbf16>, vector<128x128xbf16>, vector<256x128xf32> -> vector<256x128xf32>
    %49 = arith.addf %43, %48 : vector<256x128xf32>
    %50 = vector.extract_strided_slice %4 {offsets = [2, 1, 0], sizes = [16, 16, 128], strides = [1, 1, 1]} : vector<18x18x128xbf16> to vector<16x16x128xbf16>
    %51 = vector.shape_cast %50 : vector<16x16x128xbf16> to vector<256x128xbf16>
    %c7 = arith.constant 7 : index
    %c0_25 = arith.constant 0 : index
    %c0_26 = arith.constant 0 : index
    %52 = vector.load %arg3[%c7, %c0_25, %c0_26] : memref<9x128x128xbf16, #tpu.memory_space<vmem>>, vector<1x128x128xbf16>
    %53 = vector.shape_cast %52 : vector<1x128x128xbf16> to vector<128x128xbf16>
    %cst_27 = arith.constant dense<0.000000e+00> : vector<256x128xf32>
    %54 = tpu.matmul %51, %53, %cst_27 {dimension_numbers = #tpu.dot_dimension_numbers<[1], [0], [0], [1], [0, 0, 1, 1], [], []>} : vector<256x128xbf16>, vector<128x128xbf16>, vector<256x128xf32> -> vector<256x128xf32>
    %55 = arith.addf %49, %54 : vector<256x128xf32>
    %56 = vector.extract_strided_slice %4 {offsets = [2, 2, 0], sizes = [16, 16, 128], strides = [1, 1, 1]} : vector<18x18x128xbf16> to vector<16x16x128xbf16>
    %57 = vector.shape_cast %56 : vector<16x16x128xbf16> to vector<256x128xbf16>
    %c8 = arith.constant 8 : index
    %c0_28 = arith.constant 0 : index
    %c0_29 = arith.constant 0 : index
    %58 = vector.load %arg3[%c8, %c0_28, %c0_29] : memref<9x128x128xbf16, #tpu.memory_space<vmem>>, vector<1x128x128xbf16>
    %59 = vector.shape_cast %58 : vector<1x128x128xbf16> to vector<128x128xbf16>
    %cst_30 = arith.constant dense<0.000000e+00> : vector<256x128xf32>
    %60 = tpu.matmul %57, %59, %cst_30 {dimension_numbers = #tpu.dot_dimension_numbers<[1], [0], [0], [1], [0, 0, 1, 1], [], []>} : vector<256x128xbf16>, vector<128x128xbf16>, vector<256x128xf32> -> vector<256x128xf32>
    %61 = arith.addf %55, %60 : vector<256x128xf32>
    %cst_31 = arith.constant 1.000000e-01 : f32
    %62 = vector.broadcast %cst_31 : f32 to vector<256x128xf32>
    %63 = arith.mulf %62, %61 : vector<256x128xf32>
    %64 = arith.maximumf %61, %63 : vector<256x128xf32>
    %65 = vector.shape_cast %64 : vector<256x128xf32> to vector<16x16x128xf32>
    %66 = arith.truncf %65 : vector<16x16x128xf32> to vector<16x16x128xbf16>
    %c0_32 = arith.constant 0 : index
    %c0_33 = arith.constant 0 : index
    %c0_34 = arith.constant 0 : index
    %c0_35 = arith.constant 0 : index
    %67 = vector.load %arg5[%c0_32, %c0_33, %c0_34, %c0_35] : memref<1x16x16x128xbf16, #tpu.memory_space<vmem>>, vector<1x16x16x128xbf16>
    %68 = vector.shape_cast %67 : vector<1x16x16x128xbf16> to vector<16x16x128xbf16>
    %69 = vector.shape_cast %66 : vector<16x16x128xbf16> to vector<1x16x16x128xbf16>
    tpu.vector_store %arg5[%c0_32, %c0_33, %c0_34, %c0_35], %69 {strides = array<i32>} : memref<1x16x16x128xbf16, #tpu.memory_space<vmem>>, vector<1x16x16x128xbf16>,
    return
  }
  func.func @transform_0(%arg0: i32, %arg1: i32) -> (i32, i32, i32, i32) {
    %c0_i32 = arith.constant 0 : i32
    %c0_i32_0 = arith.constant 0 : i32
    %c0_i32_1 = arith.constant 0 : i32
    %c0_i32_2 = arith.constant 0 : i32
    return %arg0, %c0_i32, %c0_i32_0, %c0_i32_1 : i32, i32, i32, i32
  }
  func.func @transform_1(%arg0: i32, %arg1: i32) -> (i32, i32, i32) {
    %c0_i32 = arith.constant 0 : i32
    %c0_i32_0 = arith.constant 0 : i32
    %c0_i32_1 = arith.constant 0 : i32
    %c0_i32_2 = arith.constant 0 : i32
    return %c0_i32, %c0_i32_0, %c0_i32_1 : i32, i32, i32
  }
  func.func @transform_2(%arg0: i32, %arg1: i32) -> (i32, i32) {
    %c0_i32 = arith.constant 0 : i32
    %c0_i32_0 = arith.constant 0 : i32
    %c0_i32_1 = arith.constant 0 : i32
    return %c0_i32, %c0_i32_0 : i32, i32
  }
  func.func @transform_3(%arg0: i32, %arg1: i32) -> (i32, i32, i32, i32) {
    %c0_i32 = arith.constant 0 : i32
    %c0_i32_0 = arith.constant 0 : i32
    %c0_i32_1 = arith.constant 0 : i32
    return %arg0, %arg1, %c0_i32, %c0_i32_0 : i32, i32, i32, i32
  }
}

module attributes {stable_mosaic.version = 11 : i64} {
  func.func @_maxpool_kernel(%arg0: i32, %arg1: i32, %arg2: memref<1x8x2x8x256xbf16, #tpu.memory_space<vmem>>, %arg3: memref<1x8x8x128xbf16, #tpu.memory_space<vmem>>) attributes {dimension_semantics = [#tpu.dimension_semantics<parallel>, #tpu.dimension_semantics<parallel>], iteration_bounds = array<i64: 2, 1>, scalar_prefetch = 0 : i64, scratch_operands = 0 : i64, tpu.core_type = #tpu.core_type<tc>, window_params = [{transform_indices = @transform_0, window_bounds = array<i64: 1, 8, 2, 8, 256>}, {transform_indices = @transform_1, window_bounds = array<i64: 1, 8, 8, 128>}]} {
    %c0 = arith.constant 0 : index
    %c0_0 = arith.constant 0 : index
    %c0_1 = arith.constant 0 : index
    %c0_2 = arith.constant 0 : index
    %c0_3 = arith.constant 0 : index
    %0 = vector.load %arg2[%c0, %c0_0, %c0_1, %c0_2, %c0_3] : memref<1x8x2x8x256xbf16, #tpu.memory_space<vmem>>, vector<1x8x1x8x256xbf16>
    %1 = vector.shape_cast %0 : vector<1x8x1x8x256xbf16> to vector<8x8x256xbf16>
    %c0_4 = arith.constant 0 : index
    %c0_5 = arith.constant 0 : index
    %c1 = arith.constant 1 : index
    %c0_6 = arith.constant 0 : index
    %c0_7 = arith.constant 0 : index
    %2 = vector.load %arg2[%c0_4, %c0_5, %c1, %c0_6, %c0_7] : memref<1x8x2x8x256xbf16, #tpu.memory_space<vmem>>, vector<1x8x1x8x256xbf16>
    %3 = vector.shape_cast %2 : vector<1x8x1x8x256xbf16> to vector<8x8x256xbf16>
    %4 = arith.maximumf %1, %3 : vector<8x8x256xbf16>
    %5 = vector.extract_strided_slice %4 {offsets = [0, 0, 0], sizes = [8, 8, 128], strides = [1, 1, 1]} : vector<8x8x256xbf16> to vector<8x8x128xbf16>
    %6 = vector.extract_strided_slice %4 {offsets = [0, 0, 128], sizes = [8, 8, 128], strides = [1, 1, 1]} : vector<8x8x256xbf16> to vector<8x8x128xbf16>
    %7 = arith.maximumf %5, %6 : vector<8x8x128xbf16>
    %c0_8 = arith.constant 0 : index
    %c0_9 = arith.constant 0 : index
    %c0_10 = arith.constant 0 : index
    %c0_11 = arith.constant 0 : index
    %8 = vector.load %arg3[%c0_8, %c0_9, %c0_10, %c0_11] : memref<1x8x8x128xbf16, #tpu.memory_space<vmem>>, vector<1x8x8x128xbf16>
    %9 = vector.shape_cast %8 : vector<1x8x8x128xbf16> to vector<8x8x128xbf16>
    %10 = vector.shape_cast %7 : vector<8x8x128xbf16> to vector<1x8x8x128xbf16>
    tpu.vector_store %arg3[%c0_8, %c0_9, %c0_10, %c0_11], %10 {strides = array<i32>} : memref<1x8x8x128xbf16, #tpu.memory_space<vmem>>, vector<1x8x8x128xbf16>,
    return
  }
  func.func @transform_0(%arg0: i32, %arg1: i32) -> (i32, i32, i32, i32, i32) {
    %c0_i32 = arith.constant 0 : i32
    %c0_i32_0 = arith.constant 0 : i32
    %c0_i32_1 = arith.constant 0 : i32
    %c0_i32_2 = arith.constant 0 : i32
    return %arg0, %arg1, %c0_i32, %c0_i32_0, %c0_i32_1 : i32, i32, i32, i32, i32
  }
  func.func @transform_1(%arg0: i32, %arg1: i32) -> (i32, i32, i32, i32) {
    %c0_i32 = arith.constant 0 : i32
    %c0_i32_0 = arith.constant 0 : i32
    %c0_i32_1 = arith.constant 0 : i32
    return %arg0, %arg1, %c0_i32, %c0_i32_0 : i32, i32, i32, i32
  }
}

module attributes {stable_mosaic.version = 11 : i64} {
  func.func @_conv_kernel(%arg0: i32, %arg1: i32, %arg2: memref<1x10x10x128xbf16, #tpu.memory_space<vmem>>, %arg3: memref<9x128x128xbf16, #tpu.memory_space<vmem>>, %arg4: memref<1x128xf32, #tpu.memory_space<vmem>>, %arg5: memref<1x8x8x128xbf16, #tpu.memory_space<vmem>>) attributes {dimension_semantics = [#tpu.dimension_semantics<parallel>, #tpu.dimension_semantics<parallel>], iteration_bounds = array<i64: 2, 1>, scalar_prefetch = 0 : i64, scratch_operands = 0 : i64, tpu.core_type = #tpu.core_type<tc>, window_params = [{transform_indices = @transform_0, window_bounds = array<i64: 1, 10, 10, 128>}, {pipeline_mode = #tpu.pipeline_mode<synchronous>, transform_indices = @transform_1, window_bounds = array<i64: 9, 128, 128>}, {pipeline_mode = #tpu.pipeline_mode<synchronous>, transform_indices = @transform_2, window_bounds = array<i64: 1, 128>}, {transform_indices = @transform_3, window_bounds = array<i64: 1, 8, 8, 128>}]} {
    %c8_i32 = arith.constant 8 : i32
    %0 = arith.muli %arg1, %c8_i32 : i32
    %1 = tpu.assume_multiple %0, 8 : i32
    %c0 = arith.constant 0 : index
    %2 = arith.index_cast %1 : i32 to index
    %c0_0 = arith.constant 0 : index
    %c0_1 = arith.constant 0 : index
    %3 = vector.load %arg2[%c0, %2, %c0_0, %c0_1] : memref<1x10x10x128xbf16, #tpu.memory_space<vmem>>, vector<1x10x10x128xbf16>
    %4 = vector.shape_cast %3 : vector<1x10x10x128xbf16> to vector<10x10x128xbf16>
    %c0_2 = arith.constant 0 : index
    %c0_3 = arith.constant 0 : index
    %5 = vector.load %arg4[%c0_2, %c0_3] : memref<1x128xf32, #tpu.memory_space<vmem>>, vector<1x128xf32>
    %6 = vector.shape_cast %5 : vector<1x128xf32> to vector<1x128xf32>
    %7 = vector.broadcast %6 : vector<1x128xf32> to vector<64x128xf32>
    %8 = vector.extract_strided_slice %4 {offsets = [0, 0, 0], sizes = [8, 8, 128], strides = [1, 1, 1]} : vector<10x10x128xbf16> to vector<8x8x128xbf16>
    %9 = vector.shape_cast %8 : vector<8x8x128xbf16> to vector<64x128xbf16>
    %c0_4 = arith.constant 0 : index
    %c0_5 = arith.constant 0 : index
    %c0_6 = arith.constant 0 : index
    %10 = vector.load %arg3[%c0_4, %c0_5, %c0_6] : memref<9x128x128xbf16, #tpu.memory_space<vmem>>, vector<1x128x128xbf16>
    %11 = vector.shape_cast %10 : vector<1x128x128xbf16> to vector<128x128xbf16>
    %cst = arith.constant dense<0.000000e+00> : vector<64x128xf32>
    %12 = tpu.matmul %9, %11, %cst {dimension_numbers = #tpu.dot_dimension_numbers<[1], [0], [0], [1], [0, 0, 1, 1], [], []>} : vector<64x128xbf16>, vector<128x128xbf16>, vector<64x128xf32> -> vector<64x128xf32>
    %13 = arith.addf %7, %12 : vector<64x128xf32>
    %14 = vector.extract_strided_slice %4 {offsets = [0, 1, 0], sizes = [8, 8, 128], strides = [1, 1, 1]} : vector<10x10x128xbf16> to vector<8x8x128xbf16>
    %15 = vector.shape_cast %14 : vector<8x8x128xbf16> to vector<64x128xbf16>
    %c1 = arith.constant 1 : index
    %c0_7 = arith.constant 0 : index
    %c0_8 = arith.constant 0 : index
    %16 = vector.load %arg3[%c1, %c0_7, %c0_8] : memref<9x128x128xbf16, #tpu.memory_space<vmem>>, vector<1x128x128xbf16>
    %17 = vector.shape_cast %16 : vector<1x128x128xbf16> to vector<128x128xbf16>
    %cst_9 = arith.constant dense<0.000000e+00> : vector<64x128xf32>
    %18 = tpu.matmul %15, %17, %cst_9 {dimension_numbers = #tpu.dot_dimension_numbers<[1], [0], [0], [1], [0, 0, 1, 1], [], []>} : vector<64x128xbf16>, vector<128x128xbf16>, vector<64x128xf32> -> vector<64x128xf32>
    %19 = arith.addf %13, %18 : vector<64x128xf32>
    %20 = vector.extract_strided_slice %4 {offsets = [0, 2, 0], sizes = [8, 8, 128], strides = [1, 1, 1]} : vector<10x10x128xbf16> to vector<8x8x128xbf16>
    %21 = vector.shape_cast %20 : vector<8x8x128xbf16> to vector<64x128xbf16>
    %c2 = arith.constant 2 : index
    %c0_10 = arith.constant 0 : index
    %c0_11 = arith.constant 0 : index
    %22 = vector.load %arg3[%c2, %c0_10, %c0_11] : memref<9x128x128xbf16, #tpu.memory_space<vmem>>, vector<1x128x128xbf16>
    %23 = vector.shape_cast %22 : vector<1x128x128xbf16> to vector<128x128xbf16>
    %cst_12 = arith.constant dense<0.000000e+00> : vector<64x128xf32>
    %24 = tpu.matmul %21, %23, %cst_12 {dimension_numbers = #tpu.dot_dimension_numbers<[1], [0], [0], [1], [0, 0, 1, 1], [], []>} : vector<64x128xbf16>, vector<128x128xbf16>, vector<64x128xf32> -> vector<64x128xf32>
    %25 = arith.addf %19, %24 : vector<64x128xf32>
    %26 = vector.extract_strided_slice %4 {offsets = [1, 0, 0], sizes = [8, 8, 128], strides = [1, 1, 1]} : vector<10x10x128xbf16> to vector<8x8x128xbf16>
    %27 = vector.shape_cast %26 : vector<8x8x128xbf16> to vector<64x128xbf16>
    %c3 = arith.constant 3 : index
    %c0_13 = arith.constant 0 : index
    %c0_14 = arith.constant 0 : index
    %28 = vector.load %arg3[%c3, %c0_13, %c0_14] : memref<9x128x128xbf16, #tpu.memory_space<vmem>>, vector<1x128x128xbf16>
    %29 = vector.shape_cast %28 : vector<1x128x128xbf16> to vector<128x128xbf16>
    %cst_15 = arith.constant dense<0.000000e+00> : vector<64x128xf32>
    %30 = tpu.matmul %27, %29, %cst_15 {dimension_numbers = #tpu.dot_dimension_numbers<[1], [0], [0], [1], [0, 0, 1, 1], [], []>} : vector<64x128xbf16>, vector<128x128xbf16>, vector<64x128xf32> -> vector<64x128xf32>
    %31 = arith.addf %25, %30 : vector<64x128xf32>
    %32 = vector.extract_strided_slice %4 {offsets = [1, 1, 0], sizes = [8, 8, 128], strides = [1, 1, 1]} : vector<10x10x128xbf16> to vector<8x8x128xbf16>
    %33 = vector.shape_cast %32 : vector<8x8x128xbf16> to vector<64x128xbf16>
    %c4 = arith.constant 4 : index
    %c0_16 = arith.constant 0 : index
    %c0_17 = arith.constant 0 : index
    %34 = vector.load %arg3[%c4, %c0_16, %c0_17] : memref<9x128x128xbf16, #tpu.memory_space<vmem>>, vector<1x128x128xbf16>
    %35 = vector.shape_cast %34 : vector<1x128x128xbf16> to vector<128x128xbf16>
    %cst_18 = arith.constant dense<0.000000e+00> : vector<64x128xf32>
    %36 = tpu.matmul %33, %35, %cst_18 {dimension_numbers = #tpu.dot_dimension_numbers<[1], [0], [0], [1], [0, 0, 1, 1], [], []>} : vector<64x128xbf16>, vector<128x128xbf16>, vector<64x128xf32> -> vector<64x128xf32>
    %37 = arith.addf %31, %36 : vector<64x128xf32>
    %38 = vector.extract_strided_slice %4 {offsets = [1, 2, 0], sizes = [8, 8, 128], strides = [1, 1, 1]} : vector<10x10x128xbf16> to vector<8x8x128xbf16>
    %39 = vector.shape_cast %38 : vector<8x8x128xbf16> to vector<64x128xbf16>
    %c5 = arith.constant 5 : index
    %c0_19 = arith.constant 0 : index
    %c0_20 = arith.constant 0 : index
    %40 = vector.load %arg3[%c5, %c0_19, %c0_20] : memref<9x128x128xbf16, #tpu.memory_space<vmem>>, vector<1x128x128xbf16>
    %41 = vector.shape_cast %40 : vector<1x128x128xbf16> to vector<128x128xbf16>
    %cst_21 = arith.constant dense<0.000000e+00> : vector<64x128xf32>
    %42 = tpu.matmul %39, %41, %cst_21 {dimension_numbers = #tpu.dot_dimension_numbers<[1], [0], [0], [1], [0, 0, 1, 1], [], []>} : vector<64x128xbf16>, vector<128x128xbf16>, vector<64x128xf32> -> vector<64x128xf32>
    %43 = arith.addf %37, %42 : vector<64x128xf32>
    %44 = vector.extract_strided_slice %4 {offsets = [2, 0, 0], sizes = [8, 8, 128], strides = [1, 1, 1]} : vector<10x10x128xbf16> to vector<8x8x128xbf16>
    %45 = vector.shape_cast %44 : vector<8x8x128xbf16> to vector<64x128xbf16>
    %c6 = arith.constant 6 : index
    %c0_22 = arith.constant 0 : index
    %c0_23 = arith.constant 0 : index
    %46 = vector.load %arg3[%c6, %c0_22, %c0_23] : memref<9x128x128xbf16, #tpu.memory_space<vmem>>, vector<1x128x128xbf16>
    %47 = vector.shape_cast %46 : vector<1x128x128xbf16> to vector<128x128xbf16>
    %cst_24 = arith.constant dense<0.000000e+00> : vector<64x128xf32>
    %48 = tpu.matmul %45, %47, %cst_24 {dimension_numbers = #tpu.dot_dimension_numbers<[1], [0], [0], [1], [0, 0, 1, 1], [], []>} : vector<64x128xbf16>, vector<128x128xbf16>, vector<64x128xf32> -> vector<64x128xf32>
    %49 = arith.addf %43, %48 : vector<64x128xf32>
    %50 = vector.extract_strided_slice %4 {offsets = [2, 1, 0], sizes = [8, 8, 128], strides = [1, 1, 1]} : vector<10x10x128xbf16> to vector<8x8x128xbf16>
    %51 = vector.shape_cast %50 : vector<8x8x128xbf16> to vector<64x128xbf16>
    %c7 = arith.constant 7 : index
    %c0_25 = arith.constant 0 : index
    %c0_26 = arith.constant 0 : index
    %52 = vector.load %arg3[%c7, %c0_25, %c0_26] : memref<9x128x128xbf16, #tpu.memory_space<vmem>>, vector<1x128x128xbf16>
    %53 = vector.shape_cast %52 : vector<1x128x128xbf16> to vector<128x128xbf16>
    %cst_27 = arith.constant dense<0.000000e+00> : vector<64x128xf32>
    %54 = tpu.matmul %51, %53, %cst_27 {dimension_numbers = #tpu.dot_dimension_numbers<[1], [0], [0], [1], [0, 0, 1, 1], [], []>} : vector<64x128xbf16>, vector<128x128xbf16>, vector<64x128xf32> -> vector<64x128xf32>
    %55 = arith.addf %49, %54 : vector<64x128xf32>
    %56 = vector.extract_strided_slice %4 {offsets = [2, 2, 0], sizes = [8, 8, 128], strides = [1, 1, 1]} : vector<10x10x128xbf16> to vector<8x8x128xbf16>
    %57 = vector.shape_cast %56 : vector<8x8x128xbf16> to vector<64x128xbf16>
    %c8 = arith.constant 8 : index
    %c0_28 = arith.constant 0 : index
    %c0_29 = arith.constant 0 : index
    %58 = vector.load %arg3[%c8, %c0_28, %c0_29] : memref<9x128x128xbf16, #tpu.memory_space<vmem>>, vector<1x128x128xbf16>
    %59 = vector.shape_cast %58 : vector<1x128x128xbf16> to vector<128x128xbf16>
    %cst_30 = arith.constant dense<0.000000e+00> : vector<64x128xf32>
    %60 = tpu.matmul %57, %59, %cst_30 {dimension_numbers = #tpu.dot_dimension_numbers<[1], [0], [0], [1], [0, 0, 1, 1], [], []>} : vector<64x128xbf16>, vector<128x128xbf16>, vector<64x128xf32> -> vector<64x128xf32>
    %61 = arith.addf %55, %60 : vector<64x128xf32>
    %cst_31 = arith.constant 1.000000e-01 : f32
    %62 = vector.broadcast %cst_31 : f32 to vector<64x128xf32>
    %63 = arith.mulf %62, %61 : vector<64x128xf32>
    %64 = arith.maximumf %61, %63 : vector<64x128xf32>
    %65 = vector.shape_cast %64 : vector<64x128xf32> to vector<8x8x128xf32>
    %66 = arith.truncf %65 : vector<8x8x128xf32> to vector<8x8x128xbf16>
    %c0_32 = arith.constant 0 : index
    %c0_33 = arith.constant 0 : index
    %c0_34 = arith.constant 0 : index
    %c0_35 = arith.constant 0 : index
    %67 = vector.load %arg5[%c0_32, %c0_33, %c0_34, %c0_35] : memref<1x8x8x128xbf16, #tpu.memory_space<vmem>>, vector<1x8x8x128xbf16>
    %68 = vector.shape_cast %67 : vector<1x8x8x128xbf16> to vector<8x8x128xbf16>
    %69 = vector.shape_cast %66 : vector<8x8x128xbf16> to vector<1x8x8x128xbf16>
    tpu.vector_store %arg5[%c0_32, %c0_33, %c0_34, %c0_35], %69 {strides = array<i32>} : memref<1x8x8x128xbf16, #tpu.memory_space<vmem>>, vector<1x8x8x128xbf16>,
    return
  }
  func.func @transform_0(%arg0: i32, %arg1: i32) -> (i32, i32, i32, i32) {
    %c0_i32 = arith.constant 0 : i32
    %c0_i32_0 = arith.constant 0 : i32
    %c0_i32_1 = arith.constant 0 : i32
    %c0_i32_2 = arith.constant 0 : i32
    return %arg0, %c0_i32, %c0_i32_0, %c0_i32_1 : i32, i32, i32, i32
  }
  func.func @transform_1(%arg0: i32, %arg1: i32) -> (i32, i32, i32) {
    %c0_i32 = arith.constant 0 : i32
    %c0_i32_0 = arith.constant 0 : i32
    %c0_i32_1 = arith.constant 0 : i32
    %c0_i32_2 = arith.constant 0 : i32
    return %c0_i32, %c0_i32_0, %c0_i32_1 : i32, i32, i32
  }
  func.func @transform_2(%arg0: i32, %arg1: i32) -> (i32, i32) {
    %c0_i32 = arith.constant 0 : i32
    %c0_i32_0 = arith.constant 0 : i32
    %c0_i32_1 = arith.constant 0 : i32
    return %c0_i32, %c0_i32_0 : i32, i32
  }
  func.func @transform_3(%arg0: i32, %arg1: i32) -> (i32, i32, i32, i32) {
    %c0_i32 = arith.constant 0 : i32
    %c0_i32_0 = arith.constant 0 : i32
    %c0_i32_1 = arith.constant 0 : i32
    return %arg0, %arg1, %c0_i32, %c0_i32_0 : i32, i32, i32, i32
  }
}

module attributes {stable_mosaic.version = 11 : i64} {
  func.func @_conv_kernel(%arg0: i32, %arg1: i32, %arg2: memref<1x8x8x128xbf16, #tpu.memory_space<vmem>>, %arg3: memref<1x128x128xbf16, #tpu.memory_space<vmem>>, %arg4: memref<1x128xf32, #tpu.memory_space<vmem>>, %arg5: memref<1x8x8x128xbf16, #tpu.memory_space<vmem>>, %arg6: memref<1x8x8x128xbf16, #tpu.memory_space<vmem>>) attributes {dimension_semantics = [#tpu.dimension_semantics<parallel>, #tpu.dimension_semantics<parallel>], iteration_bounds = array<i64: 2, 1>, scalar_prefetch = 0 : i64, scratch_operands = 0 : i64, tpu.core_type = #tpu.core_type<tc>, window_params = [{transform_indices = @transform_0, window_bounds = array<i64: 1, 8, 8, 128>}, {pipeline_mode = #tpu.pipeline_mode<synchronous>, transform_indices = @transform_1, window_bounds = array<i64: 1, 128, 128>}, {pipeline_mode = #tpu.pipeline_mode<synchronous>, transform_indices = @transform_2, window_bounds = array<i64: 1, 128>}, {transform_indices = @transform_3, window_bounds = array<i64: 1, 8, 8, 128>}, {transform_indices = @transform_4, window_bounds = array<i64: 1, 8, 8, 128>}]} {
    %c8_i32 = arith.constant 8 : i32
    %0 = arith.muli %arg1, %c8_i32 : i32
    %1 = tpu.assume_multiple %0, 8 : i32
    %c0 = arith.constant 0 : index
    %2 = arith.index_cast %1 : i32 to index
    %c0_0 = arith.constant 0 : index
    %c0_1 = arith.constant 0 : index
    %3 = vector.load %arg2[%c0, %2, %c0_0, %c0_1] : memref<1x8x8x128xbf16, #tpu.memory_space<vmem>>, vector<1x8x8x128xbf16>
    %4 = vector.shape_cast %3 : vector<1x8x8x128xbf16> to vector<8x8x128xbf16>
    %c0_2 = arith.constant 0 : index
    %c0_3 = arith.constant 0 : index
    %5 = vector.load %arg4[%c0_2, %c0_3] : memref<1x128xf32, #tpu.memory_space<vmem>>, vector<1x128xf32>
    %6 = vector.shape_cast %5 : vector<1x128xf32> to vector<1x128xf32>
    %7 = vector.broadcast %6 : vector<1x128xf32> to vector<64x128xf32>
    %8 = vector.shape_cast %4 : vector<8x8x128xbf16> to vector<64x128xbf16>
    %c0_4 = arith.constant 0 : index
    %c0_5 = arith.constant 0 : index
    %c0_6 = arith.constant 0 : index
    %9 = vector.load %arg3[%c0_4, %c0_5, %c0_6] : memref<1x128x128xbf16, #tpu.memory_space<vmem>>, vector<1x128x128xbf16>
    %10 = vector.shape_cast %9 : vector<1x128x128xbf16> to vector<128x128xbf16>
    %cst = arith.constant dense<0.000000e+00> : vector<64x128xf32>
    %11 = tpu.matmul %8, %10, %cst {dimension_numbers = #tpu.dot_dimension_numbers<[1], [0], [0], [1], [0, 0, 1, 1], [], []>} : vector<64x128xbf16>, vector<128x128xbf16>, vector<64x128xf32> -> vector<64x128xf32>
    %12 = arith.addf %7, %11 : vector<64x128xf32>
    %cst_7 = arith.constant 1.000000e-01 : f32
    %13 = vector.broadcast %cst_7 : f32 to vector<64x128xf32>
    %14 = arith.mulf %13, %12 : vector<64x128xf32>
    %15 = arith.maximumf %12, %14 : vector<64x128xf32>
    %16 = vector.shape_cast %15 : vector<64x128xf32> to vector<8x8x128xf32>
    %c0_8 = arith.constant 0 : index
    %c0_9 = arith.constant 0 : index
    %c0_10 = arith.constant 0 : index
    %c0_11 = arith.constant 0 : index
    %17 = vector.load %arg5[%c0_8, %c0_9, %c0_10, %c0_11] : memref<1x8x8x128xbf16, #tpu.memory_space<vmem>>, vector<1x8x8x128xbf16>
    %18 = vector.shape_cast %17 : vector<1x8x8x128xbf16> to vector<8x8x128xbf16>
    %19 = arith.extf %18 : vector<8x8x128xbf16> to vector<8x8x128xf32>
    %20 = arith.addf %16, %19 : vector<8x8x128xf32>
    %21 = arith.truncf %20 : vector<8x8x128xf32> to vector<8x8x128xbf16>
    %c0_12 = arith.constant 0 : index
    %c0_13 = arith.constant 0 : index
    %c0_14 = arith.constant 0 : index
    %c0_15 = arith.constant 0 : index
    %22 = vector.load %arg6[%c0_12, %c0_13, %c0_14, %c0_15] : memref<1x8x8x128xbf16, #tpu.memory_space<vmem>>, vector<1x8x8x128xbf16>
    %23 = vector.shape_cast %22 : vector<1x8x8x128xbf16> to vector<8x8x128xbf16>
    %24 = vector.shape_cast %21 : vector<8x8x128xbf16> to vector<1x8x8x128xbf16>
    tpu.vector_store %arg6[%c0_12, %c0_13, %c0_14, %c0_15], %24 {strides = array<i32>} : memref<1x8x8x128xbf16, #tpu.memory_space<vmem>>, vector<1x8x8x128xbf16>,
    return
  }
  func.func @transform_0(%arg0: i32, %arg1: i32) -> (i32, i32, i32, i32) {
    %c0_i32 = arith.constant 0 : i32
    %c0_i32_0 = arith.constant 0 : i32
    %c0_i32_1 = arith.constant 0 : i32
    %c0_i32_2 = arith.constant 0 : i32
    return %arg0, %c0_i32, %c0_i32_0, %c0_i32_1 : i32, i32, i32, i32
  }
  func.func @transform_1(%arg0: i32, %arg1: i32) -> (i32, i32, i32) {
    %c0_i32 = arith.constant 0 : i32
    %c0_i32_0 = arith.constant 0 : i32
    %c0_i32_1 = arith.constant 0 : i32
    %c0_i32_2 = arith.constant 0 : i32
    return %c0_i32, %c0_i32_0, %c0_i32_1 : i32, i32, i32
  }
  func.func @transform_2(%arg0: i32, %arg1: i32) -> (i32, i32) {
    %c0_i32 = arith.constant 0 : i32
    %c0_i32_0 = arith.constant 0 : i32
    %c0_i32_1 = arith.constant 0 : i32
    return %c0_i32, %c0_i32_0 : i32, i32
  }
  func.func @transform_3(%arg0: i32, %arg1: i32) -> (i32, i32, i32, i32) {
    %c0_i32 = arith.constant 0 : i32
    %c0_i32_0 = arith.constant 0 : i32
    %c0_i32_1 = arith.constant 0 : i32
    return %arg0, %arg1, %c0_i32, %c0_i32_0 : i32, i32, i32, i32
  }
  func.func @transform_4(%arg0: i32, %arg1: i32) -> (i32, i32, i32, i32) {
    %c0_i32 = arith.constant 0 : i32
    %c0_i32_0 = arith.constant 0 : i32
    %c0_i32_1 = arith.constant 0 : i32
    return %arg0, %arg1, %c0_i32, %c0_i32_0 : i32, i32, i32, i32
  }
}

module attributes {stable_mosaic.version = 11 : i64} {
  func.func @_conv_kernel(%arg0: i32, %arg1: i32, %arg2: memref<1x8x8x128xbf16, #tpu.memory_space<vmem>>, %arg3: memref<1x128x128xbf16, #tpu.memory_space<vmem>>, %arg4: memref<1x128xf32, #tpu.memory_space<vmem>>, %arg5: memref<1x8x8x128xbf16, #tpu.memory_space<vmem>>) attributes {dimension_semantics = [#tpu.dimension_semantics<parallel>, #tpu.dimension_semantics<parallel>], iteration_bounds = array<i64: 2, 1>, scalar_prefetch = 0 : i64, scratch_operands = 0 : i64, tpu.core_type = #tpu.core_type<tc>, window_params = [{transform_indices = @transform_0, window_bounds = array<i64: 1, 8, 8, 128>}, {pipeline_mode = #tpu.pipeline_mode<synchronous>, transform_indices = @transform_1, window_bounds = array<i64: 1, 128, 128>}, {pipeline_mode = #tpu.pipeline_mode<synchronous>, transform_indices = @transform_2, window_bounds = array<i64: 1, 128>}, {transform_indices = @transform_3, window_bounds = array<i64: 1, 8, 8, 128>}]} {
    %c8_i32 = arith.constant 8 : i32
    %0 = arith.muli %arg1, %c8_i32 : i32
    %1 = tpu.assume_multiple %0, 8 : i32
    %c0 = arith.constant 0 : index
    %2 = arith.index_cast %1 : i32 to index
    %c0_0 = arith.constant 0 : index
    %c0_1 = arith.constant 0 : index
    %3 = vector.load %arg2[%c0, %2, %c0_0, %c0_1] : memref<1x8x8x128xbf16, #tpu.memory_space<vmem>>, vector<1x8x8x128xbf16>
    %4 = vector.shape_cast %3 : vector<1x8x8x128xbf16> to vector<8x8x128xbf16>
    %c0_2 = arith.constant 0 : index
    %c0_3 = arith.constant 0 : index
    %5 = vector.load %arg4[%c0_2, %c0_3] : memref<1x128xf32, #tpu.memory_space<vmem>>, vector<1x128xf32>
    %6 = vector.shape_cast %5 : vector<1x128xf32> to vector<1x128xf32>
    %7 = vector.broadcast %6 : vector<1x128xf32> to vector<64x128xf32>
    %8 = vector.shape_cast %4 : vector<8x8x128xbf16> to vector<64x128xbf16>
    %c0_4 = arith.constant 0 : index
    %c0_5 = arith.constant 0 : index
    %c0_6 = arith.constant 0 : index
    %9 = vector.load %arg3[%c0_4, %c0_5, %c0_6] : memref<1x128x128xbf16, #tpu.memory_space<vmem>>, vector<1x128x128xbf16>
    %10 = vector.shape_cast %9 : vector<1x128x128xbf16> to vector<128x128xbf16>
    %cst = arith.constant dense<0.000000e+00> : vector<64x128xf32>
    %11 = tpu.matmul %8, %10, %cst {dimension_numbers = #tpu.dot_dimension_numbers<[1], [0], [0], [1], [0, 0, 1, 1], [], []>} : vector<64x128xbf16>, vector<128x128xbf16>, vector<64x128xf32> -> vector<64x128xf32>
    %12 = arith.addf %7, %11 : vector<64x128xf32>
    %13 = vector.shape_cast %12 : vector<64x128xf32> to vector<8x8x128xf32>
    %14 = arith.truncf %13 : vector<8x8x128xf32> to vector<8x8x128xbf16>
    %c0_7 = arith.constant 0 : index
    %c0_8 = arith.constant 0 : index
    %c0_9 = arith.constant 0 : index
    %c0_10 = arith.constant 0 : index
    %15 = vector.load %arg5[%c0_7, %c0_8, %c0_9, %c0_10] : memref<1x8x8x128xbf16, #tpu.memory_space<vmem>>, vector<1x8x8x128xbf16>
    %16 = vector.shape_cast %15 : vector<1x8x8x128xbf16> to vector<8x8x128xbf16>
    %17 = vector.shape_cast %14 : vector<8x8x128xbf16> to vector<1x8x8x128xbf16>
    tpu.vector_store %arg5[%c0_7, %c0_8, %c0_9, %c0_10], %17 {strides = array<i32>} : memref<1x8x8x128xbf16, #tpu.memory_space<vmem>>, vector<1x8x8x128xbf16>,
    return
  }
  func.func @transform_0(%arg0: i32, %arg1: i32) -> (i32, i32, i32, i32) {
    %c0_i32 = arith.constant 0 : i32
    %c0_i32_0 = arith.constant 0 : i32
    %c0_i32_1 = arith.constant 0 : i32
    %c0_i32_2 = arith.constant 0 : i32
    return %arg0, %c0_i32, %c0_i32_0, %c0_i32_1 : i32, i32, i32, i32
  }
  func.func @transform_1(%arg0: i32, %arg1: i32) -> (i32, i32, i32) {
    %c0_i32 = arith.constant 0 : i32
    %c0_i32_0 = arith.constant 0 : i32
    %c0_i32_1 = arith.constant 0 : i32
    %c0_i32_2 = arith.constant 0 : i32
    return %c0_i32, %c0_i32_0, %c0_i32_1 : i32, i32, i32
  }
  func.func @transform_2(%arg0: i32, %arg1: i32) -> (i32, i32) {
    %c0_i32 = arith.constant 0 : i32
    %c0_i32_0 = arith.constant 0 : i32
    %c0_i32_1 = arith.constant 0 : i32
    return %c0_i32, %c0_i32_0 : i32, i32
  }
  func.func @transform_3(%arg0: i32, %arg1: i32) -> (i32, i32, i32, i32) {
    %c0_i32 = arith.constant 0 : i32
    %c0_i32_0 = arith.constant 0 : i32
    %c0_i32_1 = arith.constant 0 : i32
    return %arg0, %arg1, %c0_i32, %c0_i32_0 : i32, i32, i32, i32
  }
}

module attributes {stable_mosaic.version = 11 : i64} {
  func.func @_yolo_kernel(%arg0: i32, %arg1: i32, %arg2: memref<1x8x8x128xbf16, #tpu.memory_space<vmem>>, %arg3: memref<1x1x128xf32, #tpu.memory_space<vmem>>, %arg4: memref<1x8x8x128xf32, #tpu.memory_space<vmem>>) attributes {dimension_semantics = [#tpu.dimension_semantics<parallel>, #tpu.dimension_semantics<parallel>], iteration_bounds = array<i64: 2, 1>, scalar_prefetch = 0 : i64, scratch_operands = 0 : i64, tpu.core_type = #tpu.core_type<tc>, window_params = [{transform_indices = @transform_0, window_bounds = array<i64: 1, 8, 8, 128>}, {pipeline_mode = #tpu.pipeline_mode<synchronous>, transform_indices = @transform_1, window_bounds = array<i64: 1, 1, 128>}, {transform_indices = @transform_2, window_bounds = array<i64: 1, 8, 8, 128>}]} {
    %c0 = arith.constant 0 : index
    %c0_0 = arith.constant 0 : index
    %c0_1 = arith.constant 0 : index
    %c0_2 = arith.constant 0 : index
    %0 = vector.load %arg2[%c0, %c0_0, %c0_1, %c0_2] : memref<1x8x8x128xbf16, #tpu.memory_space<vmem>>, vector<1x8x8x128xbf16>
    %1 = vector.shape_cast %0 : vector<1x8x8x128xbf16> to vector<8x8x128xbf16>
    %2 = arith.extf %1 : vector<8x8x128xbf16> to vector<8x8x128xf32>
    %3 = tpu.iota {dimensions = array<i32: 0>} : vector<8x8x128xi32>
    %4 = arith.sitofp %3 : vector<8x8x128xi32> to vector<8x8x128xf32>
    %c8_i32 = arith.constant 8 : i32
    %5 = arith.muli %arg1, %c8_i32 : i32
    %6 = arith.sitofp %5 : i32 to f32
    %7 = vector.broadcast %6 : f32 to vector<8x8x128xf32>
    %8 = arith.addf %4, %7 : vector<8x8x128xf32>
    %9 = tpu.iota {dimensions = array<i32: 1>} : vector<8x8x128xi32>
    %10 = arith.sitofp %9 : vector<8x8x128xi32> to vector<8x8x128xf32>
    %11 = tpu.iota {dimensions = array<i32: 2>} : vector<8x8x128xi32>
    %c8_i32_3 = arith.constant 8 : i32
    %c0_i32 = arith.constant 0 : i32
    %12 = arith.cmpi eq, %c8_i32_3, %c0_i32 : i32
    %c1_i32 = arith.constant 1 : i32
    %13 = arith.select %12, %c1_i32, %c8_i32_3 : i32
    %14 = vector.broadcast %13 : i32 to vector<8x8x128xi32>
    %15 = arith.remsi %11, %14 : vector<8x8x128xi32>
    %c0_i32_4 = arith.constant 0 : i32
    %16 = vector.broadcast %c0_i32_4 : i32 to vector<8x8x128xi32>
    %17 = arith.cmpi ne, %15, %16 : vector<8x8x128xi32>
    %c0_i32_5 = arith.constant 0 : i32
    %18 = vector.broadcast %c0_i32_5 : i32 to vector<8x8x128xi32>
    %19 = arith.cmpi slt, %15, %18 : vector<8x8x128xi32>
    %c0_i32_6 = arith.constant 0 : i32
    %20 = arith.cmpi slt, %13, %c0_i32_6 : i32
    %21 = vector.broadcast %20 : i1 to vector<8x8x128xi1>
    %22 = vector.broadcast %21 : vector<8x8x128xi1> to vector<8x8x128xi1>
    %23 = arith.xori %19, %22 : vector<8x8x128xi1>
    %24 = arith.andi %23, %17 : vector<8x8x128xi1>
    %25 = vector.broadcast %13 : i32 to vector<8x8x128xi32>
    %26 = arith.addi %15, %25 : vector<8x8x128xi32>
    %27 = arith.select %24, %26, %15 : vector<8x8x128xi1>, vector<8x8x128xi32>
    %28 = arith.negf %2 : vector<8x8x128xf32>
    %29 = math.exp %28 : vector<8x8x128xf32>
    %cst = arith.constant 1.000000e+00 : f32
    %30 = vector.broadcast %cst : f32 to vector<8x8x128xf32>
    %31 = arith.addf %30, %29 : vector<8x8x128xf32>
    %32 = arith.divf %30, %31 : vector<8x8x128xf32>
    %c2_i32 = arith.constant 2 : i32
    %33 = vector.broadcast %c2_i32 : i32 to vector<8x8x128xi32>
    %34 = arith.cmpi eq, %27, %33 : vector<8x8x128xi32>
    %c3_i32 = arith.constant 3 : i32
    %35 = vector.broadcast %c3_i32 : i32 to vector<8x8x128xi32>
    %36 = arith.cmpi eq, %27, %35 : vector<8x8x128xi32>
    %37 = arith.ori %34, %36 : vector<8x8x128xi1>
    %cst_7 = arith.constant 0.000000e+00 : f32
    %38 = vector.broadcast %cst_7 : f32 to vector<8x8x128xf32>
    %39 = arith.select %37, %2, %38 : vector<8x8x128xi1>, vector<8x8x128xf32>
    %40 = math.exp %39 : vector<8x8x128xf32>
    %c0_i32_8 = arith.constant 0 : i32
    %41 = vector.broadcast %c0_i32_8 : i32 to vector<8x8x128xi32>
    %42 = arith.cmpi eq, %27, %41 : vector<8x8x128xi32>
    %cst_9 = arith.constant 0.000000e+00 : f32
    %43 = vector.broadcast %cst_9 : f32 to vector<8x8x128xf32>
    %44 = arith.select %42, %10, %43 : vector<8x8x128xi1>, vector<8x8x128xf32>
    %c1_i32_10 = arith.constant 1 : i32
    %45 = vector.broadcast %c1_i32_10 : i32 to vector<8x8x128xi32>
    %46 = arith.cmpi eq, %27, %45 : vector<8x8x128xi32>
    %cst_11 = arith.constant 0.000000e+00 : f32
    %47 = vector.broadcast %cst_11 : f32 to vector<8x8x128xf32>
    %48 = arith.select %46, %8, %47 : vector<8x8x128xi1>, vector<8x8x128xf32>
    %49 = arith.addf %44, %48 : vector<8x8x128xf32>
    %50 = arith.addf %32, %49 : vector<8x8x128xf32>
    %51 = arith.select %37, %40, %50 : vector<8x8x128xi1>, vector<8x8x128xf32>
    %c0_12 = arith.constant 0 : index
    %c0_13 = arith.constant 0 : index
    %c0_14 = arith.constant 0 : index
    %52 = vector.load %arg3[%c0_12, %c0_13, %c0_14] : memref<1x1x128xf32, #tpu.memory_space<vmem>>, vector<1x1x128xf32>
    %53 = vector.broadcast %52 : vector<1x1x128xf32> to vector<8x8x128xf32>
    %54 = arith.mulf %51, %53 : vector<8x8x128xf32>
    %c0_15 = arith.constant 0 : index
    %c0_16 = arith.constant 0 : index
    %c0_17 = arith.constant 0 : index
    %c0_18 = arith.constant 0 : index
    %55 = vector.load %arg4[%c0_15, %c0_16, %c0_17, %c0_18] : memref<1x8x8x128xf32, #tpu.memory_space<vmem>>, vector<1x8x8x128xf32>
    %56 = vector.shape_cast %55 : vector<1x8x8x128xf32> to vector<8x8x128xf32>
    %57 = vector.shape_cast %54 : vector<8x8x128xf32> to vector<1x8x8x128xf32>
    tpu.vector_store %arg4[%c0_15, %c0_16, %c0_17, %c0_18], %57 {strides = array<i32>} : memref<1x8x8x128xf32, #tpu.memory_space<vmem>>, vector<1x8x8x128xf32>,
    return
  }
  func.func @transform_0(%arg0: i32, %arg1: i32) -> (i32, i32, i32, i32) {
    %c0_i32 = arith.constant 0 : i32
    %c0_i32_0 = arith.constant 0 : i32
    %c0_i32_1 = arith.constant 0 : i32
    return %arg0, %arg1, %c0_i32, %c0_i32_0 : i32, i32, i32, i32
  }
  func.func @transform_1(%arg0: i32, %arg1: i32) -> (i32, i32, i32) {
    %c0_i32 = arith.constant 0 : i32
    %c0_i32_0 = arith.constant 0 : i32
    %c0_i32_1 = arith.constant 0 : i32
    %c0_i32_2 = arith.constant 0 : i32
    return %c0_i32, %c0_i32_0, %c0_i32_1 : i32, i32, i32
  }
  func.func @transform_2(%arg0: i32, %arg1: i32) -> (i32, i32, i32, i32) {
    %c0_i32 = arith.constant 0 : i32
    %c0_i32_0 = arith.constant 0 : i32
    %c0_i32_1 = arith.constant 0 : i32
    return %arg0, %arg1, %c0_i32, %c0_i32_0 : i32, i32, i32, i32
  }
}

module attributes {stable_mosaic.version = 11 : i64} {
  func.func @_yolo_kernel(%arg0: i32, %arg1: i32, %arg2: memref<1x16x16x128xbf16, #tpu.memory_space<vmem>>, %arg3: memref<1x1x128xf32, #tpu.memory_space<vmem>>, %arg4: memref<1x16x16x128xf32, #tpu.memory_space<vmem>>) attributes {dimension_semantics = [#tpu.dimension_semantics<parallel>, #tpu.dimension_semantics<parallel>], iteration_bounds = array<i64: 2, 1>, scalar_prefetch = 0 : i64, scratch_operands = 0 : i64, tpu.core_type = #tpu.core_type<tc>, window_params = [{transform_indices = @transform_0, window_bounds = array<i64: 1, 16, 16, 128>}, {pipeline_mode = #tpu.pipeline_mode<synchronous>, transform_indices = @transform_1, window_bounds = array<i64: 1, 1, 128>}, {transform_indices = @transform_2, window_bounds = array<i64: 1, 16, 16, 128>}]} {
    %c0 = arith.constant 0 : index
    %c0_0 = arith.constant 0 : index
    %c0_1 = arith.constant 0 : index
    %c0_2 = arith.constant 0 : index
    %0 = vector.load %arg2[%c0, %c0_0, %c0_1, %c0_2] : memref<1x16x16x128xbf16, #tpu.memory_space<vmem>>, vector<1x16x16x128xbf16>
    %1 = vector.shape_cast %0 : vector<1x16x16x128xbf16> to vector<16x16x128xbf16>
    %2 = arith.extf %1 : vector<16x16x128xbf16> to vector<16x16x128xf32>
    %3 = tpu.iota {dimensions = array<i32: 0>} : vector<16x16x128xi32>
    %4 = arith.sitofp %3 : vector<16x16x128xi32> to vector<16x16x128xf32>
    %c16_i32 = arith.constant 16 : i32
    %5 = arith.muli %arg1, %c16_i32 : i32
    %6 = arith.sitofp %5 : i32 to f32
    %7 = vector.broadcast %6 : f32 to vector<16x16x128xf32>
    %8 = arith.addf %4, %7 : vector<16x16x128xf32>
    %9 = tpu.iota {dimensions = array<i32: 1>} : vector<16x16x128xi32>
    %10 = arith.sitofp %9 : vector<16x16x128xi32> to vector<16x16x128xf32>
    %11 = tpu.iota {dimensions = array<i32: 2>} : vector<16x16x128xi32>
    %c8_i32 = arith.constant 8 : i32
    %c0_i32 = arith.constant 0 : i32
    %12 = arith.cmpi eq, %c8_i32, %c0_i32 : i32
    %c1_i32 = arith.constant 1 : i32
    %13 = arith.select %12, %c1_i32, %c8_i32 : i32
    %14 = vector.broadcast %13 : i32 to vector<16x16x128xi32>
    %15 = arith.remsi %11, %14 : vector<16x16x128xi32>
    %c0_i32_3 = arith.constant 0 : i32
    %16 = vector.broadcast %c0_i32_3 : i32 to vector<16x16x128xi32>
    %17 = arith.cmpi ne, %15, %16 : vector<16x16x128xi32>
    %c0_i32_4 = arith.constant 0 : i32
    %18 = vector.broadcast %c0_i32_4 : i32 to vector<16x16x128xi32>
    %19 = arith.cmpi slt, %15, %18 : vector<16x16x128xi32>
    %c0_i32_5 = arith.constant 0 : i32
    %20 = arith.cmpi slt, %13, %c0_i32_5 : i32
    %21 = vector.broadcast %20 : i1 to vector<16x16x128xi1>
    %22 = vector.broadcast %21 : vector<16x16x128xi1> to vector<16x16x128xi1>
    %23 = arith.xori %19, %22 : vector<16x16x128xi1>
    %24 = arith.andi %23, %17 : vector<16x16x128xi1>
    %25 = vector.broadcast %13 : i32 to vector<16x16x128xi32>
    %26 = arith.addi %15, %25 : vector<16x16x128xi32>
    %27 = arith.select %24, %26, %15 : vector<16x16x128xi1>, vector<16x16x128xi32>
    %28 = arith.negf %2 : vector<16x16x128xf32>
    %29 = math.exp %28 : vector<16x16x128xf32>
    %cst = arith.constant 1.000000e+00 : f32
    %30 = vector.broadcast %cst : f32 to vector<16x16x128xf32>
    %31 = arith.addf %30, %29 : vector<16x16x128xf32>
    %32 = arith.divf %30, %31 : vector<16x16x128xf32>
    %c2_i32 = arith.constant 2 : i32
    %33 = vector.broadcast %c2_i32 : i32 to vector<16x16x128xi32>
    %34 = arith.cmpi eq, %27, %33 : vector<16x16x128xi32>
    %c3_i32 = arith.constant 3 : i32
    %35 = vector.broadcast %c3_i32 : i32 to vector<16x16x128xi32>
    %36 = arith.cmpi eq, %27, %35 : vector<16x16x128xi32>
    %37 = arith.ori %34, %36 : vector<16x16x128xi1>
    %cst_6 = arith.constant 0.000000e+00 : f32
    %38 = vector.broadcast %cst_6 : f32 to vector<16x16x128xf32>
    %39 = arith.select %37, %2, %38 : vector<16x16x128xi1>, vector<16x16x128xf32>
    %40 = math.exp %39 : vector<16x16x128xf32>
    %c0_i32_7 = arith.constant 0 : i32
    %41 = vector.broadcast %c0_i32_7 : i32 to vector<16x16x128xi32>
    %42 = arith.cmpi eq, %27, %41 : vector<16x16x128xi32>
    %cst_8 = arith.constant 0.000000e+00 : f32
    %43 = vector.broadcast %cst_8 : f32 to vector<16x16x128xf32>
    %44 = arith.select %42, %10, %43 : vector<16x16x128xi1>, vector<16x16x128xf32>
    %c1_i32_9 = arith.constant 1 : i32
    %45 = vector.broadcast %c1_i32_9 : i32 to vector<16x16x128xi32>
    %46 = arith.cmpi eq, %27, %45 : vector<16x16x128xi32>
    %cst_10 = arith.constant 0.000000e+00 : f32
    %47 = vector.broadcast %cst_10 : f32 to vector<16x16x128xf32>
    %48 = arith.select %46, %8, %47 : vector<16x16x128xi1>, vector<16x16x128xf32>
    %49 = arith.addf %44, %48 : vector<16x16x128xf32>
    %50 = arith.addf %32, %49 : vector<16x16x128xf32>
    %51 = arith.select %37, %40, %50 : vector<16x16x128xi1>, vector<16x16x128xf32>
    %c0_11 = arith.constant 0 : index
    %c0_12 = arith.constant 0 : index
    %c0_13 = arith.constant 0 : index
    %52 = vector.load %arg3[%c0_11, %c0_12, %c0_13] : memref<1x1x128xf32, #tpu.memory_space<vmem>>, vector<1x1x128xf32>
    %53 = vector.broadcast %52 : vector<1x1x128xf32> to vector<16x16x128xf32>
    %54 = arith.mulf %51, %53 : vector<16x16x128xf32>
    %c0_14 = arith.constant 0 : index
    %c0_15 = arith.constant 0 : index
    %c0_16 = arith.constant 0 : index
    %c0_17 = arith.constant 0 : index
    %55 = vector.load %arg4[%c0_14, %c0_15, %c0_16, %c0_17] : memref<1x16x16x128xf32, #tpu.memory_space<vmem>>, vector<1x16x16x128xf32>
    %56 = vector.shape_cast %55 : vector<1x16x16x128xf32> to vector<16x16x128xf32>
    %57 = vector.shape_cast %54 : vector<16x16x128xf32> to vector<1x16x16x128xf32>
    tpu.vector_store %arg4[%c0_14, %c0_15, %c0_16, %c0_17], %57 {strides = array<i32>} : memref<1x16x16x128xf32, #tpu.memory_space<vmem>>, vector<1x16x16x128xf32>,
    return
  }
  func.func @transform_0(%arg0: i32, %arg1: i32) -> (i32, i32, i32, i32) {
    %c0_i32 = arith.constant 0 : i32
    %c0_i32_0 = arith.constant 0 : i32
    %c0_i32_1 = arith.constant 0 : i32
    return %arg0, %arg1, %c0_i32, %c0_i32_0 : i32, i32, i32, i32
  }
  func.func @transform_1(%arg0: i32, %arg1: i32) -> (i32, i32, i32) {
    %c0_i32 = arith.constant 0 : i32
    %c0_i32_0 = arith.constant 0 : i32
    %c0_i32_1 = arith.constant 0 : i32
    %c0_i32_2 = arith.constant 0 : i32
    return %c0_i32, %c0_i32_0, %c0_i32_1 : i32, i32, i32
  }
  func.func @transform_2(%arg0: i32, %arg1: i32) -> (i32, i32, i32, i32) {
    %c0_i32 = arith.constant 0 : i32
    %c0_i32_0 = arith.constant 0 : i32
    %c0_i32_1 = arith.constant 0 : i32
    return %arg0, %arg1, %c0_i32, %c0_i32_0 : i32, i32, i32, i32
  }
}

module attributes {stable_mosaic.version = 11 : i64} {
  func.func @_conv_kernel(%arg0: i32, %arg1: i32, %arg2: memref<1x16x16x128xbf16, #tpu.memory_space<vmem>>, %arg3: memref<1x128x128xbf16, #tpu.memory_space<vmem>>, %arg4: memref<1x128xf32, #tpu.memory_space<vmem>>, %arg5: memref<1x16x16x128xbf16, #tpu.memory_space<vmem>>) attributes {dimension_semantics = [#tpu.dimension_semantics<parallel>, #tpu.dimension_semantics<parallel>], iteration_bounds = array<i64: 2, 1>, scalar_prefetch = 0 : i64, scratch_operands = 0 : i64, tpu.core_type = #tpu.core_type<tc>, window_params = [{transform_indices = @transform_0, window_bounds = array<i64: 1, 16, 16, 128>}, {pipeline_mode = #tpu.pipeline_mode<synchronous>, transform_indices = @transform_1, window_bounds = array<i64: 1, 128, 128>}, {pipeline_mode = #tpu.pipeline_mode<synchronous>, transform_indices = @transform_2, window_bounds = array<i64: 1, 128>}, {transform_indices = @transform_3, window_bounds = array<i64: 1, 16, 16, 128>}]} {
    %c16_i32 = arith.constant 16 : i32
    %0 = arith.muli %arg1, %c16_i32 : i32
    %1 = tpu.assume_multiple %0, 16 : i32
    %c0 = arith.constant 0 : index
    %2 = arith.index_cast %1 : i32 to index
    %c0_0 = arith.constant 0 : index
    %c0_1 = arith.constant 0 : index
    %3 = vector.load %arg2[%c0, %2, %c0_0, %c0_1] : memref<1x16x16x128xbf16, #tpu.memory_space<vmem>>, vector<1x16x16x128xbf16>
    %4 = vector.shape_cast %3 : vector<1x16x16x128xbf16> to vector<16x16x128xbf16>
    %c0_2 = arith.constant 0 : index
    %c0_3 = arith.constant 0 : index
    %5 = vector.load %arg4[%c0_2, %c0_3] : memref<1x128xf32, #tpu.memory_space<vmem>>, vector<1x128xf32>
    %6 = vector.shape_cast %5 : vector<1x128xf32> to vector<1x128xf32>
    %7 = vector.broadcast %6 : vector<1x128xf32> to vector<256x128xf32>
    %8 = vector.shape_cast %4 : vector<16x16x128xbf16> to vector<256x128xbf16>
    %c0_4 = arith.constant 0 : index
    %c0_5 = arith.constant 0 : index
    %c0_6 = arith.constant 0 : index
    %9 = vector.load %arg3[%c0_4, %c0_5, %c0_6] : memref<1x128x128xbf16, #tpu.memory_space<vmem>>, vector<1x128x128xbf16>
    %10 = vector.shape_cast %9 : vector<1x128x128xbf16> to vector<128x128xbf16>
    %cst = arith.constant dense<0.000000e+00> : vector<256x128xf32>
    %11 = tpu.matmul %8, %10, %cst {dimension_numbers = #tpu.dot_dimension_numbers<[1], [0], [0], [1], [0, 0, 1, 1], [], []>} : vector<256x128xbf16>, vector<128x128xbf16>, vector<256x128xf32> -> vector<256x128xf32>
    %12 = arith.addf %7, %11 : vector<256x128xf32>
    %13 = vector.shape_cast %12 : vector<256x128xf32> to vector<16x16x128xf32>
    %14 = arith.truncf %13 : vector<16x16x128xf32> to vector<16x16x128xbf16>
    %c0_7 = arith.constant 0 : index
    %c0_8 = arith.constant 0 : index
    %c0_9 = arith.constant 0 : index
    %c0_10 = arith.constant 0 : index
    %15 = vector.load %arg5[%c0_7, %c0_8, %c0_9, %c0_10] : memref<1x16x16x128xbf16, #tpu.memory_space<vmem>>, vector<1x16x16x128xbf16>
    %16 = vector.shape_cast %15 : vector<1x16x16x128xbf16> to vector<16x16x128xbf16>
    %17 = vector.shape_cast %14 : vector<16x16x128xbf16> to vector<1x16x16x128xbf16>
    tpu.vector_store %arg5[%c0_7, %c0_8, %c0_9, %c0_10], %17 {strides = array<i32>} : memref<1x16x16x128xbf16, #tpu.memory_space<vmem>>, vector<1x16x16x128xbf16>,
    return
  }
  func.func @transform_0(%arg0: i32, %arg1: i32) -> (i32, i32, i32, i32) {
    %c0_i32 = arith.constant 0 : i32
    %c0_i32_0 = arith.constant 0 : i32
    %c0_i32_1 = arith.constant 0 : i32
    %c0_i32_2 = arith.constant 0 : i32
    return %arg0, %c0_i32, %c0_i32_0, %c0_i32_1 : i32, i32, i32, i32
  }
  func.func @transform_1(%arg0: i32, %arg1: i32) -> (i32, i32, i32) {
    %c0_i32 = arith.constant 0 : i32
    %c0_i32_0 = arith.constant 0 : i32
    %c0_i32_1 = arith.constant 0 : i32
    %c0_i32_2 = arith.constant 0 : i32
    return %c0_i32, %c0_i32_0, %c0_i32_1 : i32, i32, i32
  }
  func.func @transform_2(%arg0: i32, %arg1: i32) -> (i32, i32) {
    %c0_i32 = arith.constant 0 : i32
    %c0_i32_0 = arith.constant 0 : i32
    %c0_i32_1 = arith.constant 0 : i32
    return %c0_i32, %c0_i32_0 : i32, i32
  }
  func.func @transform_3(%arg0: i32, %arg1: i32) -> (i32, i32, i32, i32) {
    %c0_i32 = arith.constant 0 : i32
    %c0_i32_0 = arith.constant 0 : i32
    %c0_i32_1 = arith.constant 0 : i32
    return %arg0, %arg1, %c0_i32, %c0_i32_0 : i32, i32, i32, i32
  }
}

module attributes {stable_mosaic.version = 11 : i64} {
  func.func @_conv_kernel(%arg0: i32, %arg1: i32, %arg2: memref<1x18x18x128xbf16, #tpu.memory_space<vmem>>, %arg3: memref<1x18x18x128xbf16, #tpu.memory_space<vmem>>, %arg4: memref<9x256x128xbf16, #tpu.memory_space<vmem>>, %arg5: memref<1x128xf32, #tpu.memory_space<vmem>>, %arg6: memref<1x16x16x128xbf16, #tpu.memory_space<vmem>>) attributes {dimension_semantics = [#tpu.dimension_semantics<parallel>, #tpu.dimension_semantics<parallel>], iteration_bounds = array<i64: 2, 1>, scalar_prefetch = 0 : i64, scratch_operands = 0 : i64, tpu.core_type = #tpu.core_type<tc>, window_params = [{transform_indices = @transform_0, window_bounds = array<i64: 1, 18, 18, 128>}, {transform_indices = @transform_1, window_bounds = array<i64: 1, 18, 18, 128>}, {pipeline_mode = #tpu.pipeline_mode<synchronous>, transform_indices = @transform_2, window_bounds = array<i64: 9, 256, 128>}, {pipeline_mode = #tpu.pipeline_mode<synchronous>, transform_indices = @transform_3, window_bounds = array<i64: 1, 128>}, {transform_indices = @transform_4, window_bounds = array<i64: 1, 16, 16, 128>}]} {
    %c16_i32 = arith.constant 16 : i32
    %0 = arith.muli %arg1, %c16_i32 : i32
    %1 = tpu.assume_multiple %0, 16 : i32
    %c0 = arith.constant 0 : index
    %2 = arith.index_cast %1 : i32 to index
    %c0_0 = arith.constant 0 : index
    %c0_1 = arith.constant 0 : index
    %3 = vector.load %arg2[%c0, %2, %c0_0, %c0_1] : memref<1x18x18x128xbf16, #tpu.memory_space<vmem>>, vector<1x18x18x128xbf16>
    %4 = vector.shape_cast %3 : vector<1x18x18x128xbf16> to vector<18x18x128xbf16>
    %c0_2 = arith.constant 0 : index
    %5 = arith.index_cast %1 : i32 to index
    %c0_3 = arith.constant 0 : index
    %c0_4 = arith.constant 0 : index
    %6 = vector.load %arg3[%c0_2, %5, %c0_3, %c0_4] : memref<1x18x18x128xbf16, #tpu.memory_space<vmem>>, vector<1x18x18x128xbf16>
    %7 = vector.shape_cast %6 : vector<1x18x18x128xbf16> to vector<18x18x128xbf16>
    %8 = tpu.concatenate %4, %7 in 2 : vector<18x18x128xbf16>, vector<18x18x128xbf16> -> vector<18x18x256xbf16>
    %c0_5 = arith.constant 0 : index
    %c0_6 = arith.constant 0 : index
    %9 = vector.load %arg5[%c0_5, %c0_6] : memref<1x128xf32, #tpu.memory_space<vmem>>, vector<1x128xf32>
    %10 = vector.shape_cast %9 : vector<1x128xf32> to vector<1x128xf32>
    %11 = vector.broadcast %10 : vector<1x128xf32> to vector<256x128xf32>
    %12 = vector.extract_strided_slice %8 {offsets = [0, 0, 0], sizes = [16, 16, 256], strides = [1, 1, 1]} : vector<18x18x256xbf16> to vector<16x16x256xbf16>
    %13 = vector.shape_cast %12 : vector<16x16x256xbf16> to vector<256x256xbf16>
    %c0_7 = arith.constant 0 : index
    %c0_8 = arith.constant 0 : index
    %c0_9 = arith.constant 0 : index
    %14 = vector.load %arg4[%c0_7, %c0_8, %c0_9] : memref<9x256x128xbf16, #tpu.memory_space<vmem>>, vector<1x256x128xbf16>
    %15 = vector.shape_cast %14 : vector<1x256x128xbf16> to vector<256x128xbf16>
    %cst = arith.constant dense<0.000000e+00> : vector<256x128xf32>
    %16 = tpu.matmul %13, %15, %cst {dimension_numbers = #tpu.dot_dimension_numbers<[1], [0], [0], [1], [0, 0, 1, 1], [], []>} : vector<256x256xbf16>, vector<256x128xbf16>, vector<256x128xf32> -> vector<256x128xf32>
    %17 = arith.addf %11, %16 : vector<256x128xf32>
    %18 = vector.extract_strided_slice %8 {offsets = [0, 1, 0], sizes = [16, 16, 256], strides = [1, 1, 1]} : vector<18x18x256xbf16> to vector<16x16x256xbf16>
    %19 = vector.shape_cast %18 : vector<16x16x256xbf16> to vector<256x256xbf16>
    %c1 = arith.constant 1 : index
    %c0_10 = arith.constant 0 : index
    %c0_11 = arith.constant 0 : index
    %20 = vector.load %arg4[%c1, %c0_10, %c0_11] : memref<9x256x128xbf16, #tpu.memory_space<vmem>>, vector<1x256x128xbf16>
    %21 = vector.shape_cast %20 : vector<1x256x128xbf16> to vector<256x128xbf16>
    %cst_12 = arith.constant dense<0.000000e+00> : vector<256x128xf32>
    %22 = tpu.matmul %19, %21, %cst_12 {dimension_numbers = #tpu.dot_dimension_numbers<[1], [0], [0], [1], [0, 0, 1, 1], [], []>} : vector<256x256xbf16>, vector<256x128xbf16>, vector<256x128xf32> -> vector<256x128xf32>
    %23 = arith.addf %17, %22 : vector<256x128xf32>
    %24 = vector.extract_strided_slice %8 {offsets = [0, 2, 0], sizes = [16, 16, 256], strides = [1, 1, 1]} : vector<18x18x256xbf16> to vector<16x16x256xbf16>
    %25 = vector.shape_cast %24 : vector<16x16x256xbf16> to vector<256x256xbf16>
    %c2 = arith.constant 2 : index
    %c0_13 = arith.constant 0 : index
    %c0_14 = arith.constant 0 : index
    %26 = vector.load %arg4[%c2, %c0_13, %c0_14] : memref<9x256x128xbf16, #tpu.memory_space<vmem>>, vector<1x256x128xbf16>
    %27 = vector.shape_cast %26 : vector<1x256x128xbf16> to vector<256x128xbf16>
    %cst_15 = arith.constant dense<0.000000e+00> : vector<256x128xf32>
    %28 = tpu.matmul %25, %27, %cst_15 {dimension_numbers = #tpu.dot_dimension_numbers<[1], [0], [0], [1], [0, 0, 1, 1], [], []>} : vector<256x256xbf16>, vector<256x128xbf16>, vector<256x128xf32> -> vector<256x128xf32>
    %29 = arith.addf %23, %28 : vector<256x128xf32>
    %30 = vector.extract_strided_slice %8 {offsets = [1, 0, 0], sizes = [16, 16, 256], strides = [1, 1, 1]} : vector<18x18x256xbf16> to vector<16x16x256xbf16>
    %31 = vector.shape_cast %30 : vector<16x16x256xbf16> to vector<256x256xbf16>
    %c3 = arith.constant 3 : index
    %c0_16 = arith.constant 0 : index
    %c0_17 = arith.constant 0 : index
    %32 = vector.load %arg4[%c3, %c0_16, %c0_17] : memref<9x256x128xbf16, #tpu.memory_space<vmem>>, vector<1x256x128xbf16>
    %33 = vector.shape_cast %32 : vector<1x256x128xbf16> to vector<256x128xbf16>
    %cst_18 = arith.constant dense<0.000000e+00> : vector<256x128xf32>
    %34 = tpu.matmul %31, %33, %cst_18 {dimension_numbers = #tpu.dot_dimension_numbers<[1], [0], [0], [1], [0, 0, 1, 1], [], []>} : vector<256x256xbf16>, vector<256x128xbf16>, vector<256x128xf32> -> vector<256x128xf32>
    %35 = arith.addf %29, %34 : vector<256x128xf32>
    %36 = vector.extract_strided_slice %8 {offsets = [1, 1, 0], sizes = [16, 16, 256], strides = [1, 1, 1]} : vector<18x18x256xbf16> to vector<16x16x256xbf16>
    %37 = vector.shape_cast %36 : vector<16x16x256xbf16> to vector<256x256xbf16>
    %c4 = arith.constant 4 : index
    %c0_19 = arith.constant 0 : index
    %c0_20 = arith.constant 0 : index
    %38 = vector.load %arg4[%c4, %c0_19, %c0_20] : memref<9x256x128xbf16, #tpu.memory_space<vmem>>, vector<1x256x128xbf16>
    %39 = vector.shape_cast %38 : vector<1x256x128xbf16> to vector<256x128xbf16>
    %cst_21 = arith.constant dense<0.000000e+00> : vector<256x128xf32>
    %40 = tpu.matmul %37, %39, %cst_21 {dimension_numbers = #tpu.dot_dimension_numbers<[1], [0], [0], [1], [0, 0, 1, 1], [], []>} : vector<256x256xbf16>, vector<256x128xbf16>, vector<256x128xf32> -> vector<256x128xf32>
    %41 = arith.addf %35, %40 : vector<256x128xf32>
    %42 = vector.extract_strided_slice %8 {offsets = [1, 2, 0], sizes = [16, 16, 256], strides = [1, 1, 1]} : vector<18x18x256xbf16> to vector<16x16x256xbf16>
    %43 = vector.shape_cast %42 : vector<16x16x256xbf16> to vector<256x256xbf16>
    %c5 = arith.constant 5 : index
    %c0_22 = arith.constant 0 : index
    %c0_23 = arith.constant 0 : index
    %44 = vector.load %arg4[%c5, %c0_22, %c0_23] : memref<9x256x128xbf16, #tpu.memory_space<vmem>>, vector<1x256x128xbf16>
    %45 = vector.shape_cast %44 : vector<1x256x128xbf16> to vector<256x128xbf16>
    %cst_24 = arith.constant dense<0.000000e+00> : vector<256x128xf32>
    %46 = tpu.matmul %43, %45, %cst_24 {dimension_numbers = #tpu.dot_dimension_numbers<[1], [0], [0], [1], [0, 0, 1, 1], [], []>} : vector<256x256xbf16>, vector<256x128xbf16>, vector<256x128xf32> -> vector<256x128xf32>
    %47 = arith.addf %41, %46 : vector<256x128xf32>
    %48 = vector.extract_strided_slice %8 {offsets = [2, 0, 0], sizes = [16, 16, 256], strides = [1, 1, 1]} : vector<18x18x256xbf16> to vector<16x16x256xbf16>
    %49 = vector.shape_cast %48 : vector<16x16x256xbf16> to vector<256x256xbf16>
    %c6 = arith.constant 6 : index
    %c0_25 = arith.constant 0 : index
    %c0_26 = arith.constant 0 : index
    %50 = vector.load %arg4[%c6, %c0_25, %c0_26] : memref<9x256x128xbf16, #tpu.memory_space<vmem>>, vector<1x256x128xbf16>
    %51 = vector.shape_cast %50 : vector<1x256x128xbf16> to vector<256x128xbf16>
    %cst_27 = arith.constant dense<0.000000e+00> : vector<256x128xf32>
    %52 = tpu.matmul %49, %51, %cst_27 {dimension_numbers = #tpu.dot_dimension_numbers<[1], [0], [0], [1], [0, 0, 1, 1], [], []>} : vector<256x256xbf16>, vector<256x128xbf16>, vector<256x128xf32> -> vector<256x128xf32>
    %53 = arith.addf %47, %52 : vector<256x128xf32>
    %54 = vector.extract_strided_slice %8 {offsets = [2, 1, 0], sizes = [16, 16, 256], strides = [1, 1, 1]} : vector<18x18x256xbf16> to vector<16x16x256xbf16>
    %55 = vector.shape_cast %54 : vector<16x16x256xbf16> to vector<256x256xbf16>
    %c7 = arith.constant 7 : index
    %c0_28 = arith.constant 0 : index
    %c0_29 = arith.constant 0 : index
    %56 = vector.load %arg4[%c7, %c0_28, %c0_29] : memref<9x256x128xbf16, #tpu.memory_space<vmem>>, vector<1x256x128xbf16>
    %57 = vector.shape_cast %56 : vector<1x256x128xbf16> to vector<256x128xbf16>
    %cst_30 = arith.constant dense<0.000000e+00> : vector<256x128xf32>
    %58 = tpu.matmul %55, %57, %cst_30 {dimension_numbers = #tpu.dot_dimension_numbers<[1], [0], [0], [1], [0, 0, 1, 1], [], []>} : vector<256x256xbf16>, vector<256x128xbf16>, vector<256x128xf32> -> vector<256x128xf32>
    %59 = arith.addf %53, %58 : vector<256x128xf32>
    %60 = vector.extract_strided_slice %8 {offsets = [2, 2, 0], sizes = [16, 16, 256], strides = [1, 1, 1]} : vector<18x18x256xbf16> to vector<16x16x256xbf16>
    %61 = vector.shape_cast %60 : vector<16x16x256xbf16> to vector<256x256xbf16>
    %c8 = arith.constant 8 : index
    %c0_31 = arith.constant 0 : index
    %c0_32 = arith.constant 0 : index
    %62 = vector.load %arg4[%c8, %c0_31, %c0_32] : memref<9x256x128xbf16, #tpu.memory_space<vmem>>, vector<1x256x128xbf16>
    %63 = vector.shape_cast %62 : vector<1x256x128xbf16> to vector<256x128xbf16>
    %cst_33 = arith.constant dense<0.000000e+00> : vector<256x128xf32>
    %64 = tpu.matmul %61, %63, %cst_33 {dimension_numbers = #tpu.dot_dimension_numbers<[1], [0], [0], [1], [0, 0, 1, 1], [], []>} : vector<256x256xbf16>, vector<256x128xbf16>, vector<256x128xf32> -> vector<256x128xf32>
    %65 = arith.addf %59, %64 : vector<256x128xf32>
    %cst_34 = arith.constant 1.000000e-01 : f32
    %66 = vector.broadcast %cst_34 : f32 to vector<256x128xf32>
    %67 = arith.mulf %66, %65 : vector<256x128xf32>
    %68 = arith.maximumf %65, %67 : vector<256x128xf32>
    %69 = vector.shape_cast %68 : vector<256x128xf32> to vector<16x16x128xf32>
    %70 = arith.truncf %69 : vector<16x16x128xf32> to vector<16x16x128xbf16>
    %c0_35 = arith.constant 0 : index
    %c0_36 = arith.constant 0 : index
    %c0_37 = arith.constant 0 : index
    %c0_38 = arith.constant 0 : index
    %71 = vector.load %arg6[%c0_35, %c0_36, %c0_37, %c0_38] : memref<1x16x16x128xbf16, #tpu.memory_space<vmem>>, vector<1x16x16x128xbf16>
    %72 = vector.shape_cast %71 : vector<1x16x16x128xbf16> to vector<16x16x128xbf16>
    %73 = vector.shape_cast %70 : vector<16x16x128xbf16> to vector<1x16x16x128xbf16>
    tpu.vector_store %arg6[%c0_35, %c0_36, %c0_37, %c0_38], %73 {strides = array<i32>} : memref<1x16x16x128xbf16, #tpu.memory_space<vmem>>, vector<1x16x16x128xbf16>,
    return
  }
  func.func @transform_0(%arg0: i32, %arg1: i32) -> (i32, i32, i32, i32) {
    %c0_i32 = arith.constant 0 : i32
    %c0_i32_0 = arith.constant 0 : i32
    %c0_i32_1 = arith.constant 0 : i32
    %c0_i32_2 = arith.constant 0 : i32
    return %arg0, %c0_i32, %c0_i32_0, %c0_i32_1 : i32, i32, i32, i32
  }
  func.func @transform_1(%arg0: i32, %arg1: i32) -> (i32, i32, i32, i32) {
    %c0_i32 = arith.constant 0 : i32
    %c0_i32_0 = arith.constant 0 : i32
    %c0_i32_1 = arith.constant 0 : i32
    %c0_i32_2 = arith.constant 0 : i32
    return %arg0, %c0_i32, %c0_i32_0, %c0_i32_1 : i32, i32, i32, i32
  }
  func.func @transform_2(%arg0: i32, %arg1: i32) -> (i32, i32, i32) {
    %c0_i32 = arith.constant 0 : i32
    %c0_i32_0 = arith.constant 0 : i32
    %c0_i32_1 = arith.constant 0 : i32
    %c0_i32_2 = arith.constant 0 : i32
    return %c0_i32, %c0_i32_0, %c0_i32_1 : i32, i32, i32
  }
  func.func @transform_3(%arg0: i32, %arg1: i32) -> (i32, i32) {
    %c0_i32 = arith.constant 0 : i32
    %c0_i32_0 = arith.constant 0 : i32
    %c0_i32_1 = arith.constant 0 : i32
    return %c0_i32, %c0_i32_0 : i32, i32
  }
  func.func @transform_4(%arg0: i32, %arg1: i32) -> (i32, i32, i32, i32) {
    %c0_i32 = arith.constant 0 : i32
    %c0_i32_0 = arith.constant 0 : i32
    %c0_i32_1 = arith.constant 0 : i32
    return %arg0, %arg1, %c0_i32, %c0_i32_0 : i32, i32, i32, i32
  }
}

</mosaic_0001>

<bundles_post_ra>
// kernel: darknet_forward.10
= control target key start
LH: loop header
LB: loop body
LE: loop exit
PB: predicated region body
PF: predicated region fallthrough
CT: control target
= control target key end

     0   :  { %s420_s6 = smov 0   ;;  %s422_s7 = smov 0   ;;  %s457_s0 = inlined_call_operand.vmem [shape: bf16[2,8,2,8,256], index: 0, kind: input, shape index: {}]   ;;  %s458_s1 = inlined_call_operand.vmem [shape: bf16[2,8,8,128], index: 1, kind: output, shape index: {}]  }
   0x1   :  { %s424_s8 = smov 0  }
   0x2 LB: > { %s23_s9 = sadd.s32 1, %s404_s7  ;;  %p318_p0 = scmp.ge.s32.totalorder %s408_s8, 1  ;;  %s408_s8 = sphi %s424_s8, %s11_s8   ;;  %s404_s7 = sphi %s422_s7, %s460_s7   ;;  %s400_s6 = sphi %s420_s6, %s459_s6  }
   0x3   : > { %p25_p1 = scmp.ge.s32.totalorder %s23_s9, 2  ;;  %p109_p2 = scmp.lt.s32.totalorder %s408_s8, 3 }
   0x5   : > { %s462_s9 = smov (%p25_p1, %s23_s9), 0  ;;  %p110_p3 = pnand %p318_p0, %p109_p2 }
   0x6   : > { %p139_p4 = scmp.lt.s32.totalorder (!%p110_p3), %s400_s6, 1 }
   0x7   : > { %113 = sbr.rel (%p110_p3) target bundleno = 32 (0x20), region = 24 }
   0xe   : > { %s464_s6 = smov (!%p139_p4, %s400_s6), 1 }
   0xf   : > { %s333_s10 = sshll.u32 %s464_s6, 7  ;;  %s334_s14 = sshll.u32 %s464_s6, 5 }
  0x10   : > { %s147_s13 = scalar_lea.vmem %s457_s0, %s333_s10  ;;  %s157_s17 = scalar_lea.vmem %s458_s1, %s334_s14 }
  0x11   : > { %v159_v0 = vld [vmem:[%s147_s13] sm:$0xff]  ;;  %v160_v1 = vld [vmem:[%s147_s13 + $0x10] sm:$0xff]  ;;  %v323_v2 = vld [vmem:[%s147_s13 + $0x8] sm:$0xff] }
  0x12   : > { %v324_v3 = vld [vmem:[%s147_s13 + $0x18] sm:$0xff]  ;;  %v176_v4 = vmax.bf16 %v323_v2, %v159_v0  ;;  %v161_v5 = vld [vmem:[%s147_s13 + $0x20] sm:$0xff]  ;;  %v162_v6 = vld [vmem:[%s147_s13 + $0x30] sm:$0xff] }
  0x13   : > { %v177_v7 = vmax.bf16 %v324_v3, %v160_v1  ;;  %v325_v8 = vld [vmem:[%s147_s13 + $0x28] sm:$0xff]  ;;  %v326_v9 = vld [vmem:[%s147_s13 + $0x38] sm:$0xff]  ;;  %v163_v10 = vld [vmem:[%s147_s13 + $0x40] sm:$0xff] }
  0x14   : > { %v192_v11 = vrot.slane %v176_v4, 4  ;;  %v178_v12 = vmax.bf16 %v325_v8, %v161_v5  ;;  %v179_v13 = vmax.bf16 %v326_v9, %v162_v6  ;;  %v164_v14 = vld [vmem:[%s147_s13 + $0x50] sm:$0xff]  ;;  %v327_v15 = vld [vmem:[%s147_s13 + $0x48] sm:$0xff]  ;;  %v328_v16 = vld [vmem:[%s147_s13 + $0x58] sm:$0xff] }
  0x15   : > { %v193_v17 = vrot.slane %v177_v7, 4  ;;  %v180_v18 = vmax.bf16 %v327_v15, %v163_v10  ;;  %v181_v19 = vmax.bf16 %v328_v16, %v164_v14  ;;  %v165_v20 = vld [vmem:[%s147_s13 + $0x60] sm:$0xff]  ;;  %v166_v21 = vld [vmem:[%s147_s13 + $0x70] sm:$0xff]  ;;  %v329_v22 = vld [vmem:[%s147_s13 + $0x68] sm:$0xff] }
  0x16   : > { %v208_v23 = vmax.bf16 %v192_v11, %v176_v4  ;;  %v194_v24 = vrot.slane %v178_v12, 4  ;;  %v195_v25 = vrot.slane %v179_v13, 4  ;;  %v330_v26 = vld [vmem:[%s147_s13 + $0x78] sm:$0xff]  ;;  %v182_v27 = vmax.bf16 %v329_v22, %v165_v20 }
  0x17   : > { %v209_v28 = vmax.bf16 %v193_v17, %v177_v7  ;;  %v196_v29 = vrot.slane %v180_v18, 4  ;;  %v197_v30 = vrot.slane %v181_v19, 4  ;;  %v183_v31 = vmax.bf16 %v330_v26, %v166_v21 }
  0x18   : > { %v210_v32 = vmax.bf16 %v194_v24, %v178_v12  ;;  %v211_v33 = vmax.bf16 %v195_v25, %v179_v13  ;;  %v198_v34 = vrot.slane %v182_v27, 4 }
  0x19   : > { %v355_v35 = vcombine.low %v208_v23, %v209_v28  ;;  %v212_v36 = vmax.bf16 %v196_v29, %v180_v18  ;;  %v213_v37 = vmax.bf16 %v197_v30, %v181_v19  ;;  %v199_v38 = vrot.slane %v183_v31, 4 }
  0x1a   : > { %v356_v39 = vcombine.low %v210_v32, %v211_v33  ;;  %v214_v40 = vmax.bf16 %v198_v34, %v182_v27 }
  0x1b   : > { %339 = vst [vmem:[%s157_s17] sm:$0xff] %v355_v35   ;;  %v358_v41 = vcombine.low %v212_v36, %v213_v37  ;;  %v215_v42 = vmax.bf16 %v199_v38, %v183_v31 }
  0x1c   : > { %357 = vst [vmem:[%s157_s17 + $0x8] sm:$0xff] %v356_v39  }
  0x1d   : > { %359 = vst [vmem:[%s157_s17 + $0x10] sm:$0xff] %v358_v41   ;;  %v360_v43 = vcombine.low %v214_v40, %v215_v42 }
  0x1f   : > { %361 = vst [vmem:[%s157_s17 + $0x18] sm:$0xff] %v360_v43  }
  0x20 PF: > { %s11_s8 = sadd.s32 1, %s408_s8   ;;  %s459_s6 = smov %s404_s7 }
  0x21   : > { %p8_p5 = scmp.ge.s32.totalorder %s11_s8, 4   ;;  %s460_s7 = smov %s462_s9 }
  0x23   :  { %10 = sbr.rel (!%p8_p5) target bundleno = 2 (0x2), region = 55 }

// kernel: darknet_forward.12
= control target key start
LH: loop header
LB: loop body
LE: loop exit
PB: predicated region body
PF: predicated region fallthrough
CT: control target
= control target key end

     0   :  { %s802_s15 = smov 0   ;;  %s804_s16 = smov 0   ;;  %s876_s0 = inlined_call_operand.vmem [shape: bf16[2,8,8,128], index: 0, kind: input, shape index: {}, may-alias: {0,3}]   ;;  %s877_s1 = inlined_call_operand.vmem [shape: bf16[1,128,128], index: 1, kind: input, shape index: {}]   ;;  %s878_s2 = inlined_call_operand.vmem [shape: f32[1,128], index: 2, kind: input, shape index: {}]   ;;  %s879_s3 = inlined_call_operand.vmem [shape: bf16[2,8,8,128], index: 3, kind: input, shape index: {}, may-alias: {0,3}]   ;;  %s880_s4 = inlined_call_operand.vmem [shape: bf16[2,8,8,128], index: 4, kind: output, shape index: {}]  }
   0x1   :  { %s806_s17 = smov 0  }
   0x2 LB: > { %s26_s18 = sadd.s32 1, %s771_s16  ;;  %p598_p0 = scmp.ge.s32.totalorder %s775_s17, 1  ;;  %s775_s17 = sphi %s806_s17, %s14_s17   ;;  %s771_s16 = sphi %s804_s16, %s882_s16   ;;  %s767_s15 = sphi %s802_s15, %s881_s15  }
   0x3   : > { %p28_p1 = scmp.ge.s32.totalorder %s26_s18, 2  ;;  %p193_p2 = scmp.lt.s32.totalorder %s775_s17, 3 }
   0x5   : > { %s884_s18 = smov (%p28_p1, %s26_s18), 0  ;;  %p194_p3 = pnand %p598_p0, %p193_p2 }
   0x6   : > { %v741_v0 = vld [vmem:[%s877_s1] sm:$0xff] (!%p194_p3)   ;;  %p232_p4 = scmp.lt.s32.totalorder (!%p194_p3), %s767_s15, 1  ;;  %v742_v1 = vld [vmem:[%s877_s1 + $0x8] sm:$0xff] (!%p194_p3)   ;;  %v743_v2 = vld [vmem:[%s877_s1 + $0x10] sm:$0xff] (!%p194_p3)  }
   0x7   : > { %197 = sbr.rel (%p194_p3) target bundleno = 265 (0x109), region = 36  ;;  %677 = vmatprep.subr.bf16.mxu0 (!%p194_p3), %v741_v0  ;;  %701 = vmatprep.subr.bf16.mxu1 (!%p194_p3), %v741_v0  ;;  %v744_v3 = vld [vmem:[%s877_s1 + $0x18] sm:$0xff] (!%p194_p3)   ;;  %v745_v6 = vld [vmem:[%s877_s1 + $0x20] sm:$0xff] (!%p194_p3)   ;;  %v746_v7 = vld [vmem:[%s877_s1 + $0x28] sm:$0xff] (!%p194_p3)  }
   0x8   : > { %678 = vmatpush3.bf16.msra.mxu0 (!%p194_p3), %v741_v0  ;;  %709 = vmatpush3.bf16.msra.mxu1 (!%p194_p3), %v741_v0  ;;  %v747_v8 = vld [vmem:[%s877_s1 + $0x30] sm:$0xff] (!%p194_p3)   ;;  %v748_v9 = vld [vmem:[%s877_s1 + $0x38] sm:$0xff] (!%p194_p3)   ;;  %v605_v16 = vld [vmem:[%s878_s2] ss:$0 sm:$0xff] (!%p194_p3) }
   0x9   : > { %679 = vmatprep.subr.bf16.mxu0 (!%p194_p3), %v742_v1  ;;  %702 = vmatprep.subr.bf16.mxu1 (!%p194_p3), %v742_v1 }
   0xc   : > { %680 = vmatpush3.bf16.msra.mxu0 (!%p194_p3), %v742_v1  ;;  %710 = vmatpush3.bf16.msra.mxu1 (!%p194_p3), %v742_v1 }
   0xd   : > { %681 = vmatprep.subr.bf16.mxu0 (!%p194_p3), %v743_v2  ;;  %703 = vmatprep.subr.bf16.mxu1 (!%p194_p3), %v743_v2 }
   0xe   : > { %s886_s15 = smov (!%p232_p4, %s767_s15), 1 }
   0xf   : > { %s829_s25 = sshll.u32 %s886_s15, 5 }
  0x10   : > { %s835_s28 = scalar_lea.vmem %s876_s0, %s829_s25  ;;  %682 = vmatpush3.bf16.msra.mxu0 %v743_v2  ;;  %711 = vmatpush3.bf16.msra.mxu1 %v743_v2  ;;  %s245_s15 = scalar_lea.vmem %s879_s3, %s829_s25 }
  0x11   : > { %v749_v4 = vld [vmem:[%s835_s28] sm:$0xff]   ;;  %v750_v5 = vld [vmem:[%s835_s28 + $0x10] sm:$0xff]   ;;  %683 = vmatprep.subr.bf16.mxu0 %v744_v3  ;;  %704 = vmatprep.subr.bf16.mxu1 %v744_v3  ;;  %v751_v10 = vld [vmem:[%s835_s28 + $0x8] sm:$0xff]   ;;  %s255_s23 = scalar_lea.vmem %s880_s4, %s829_s25 }
  0x12   : > { %693 = vmatprep.mubr.bf16.mxu0 %v749_v4  ;;  %697 = vmatprep.mubr.bf16.mxu1 %v750_v5  ;;  %v752_v11 = vld [vmem:[%s835_s28 + $0x18] sm:$0xff]   ;;  %v659_v12 = vld [vmem:[%s245_s15 + $0x8] sm:$0xff]   ;;  %v624_v14 = vld [vmem:[%s245_s15] sm:$0xff]  }
  0x13   : > { %v661_v13 = vld [vmem:[%s245_s15 + $0x18] sm:$0xff]   ;;  %v660_v15 = vld [vmem:[%s245_s15 + $0x10] sm:$0xff]   ;;  %v629_v18 = vunpack.c.l.bf16 %v659_v12  ;;  %v625_v21 = vunpack.c.l.bf16 %v624_v14  ;;  %v630_v27 = vunpack.c.h.bf16 %v659_v12  ;;  %v626_v33 = vunpack.c.h.bf16 %v624_v14 }
  0x14   : > { %684 = vmatpush3.bf16.msra.mxu0 %v744_v3  ;;  %712 = vmatpush3.bf16.msra.mxu1 %v744_v3  ;;  %v637_v20 = vunpack.c.l.bf16 %v661_v13  ;;  %v633_v22 = vunpack.c.l.bf16 %v660_v15  ;;  %v638_v28 = vunpack.c.h.bf16 %v661_v13  ;;  %v634_v34 = vunpack.c.h.bf16 %v660_v15 }
  0x15   : > { %685 = vmatprep.subr.bf16.mxu0 %v745_v6  ;;  %705 = vmatprep.subr.bf16.mxu1 %v745_v6 }
  0x18   : > { %686 = vmatpush3.bf16.msra.mxu0 %v745_v6  ;;  %713 = vmatpush3.bf16.msra.mxu1 %v745_v6 }
  0x19   : > { %687 = vmatprep.subr.bf16.mxu0 %v746_v7  ;;  %706 = vmatprep.subr.bf16.mxu1 %v746_v7 }
  0x1c   : > { %688 = vmatpush3.bf16.msra.mxu0 %v746_v7  ;;  %714 = vmatpush3.bf16.msra.mxu1 %v746_v7 }
  0x1d   : > { %689 = vmatprep.subr.bf16.mxu0 %v747_v8  ;;  %707 = vmatprep.subr.bf16.mxu1 %v747_v8 }
  0x20   : > { %690 = vmatpush3.bf16.msra.mxu0 %v747_v8  ;;  %715 = vmatpush3.bf16.msra.mxu1 %v747_v8 }
  0x21   : > { %691 = vmatprep.subr.bf16.mxu0 %v748_v9  ;;  %708 = vmatprep.subr.bf16.mxu1 %v748_v9 }
  0x24   : > { %692 = vmatpush3.bf16.msra.mxu0 %v748_v9  ;;  %716 = vmatpush3.bf16.msra.mxu1 %v748_v9 }
  0x27   : > { %694 = vmatmul.mubr.bf16.vlgmr.msra.gmra.mrb[0].mxu0 %v751_v10  ;;  %698 = vmatmul.mubr.bf16.vlgmr.msra.gmra.mrb[0].mxu1 %v752_v11 }
  0xfa   : > { %v695_v17 = vpop.f32.mrb[0].mxu0  ;;  %v699_v19 = vpop.f32.mrb[0].mxu1 }
  0xfb   : > { %v431_v23 = vadd.f32 %v695_v17, %v605_v16  ;;  %v435_v24 = vadd.f32 %v699_v19, %v605_v16  ;;  %v398_v25 = vpop.f32.mrb[1].mxu0  ;;  %v414_v26 = vpop.f32.mrb[1].mxu1 }
  0xfc   : > { %v429_v29 = vadd.f32 %v605_v16, %v398_v25  ;;  %v433_v30 = vadd.f32 %v605_v16, %v414_v26  ;;  %v696_v31 = vpop.f32.mrb[2].mxu0  ;;  %v700_v32 = vpop.f32.mrb[2].mxu1 }
  0xfd   : > { %v439_v35 = vmul.f32 0.1, %v431_v23  ;;  %v443_v36 = vmul.f32 0.1, %v435_v24  ;;  %v432_v37 = vadd.f32 %v696_v31, %v605_v16  ;;  %v436_v38 = vadd.f32 %v700_v32, %v605_v16  ;;  %v401_v39 = vpop.f32.mrb[3].mxu0  ;;  %v417_v40 = vpop.f32.mrb[3].mxu1 }
  0xfe   : > { %v437_v41 = vmul.f32 0.1, %v429_v29  ;;  %v441_v42 = vmul.f32 0.1, %v433_v30  ;;  %v430_v43 = vadd.f32 %v605_v16, %v401_v39  ;;  %v434_v44 = vadd.f32 %v605_v16, %v417_v40 }
  0xff   : > { %v447_v45 = vmax.f32 %v431_v23, %v439_v35  ;;  %v451_v46 = vmax.f32 %v435_v24, %v443_v36  ;;  %v440_v47 = vmul.f32 0.1, %v432_v37  ;;  %v444_v48 = vmul.f32 0.1, %v436_v38 }
 0x100   : > { %v445_v49 = vmax.f32 %v429_v29, %v437_v41  ;;  %v449_v50 = vmax.f32 %v433_v30, %v441_v42  ;;  %v438_v51 = vmul.f32 0.1, %v430_v43  ;;  %v442_v52 = vmul.f32 0.1, %v434_v44 }
 0x101   : > { %v448_v53 = vmax.f32 %v432_v37, %v440_v47  ;;  %v452_v54 = vmax.f32 %v436_v38, %v444_v48  ;;  %v471_v57 = vadd.f32 %v629_v18, %v447_v45  ;;  %v475_v58 = vadd.f32 %v637_v20, %v451_v46 }
 0x102   : > { %v446_v55 = vmax.f32 %v430_v43, %v438_v51  ;;  %v450_v56 = vmax.f32 %v434_v44, %v442_v52  ;;  %v469_v61 = vadd.f32 %v625_v21, %v445_v49  ;;  %v473_v62 = vadd.f32 %v633_v22, %v449_v50 }
 0x103   : > { %v472_v59 = vadd.f32 %v630_v27, %v448_v53  ;;  %v476_v60 = vadd.f32 %v638_v28, %v452_v54 }
 0x104   : > { %v470_v63 = vadd.f32 %v626_v33, %v446_v55  ;;  %v474_v0 = vadd.f32 %v634_v34, %v450_v56 }
 0x105   : > { %v647_v1 = vpack.c.bf16 %v472_v59, %v471_v57  ;;  %v657_v2 = vpack.c.bf16 %v476_v60, %v475_v58 }
 0x106   : > { %v642_v3 = vpack.c.bf16 %v470_v63, %v469_v61  ;;  %v652_v4 = vpack.c.bf16 %v474_v0, %v473_v62 }
 0x107   : > { %662 = vst [vmem:[%s255_s23 + $0x8] sm:$0xff] %v647_v1   ;;  %664 = vst [vmem:[%s255_s23 + $0x18] sm:$0xff] %v657_v2  }
 0x108   : > { %643 = vst [vmem:[%s255_s23] sm:$0xff] %v642_v3   ;;  %663 = vst [vmem:[%s255_s23 + $0x10] sm:$0xff] %v652_v4  }
 0x109 PF: > { %s14_s17 = sadd.s32 1, %s775_s17   ;;  %s881_s15 = smov %s771_s16 }
 0x10a   : > { %p11_p5 = scmp.ge.s32.totalorder %s14_s17, 4   ;;  %s882_s16 = smov %s884_s18 }
 0x10c   :  { %13 = sbr.rel (!%p11_p5) target bundleno = 2 (0x2), region = 70 }

// kernel: darknet_forward.11
= control target key start
LH: loop header
LB: loop body
LE: loop exit
PB: predicated region body
PF: predicated region fallthrough
CT: control target
= control target key end

     0   :  { %s2706_s12 = smov 0   ;;  %s2708_s13 = smov 0   ;;  %s3253_s0 = inlined_call_operand.vmem [shape: bf16[2,10,10,128], index: 0, kind: input, shape index: {}]   ;;  %s3254_s1 = inlined_call_operand.vmem [shape: bf16[9,128,128], index: 1, kind: input, shape index: {}]   ;;  %s3255_s2 = inlined_call_operand.vmem [shape: f32[1,128], index: 2, kind: input, shape index: {}]   ;;  %s3256_s3 = inlined_call_operand.vmem [shape: bf16[2,8,8,128], index: 3, kind: output, shape index: {}]  }
   0x1   :  { %s2710_s14 = smov 0  }
   0x2 LB: > { %s25_s15 = sadd.s32 1, %s2680_s13  ;;  %p1876_p0 = scmp.ge.s32.totalorder %s2684_s14, 1  ;;  %s2684_s14 = sphi %s2710_s14, %s13_s14   ;;  %s2680_s13 = sphi %s2708_s13, %s3262_s13   ;;  %s2676_s12 = sphi %s2706_s12, %s3261_s12  }
   0x3   : > { %p27_p1 = scmp.ge.s32.totalorder %s25_s15, 2  ;;  %p151_p2 = scmp.lt.s32.totalorder %s2684_s14, 3 }
   0x5   : > { %s3264_s15 = smov (%p27_p1, %s25_s15), 0  ;;  %p152_p3 = pnand %p1876_p0, %p151_p2 }
   0x6   : > { %v2581_v0 = vld [vmem:[%s3254_s1] sm:$0xff] (!%p152_p3)   ;;  %p179_p4 = scmp.lt.s32.totalorder (!%p152_p3), %s2676_s12, 1  ;;  %v2583_v2 = vld [vmem:[%s3254_s1 + $0x8] sm:$0xff] (!%p152_p3)   ;;  %v2585_v4 = vld [vmem:[%s3254_s1 + $0x10] sm:$0xff] (!%p152_p3)   ;;  %vm387_vm0 = vsmask.f32 (!%p152_p3), 3328 }
   0x7   : > { %155 = sbr.rel (%p152_p3) target bundleno = 393 (0x189), region = 32  ;;  %v2582_v1 = vld [vmem:[%s3254_s1 + $0x100] sm:$0xff] (!%p152_p3)   ;;  %2252 = vmatprep.subr.bf16.mxu1 (!%p152_p3), %v2581_v0  ;;  %v2584_v3 = vld [vmem:[%s3254_s1 + $0x108] sm:$0xff] (!%p152_p3)   ;;  %v2586_v5 = vld [vmem:[%s3254_s1 + $0x110] sm:$0xff] (!%p152_p3)   ;;  %vm388_vm1 = vsmask.f32 (!%p152_p3), 7440 }
   0x8   : > { %2348 = vmatprep.subr.bf16.mxu0 (!%p152_p3), %v2582_v1  ;;  %2253 = vmatpush3.bf16.msra.mxu1 (!%p152_p3), %v2581_v0  ;;  %v2587_v6 = vld [vmem:[%s3254_s1 + $0x18] sm:$0xff] (!%p152_p3)   ;;  %v2589_v8 = vld [vmem:[%s3254_s1 + $0x20] sm:$0xff] (!%p152_p3)   ;;  %v2591_v10 = vld [vmem:[%s3254_s1 + $0x28] sm:$0xff] (!%p152_p3)   ;;  %vm664_vm3 = vcmask (!%p152_p3), 1042432   ;;  %vm665_vm4 = vcmask (!%p152_p3), 1046532  }
   0x9   : > { %2349 = vmatpush3.bf16.msra.mxu0 (!%p152_p3), %v2582_v1  ;;  %2254 = vmatprep.subr.bf16.mxu1 (!%p152_p3), %v2583_v2  ;;  %v2588_v7 = vld [vmem:[%s3254_s1 + $0x118] sm:$0xff] (!%p152_p3)   ;;  %v2590_v9 = vld [vmem:[%s3254_s1 + $0x120] sm:$0xff] (!%p152_p3)   ;;  %v2592_v13 = vld [vmem:[%s3254_s1 + $0x128] sm:$0xff] (!%p152_p3)  }
   0xa   : > { %2350 = vmatprep.subr.bf16.mxu0 (!%p152_p3), %v2584_v3  ;;  %v2593_v17 = vld [vmem:[%s3254_s1 + $0x30] sm:$0xff] (!%p152_p3)   ;;  %v2595_v29 = vld [vmem:[%s3254_s1 + $0x38] sm:$0xff] (!%p152_p3)   ;;  %vm2824_vm2 = vmor (!%p152_p3), %vm387_vm0, %vm388_vm1 }
   0xb   : > { %v2594_v24 = vld [vmem:[%s3254_s1 + $0x130] sm:$0xff] (!%p152_p3)   ;;  %v2596_v34 = vld [vmem:[%s3254_s1 + $0x138] sm:$0xff] (!%p152_p3)   ;;  %v2598_v56 = vld [vmem:[%s3254_s1 + $0x40] sm:$0xff] (!%p152_p3)  }
   0xc   : > { %2255 = vmatpush3.bf16.msra.mxu1 (!%p152_p3), %v2583_v2  ;;  %v2599_v59 = vld [vmem:[%s3254_s1 + $0x140] sm:$0xff] (!%p152_p3)   ;;  %vm2950_vm5 = vmor (!%p152_p3), %vm664_vm3, %vm665_vm4 }
   0xd   : > { %2351 = vmatpush3.bf16.msra.mxu0 (!%p152_p3), %v2584_v3  ;;  %2256 = vmatprep.subr.bf16.mxu1 (!%p152_p3), %v2585_v4  ;;  %v2625_v47 = vld [vmem:[%s3254_s1 + $0xa0] sm:$0xff] (!%p152_p3)  }
   0xe   : > { %s3266_s12 = smov (!%p179_p4, %s2676_s12), 1  ;;  %2352 = vmatprep.subr.bf16.mxu0 %v2586_v5 }
   0xf   : > { %s2556_s5 = smul.u32 80, %s3266_s12  ;;  %s2120_s29 = sshll.u32 %s3266_s12, 5 }
  0x10   : > { %2257 = vmatpush3.bf16.msra.mxu1 %v2585_v4 }
  0x11   : > { %2353 = vmatpush3.bf16.msra.mxu0 %v2586_v5  ;;  %2258 = vmatprep.subr.bf16.mxu1 %v2587_v6  ;;  %s2760_s16 = scalar_lea.vmem %s3253_s0, %s2556_s5  ;;  %s192_s5 = scalar_lea.vmem %s3256_s3, %s2120_s29 }
  0x12   : > { %2354 = vmatprep.subr.bf16.mxu0 %v2588_v7  ;;  %v2766_v11 = vld [vmem:[%s2760_s16] sm:$0xf]  ;;  %v2769_v12 = vld [vmem:[%s2760_s16 + $0x8] sm:$0xf]  ;;  %v2782_v18 = vld [vmem:[%s2760_s16 + $0x10] sm:$0xf] }
  0x13   : > { %v1881_v14 = vcombine.low %v2766_v11, %v2769_v12  ;;  %v391_v15 = vshrl.u32 %v2766_v11, 16  ;;  %v394_v16 = vshll.u32 %v2766_v11, 16  ;;  %v2785_v21 = vld [vmem:[%s2760_s16 + $0xc] sm:$0x1]  ;;  %v2788_v22 = vld [vmem:[%s2760_s16 + $0x14] sm:$0x1]  ;;  %v1973_v23 = vcombine.low %v2769_v12, %v2782_v18 }
  0x14   : > { %2259 = vmatpush3.bf16.msra.mxu1 %v2587_v6  ;;  %v2796_v25 = vld [vmem:[%s2760_s16 + $0x4] sm:$0x1]  ;;  %v2799_v26 = vld [vmem:[%s2760_s16 + $0x18] sm:$0xf]  ;;  %v405_v27 = vshrl.u32 %v2769_v12, 16  ;;  %v408_v28 = vshll.u32 %v2769_v12, 16 }
  0x15   : > { %2355 = vmatpush3.bf16.msra.mxu0 %v2588_v7  ;;  %2260 = vmatprep.subr.bf16.mxu1 %v2589_v8  ;;  %v393_v19 = vrot.slane %v391_v15, 4  ;;  %v396_v20 = vrot.slane %v394_v16, 5  ;;  %v414_v30 = vshll.u32 %v2785_v21, 16  ;;  %v419_v31 = vshrl.u32 %v2782_v18, 16  ;;  %v2814_v35 = vld [vmem:[%s2760_s16 + $0x1c] sm:$0x1] }
  0x16   : > { %2356 = vmatprep.subr.bf16.mxu0 %v2590_v9  ;;  %2268 = vmatprep.mubr.bf16.mxu1 %v1881_v14  ;;  %v422_v32 = vshll.u32 %v2782_v18, 16  ;;  %v428_v33 = vshll.u32 %v2788_v22, 16  ;;  %v407_v37 = vrot.slane %v405_v27, 4  ;;  %v410_v38 = vrot.slane %v408_v28, 5  ;;  %v2818_v43 = vld [vmem:[%s2760_s16 + $0x20] sm:$0xf] }
  0x17   : > { %v397_v36 = vor.u32 %v396_v20, %v393_v19  ;;  %v400_v39 = vshll.u32 %v2796_v25, 16  ;;  %v416_v40 = vrot.slane %v414_v30, 5  ;;  %v421_v41 = vrot.slane %v419_v31, 4  ;;  %v2830_v51 = vld [vmem:[%s2760_s16 + $0x24] sm:$0x1]  ;;  %v2603_v20 = vld [vmem:[%s3254_s1 + $0x50] sm:$0xff]  }
  0x18   : > { %2261 = vmatpush3.bf16.msra.mxu1 %v2589_v8  ;;  %v424_v42 = vrot.slane %v422_v32, 5  ;;  %v411_v44 = vor.u32 %v410_v38, %v407_v37  ;;  %v433_v45 = vshrl.u32 %v2799_v26, 16  ;;  %v436_v46 = vshll.u32 %v2799_v26, 16  ;;  %v2602_v28 = vld [vmem:[%s3254_s1 + $0x148] sm:$0xff]   ;;  %v2605_v30 = vld [vmem:[%s3254_s1 + $0x58] sm:$0xff]  }
  0x19   : > { %2357 = vmatpush3.bf16.msra.mxu0 %v2590_v9  ;;  %2262 = vmatprep.subr.bf16.mxu1 %v2591_v10  ;;  %v430_v49 = vrot.slane %v428_v33, 5  ;;  %v442_v50 = vshll.u32 %v2814_v35, 16  ;;  %v398_v52 = vrot.slane %v397_v36, 4  ;;  %v402_v57 = vrot.slane %v400_v39, 5  ;;  %v2601_v9 = vld [vmem:[%s3254_s1 + $0x48] sm:$0xff]  }
  0x1a   : > { %2358 = vmatprep.subr.bf16.mxu0 %v2592_v13  ;;  %v425_v48 = vor.u32 %v424_v42, %v421_v41  ;;  %v412_v53 = vrot.slane %v411_v44, 4  ;;  %v435_v54 = vrot.slane %v433_v45, 4  ;;  %v438_v55 = vrot.slane %v436_v46, 5  ;;  %v2889_v32 = vld [vmem:[%s2760_s16 + $0x2c] sm:$0x1]  ;;  %v2604_v45 = vld [vmem:[%s3254_s1 + $0x150] sm:$0xff]  }
  0x1b   : > { %v447_v60 = vshrl.u32 %v2818_v43, 16  ;;  %v450_v61 = vshll.u32 %v2818_v43, 16  ;;  %v444_v0 = vrot.slane %v442_v50, 5  ;;  %v456_v1 = vshll.u32 %v2830_v51, 16  ;;  %v2893_v36 = vld [vmem:[%s2760_s16 + $0x30] sm:$0xf] }
  0x1c   : > { %2263 = vmatpush3.bf16.msra.mxu1 %v2591_v10  ;;  %v426_v58 = vrot.slane %v425_v48, 4  ;;  %v417_v62 = vsel %vm2824_vm2, %v412_v53, %v416_v40  ;;  %v439_v63 = vor.u32 %v438_v55, %v435_v54  ;;  %v2849_v3 = vcombine.low %v2782_v18, %v2799_v26  ;;  %v2896_v37 = vld [vmem:[%s2760_s16 + $0x34] sm:$0x1] }
  0x1d   : > { %2359 = vmatpush3.bf16.msra.mxu0 %v2592_v13  ;;  %2264 = vmatprep.subr.bf16.mxu1 %v2593_v17  ;;  %v449_v4 = vrot.slane %v447_v60, 4  ;;  %v452_v5 = vrot.slane %v450_v61, 5  ;;  %v458_v8 = vrot.slane %v456_v1, 5  ;;  %v1974_v10 = vcombine.low %v2799_v26, %v2818_v43  ;;  %v2922_v60 = vld [vmem:[%s2760_s16 + $0x3c] sm:$0x1] }
  0x1e   : > { %2360 = vmatprep.subr.bf16.mxu0 %v2594_v24  ;;  %v2845_v2 = vsel %vm2824_vm2, %v426_v58, %v430_v49  ;;  %v440_v6 = vrot.slane %v439_v63, 4  ;;  %v403_v16 = vsel %vm2824_vm2, %v398_v52, %v402_v57  ;;  %v470_v39 = vshll.u32 %v2889_v32, 16  ;;  %v2606_v57 = vld [vmem:[%s3254_s1 + $0x158] sm:$0xff]   ;;  %v2925_v61 = vld [vmem:[%s2760_s16 + $0x40] sm:$0xf] }
  0x1f   : > { %v2001_v7 = vcombine.low %v417_v62, %v2845_v2  ;;  %v453_v13 = vor.u32 %v452_v5, %v449_v4  ;;  %v475_v41 = vshrl.u32 %v2893_v36, 16  ;;  %v478_v42 = vshll.u32 %v2893_v36, 16  ;;  %v2607_v63 = vld [vmem:[%s3254_s1 + $0x60] sm:$0xff]  }
  0x20   : > { %2265 = vmatpush3.bf16.msra.mxu1 %v2593_v17  ;;  %v2859_v14 = vsel %vm2824_vm2, %v440_v6, %v444_v0  ;;  %v673_v17 = vrot.slane %v2785_v21, 5  ;;  %v484_v44 = vshll.u32 %v2896_v37, 16  ;;  %v1922_v48 = vrot.slane %v2769_v12, 9  ;;  %v2610_v21 = vld [vmem:[%s3254_s1 + $0x168] sm:$0xff]  }
  0x21   : > { %2361 = vmatpush3.bf16.msra.mxu0 %v2594_v24  ;;  %2266 = vmatprep.subr.bf16.mxu1 %v2595_v29  ;;  %v454_v15 = vrot.slane %v453_v13, 4  ;;  %v677_v24 = vrot.slane %v2788_v22, 5  ;;  %v1923_v49 = vrot.slane %v2782_v18, 9  ;;  %v472_v52 = vrot.slane %v470_v39, 5  ;;  %v2643_v12 = vld [vmem:[%s3254_s1 + $0xe8] sm:$0xff]   ;;  %v2642_v18 = vld [vmem:[%s3254_s1 + $0x1e0] sm:$0xff]  }
  0x22   : > { %2362 = vmatprep.subr.bf16.mxu0 %v2596_v34  ;;  %2364 = vmatprep.mubr.bf16.mxu0 %v2001_v7  ;;  %v477_v53 = vrot.slane %v475_v41, 4  ;;  %v480_v54 = vrot.slane %v478_v42, 5  ;;  %v486_v55 = vrot.slane %v484_v44, 5  ;;  %v498_v5 = vshll.u32 %v2922_v60, 16  ;;  %v2624_v41 = vld [vmem:[%s3254_s1 + $0x198] sm:$0xff]  }
  0x23   : > { %v2867_v19 = vsel %vm2824_vm2, %v454_v15, %v458_v8  ;;  %v1002_v7 = vshrl.u32 %v2925_v61, 16  ;;  %v1005_v8 = vshll.u32 %v2925_v61, 16 }
  0x24   : > { %2267 = vmatpush3.bf16.msra.mxu1 %v2595_v29  ;;  %v2002_v27 = vcombine.low %v2859_v14, %v2867_v19  ;;  %v2879_v29 = vld [vmem:[%s2760_s16 + $0x28] sm:$0xf]  ;;  %v481_v0 = vor.u32 %v480_v54, %v477_v53  ;;  %v2971_v54 = vsel %vm2950_vm5, %v1923_v49, %v677_v24  ;;  %v681_v49 = vrot.slane %v2814_v35, 5  ;;  %v2617_v35 = vld [vmem:[%s3254_s1 + $0x80] sm:$0xff]  }
  0x25   : > { %2363 = vmatpush3.bf16.msra.mxu0 %v2596_v34  ;;  %2276 = vmatprep.subr.bf16.mxu1 %v2598_v56  ;;  %v2886_v31 = vcombine.low %v2818_v43, %v2879_v29  ;;  %v461_v33 = vshrl.u32 %v2879_v29, 16  ;;  %v1909_v34 = vcombine.low %v403_v16, %v417_v62  ;;  %v464_v38 = vshll.u32 %v2879_v29, 16  ;;  %v2928_v62 = vld [vmem:[%s2760_s16 + $0x44] sm:$0x1] }
  0x26   : > { %2372 = vmatprep.subr.bf16.mxu0 %v2599_v59  ;;  %v1975_v50 = vcombine.low %v2879_v29, %v2893_v36  ;;  %v482_v13 = vrot.slane %v481_v0, 4  ;;  %v1007_v39 = vrot.slane %v1005_v8, 5  ;;  %v2613_v0 = vld [vmem:[%s3254_s1 + $0x170] sm:$0xff]   ;;  %v1927_v8 = vrot.slane %v2893_v36, 9 }
  0x27   : > { %2269 = vmatmul.mubr.bf16.vlgmr.msra.gmra.mrb[0].mxu1 %v2849_v3  ;;  %v463_v40 = vrot.slane %v461_v33, 4  ;;  %v466_v46 = vrot.slane %v464_v38, 5  ;;  %v1004_v38 = vrot.slane %v1002_v7, 4  ;;  %v1165_v7 = vrot.slane %v2928_v62, 5 }
  0x28   : > { %2277 = vmatpush3.bf16.msra.mxu1 %v2598_v56  ;;  %2365 = vmatmul.mubr.bf16.vlgmr.msra.gmra.mrb[0].mxu0 %v2002_v27  ;;  %v2912_v56 = vld [vmem:[%s2760_s16 + $0x38] sm:$0xf]  ;;  %v2608_v27 = vld [vmem:[%s3254_s1 + $0x160] sm:$0xff]  }
  0x29   : > { %2278 = vmatprep.subr.bf16.mxu1 %v2601_v9  ;;  %2373 = vmatpush3.bf16.msra.mxu0 %v2599_v59  ;;  %v467_v58 = vor.u32 %v466_v46, %v463_v40  ;;  %v2919_v59 = vcombine.low %v2893_v36, %v2912_v56  ;;  %v489_v1 = vshrl.u32 %v2912_v56, 16  ;;  %v492_v4 = vshll.u32 %v2912_v56, 16  ;;  %v2661_v36 = vld [vmem:[%s3254_s1 + $0x238] sm:$0xff]  }
  0x2a   : > { %2374 = vmatprep.subr.bf16.mxu0 %v2602_v28  ;;  %2272 = vmatprep.mubr.bf16.mxu1 %v2886_v31  ;;  %v1008_v44 = vor.u32 %v1007_v39, %v1004_v38  ;;  %v1976_v46 = vcombine.low %v2912_v56, %v2925_v61  ;;  %v669_v39 = vrot.slane %v2796_v25, 5 }
  0x2b   : > { %v468_v6 = vrot.slane %v467_v58, 4  ;;  %v491_v15 = vrot.slane %v489_v1, 4  ;;  %v494_v16 = vrot.slane %v492_v4, 5  ;;  %v2616_v1 = vld [vmem:[%s3254_s1 + $0x178] sm:$0xff]   ;;  %v1926_v4 = vrot.slane %v2879_v29, 9  ;;  %v2660_v29 = vld [vmem:[%s3254_s1 + $0x230] sm:$0xff]  }
  0x2c   : > { %2279 = vmatpush3.bf16.msra.mxu1 %v2601_v9  ;;  %v1011_v9 = vshll.u32 %v2928_v62, 16  ;;  %v1009_v53 = vrot.slane %v1008_v44, 4 }
  0x2d   : > { %2280 = vmatprep.subr.bf16.mxu1 %v2603_v20  ;;  %2375 = vmatpush3.bf16.msra.mxu0 %v2602_v28  ;;  %v2609_v28 = vld [vmem:[%s3254_s1 + $0x68] sm:$0xff]   ;;  %v473_v33 = vsel %vm2824_vm2, %v468_v6, %v472_v52  ;;  %v2013_v6 = vrot.slane %v2925_v61, 9 }
  0x2e   : > { %2376 = vmatprep.subr.bf16.mxu0 %v2604_v45  ;;  %v1013_v40 = vrot.slane %v1011_v9, 5  ;;  %v693_v9 = vrot.slane %v2896_v37, 5  ;;  %v2619_v37 = vld [vmem:[%s3254_s1 + $0x88] sm:$0xff]  }
  0x2f   : > { %2273 = vmatmul.mubr.bf16.gmra.mrb[4].mxu1 %v2919_v59 }
  0x30   : > { %2281 = vmatpush3.bf16.msra.mxu1 %v2603_v20  ;;  %v500_v20 = vrot.slane %v498_v5, 5  ;;  %2292 = vmatprep.mubr.bf16.mxu1 %v1909_v34  ;;  %v495_v34 = vor.u32 %v494_v16, %v491_v15  ;;  %v2985_v22 = vsel %vm2824_vm2, %v1009_v53, %v1013_v40  ;;  %v689_v5 = vrot.slane %v2889_v32, 5  ;;  %v218_v15 = vld [vmem:[%s2760_s16 + $0x4c] sm:$0x1]  ;;  %v2621_v53 = vld [vmem:[%s3254_s1 + $0x90] sm:$0xff]  }
  0x31   : > { %2282 = vmatprep.subr.bf16.mxu1 %v2605_v30  ;;  %2377 = vmatpush3.bf16.msra.mxu0 %v2604_v45  ;;  %v2965_v45 = vsel %vm2950_vm5, %v1922_v48, %v673_v17  ;;  %v1921_v48 = vrot.slane %v2766_v11, 9  ;;  %v1924_v11 = vrot.slane %v2799_v26, 9  ;;  %v3020_v16 = vcombine.low %v2845_v2, %v2859_v14  ;;  %v2657_v26 = vld [vmem:[%s3254_s1 + $0x218] sm:$0xff]  }
  0x32   : > { %2378 = vmatprep.subr.bf16.mxu0 %v2606_v57  ;;  %v496_v52 = vrot.slane %v495_v34, 4  ;;  %v2030_v24 = vcombine.low %v2965_v45, %v2971_v54  ;;  %v3040_v14 = vsel %vm2950_vm5, %v2013_v6, %v1165_v7  ;;  %v3060_v25 = vsel %vm2950_vm5, %v1927_v8, %v693_v9  ;;  %v2628_v6 = vld [vmem:[%s3254_s1 + $0x1a8] sm:$0xff]   ;;  %v2631_v7 = vld [vmem:[%s3254_s1 + $0xb8] sm:$0xff]   ;;  %v2633_v8 = vld [vmem:[%s3254_s1 + $0xc0] sm:$0xff]  }
  0x33   : > { %v2632_v9 = vld [vmem:[%s3254_s1 + $0x1b8] sm:$0xff]  }
  0x34   : > { %2283 = vmatpush3.bf16.msra.mxu1 %v2605_v30  ;;  %v2956_v30 = vsel %vm2824_vm2, %v482_v13, %v486_v55  ;;  %v2612_v55 = vld [vmem:[%s3254_s1 + $0x70] sm:$0xff]   ;;  %v2978_v58 = vsel %vm2824_vm2, %v496_v52, %v500_v20  ;;  %v3015_v13 = vld [vmem:[%s2760_s16 + $0x48] sm:$0xf]  ;;  %v1614_v20 = vrot.slane %v218_v15, 5 }
  0x35   : > { %2284 = vmatprep.subr.bf16.mxu1 %v2607_v63  ;;  %v2003_v42 = vcombine.low %v473_v33, %v2956_v30  ;;  %2379 = vmatpush3.bf16.msra.mxu0 %v2606_v57  ;;  %v2004_v17 = vcombine.low %v2978_v58, %v2985_v22  ;;  %v685_v57 = vrot.slane %v2830_v51, 5  ;;  %v1925_v51 = vrot.slane %v2818_v43, 9  ;;  %v2658_v43 = vld [vmem:[%s3254_s1 + $0x220] sm:$0xff]  }
  0x36   : > { %2380 = vmatprep.subr.bf16.mxu0 %v2608_v27  ;;  %v2092_v32 = vrot.slane %v3015_v13, 9  ;;  %v1457_v2 = vshrl.u32 %v3015_v13, 16  ;;  %v1460_v40 = vshll.u32 %v3015_v13, 16 }
  0x37   : > { %2368 = vmatprep.mubr.bf16.mxu0 %v2003_v42  ;;  %v3029_v62 = vsel %vm2950_vm5, %v1925_v51, %v685_v57  ;;  %v3056_v42 = vsel %vm2950_vm5, %v1926_v4, %v689_v5  ;;  %v2620_v57 = vld [vmem:[%s3254_s1 + $0x188] sm:$0xff]   ;;  %v2626_v4 = vld [vmem:[%s3254_s1 + $0x1a0] sm:$0xff]   ;;  %v2629_v5 = vld [vmem:[%s3254_s1 + $0xb0] sm:$0xff]  }
  0x38   : > { %2285 = vmatpush3.bf16.msra.mxu1 %v2607_v63  ;;  %v2615_v63 = vld [vmem:[%s3254_s1 + $0x78] sm:$0xff]   ;;  %2369 = vmatmul.mubr.bf16.gmra.mrb[4].mxu0 %v2004_v17  ;;  %v3044_v38 = vsel %vm2950_vm5, %v2092_v32, %v1614_v20  ;;  %v1459_v34 = vrot.slane %v1457_v2, 4  ;;  %v1462_v44 = vrot.slane %v1460_v40, 5  ;;  %v697_v17 = vrot.slane %v2922_v60, 5  ;;  %v2635_v20 = vld [vmem:[%s3254_s1 + $0xc8] sm:$0xff]   ;;  %v2641_v40 = vld [vmem:[%s3254_s1 + $0xe0] sm:$0xff]  }
  0x39   : > { %2286 = vmatprep.subr.bf16.mxu1 %v2609_v28  ;;  %2381 = vmatpush3.bf16.msra.mxu0 %v2608_v27  ;;  %v3025_v27 = vsel %vm2950_vm5, %v1924_v11, %v681_v49  ;;  %v3079_v11 = vcombine.low %v2956_v30, %v2978_v58  ;;  %v2622_v30 = vld [vmem:[%s3254_s1 + $0x190] sm:$0xff]   ;;  %v3134_v32 = vcombine.low %v3029_v62, %v3056_v42  ;;  %v2639_v2 = vld [vmem:[%s3254_s1 + $0xd8] sm:$0xff]  }
  0x3a   : > { %2382 = vmatprep.subr.bf16.mxu0 %v2610_v21  ;;  %2388 = vmatprep.mubr.bf16.mxu0 %v2030_v24  ;;  %v2031_v52 = vcombine.low %v3025_v27, %v3029_v62  ;;  %v670_v24 = vsel %vm2950_vm5, %v1921_v48, %v669_v39  ;;  %v1463_v49 = vor.u32 %v1462_v44, %v1459_v34  ;;  %v2623_v48 = vld [vmem:[%s3254_s1 + $0x98] sm:$0xff]   ;;  %v2638_v39 = vld [vmem:[%s3254_s1 + $0x1d0] sm:$0xff]   ;;  %v2652_v34 = vld [vmem:[%s3254_s1 + $0x200] sm:$0xff]  }
  0x3b   : > { %v1945_v60 = vcombine.low %v670_v24, %v2965_v45  ;;  %v2656_v44 = vld [vmem:[%s3254_s1 + $0x210] sm:$0xff]  }
  0x3c   : > { %2287 = vmatpush3.bf16.msra.mxu1 %v2609_v28  ;;  %v3035_v28 = vcombine.low %v2867_v19, %v473_v33  ;;  %v2618_v19 = vld [vmem:[%s3254_s1 + $0x180] sm:$0xff]   ;;  %v2109_v33 = vcombine.low %v3040_v14, %v3044_v38 }
  0x3d   : > { %2288 = vmatprep.subr.bf16.mxu1 %v2612_v55  ;;  %2383 = vmatpush3.bf16.msra.mxu0 %v2610_v21  ;;  %v1928_v21 = vrot.slane %v2912_v56, 9 }
  0x3e   : > { %2384 = vmatprep.subr.bf16.mxu0 %v2613_v0 }
  0x3f   : > { %v698_v51 = vsel %vm2950_vm5, %v1928_v21, %v697_v17 }
  0x40   : > { %2289 = vmatpush3.bf16.msra.mxu1 %v2612_v55  ;;  %v1466_v55 = vshll.u32 %v218_v15, 16  ;;  %v2033_v58 = vcombine.low %v698_v51, %v3040_v14  ;;  %v3130_v15 = vcombine.low %v2971_v54, %v3025_v27  ;;  %v2637_v54 = vld [vmem:[%s3254_s1 + $0xd0] sm:$0xff]   ;;  %v2636_v27 = vld [vmem:[%s3254_s1 + $0x1c8] sm:$0xff]   ;;  %v3151_v62 = vcombine.low %v3060_v25, %v698_v51 }
  0x41   : > { %2290 = vmatprep.subr.bf16.mxu1 %v2615_v63  ;;  %2385 = vmatpush3.bf16.msra.mxu0 %v2613_v0 }
  0x42   : > { %2386 = vmatprep.subr.bf16.mxu0 %v2616_v1  ;;  %v1468_v0 = vrot.slane %v1466_v55, 5 }
  0x44   : > { %2291 = vmatpush3.bf16.msra.mxu1 %v2615_v63  ;;  %v2032_v63 = vcombine.low %v3056_v42, %v3060_v25  ;;  %v2649_v42 = vld [vmem:[%s3254_s1 + $0x1f8] sm:$0xff]   ;;  %v2653_v25 = vld [vmem:[%s3254_s1 + $0x208] sm:$0xff]  }
  0x45   : > { %2300 = vmatprep.subr.bf16.mxu1 %v2617_v35  ;;  %2387 = vmatpush3.bf16.msra.mxu0 %v2616_v1 }
  0x46   : > { %2396 = vmatprep.subr.bf16.mxu0 %v2618_v19 }
  0x47   : > { %2293 = vmatmul.mubr.bf16.vlgmr.msra.gmra.mrb[0].mxu1 %v3020_v16 }
  0x48   : > { %2301 = vmatpush3.bf16.msra.mxu1 %v2617_v35  ;;  %2296 = vmatprep.mubr.bf16.mxu1 %v3035_v28  ;;  %v1464_v35 = vrot.slane %v1463_v49, 4 }
  0x49   : > { %2302 = vmatprep.subr.bf16.mxu1 %v2619_v37  ;;  %2389 = vmatmul.mubr.bf16.vlgmr.msra.gmra.mrb[0].mxu0 %v2031_v52  ;;  %v1880_v52 = vld [vmem:[%s3255_s2] ss:$0 sm:$0xff] }
  0x4a   : > { %2397 = vmatpush3.bf16.msra.mxu0 %v2618_v19  ;;  %v1469_v1 = vsel %vm2824_vm2, %v1464_v35, %v1468_v0  ;;  %2392 = vmatprep.mubr.bf16.mxu0 %v2032_v63  ;;  %v2648_v19 = vld [vmem:[%s3254_s1 + $0xf8] sm:$0xff]  }
  0x4b   : > { %2398 = vmatprep.subr.bf16.mxu0 %v2620_v57  ;;  %v3093_v45 = vcombine.low %v2985_v22, %v1469_v1  ;;  %v2627_v22 = vld [vmem:[%s3254_s1 + $0xa8] sm:$0xff]  }
  0x4c   : > { %2303 = vmatpush3.bf16.msra.mxu1 %v2619_v37  ;;  %v2634_v37 = vld [vmem:[%s3254_s1 + $0x1c0] sm:$0xff]  }
  0x4d   : > { %2304 = vmatprep.subr.bf16.mxu1 %v2621_v53 }
  0x4e   : > { %2399 = vmatpush3.bf16.msra.mxu0 %v2620_v57 }
  0x4f   : > { %2297 = vmatmul.mubr.bf16.gmra.mrb[4].mxu1 %v3079_v11  ;;  %2400 = vmatprep.subr.bf16.mxu0 %v2622_v30 }
  0x50   : > { %2305 = vmatpush3.bf16.msra.mxu1 %v2621_v53  ;;  %2316 = vmatprep.mubr.bf16.mxu1 %v1945_v60 }
  0x51   : > { %2306 = vmatprep.subr.bf16.mxu1 %v2623_v48  ;;  %2393 = vmatmul.mubr.bf16.gmra.mrb[4].mxu0 %v2033_v58 }
  0x52   : > { %2401 = vmatpush3.bf16.msra.mxu0 %v2622_v30  ;;  %2412 = vmatprep.mubr.bf16.mxu0 %v2849_v3  ;;  %v2630_v3 = vld [vmem:[%s3254_s1 + $0x1b0] sm:$0xff]  }
  0x53   : > { %2402 = vmatprep.subr.bf16.mxu0 %v2624_v41 }
  0x54   : > { %2307 = vmatpush3.bf16.msra.mxu1 %v2623_v48 }
  0x55   : > { %2308 = vmatprep.subr.bf16.mxu1 %v2625_v47 }
  0x56   : > { %2403 = vmatpush3.bf16.msra.mxu0 %v2624_v41 }
  0x57   : > { %2404 = vmatprep.subr.bf16.mxu0 %v2626_v4 }
  0x58   : > { %2309 = vmatpush3.bf16.msra.mxu1 %v2625_v47 }
  0x59   : > { %2310 = vmatprep.subr.bf16.mxu1 %v2627_v22 }
  0x5a   : > { %2405 = vmatpush3.bf16.msra.mxu0 %v2626_v4 }
  0x5b   : > { %2406 = vmatprep.subr.bf16.mxu0 %v2628_v6 }
  0x5c   : > { %2311 = vmatpush3.bf16.msra.mxu1 %v2627_v22 }
  0x5d   : > { %2312 = vmatprep.subr.bf16.mxu1 %v2629_v5 }
  0x5e   : > { %2407 = vmatpush3.bf16.msra.mxu0 %v2628_v6 }
  0x5f   : > { %2408 = vmatprep.subr.bf16.mxu0 %v2630_v3 }
  0x60   : > { %2313 = vmatpush3.bf16.msra.mxu1 %v2629_v5 }
  0x61   : > { %2314 = vmatprep.subr.bf16.mxu1 %v2631_v7 }
  0x62   : > { %2409 = vmatpush3.bf16.msra.mxu0 %v2630_v3 }
  0x63   : > { %2410 = vmatprep.subr.bf16.mxu0 %v2632_v9 }
  0x64   : > { %2315 = vmatpush3.bf16.msra.mxu1 %v2631_v7 }
  0x65   : > { %2324 = vmatprep.subr.bf16.mxu1 %v2633_v8 }
  0x66   : > { %2411 = vmatpush3.bf16.msra.mxu0 %v2632_v9 }
  0x67   : > { %2317 = vmatmul.mubr.bf16.vlgmr.msra.gmra.mrb[0].mxu1 %v3130_v15  ;;  %2420 = vmatprep.subr.bf16.mxu0 %v2634_v37 }
  0x68   : > { %2325 = vmatpush3.bf16.msra.mxu1 %v2633_v8  ;;  %2320 = vmatprep.mubr.bf16.mxu1 %v3134_v32 }
  0x69   : > { %2326 = vmatprep.subr.bf16.mxu1 %v2635_v20  ;;  %2413 = vmatmul.mubr.bf16.vlgmr.msra.gmra.mrb[0].mxu0 %v2886_v31  ;;  %v2058_v31 = vcombine.low %v2925_v61, %v3015_v13  ;;  %v2644_v13 = vld [vmem:[%s3254_s1 + $0x1e8] sm:$0xff]  }
  0x6a   : > { %2421 = vmatpush3.bf16.msra.mxu0 %v2634_v37  ;;  %2416 = vmatprep.mubr.bf16.mxu0 %v2919_v59  ;;  %v2640_v59 = vld [vmem:[%s3254_s1 + $0x1d8] sm:$0xff]  }
  0x6b   : > { %2422 = vmatprep.subr.bf16.mxu0 %v2636_v27 }
  0x6c   : > { %2327 = vmatpush3.bf16.msra.mxu1 %v2635_v20 }
  0x6d   : > { %2328 = vmatprep.subr.bf16.mxu1 %v2637_v54 }
  0x6e   : > { %2423 = vmatpush3.bf16.msra.mxu0 %v2636_v27 }
  0x6f   : > { %2321 = vmatmul.mubr.bf16.gmra.mrb[4].mxu1 %v3151_v62  ;;  %2424 = vmatprep.subr.bf16.mxu0 %v2638_v39 }
  0x70   : > { %2329 = vmatpush3.bf16.msra.mxu1 %v2637_v54  ;;  %2340 = vmatprep.mubr.bf16.mxu1 %v1973_v23  ;;  %v2645_v23 = vld [vmem:[%s3254_s1 + $0xf0] sm:$0xff]  }
  0x71   : > { %2330 = vmatprep.subr.bf16.mxu1 %v2639_v2  ;;  %2417 = vmatmul.mubr.bf16.gmra.mrb[4].mxu0 %v2058_v31 }
  0x72   : > { %2425 = vmatpush3.bf16.msra.mxu0 %v2638_v39  ;;  %2436 = vmatprep.mubr.bf16.mxu0 %v3020_v16  ;;  %v2647_v16 = vld [vmem:[%s3254_s1 + $0x1f0] sm:$0xff]  }
  0x73   : > { %2426 = vmatprep.subr.bf16.mxu0 %v2640_v59 }
  0x74   : > { %2331 = vmatpush3.bf16.msra.mxu1 %v2639_v2 }
  0x75   : > { %2332 = vmatprep.subr.bf16.mxu1 %v2641_v40 }
  0x76   : > { %2427 = vmatpush3.bf16.msra.mxu0 %v2640_v59 }
  0x77   : > { %2428 = vmatprep.subr.bf16.mxu0 %v2642_v18 }
  0x78   : > { %2333 = vmatpush3.bf16.msra.mxu1 %v2641_v40 }
  0x79   : > { %2334 = vmatprep.subr.bf16.mxu1 %v2643_v12 }
  0x7a   : > { %2429 = vmatpush3.bf16.msra.mxu0 %v2642_v18 }
  0x7b   : > { %2430 = vmatprep.subr.bf16.mxu0 %v2644_v13 }
  0x7c   : > { %2335 = vmatpush3.bf16.msra.mxu1 %v2643_v12 }
  0x7d   : > { %2336 = vmatprep.subr.bf16.mxu1 %v2645_v23 }
  0x7e   : > { %2431 = vmatpush3.bf16.msra.mxu0 %v2644_v13 }
  0x7f   : > { %2432 = vmatprep.subr.bf16.mxu0 %v2647_v16 }
  0x80   : > { %2337 = vmatpush3.bf16.msra.mxu1 %v2645_v23 }
  0x81   : > { %2338 = vmatprep.subr.bf16.mxu1 %v2648_v19 }
  0x82   : > { %2433 = vmatpush3.bf16.msra.mxu0 %v2647_v16 }
  0x83   : > { %2434 = vmatprep.subr.bf16.mxu0 %v2649_v42 }
  0x84   : > { %2339 = vmatpush3.bf16.msra.mxu1 %v2648_v19 }
  0x85   : > { %2468 = vmatprep.subr.bf16.mxu1 %v2652_v34 }
  0x86   : > { %2435 = vmatpush3.bf16.msra.mxu0 %v2649_v42 }
  0x87   : > { %2341 = vmatmul.mubr.bf16.vlgmr.msra.gmra.mrb[0].mxu1 %v1974_v10  ;;  %2444 = vmatprep.subr.bf16.mxu0 %v2652_v34  ;;  %v2659_v10 = vld [vmem:[%s3254_s1 + $0x228] sm:$0xff]  }
  0x88   : > { %2476 = vmatpush3.bf16.msra.mxu1 %v2652_v34  ;;  %2344 = vmatprep.mubr.bf16.mxu1 %v1975_v50 }
  0x89   : > { %2469 = vmatprep.subr.bf16.mxu1 %v2653_v25  ;;  %2437 = vmatmul.mubr.bf16.vlgmr.msra.gmra.mrb[0].mxu0 %v3035_v28 }
  0x8a   : > { %2445 = vmatpush3.bf16.msra.mxu0 %v2652_v34  ;;  %2440 = vmatprep.mubr.bf16.mxu0 %v3079_v11 }
  0x8b   : > { %2446 = vmatprep.subr.bf16.mxu0 %v2653_v25 }
  0x8c   : > { %2477 = vmatpush3.bf16.msra.mxu1 %v2653_v25 }
  0x8d   : > { %2470 = vmatprep.subr.bf16.mxu1 %v2656_v44 }
  0x8e   : > { %2447 = vmatpush3.bf16.msra.mxu0 %v2653_v25 }
  0x8f   : > { %2345 = vmatmul.mubr.bf16.gmra.mrb[4].mxu1 %v1976_v46  ;;  %2448 = vmatprep.subr.bf16.mxu0 %v2656_v44 }
  0x90   : > { %2478 = vmatpush3.bf16.msra.mxu1 %v2656_v44  ;;  %2464 = vmatprep.mubr.bf16.mxu1 %v3151_v62 }
  0x91   : > { %2471 = vmatprep.subr.bf16.mxu1 %v2657_v26  ;;  %2441 = vmatmul.mubr.bf16.gmra.mrb[4].mxu0 %v3093_v45 }
  0x92   : > { %2449 = vmatpush3.bf16.msra.mxu0 %v2656_v44  ;;  %2460 = vmatprep.mubr.bf16.mxu0 %v3130_v15 }
  0x93   : > { %2450 = vmatprep.subr.bf16.mxu0 %v2657_v26 }
  0x94   : > { %2479 = vmatpush3.bf16.msra.mxu1 %v2657_v26 }
  0x95   : > { %2472 = vmatprep.subr.bf16.mxu1 %v2658_v43 }
  0x96   : > { %2451 = vmatpush3.bf16.msra.mxu0 %v2657_v26 }
  0x97   : > { %2452 = vmatprep.subr.bf16.mxu0 %v2658_v43 }
  0x98   : > { %2480 = vmatpush3.bf16.msra.mxu1 %v2658_v43 }
  0x99   : > { %2473 = vmatprep.subr.bf16.mxu1 %v2659_v10 }
  0x9a   : > { %2453 = vmatpush3.bf16.msra.mxu0 %v2658_v43 }
  0x9b   : > { %2454 = vmatprep.subr.bf16.mxu0 %v2659_v10 }
  0x9c   : > { %2481 = vmatpush3.bf16.msra.mxu1 %v2659_v10 }
  0x9d   : > { %2474 = vmatprep.subr.bf16.mxu1 %v2660_v29 }
  0x9e   : > { %2455 = vmatpush3.bf16.msra.mxu0 %v2659_v10 }
  0x9f   : > { %2456 = vmatprep.subr.bf16.mxu0 %v2660_v29 }
  0xa0   : > { %2482 = vmatpush3.bf16.msra.mxu1 %v2660_v29 }
  0xa1   : > { %2475 = vmatprep.subr.bf16.mxu1 %v2661_v36 }
  0xa2   : > { %2457 = vmatpush3.bf16.msra.mxu0 %v2660_v29 }
  0xa3   : > { %2458 = vmatprep.subr.bf16.mxu0 %v2661_v36 }
  0xa4   : > { %2483 = vmatpush3.bf16.msra.mxu1 %v2661_v36 }
  0xa6   : > { %2459 = vmatpush3.bf16.msra.mxu0 %v2661_v36 }
  0xa7   : > { %2465 = vmatmul.mubr.bf16.vlgmr.msra.gmra.mrb[8].mxu1 %v2109_v33 }
  0xa9   : > { %2461 = vmatmul.mubr.bf16.vlgmr.msra.gmra.mrb[0].mxu0 %v3134_v32 }
 0x15a   : > { %v2342_v50 = vpop.f32.mrb[0].mxu1 }
 0x15b   : > { %v962_v56 = vpop.f32.mrb[1].mxu1  ;;  %v2484_v22 = vadd.f32 %v2342_v50, %v1880_v52 }
 0x15c   : > { %v2343_v61 = vpop.f32.mrb[2].mxu1  ;;  %v2486_v6 = vadd.f32 %v1880_v52, %v962_v56 }
 0x15d   : > { %v965_v46 = vpop.f32.mrb[3].mxu1  ;;  %v2488_v8 = vadd.f32 %v2343_v61, %v1880_v52 }
 0x15e   : > { %v2490_v20 = vadd.f32 %v1880_v52, %v965_v46 }
 0x162   : > { %v2346_v28 = vpop.f32.mrb[4].mxu1 }
 0x163   : > { %v978_v53 = vpop.f32.mrb[5].mxu1  ;;  %v2492_v55 = vadd.f32 %v2346_v28, %v1880_v52 }
 0x164   : > { %v2347_v21 = vpop.f32.mrb[6].mxu1  ;;  %v2495_v17 = vadd.f32 %v1880_v52, %v978_v53  ;;  %v2442_v14 = vpop.f32.mrb[4].mxu0 }
 0x165   : > { %v981_v24 = vpop.f32.mrb[7].mxu1  ;;  %v2498_v49 = vadd.f32 %v2347_v21, %v1880_v52  ;;  %v2493_v33 = vadd.f32 %v2492_v55, %v2442_v14  ;;  %v1588_v57 = vpop.f32.mrb[5].mxu0 }
 0x166   : > { %v2501_v38 = vadd.f32 %v1880_v52, %v981_v24  ;;  %v2496_v63 = vadd.f32 %v2495_v17, %v1588_v57  ;;  %v2443_v0 = vpop.f32.mrb[6].mxu0 }
 0x167   : > { %v2499_v11 = vadd.f32 %v2498_v49, %v2443_v0  ;;  %v1591_v35 = vpop.f32.mrb[7].mxu0 }
 0x168   : > { %v2502_v60 = vadd.f32 %v2501_v38, %v1591_v35 }
 0x17a   : > { %v2466_v48 = vpop.f32.mrb[8].mxu1 }
 0x17b   : > { %v2494_v51 = vadd.f32 %v2493_v33, %v2466_v48  ;;  %v1734_v1 = vpop.f32.mrb[9].mxu1 }
 0x17c   : > { %v2497_v30 = vadd.f32 %v2496_v63, %v1734_v1  ;;  %v2467_v45 = vpop.f32.mrb[10].mxu1  ;;  %v2462_v7 = vpop.f32.mrb[0].mxu0 }
 0x17d   : > { %v1763_v58 = vmul.f32 0.1, %v2494_v51  ;;  %v2500_v47 = vadd.f32 %v2499_v11, %v2467_v45  ;;  %v1737_v41 = vpop.f32.mrb[11].mxu1  ;;  %v2485_v9 = vadd.f32 %v2484_v22, %v2462_v7  ;;  %v1718_v15 = vpop.f32.mrb[1].mxu0 }
 0x17e   : > { %v1761_v4 = vmul.f32 0.1, %v2497_v30  ;;  %v2503_v5 = vadd.f32 %v2502_v60, %v1737_v41  ;;  %v2487_v54 = vadd.f32 %v2486_v6, %v1718_v15  ;;  %v2463_v27 = vpop.f32.mrb[2].mxu0 }
 0x17f   : > { %v1764_v3 = vmul.f32 0.1, %v2500_v47  ;;  %v1771_v37 = vmax.f32 %v2494_v51, %v1763_v58  ;;  %v1759_v2 = vmul.f32 0.1, %v2485_v9  ;;  %v2489_v31 = vadd.f32 %v2488_v8, %v2463_v27  ;;  %v1721_v40 = vpop.f32.mrb[3].mxu0 }
 0x180   : > { %v1762_v32 = vmul.f32 0.1, %v2503_v5  ;;  %v1769_v39 = vmax.f32 %v2497_v30, %v1761_v4  ;;  %v1757_v12 = vmul.f32 0.1, %v2487_v54  ;;  %v2491_v23 = vadd.f32 %v2490_v20, %v1721_v40 }
 0x181   : > { %v1772_v62 = vmax.f32 %v2500_v47, %v1764_v3  ;;  %v1760_v13 = vmul.f32 0.1, %v2489_v31  ;;  %v1767_v34 = vmax.f32 %v2485_v9, %v1759_v2 }
 0x182   : > { %v1770_v59 = vmax.f32 %v2503_v5, %v1762_v32  ;;  %v1758_v16 = vmul.f32 0.1, %v2491_v23  ;;  %v1765_v25 = vmax.f32 %v2487_v54, %v1757_v12 }
 0x183   : > { %v2139_v18 = vpack.c.bf16 %v1772_v62, %v1771_v37  ;;  %v1768_v42 = vmax.f32 %v2489_v31, %v1760_v13 }
 0x184   : > { %v2134_v19 = vpack.c.bf16 %v1770_v59, %v1769_v39  ;;  %v1766_v44 = vmax.f32 %v2491_v23, %v1758_v16 }
 0x185   : > { %2143 = vst [vmem:[%s192_s5 + $0x18] sm:$0xff] %v2139_v18   ;;  %v2129_v26 = vpack.c.bf16 %v1768_v42, %v1767_v34 }
 0x186   : > { %2142 = vst [vmem:[%s192_s5 + $0x10] sm:$0xff] %v2134_v19   ;;  %v2124_v43 = vpack.c.bf16 %v1766_v44, %v1765_v25 }
 0x187   : > { %2141 = vst [vmem:[%s192_s5 + $0x8] sm:$0xff] %v2129_v26  }
 0x188   : > { %2125 = vst [vmem:[%s192_s5] sm:$0xff] %v2124_v43  }
 0x189 PF: > { %s13_s14 = sadd.s32 1, %s2684_s14   ;;  %s3261_s12 = smov %s2680_s13 }
 0x18a   : > { %p10_p5 = scmp.ge.s32.totalorder %s13_s14, 4   ;;  %s3262_s13 = smov %s3264_s15 }
 0x18c   :  { %12 = sbr.rel (!%p10_p5) target bundleno = 2 (0x2), region = 71 }

// kernel: darknet_forward.13
= control target key start
LH: loop header
LB: loop body
LE: loop exit
PB: predicated region body
PF: predicated region fallthrough
CT: control target
= control target key end

     0   :  { %s654_s12 = smov 0   ;;  %s656_s13 = smov 0   ;;  %s727_s0 = inlined_call_operand.vmem [shape: bf16[2,8,8,128], index: 0, kind: input, shape index: {}]   ;;  %s728_s1 = inlined_call_operand.vmem [shape: bf16[1,128,128], index: 1, kind: input, shape index: {}]   ;;  %s729_s2 = inlined_call_operand.vmem [shape: f32[1,128], index: 2, kind: input, shape index: {}]   ;;  %s730_s3 = inlined_call_operand.vmem [shape: bf16[2,8,8,128], index: 3, kind: output, shape index: {}]  }
   0x1   :  { %s658_s14 = smov 0  }
   0x2 LB: > { %s25_s15 = sadd.s32 1, %s628_s13  ;;  %p477_p0 = scmp.ge.s32.totalorder %s632_s14, 1  ;;  %s632_s14 = sphi %s658_s14, %s13_s14   ;;  %s628_s13 = sphi %s656_s13, %s732_s13   ;;  %s624_s12 = sphi %s654_s12, %s731_s12  }
   0x3   : > { %p27_p1 = scmp.ge.s32.totalorder %s25_s15, 2  ;;  %p151_p2 = scmp.lt.s32.totalorder %s632_s14, 3 }
   0x5   : > { %s734_s15 = smov (%p27_p1, %s25_s15), 0  ;;  %p152_p3 = pnand %p477_p0, %p151_p2 }
   0x6   : > { %v598_v0 = vld [vmem:[%s728_s1] sm:$0xff] (!%p152_p3)   ;;  %p179_p4 = scmp.lt.s32.totalorder (!%p152_p3), %s624_s12, 1  ;;  %v599_v1 = vld [vmem:[%s728_s1 + $0x8] sm:$0xff] (!%p152_p3)   ;;  %v600_v2 = vld [vmem:[%s728_s1 + $0x10] sm:$0xff] (!%p152_p3)  }
   0x7   : > { %155 = sbr.rel (%p152_p3) target bundleno = 259 (0x103), region = 32  ;;  %534 = vmatprep.subr.bf16.mxu0 (!%p152_p3), %v598_v0  ;;  %558 = vmatprep.subr.bf16.mxu1 (!%p152_p3), %v598_v0  ;;  %v601_v3 = vld [vmem:[%s728_s1 + $0x18] sm:$0xff] (!%p152_p3)   ;;  %v602_v6 = vld [vmem:[%s728_s1 + $0x20] sm:$0xff] (!%p152_p3)   ;;  %v603_v7 = vld [vmem:[%s728_s1 + $0x28] sm:$0xff] (!%p152_p3)  }
   0x8   : > { %535 = vmatpush3.bf16.msra.mxu0 (!%p152_p3), %v598_v0  ;;  %566 = vmatpush3.bf16.msra.mxu1 (!%p152_p3), %v598_v0  ;;  %v604_v8 = vld [vmem:[%s728_s1 + $0x30] sm:$0xff] (!%p152_p3)   ;;  %v605_v9 = vld [vmem:[%s728_s1 + $0x38] sm:$0xff] (!%p152_p3)   ;;  %v482_v12 = vld [vmem:[%s729_s2] ss:$0 sm:$0xff] (!%p152_p3) }
   0x9   : > { %536 = vmatprep.subr.bf16.mxu0 (!%p152_p3), %v599_v1  ;;  %559 = vmatprep.subr.bf16.mxu1 (!%p152_p3), %v599_v1 }
   0xc   : > { %537 = vmatpush3.bf16.msra.mxu0 (!%p152_p3), %v599_v1  ;;  %567 = vmatpush3.bf16.msra.mxu1 (!%p152_p3), %v599_v1 }
   0xd   : > { %538 = vmatprep.subr.bf16.mxu0 (!%p152_p3), %v600_v2  ;;  %560 = vmatprep.subr.bf16.mxu1 (!%p152_p3), %v600_v2 }
   0xe   : > { %s736_s12 = smov (!%p179_p4, %s624_s12), 1 }
   0xf   : > { %s497_s22 = sshll.u32 %s736_s12, 5 }
  0x10   : > { %s689_s25 = scalar_lea.vmem %s727_s0, %s497_s22  ;;  %539 = vmatpush3.bf16.msra.mxu0 %v600_v2  ;;  %568 = vmatpush3.bf16.msra.mxu1 %v600_v2  ;;  %s192_s17 = scalar_lea.vmem %s730_s3, %s497_s22 }
  0x11   : > { %v606_v4 = vld [vmem:[%s689_s25] sm:$0xff]   ;;  %v607_v5 = vld [vmem:[%s689_s25 + $0x10] sm:$0xff]   ;;  %540 = vmatprep.subr.bf16.mxu0 %v601_v3  ;;  %561 = vmatprep.subr.bf16.mxu1 %v601_v3  ;;  %v608_v10 = vld [vmem:[%s689_s25 + $0x8] sm:$0xff]  }
  0x12   : > { %550 = vmatprep.mubr.bf16.mxu0 %v606_v4  ;;  %554 = vmatprep.mubr.bf16.mxu1 %v607_v5  ;;  %v609_v11 = vld [vmem:[%s689_s25 + $0x18] sm:$0xff]  }
  0x14   : > { %541 = vmatpush3.bf16.msra.mxu0 %v601_v3  ;;  %569 = vmatpush3.bf16.msra.mxu1 %v601_v3 }
  0x15   : > { %542 = vmatprep.subr.bf16.mxu0 %v602_v6  ;;  %562 = vmatprep.subr.bf16.mxu1 %v602_v6 }
  0x18   : > { %543 = vmatpush3.bf16.msra.mxu0 %v602_v6  ;;  %570 = vmatpush3.bf16.msra.mxu1 %v602_v6 }
  0x19   : > { %544 = vmatprep.subr.bf16.mxu0 %v603_v7  ;;  %563 = vmatprep.subr.bf16.mxu1 %v603_v7 }
  0x1c   : > { %545 = vmatpush3.bf16.msra.mxu0 %v603_v7  ;;  %571 = vmatpush3.bf16.msra.mxu1 %v603_v7 }
  0x1d   : > { %546 = vmatprep.subr.bf16.mxu0 %v604_v8  ;;  %564 = vmatprep.subr.bf16.mxu1 %v604_v8 }
  0x20   : > { %547 = vmatpush3.bf16.msra.mxu0 %v604_v8  ;;  %572 = vmatpush3.bf16.msra.mxu1 %v604_v8 }
  0x21   : > { %548 = vmatprep.subr.bf16.mxu0 %v605_v9  ;;  %565 = vmatprep.subr.bf16.mxu1 %v605_v9 }
  0x24   : > { %549 = vmatpush3.bf16.msra.mxu0 %v605_v9  ;;  %573 = vmatpush3.bf16.msra.mxu1 %v605_v9 }
  0x27   : > { %551 = vmatmul.mubr.bf16.vlgmr.msra.gmra.mrb[0].mxu0 %v608_v10  ;;  %555 = vmatmul.mubr.bf16.vlgmr.msra.gmra.mrb[0].mxu1 %v609_v11 }
  0xfa   : > { %v552_v13 = vpop.f32.mrb[0].mxu0  ;;  %v556_v14 = vpop.f32.mrb[0].mxu1 }
  0xfb   : > { %v335_v15 = vpop.f32.mrb[1].mxu0  ;;  %v351_v16 = vpop.f32.mrb[1].mxu1  ;;  %v368_v19 = vadd.f32 %v552_v13, %v482_v12  ;;  %v372_v20 = vadd.f32 %v556_v14, %v482_v12 }
  0xfc   : > { %v553_v17 = vpop.f32.mrb[2].mxu0  ;;  %v557_v18 = vpop.f32.mrb[2].mxu1  ;;  %v366_v25 = vadd.f32 %v482_v12, %v335_v15  ;;  %v370_v26 = vadd.f32 %v482_v12, %v351_v16 }
  0xfd   : > { %v369_v21 = vadd.f32 %v553_v17, %v482_v12  ;;  %v373_v22 = vadd.f32 %v557_v18, %v482_v12  ;;  %v338_v23 = vpop.f32.mrb[3].mxu0  ;;  %v354_v24 = vpop.f32.mrb[3].mxu1 }
  0xfe   : > { %v367_v27 = vadd.f32 %v482_v12, %v338_v23  ;;  %v371_v28 = vadd.f32 %v482_v12, %v354_v24 }
  0xff   : > { %v507_v29 = vpack.c.bf16 %v369_v21, %v368_v19  ;;  %v517_v30 = vpack.c.bf16 %v373_v22, %v372_v20 }
 0x100   : > { %v502_v31 = vpack.c.bf16 %v367_v27, %v366_v25  ;;  %v512_v32 = vpack.c.bf16 %v371_v28, %v370_v26 }
 0x101   : > { %519 = vst [vmem:[%s192_s17 + $0x8] sm:$0xff] %v507_v29   ;;  %521 = vst [vmem:[%s192_s17 + $0x18] sm:$0xff] %v517_v30  }
 0x102   : > { %503 = vst [vmem:[%s192_s17] sm:$0xff] %v502_v31   ;;  %520 = vst [vmem:[%s192_s17 + $0x10] sm:$0xff] %v512_v32  }
 0x103 PF: > { %s13_s14 = sadd.s32 1, %s632_s14   ;;  %s731_s12 = smov %s628_s13 }
 0x104   : > { %p10_p5 = scmp.ge.s32.totalorder %s13_s14, 4   ;;  %s732_s13 = smov %s734_s15 }
 0x106   :  { %12 = sbr.rel (!%p10_p5) target bundleno = 2 (0x2), region = 63 }

// kernel: darknet_forward.14
= control target key start
LH: loop header
LB: loop body
LE: loop exit
PB: predicated region body
PF: predicated region fallthrough
CT: control target
= control target key end

     0   :  { %s609_s9 = smov 0   ;;  %s611_s10 = smov 0   ;;  %s725_s0 = inlined_call_operand.vmem [shape: bf16[2,8,8,128], index: 0, kind: input, shape index: {}]   ;;  %s726_s1 = inlined_call_operand.vmem [shape: f32[1,1,128], index: 1, kind: input, shape index: {}]   ;;  %s727_s2 = inlined_call_operand.vmem [shape: f32[2,8,8,128], index: 2, kind: output, shape index: {}]  }
   0x1   :  { %s613_s11 = smov 0  }
   0x2 LB: > { %s24_s12 = sadd.s32 1, %s587_s10  ;;  %p459_p0 = scmp.ge.s32.totalorder %s591_s11, 1  ;;  %s591_s11 = sphi %s613_s11, %s12_s11   ;;  %s587_s10 = sphi %s611_s10, %s731_s10   ;;  %s583_s9 = sphi %s609_s9, %s730_s9  }
   0x3   : > { %p26_p1 = scmp.ge.s32.totalorder %s24_s12, 2  ;;  %p133_p2 = scmp.lt.s32.totalorder %s591_s11, 3 }
   0x5   : > { %s733_s12 = smov (%p26_p1, %s24_s12), 0  ;;  %p134_p3 = pnand %p459_p0, %p133_p2 }
   0x6   : > { %p164_p4 = scmp.lt.s32.totalorder (!%p134_p3), %s583_s9, 1  ;;  %v218_v0 = vlaneseq (!%p134_p3)  ;;  %v593_v50 = vmov (!%p134_p3), 0.0  }
   0x7   : > { %137 = sbr.rel (%p134_p3) target bundleno = 68 (0x44), region = 28 }
   0x8   : > { %v222_v1 = vand.u32 (!%p134_p3), 127, %v218_v0  ;;  %v219_v30 = vshrl.u32 (!%p134_p3), %v218_v0, 7 }
   0xa   : > { %v630_v2 = vand.u32 (!%p134_p3), 7, %v222_v1  ;;  %v220_v39 = vcvt.s32.f32 (!%p134_p3), %v219_v30 }
   0xc   : > { %vm283_vm0 = vcmp.eq.s32.totalorder (!%p134_p3), %v630_v2, 2  ;;  %vm284_vm1 = vcmp.eq.s32.totalorder (!%p134_p3), %v630_v2, 3  ;;  %vm310_vm3 = vcmp.eq.s32.totalorder (!%p134_p3), %v630_v2, 0  ;;  %vm312_vm4 = vcmp.eq.s32.totalorder (!%p134_p3), %v630_v2, 1 }
   0xd   : > { %vm637_vm2 = vmor (!%p134_p3), %vm283_vm0, %vm284_vm1  ;;  %v657_v49 = vsel (!%p134_p3), %vm310_vm3, %v220_v39, 0.0  ;;  %v314_v51 = vsel (!%p134_p3), %vm312_vm4, 1.0, %v593_v50  ;;  %v315_v56 = vsel (!%p134_p3), %vm312_vm4, 2.0, %v593_v50  ;;  %v316_v62 = vsel (!%p134_p3), %vm312_vm4, 3.0, %v593_v50 }
   0xe   : > { %s735_s9 = smov (!%p164_p4, %s583_s9), 1  ;;  %v322_v60 = vadd.f32 %v314_v51, %v657_v49 }
   0xf   : > { %s475_s13 = sshll.u32 %s735_s9, 5  ;;  %s476_s17 = sshll.u32 %s735_s9, 6 }
  0x10   : > { %s171_s16 = scalar_lea.vmem %s725_s0, %s475_s13  ;;  %s679_s22 = scalar_lea.vmem %s727_s2, %s476_s17 }
  0x11   : > { %v478_v3 = vld [vmem:[%s171_s16] sm:$0xff]   ;;  %v493_v4 = vld [vmem:[%s171_s16 + $0x8] sm:$0xff]   ;;  %v494_v11 = vld [vmem:[%s171_s16 + $0x10] sm:$0xff]  }
  0x12   : > { %v479_v5 = vunpack.c.l.bf16 %v478_v3  ;;  %v480_v6 = vunpack.c.h.bf16 %v478_v3  ;;  %v483_v7 = vunpack.c.l.bf16 %v493_v4  ;;  %v484_v10 = vunpack.c.h.bf16 %v493_v4  ;;  %v495_v17 = vld [vmem:[%s171_s16 + $0x18] sm:$0xff]   ;;  %v472_v3 = vld [vmem:[%s726_s1] ss:$0 sm:$0xff] }
  0x13   : > { %v487_v16 = vunpack.c.l.bf16 %v494_v11  ;;  %v488_v18 = vunpack.c.h.bf16 %v494_v11  ;;  %v491_v23 = vunpack.c.l.bf16 %v495_v17  ;;  %v492_v27 = vunpack.c.h.bf16 %v495_v17 }
  0x14   : > { %v464_v8 = vmul.f32 -1.442695, %v479_v5  ;;  %v465_v9 = vmul.f32 -1.442695, %v480_v6  ;;  %v466_v13 = vmul.f32 -1.442695, %v483_v7  ;;  %v323_v4 = vadd.f32 %v315_v56, %v657_v49 }
  0x15   : > { %v286_v14 = vsel %vm637_vm2, %v479_v5, 0.0  ;;  %v467_v15 = vmul.f32 -1.442695, %v484_v10  ;;  %v287_v19 = vsel %vm637_vm2, %v480_v6, 0.0  ;;  %v468_v20 = vmul.f32 -1.442695, %v487_v16 }
  0x16   : > { %521 = vpow2.f32 %v464_v8  ;;  %v294_v21 = vmul.f32 1.442695, %v286_v14  ;;  %v469_v22 = vmul.f32 -1.442695, %v488_v18  ;;  %v296_v24 = vmul.f32 1.442695, %v287_v19 }
  0x17   : > { %523 = vpow2.f32 %v465_v9  ;;  %v288_v25 = vsel %vm637_vm2, %v483_v7, 0.0  ;;  %v470_v26 = vmul.f32 -1.442695, %v491_v23  ;;  %v289_v32 = vsel %vm637_vm2, %v484_v10, 0.0 }
  0x18   : > { %525 = vpow2.f32 %v466_v13  ;;  %v298_v29 = vmul.f32 1.442695, %v288_v25  ;;  %v471_v34 = vmul.f32 -1.442695, %v492_v27  ;;  %v290_v36 = vsel %vm637_vm2, %v487_v16, 0.0 }
  0x19   : > { %527 = vpow2.f32 %v467_v15  ;;  %v300_v38 = vmul.f32 1.442695, %v289_v32  ;;  %v291_v41 = vsel %vm637_vm2, %v488_v18, 0.0  ;;  %v302_v43 = vmul.f32 1.442695, %v290_v36 }
  0x1a   : > { %529 = vpow2.f32 %v468_v20  ;;  %v292_v45 = vsel %vm637_vm2, %v491_v23, 0.0  ;;  %v304_v47 = vmul.f32 1.442695, %v291_v41  ;;  %v293_v58 = vsel %vm637_vm2, %v492_v27, 0.0 }
  0x1b   : > { %531 = vpow2.f32 %v294_v21  ;;  %v306_v54 = vmul.f32 1.442695, %v292_v45  ;;  %v308_v5 = vmul.f32 1.442695, %v293_v58  ;;  %v317_v7 = vsel %vm312_vm4, 4.0, %v593_v50 }
  0x1c   : > { %533 = vpow2.f32 %v469_v22  ;;  %v324_v11 = vadd.f32 %v316_v62, %v657_v49  ;;  %v318_v15 = vsel %vm312_vm4, 5.0, %v593_v50  ;;  %v325_v20 = vadd.f32 %v317_v7, %v657_v49 }
  0x1d   : > { %535 = vpow2.f32 %v296_v24  ;;  %v319_v23 = vsel %vm312_vm4, 6.0, %v593_v50  ;;  %v326_v27 = vadd.f32 %v318_v15, %v657_v49  ;;  %v320_v36 = vsel %vm312_vm4, 7.0, %v593_v50 }
  0x1e   : > { %537 = vpow2.f32 %v470_v26 }
  0x20   : > { %v522_v28 = vpop.eup %521 }
  0x21   : > { %v259_v31 = vadd.f32 1.0, %v522_v28  ;;  %v524_v33 = vpop.eup %523 }
  0x22   : > { %v260_v35 = vadd.f32 1.0, %v524_v33  ;;  %v526_v37 = vpop.eup %525  ;;  %v327_v33 = vadd.f32 %v319_v23, %v657_v49 }
  0x23   : > { %539 = vrcp.f32 %v259_v31  ;;  %v261_v40 = vadd.f32 1.0, %v526_v37  ;;  %v528_v42 = vpop.eup %527 }
  0x24   : > { %541 = vpow2.f32 %v298_v29  ;;  %v262_v44 = vadd.f32 1.0, %v528_v42  ;;  %v530_v46 = vpop.eup %529 }
  0x25   : > { %543 = vrcp.f32 %v260_v35  ;;  %v532_v48 = vpop.eup %531  ;;  %v263_v52 = vadd.f32 1.0, %v530_v46 }
  0x26   : > { %545 = vpow2.f32 %v471_v34  ;;  %v534_v53 = vpop.eup %533 }
  0x27   : > { %547 = vrcp.f32 %v261_v40  ;;  %v536_v55 = vpop.eup %535  ;;  %v264_v57 = vadd.f32 1.0, %v534_v53 }
  0x28   : > { %549 = vpow2.f32 %v300_v38  ;;  %v538_v59 = vpop.eup %537 }
  0x29   : > { %551 = vrcp.f32 %v262_v44  ;;  %v265_v63 = vadd.f32 1.0, %v538_v59  ;;  %v328_v44 = vadd.f32 %v320_v36, %v657_v49 }
  0x2a   : > { %553 = vpow2.f32 %v302_v43 }
  0x2b   : > { %555 = vrcp.f32 %v263_v52 }
  0x2c   : > { %557 = vpow2.f32 %v304_v47 }
  0x2d   : > { %v540_v61 = vpop.eup %539  ;;  %559 = vrcp.f32 %v264_v57 }
  0x2e   : > { %v542_v0 = vpop.eup %541  ;;  %v329_v1 = vadd.f32 %v540_v61, %v657_v49  ;;  %561 = vpow2.f32 %v306_v54 }
  0x2f   : > { %v544_v6 = vpop.eup %543  ;;  %563 = vrcp.f32 %v265_v63 }
  0x30   : > { %v546_v8 = vpop.eup %545  ;;  %v337_v9 = vsel %vm637_vm2, %v532_v48, %v329_v1  ;;  %v330_v10 = vadd.f32 %v544_v6, %v322_v60  ;;  %565 = vpow2.f32 %v308_v5 }
  0x31   : > { %v548_v13 = vpop.eup %547  ;;  %v352_v14 = vmul.f32 %v472_v3, %v337_v9  ;;  %v266_v16 = vadd.f32 1.0, %v546_v8 }
  0x32   : > { %v550_v17 = vpop.eup %549  ;;  %v338_v18 = vsel %vm637_vm2, %v536_v55, %v330_v10  ;;  %v331_v19 = vadd.f32 %v548_v13, %v323_v4 }
  0x33   : > { %v552_v21 = vpop.eup %551  ;;  %360 = vst [vmem:[%s679_s22] sm:$0xff] %v352_v14  ;;  %v353_v22 = vmul.f32 %v472_v3, %v338_v18  ;;  %567 = vrcp.f32 %v266_v16 }
  0x34   : > { %v554_v24 = vpop.eup %553  ;;  %v339_v25 = vsel %vm637_vm2, %v542_v0, %v331_v19  ;;  %v332_v26 = vadd.f32 %v552_v21, %v324_v11 }
  0x35   : > { %v556_v28 = vpop.eup %555  ;;  %361 = vst [vmem:[%s679_s22 + $0x8] sm:$0xff] %v353_v22  ;;  %v354_v29 = vmul.f32 %v472_v3, %v339_v25 }
  0x36   : > { %v558_v30 = vpop.eup %557  ;;  %v340_v31 = vsel %vm637_vm2, %v550_v17, %v332_v26  ;;  %v333_v32 = vadd.f32 %v556_v28, %v325_v20 }
  0x37   : > { %v560_v34 = vpop.eup %559  ;;  %362 = vst [vmem:[%s679_s22 + $0x10] sm:$0xff] %v354_v29  ;;  %v355_v35 = vmul.f32 %v472_v3, %v340_v31 }
  0x38   : > { %v562_v37 = vpop.eup %561  ;;  %v341_v38 = vsel %vm637_vm2, %v554_v24, %v333_v32  ;;  %v334_v39 = vadd.f32 %v560_v34, %v326_v27 }
  0x39   : > { %v564_v40 = vpop.eup %563  ;;  %363 = vst [vmem:[%s679_s22 + $0x18] sm:$0xff] %v355_v35  ;;  %v356_v41 = vmul.f32 %v472_v3, %v341_v38 }
  0x3a   : > { %v342_v42 = vsel %vm637_vm2, %v558_v30, %v334_v39  ;;  %v335_v43 = vadd.f32 %v564_v40, %v327_v33  ;;  %v566_v45 = vpop.eup %565 }
  0x3b   : > { %364 = vst [vmem:[%s679_s22 + $0x20] sm:$0xff] %v356_v41  ;;  %v357_v2 = vmul.f32 %v472_v3, %v342_v42 }
  0x3c   : > { %v343_v46 = vsel %vm637_vm2, %v562_v37, %v335_v43 }
  0x3d   : > { %v568_v47 = vpop.eup %567  ;;  %365 = vst [vmem:[%s679_s22 + $0x28] sm:$0xff] %v357_v2  ;;  %v358_v48 = vmul.f32 %v472_v3, %v343_v46 }
  0x3e   : > { %v336_v50 = vadd.f32 %v568_v47, %v328_v44 }
  0x3f   : > { %366 = vst [vmem:[%s679_s22 + $0x30] sm:$0xff] %v358_v48 }
  0x40   : > { %v344_v51 = vsel %vm637_vm2, %v566_v45, %v336_v50 }
  0x41   : > { %v359_v52 = vmul.f32 %v472_v3, %v344_v51 }
  0x43   : > { %367 = vst [vmem:[%s679_s22 + $0x38] sm:$0xff] %v359_v52 }
  0x44 PF: > { %s12_s11 = sadd.s32 1, %s591_s11   ;;  %s730_s9 = smov %s587_s10 }
  0x45   : > { %p9_p5 = scmp.ge.s32.totalorder %s12_s11, 4   ;;  %s731_s10 = smov %s733_s12 }
  0x47   :  { %11 = sbr.rel (!%p9_p5) target bundleno = 2 (0x2), region = 58 }

// kernel: darknet_forward.9
= control target key start
LH: loop header
LB: loop body
LE: loop exit
PB: predicated region body
PF: predicated region fallthrough
CT: control target
= control target key end

     0   :  { %s5292_s12 = smov 0   ;;  %s5294_s13 = smov 0   ;;  %s6484_s0 = inlined_call_operand.vmem [shape: bf16[2,18,18,128], index: 0, kind: input, shape index: {}]   ;;  %s6485_s1 = inlined_call_operand.vmem [shape: bf16[9,128,128], index: 1, kind: input, shape index: {}]   ;;  %s6486_s2 = inlined_call_operand.vmem [shape: f32[1,128], index: 2, kind: input, shape index: {}]   ;;  %s6487_s3 = inlined_call_operand.vmem [shape: bf16[2,16,16,128], index: 3, kind: output, shape index: {}]  }
   0x1   :  { %s5296_s14 = smov 0  }
   0x2 LB: > { %s25_s15 = sadd.s32 1, %s5266_s13  ;;  %p3734_p0 = scmp.ge.s32.totalorder %s5270_s14, 1  ;;  %s5270_s14 = sphi %s5296_s14, %s13_s14   ;;  %s5266_s13 = sphi %s5294_s13, %s6625_s13   ;;  %s5262_s12 = sphi %s5292_s12, %s6624_s12  }
   0x3   : > { %p27_p1 = scmp.ge.s32.totalorder %s25_s15, 2  ;;  %p151_p2 = scmp.lt.s32.totalorder %s5270_s14, 3 }
   0x5   : > { %s6627_s15 = smov (%p27_p1, %s25_s15), 0  ;;  %p152_p3 = pnand %p3734_p0, %p151_p2 }
   0x7   : > { %155 = sbr.rel (%p152_p3) target bundleno = 555 (0x22b), region = 32 }
   0xe   : > { %v5150_v0 = vld [vmem:[%s6485_s1] sm:$0xff]   ;;  %p180_p4 = scmp.lt.s32.totalorder %s5262_s12, 1  ;;  %v5152_v2 = vld [vmem:[%s6485_s1 + $0x8] sm:$0xff]   ;;  %v5154_v4 = vld [vmem:[%s6485_s1 + $0x10] sm:$0xff]   ;;  %vm615_vm0 = vsmask.f32 3328 }
   0xf   : > { %v5151_v1 = vld [vmem:[%s6485_s1 + $0x100] sm:$0xff]   ;;  %4389 = vmatprep.subr.bf16.mxu1 %v5150_v0  ;;  %v5153_v3 = vld [vmem:[%s6485_s1 + $0x108] sm:$0xff]   ;;  %v5155_v5 = vld [vmem:[%s6485_s1 + $0x110] sm:$0xff]   ;;  %vm616_vm1 = vsmask.f32 7440  ;;  %vm1340_vm3 = vcmask 1042432  }
  0x10   : > { %4581 = vmatprep.subr.bf16.mxu0 %v5151_v1  ;;  %4390 = vmatpush3.bf16.msra.mxu1 %v5150_v0  ;;  %s6629_s12 = smov (!%p180_p4, %s5262_s12), 1  ;;  %v5156_v6 = vld [vmem:[%s6485_s1 + $0x18] sm:$0xff]   ;;  %v5158_v8 = vld [vmem:[%s6485_s1 + $0x20] sm:$0xff]   ;;  %v5160_v10 = vld [vmem:[%s6485_s1 + $0x28] sm:$0xff]   ;;  %vm1341_vm4 = vcmask 1046532  }
  0x11   : > { %4582 = vmatpush3.bf16.msra.mxu0 %v5151_v1  ;;  %4391 = vmatprep.subr.bf16.mxu1 %v5152_v2  ;;  %v5157_v7 = vld [vmem:[%s6485_s1 + $0x118] sm:$0xff]   ;;  %s5125_s5 = smul.u32 216, %s6629_s12  ;;  %v5159_v9 = vld [vmem:[%s6485_s1 + $0x120] sm:$0xff]   ;;  %v5161_v14 = vld [vmem:[%s6485_s1 + $0x128] sm:$0xff]   ;;  %s4045_s26 = sshll.u32 %s6629_s12, 7 }
  0x12   : > { %4583 = vmatprep.subr.bf16.mxu0 %v5153_v3  ;;  %v5162_v19 = vld [vmem:[%s6485_s1 + $0x30] sm:$0xff]   ;;  %v5164_v34 = vld [vmem:[%s6485_s1 + $0x38] sm:$0xff]   ;;  %vm5405_vm2 = vmor %vm615_vm0, %vm616_vm1  ;;  %s6427_s29 = scalar_lea.vmem %s6487_s3, %s4045_s26 }
  0x13   : > { %s5346_s16 = scalar_lea.vmem %s6484_s0, %s5125_s5  ;;  %v5163_v22 = vld [vmem:[%s6485_s1 + $0x130] sm:$0xff]   ;;  %v5165_v40 = vld [vmem:[%s6485_s1 + $0x138] sm:$0xff]   ;;  %v5168_v52 = vld [vmem:[%s6485_s1 + $0x40] sm:$0xff]  }
  0x14   : > { %4392 = vmatpush3.bf16.msra.mxu1 %v5152_v2  ;;  %v5352_v11 = vld [vmem:[%s5346_s16] sm:$0xf]  ;;  %v5355_v12 = vld [vmem:[%s5346_s16 + $0x4] sm:$0xf]  ;;  %v5358_v13 = vld [vmem:[%s5346_s16 + $0xc] sm:$0xf] }
  0x15   : > { %4584 = vmatpush3.bf16.msra.mxu0 %v5153_v3  ;;  %4393 = vmatprep.subr.bf16.mxu1 %v5154_v4  ;;  %v3739_v15 = vcombine.low %v5352_v11, %v5355_v12  ;;  %v5366_v16 = vld [vmem:[%s5346_s16 + $0x10] sm:$0xf]  ;;  %v5369_v17 = vld [vmem:[%s5346_s16 + $0x14] sm:$0x1]  ;;  %v643_v18 = vshrl.u32 %v5358_v13, 16  ;;  %v646_v21 = vshll.u32 %v5358_v13, 16  ;;  %vm5493_vm5 = vmor %vm1340_vm3, %vm1341_vm4 }
  0x16   : > { %4585 = vmatprep.subr.bf16.mxu0 %v5155_v5  ;;  %v652_v23 = vshll.u32 %v5366_v16, 16  ;;  %v656_v24 = vshrl.u32 %v5366_v16, 16  ;;  %v662_v25 = vshll.u32 %v5369_v17, 16  ;;  %v3803_v26 = vrot.slane %v5352_v11, 9  ;;  %v5384_v28 = vld [vmem:[%s5346_s16 + $0x18] sm:$0xf] }
  0x17   : > { %4405 = vmatprep.mubr.bf16.mxu1 %v3739_v15  ;;  %v645_v20 = vrot.slane %v643_v18, 4  ;;  %v648_v27 = vrot.slane %v646_v21, 5  ;;  %v6488_v29 = vrot.slane %v5355_v12, 5  ;;  %v5388_v32 = vld [vmem:[%s5346_s16 + $0x1c] sm:$0xf]  ;;  %v667_v33 = vshrl.u32 %v5384_v28, 16 }
  0x18   : > { %4394 = vmatpush3.bf16.msra.mxu1 %v5154_v4  ;;  %v654_v30 = vrot.slane %v652_v23, 5  ;;  %v658_v31 = vrot.slane %v656_v24, 4  ;;  %v5395_v36 = vld [vmem:[%s5346_s16 + $0x20] sm:$0x1]  ;;  %v670_v37 = vshll.u32 %v5384_v28, 16  ;;  %v676_v38 = vshll.u32 %v5388_v32, 16 }
  0x19   : > { %4586 = vmatpush3.bf16.msra.mxu0 %v5155_v5  ;;  %4395 = vmatprep.subr.bf16.mxu1 %v5156_v6  ;;  %v649_v35 = vor.u32 %v648_v27, %v645_v20  ;;  %v680_v39 = vshrl.u32 %v5388_v32, 16  ;;  %v664_v43 = vrot.slane %v662_v25, 5  ;;  %v669_v44 = vrot.slane %v667_v33, 4  ;;  %v5424_v58 = vld [vmem:[%s5346_s16 + $0x24] sm:$0xf]  ;;  %v5173_v21 = vld [vmem:[%s6485_s1 + $0x48] sm:$0xff]  }
  0x1a   : > { %4587 = vmatprep.subr.bf16.mxu0 %v5157_v7  ;;  %v659_v42 = vor.u32 %v658_v31, %v654_v30  ;;  %v686_v45 = vshll.u32 %v5395_v36, 16  ;;  %v672_v47 = vrot.slane %v670_v37, 5  ;;  %v678_v48 = vrot.slane %v676_v38, 5  ;;  %v5427_v59 = vld [vmem:[%s5346_s16 + $0x28] sm:$0xf]  ;;  %v5169_v62 = vld [vmem:[%s6485_s1 + $0x140] sm:$0xff]  }
  0x1b   : > { %v650_v46 = vrot.slane %v649_v35, 4  ;;  %v682_v49 = vrot.slane %v680_v39, 4  ;;  %v5412_v51 = vcombine.low %v5358_v13, %v5366_v16  ;;  %v5419_v54 = vcombine.low %v5384_v28, %v5388_v32  ;;  %v5430_v60 = vld [vmem:[%s5346_s16 + $0x2c] sm:$0x1]  ;;  %v5466_v23 = vld [vmem:[%s5346_s16 + $0x38] sm:$0x1] }
  0x1c   : > { %4396 = vmatpush3.bf16.msra.mxu1 %v5156_v6  ;;  %v660_v50 = vrot.slane %v659_v42, 4  ;;  %v688_v53 = vrot.slane %v686_v45, 5  ;;  %v673_v56 = vor.u32 %v672_v47, %v669_v44  ;;  %v691_v63 = vshrl.u32 %v5424_v58, 16  ;;  %v5170_v6 = vld [vmem:[%s6485_s1 + $0x148] sm:$0xff]  }
  0x1d   : > { %4588 = vmatpush3.bf16.msra.mxu0 %v5157_v7  ;;  %4397 = vmatprep.subr.bf16.mxu1 %v5158_v8  ;;  %6541 = vst [vmem:[#allocation2_spill] sm:$0xff] %v5412_v51  ;;  %v655_v55 = vsel %vm5405_vm2, %v650_v46, %v654_v30  ;;  %v683_v57 = vor.u32 %v682_v49, %v678_v48  ;;  %v694_v0 = vshll.u32 %v5424_v58, 16  ;;  %v700_v1 = vshll.u32 %v5427_v59, 16 }
  0x1e   : > { %4589 = vmatprep.subr.bf16.mxu0 %v5159_v9  ;;  %v665_v61 = vsel %vm5405_vm2, %v660_v50, %v664_v43  ;;  %v674_v3 = vrot.slane %v673_v56, 4  ;;  %v704_v5 = vshrl.u32 %v5427_v59, 16  ;;  %v693_v7 = vrot.slane %v691_v63, 4  ;;  %v5178_v43 = vld [vmem:[%s6485_s1 + $0x50] sm:$0xff]  }
  0x1f   : > { %v5440_v2 = vcombine.low %v655_v55, %v665_v61  ;;  %v684_v4 = vrot.slane %v683_v57, 4  ;;  %v5457_v20 = vcombine.low %v5424_v58, %v5427_v59  ;;  %v734_v39 = vshll.u32 %v5466_v23, 16  ;;  %v5503_v55 = vld [vmem:[%s5346_s16 + $0x44] sm:$0x1] }
  0x20   : > { %4398 = vmatpush3.bf16.msra.mxu1 %v5158_v8  ;;  %v696_v8 = vrot.slane %v694_v0, 5  ;;  %v679_v15 = vsel %vm5405_vm2, %v674_v3, %v678_v48  ;;  %v5489_v48 = vld [vmem:[%s5346_s16 + $0x3c] sm:$0xf]  ;;  %v5512_v57 = vsel %vm5493_vm5, %v3803_v26, %v6488_v29 }
  0x21   : > { %4590 = vmatpush3.bf16.msra.mxu0 %v5159_v9  ;;  %4399 = vmatprep.subr.bf16.mxu1 %v5160_v10  ;;  %v702_v9 = vrot.slane %v700_v1, 5  ;;  %v689_v18 = vsel %vm5405_vm2, %v684_v4, %v688_v53  ;;  %v5500_v53 = vld [vmem:[%s5346_s16 + $0x40] sm:$0xf]  ;;  %v739_v56 = vshrl.u32 %v5489_v48, 16  ;;  %v742_v0 = vshll.u32 %v5489_v48, 16  ;;  %v5183_v26 = vld [vmem:[%s6485_s1 + $0x58] sm:$0xff]  }
  0x22   : > { %4591 = vmatprep.subr.bf16.mxu0 %v5161_v14  ;;  %4597 = vmatprep.mubr.bf16.mxu0 %v5440_v2  ;;  %v5468_v24 = vcombine.low %v679_v15, %v689_v18  ;;  %v697_v25 = vor.u32 %v696_v8, %v693_v7  ;;  %v748_v4 = vshll.u32 %v5500_v53, 16  ;;  %v5522_v7 = vld [vmem:[%s5346_s16 + $0x48] sm:$0xf]  ;;  %v758_v15 = vshll.u32 %v5503_v55, 16  ;;  %v5529_v18 = vld [vmem:[%s5346_s16 + $0x4c] sm:$0xf] }
  0x23   : > { %v741_v3 = vrot.slane %v739_v56, 4  ;;  %v5558_v56 = vld [vmem:[%s5346_s16 + $0x54] sm:$0xf] }
  0x24   : > { %4400 = vmatpush3.bf16.msra.mxu1 %v5160_v10  ;;  %v710_v10 = vshll.u32 %v5430_v60, 16  ;;  %6542 = vst [vmem:[#allocation3_spill] sm:$0xff] %v5468_v24  ;;  %v698_v37 = vrot.slane %v697_v25, 4 }
  0x25   : > { %4592 = vmatpush3.bf16.msra.mxu0 %v5161_v14  ;;  %4401 = vmatprep.subr.bf16.mxu1 %v5162_v19  ;;  %v5448_v14 = vld [vmem:[%s5346_s16 + $0x30] sm:$0xf] }
  0x26   : > { %4593 = vmatprep.subr.bf16.mxu0 %v5163_v22  ;;  %v712_v27 = vrot.slane %v710_v10, 5  ;;  %v715_v30 = vshrl.u32 %v5448_v14, 16  ;;  %v718_v33 = vshll.u32 %v5448_v14, 16  ;;  %v703_v50 = vsel %vm5405_vm2, %v698_v37, %v702_v9 }
  0x27   : > { %v744_v10 = vrot.slane %v742_v0, 5  ;;  %v5573_v0 = vld [vmem:[%s5346_s16 + $0x5c] sm:$0x1] }
  0x28   : > { %4402 = vmatpush3.bf16.msra.mxu1 %v5162_v19  ;;  %v706_v19 = vrot.slane %v704_v5, 4  ;;  %v717_v38 = vrot.slane %v715_v30, 4  ;;  %v720_v45 = vrot.slane %v718_v33, 5  ;;  %v752_v5 = vshrl.u32 %v5500_v53, 16 }
  0x29   : > { %4594 = vmatpush3.bf16.msra.mxu0 %v5163_v22  ;;  %4403 = vmatprep.subr.bf16.mxu1 %v5164_v34  ;;  %v5463_v22 = vld [vmem:[%s5346_s16 + $0x34] sm:$0xf]  ;;  %v745_v33 = vor.u32 %v744_v10, %v741_v3 }
  0x2a   : > { %4595 = vmatprep.subr.bf16.mxu0 %v5165_v40  ;;  %v707_v31 = vor.u32 %v706_v19, %v702_v9  ;;  %v728_v35 = vshrl.u32 %v5463_v22, 16  ;;  %v5482_v42 = vcombine.low %v5448_v14, %v5463_v22  ;;  %v5175_v19 = vld [vmem:[%s6485_s1 + $0x158] sm:$0xff]   ;;  %v754_v25 = vrot.slane %v752_v5, 4 }
  0x2c   : > { %4404 = vmatpush3.bf16.msra.mxu1 %v5164_v34  ;;  %v724_v34 = vshll.u32 %v5463_v22, 16  ;;  %6543 = vst [vmem:[#allocation4_spill] sm:$0xff] %v5482_v42  ;;  %v708_v44 = vrot.slane %v707_v31, 4  ;;  %v730_v47 = vrot.slane %v728_v35, 4  ;;  %v5188_v35 = vld [vmem:[%s6485_s1 + $0x60] sm:$0xff]  }
  0x2d   : > { %4596 = vmatpush3.bf16.msra.mxu0 %v5165_v40  ;;  %4437 = vmatprep.subr.bf16.mxu1 %v5168_v52  ;;  %v5174_v40 = vld [vmem:[%s6485_s1 + $0x150] sm:$0xff]  }
  0x2e   : > { %4629 = vmatprep.subr.bf16.mxu0 %v5169_v62  ;;  %v726_v46 = vrot.slane %v724_v34, 5  ;;  %v713_v61 = vsel %vm5405_vm2, %v708_v44, %v712_v27  ;;  %v5536_v27 = vld [vmem:[%s5346_s16 + $0x50] sm:$0x1]  ;;  %v760_v34 = vrot.slane %v758_v15, 5  ;;  %v766_v44 = vshll.u32 %v5522_v7, 16  ;;  %v5180_v15 = vld [vmem:[%s6485_s1 + $0x168] sm:$0xff]  }
  0x2f   : > { %4406 = vmatmul.mubr.bf16.vlgmr.msra.gmra.mrb[0].mxu1 %v5412_v51  ;;  %v5517_v1 = vcombine.low %v703_v50, %v713_v61  ;;  %v776_v50 = vshrl.u32 %v5529_v18, 16 }
  0x30   : > { %4598 = vmatmul.mubr.bf16.vlgmr.msra.gmra.mrb[0].mxu0 %v5468_v24  ;;  %4438 = vmatpush3.bf16.msra.mxu1 %v5168_v52  ;;  %v736_v52 = vrot.slane %v734_v39, 5  ;;  %v731_v63 = vor.u32 %v730_v47, %v726_v46  ;;  %v772_v47 = vshll.u32 %v5529_v18, 16 }
  0x31   : > { %4630 = vmatpush3.bf16.msra.mxu0 %v5169_v62  ;;  %4409 = vmatprep.mubr.bf16.mxu1 %v5419_v54  ;;  %v721_v62 = vor.u32 %v720_v45, %v717_v38  ;;  %6546 = vst [vmem:[#allocation5_spill] sm:$0xff] %v5517_v1  ;;  %v5179_v45 = vld [vmem:[%s6485_s1 + $0x160] sm:$0xff]   ;;  %v778_v5 = vrot.slane %v776_v50, 4  ;;  %v5599_v50 = vld [vmem:[%s5346_s16 + $0x68] sm:$0x1] }
  0x32   : > { %4631 = vmatprep.subr.bf16.mxu0 %v5170_v6  ;;  %4439 = vmatprep.subr.bf16.mxu1 %v5173_v21  ;;  %v732_v9 = vrot.slane %v731_v63, 4  ;;  %v5570_v63 = vld [vmem:[%s5346_s16 + $0x58] sm:$0xf] }
  0x33   : > { %v722_v8 = vrot.slane %v721_v62, 4  ;;  %4601 = vmatprep.mubr.bf16.mxu0 %v5517_v1  ;;  %v5563_v62 = vcombine.low %v5489_v48, %v5500_v53 }
  0x34   : > { %4440 = vmatpush3.bf16.msra.mxu1 %v5173_v21  ;;  %v750_v21 = vrot.slane %v748_v4, 5  ;;  %v737_v31 = vsel %vm5405_vm2, %v732_v9, %v736_v52  ;;  %v782_v52 = vshll.u32 %v5536_v27, 16  ;;  %v774_v4 = vrot.slane %v772_v47, 5 }
  0x35   : > { %4632 = vmatpush3.bf16.msra.mxu0 %v5170_v6  ;;  %4441 = vmatprep.subr.bf16.mxu1 %v5178_v43  ;;  %v763_v6 = vshrl.u32 %v5522_v7, 16  ;;  %v727_v30 = vsel %vm5405_vm2, %v722_v8, %v726_v46  ;;  %v746_v46 = vrot.slane %v745_v33, 4  ;;  %6548 = vst [vmem:[#allocation7_spill] sm:$0xff] %v5563_v62  ;;  %v796_v33 = vshll.u32 %v5570_v63, 16 }
  0x36   : > { %4633 = vmatprep.subr.bf16.mxu0 %v5174_v40  ;;  %v5547_v37 = vcombine.low %v727_v30, %v737_v31  ;;  %v755_v38 = vor.u32 %v754_v25, %v750_v21  ;;  %v784_v8 = vrot.slane %v782_v52, 5  ;;  %v787_v25 = vshrl.u32 %v5558_v56, 16 }
  0x37   : > { %4410 = vmatmul.mubr.bf16.gmra.mrb[4].mxu1 %v5457_v20  ;;  %v765_v39 = vrot.slane %v763_v6, 4  ;;  %v751_v3 = vsel %vm5405_vm2, %v746_v46, %v750_v21  ;;  %v790_v6 = vshll.u32 %v5558_v56, 16  ;;  %v5192_v21 = vld [vmem:[%s6485_s1 + $0x68] sm:$0xff]   ;;  %v779_v31 = vor.u32 %v778_v5, %v774_v4 }
  0x38   : > { %6547 = vst [vmem:[#allocation6_spill] sm:$0xff] %v5547_v37  ;;  %4413 = vmatprep.mubr.bf16.mxu1 %v5482_v42  ;;  %4442 = vmatpush3.bf16.msra.mxu1 %v5178_v43  ;;  %v756_v61 = vrot.slane %v755_v38, 4  ;;  %v768_v43 = vrot.slane %v766_v44, 5  ;;  %v5592_v38 = vld [vmem:[%s5346_s16 + $0x60] sm:$0xf]  ;;  %v806_v47 = vshll.u32 %v5573_v0, 16 }
  0x39   : > { %4634 = vmatpush3.bf16.msra.mxu0 %v5174_v40  ;;  %4443 = vmatprep.subr.bf16.mxu1 %v5183_v26  ;;  %v5567_v40 = vcombine.low %v5522_v7, %v5529_v18  ;;  %v792_v46 = vrot.slane %v790_v6, 5  ;;  %v798_v52 = vrot.slane %v796_v33, 5 }
  0x3a   : > { %4602 = vmatmul.mubr.bf16.gmra.mrb[4].mxu0 %v5547_v37  ;;  %4635 = vmatprep.subr.bf16.mxu0 %v5175_v19  ;;  %v761_v9 = vsel %vm5405_vm2, %v756_v61, %v760_v34  ;;  %v769_v10 = vor.u32 %v768_v43, %v765_v39  ;;  %v800_v34 = vshrl.u32 %v5570_v63, 16  ;;  %v5595_v39 = vld [vmem:[%s5346_s16 + $0x64] sm:$0xf]  ;;  %v5605_v43 = vcombine.low %v5558_v56, %v5570_v63 }
  0x3b   : > { %6549 = vst [vmem:[#allocation8_spill] sm:$0xff] %v5567_v40  ;;  %v5587_v30 = vcombine.low %v751_v3, %v761_v9  ;;  %v808_v9 = vrot.slane %v806_v47, 5  ;;  %v820_v33 = vshll.u32 %v5595_v39, 16 }
  0x3c   : > { %4444 = vmatpush3.bf16.msra.mxu1 %v5183_v26  ;;  %v770_v44 = vrot.slane %v769_v10, 4  ;;  %v789_v26 = vrot.slane %v787_v25, 4  ;;  %v802_v61 = vrot.slane %v800_v34, 4  ;;  %6550 = vst [vmem:[#allocation9_spill] sm:$0xff] %v5605_v43  ;;  %v811_v10 = vshrl.u32 %v5592_v38, 16 }
  0x3d   : > { %4636 = vmatpush3.bf16.msra.mxu0 %v5175_v19  ;;  %4445 = vmatprep.subr.bf16.mxu1 %v5188_v35  ;;  %v780_v19 = vrot.slane %v779_v31, 4  ;;  %v814_v31 = vshll.u32 %v5592_v38, 16  ;;  %v822_v47 = vrot.slane %v820_v33, 5 }
  0x3e   : > { %4637 = vmatprep.subr.bf16.mxu0 %v5179_v45  ;;  %4605 = vmatprep.mubr.bf16.mxu0 %v5587_v30  ;;  %v775_v3 = vsel %vm5405_vm2, %v770_v44, %v774_v4  ;;  %v793_v5 = vor.u32 %v792_v46, %v789_v26  ;;  %v803_v6 = vor.u32 %v802_v61, %v798_v52  ;;  %v5196_v4 = vld [vmem:[%s6485_s1 + $0x70] sm:$0xff]   ;;  %v813_v26 = vrot.slane %v811_v10, 4 }
  0x3f   : > { %4414 = vmatmul.mubr.bf16.gmra.mrb[8].mxu1 %v5563_v62  ;;  %v785_v25 = vsel %vm5405_vm2, %v780_v19, %v784_v8  ;;  %v816_v46 = vrot.slane %v814_v31, 5  ;;  %v830_v19 = vshll.u32 %v5599_v50, 16  ;;  %v3804_v10 = vrot.slane %v5358_v13, 9  ;;  %v5185_v13 = vld [vmem:[%s6485_s1 + $0x178] sm:$0xff]  }
  0x40   : > { %4417 = vmatprep.mubr.bf16.mxu1 %v5567_v40  ;;  %4446 = vmatpush3.bf16.msra.mxu1 %v5188_v35  ;;  %v5618_v34 = vcombine.low %v775_v3, %v785_v25  ;;  %v794_v44 = vrot.slane %v793_v5, 4  ;;  %v824_v35 = vshrl.u32 %v5595_v39, 16  ;;  %v804_v8 = vrot.slane %v803_v6, 4 }
  0x41   : > { %4638 = vmatpush3.bf16.msra.mxu0 %v5179_v45  ;;  %4447 = vmatprep.subr.bf16.mxu1 %v5192_v21  ;;  %v5184_v45 = vld [vmem:[%s6485_s1 + $0x170] sm:$0xff]   ;;  %v5630_v5 = vcombine.low %v5592_v38, %v5595_v39  ;;  %v817_v6 = vor.u32 %v816_v46, %v813_v26  ;;  %v1352_v31 = vrot.slane %v5366_v16, 5  ;;  %v5200_v16 = vld [vmem:[%s6485_s1 + $0x78] sm:$0xff]  }
  0x42   : > { %4639 = vmatprep.subr.bf16.mxu0 %v5180_v15  ;;  %4606 = vmatmul.mubr.bf16.gmra.mrb[8].mxu0 %v5618_v34  ;;  %v799_v61 = vsel %vm5405_vm2, %v794_v44, %v798_v52  ;;  %v826_v3 = vrot.slane %v824_v35, 4  ;;  %v809_v25 = vsel %vm5405_vm2, %v804_v8, %v808_v9  ;;  %v832_v44 = vrot.slane %v830_v19, 5  ;;  %v5646_v9 = vld [vmem:[%s5346_s16 + $0x70] sm:$0xf]  ;;  %v5655_v46 = vld [vmem:[%s5346_s16 + $0x78] sm:$0xf] }
  0x43   : > { %6551 = vst [vmem:[#allocation10_spill] sm:$0xff] %v5630_v5  ;;  %v5636_v52 = vcombine.low %v799_v61, %v809_v25  ;;  %v818_v26 = vrot.slane %v817_v6, 4  ;;  %v1353_v35 = vsel %vm5493_vm5, %v3804_v10, %v1352_v31  ;;  %v1354_v8 = vrot.slane %v1352_v31, 4  ;;  %v5660_v19 = vld [vmem:[%s5346_s16 + $0x7c] sm:$0xf] }
  0x44   : > { %4448 = vmatpush3.bf16.msra.mxu1 %v5192_v21  ;;  %v827_v33 = vor.u32 %v826_v3, %v822_v47  ;;  %v5643_v21 = vld [vmem:[%s5346_s16 + $0x6c] sm:$0xf]  ;;  %v1359_v25 = vrot.slane %v5388_v32, 5  ;;  %v1362_v10 = vrot.slane %v5395_v36, 5  ;;  %v5189_v32 = vld [vmem:[%s6485_s1 + $0x180] sm:$0xff]   ;;  %v5684_v36 = vcombine.low %v5655_v46, %v5660_v19 }
  0x45   : > { %4640 = vmatpush3.bf16.msra.mxu0 %v5180_v15  ;;  %4449 = vmatprep.subr.bf16.mxu1 %v5196_v4  ;;  %v1355_v15 = vrot.slane %v5369_v17, 5  ;;  %v823_v61 = vsel %vm5405_vm2, %v818_v26, %v822_v47  ;;  %v619_v26 = vshrl.u32 %v5352_v11, 16  ;;  %v6572_v40 = vshll.u32 %v5643_v21, 16 }
  0x46   : > { %4641 = vmatprep.subr.bf16.mxu0 %v5184_v45  ;;  %4609 = vmatprep.mubr.bf16.mxu0 %v5636_v52  ;;  %v828_v17 = vrot.slane %v827_v33, 4  ;;  %v3805_v33 = vrot.slane %v5384_v28, 9  ;;  %v1361_v47 = vrot.slane %v1359_v25, 4  ;;  %6554 = vst [vmem:[#allocation13_spill] sm:$0xff] %v5684_v36  ;;  %v1366_v28 = vrot.slane %v5427_v59, 5 }
  0x47   : > { %4418 = vmatmul.mubr.bf16.gmra.mrb[12].mxu1 %v5605_v43  ;;  %v1356_v3 = vsel %vm5493_vm5, %v1354_v8, %v1355_v15  ;;  %v5692_v15 = vld [vmem:[%s6485_s1 + $0x80] sm:$0xff]   ;;  %v628_v8 = vshll.u32 %v5355_v12, 16  ;;  %v840_v62 = vrot.slane %v6572_v40, 5 }
  0x48   : > { %4421 = vmatprep.mubr.bf16.mxu1 %v5630_v5  ;;  %4450 = vmatpush3.bf16.msra.mxu1 %v5196_v4  ;;  %v833_v6 = vsel %vm5405_vm2, %v828_v17, %v832_v44  ;;  %v5670_v31 = vcombine.low %v1353_v35, %v1356_v3  ;;  %v3806_v4 = vrot.slane %v5424_v58, 9  ;;  %v1369_v44 = vrot.slane %v5430_v60, 5  ;;  %v5712_v3 = vld [vmem:[%s5346_s16 + $0x84] sm:$0xf]  ;;  %v5976_v5 = vld [vmem:[%s5346_s16 + $0xc8] sm:$0x1] }
  0x49   : > { %4642 = vmatpush3.bf16.msra.mxu0 %v5184_v45  ;;  %4451 = vmatprep.subr.bf16.mxu1 %v5200_v16  ;;  %v5673_v29 = vcombine.low %v823_v61, %v833_v6  ;;  %v5677_v45 = vcombine.low %v5643_v21, %v5646_v9  ;;  %v1360_v58 = vsel %vm5493_vm5, %v3805_v33, %v1359_v25  ;;  %v1368_v60 = vrot.slane %v1366_v28, 4  ;;  %v5725_v6 = vld [vmem:[%s5346_s16 + $0x94] sm:$0xf] }
  0x4a   : > { %4643 = vmatprep.subr.bf16.mxu0 %v5185_v13  ;;  %6552 = vst [vmem:[#allocation11_spill] sm:$0xff] %v5670_v31  ;;  %v1363_v59 = vsel %vm5493_vm5, %v1361_v47, %v1362_v10  ;;  %v622_v35 = vshll.u32 %v5352_v11, 16  ;;  %v632_v17 = vshrl.u32 %v5355_v12, 16  ;;  %v5715_v11 = vld [vmem:[%s5346_s16 + $0x88] sm:$0xf]  ;;  %v3807_v10 = vrot.slane %v5448_v14, 9 }
  0x4b   : > { %6553 = vst [vmem:[#allocation12_spill] sm:$0xff] %v5677_v45  ;;  %4610 = vmatmul.mubr.bf16.gmra.mrb[12].mxu0 %v5673_v29  ;;  %v1370_v61 = vsel %vm5493_vm5, %v1368_v60, %v1369_v44  ;;  %v5718_v25 = vcombine.low %v1360_v58, %v1363_v59  ;;  %v1380_v33 = vrot.slane %v5500_v53, 5  ;;  %v5193_v44 = vld [vmem:[%s6485_s1 + $0x188] sm:$0xff]   ;;  %v3808_v58 = vrot.slane %v5489_v48, 9  ;;  %v5748_v48 = vld [vmem:[%s5346_s16 + $0x9c] sm:$0xf] }
  0x4c   : > { %4452 = vmatpush3.bf16.msra.mxu1 %v5200_v16  ;;  %4645 = vmatprep.mubr.bf16.mxu0 %v5670_v31  ;;  %v1373_v16 = vrot.slane %v5463_v22, 5  ;;  %v5722_v22 = vld [vmem:[%s5346_s16 + $0x90] sm:$0xf]  ;;  %v5737_v14 = vcombine.low %v5712_v3, %v5715_v11  ;;  %v1383_v60 = vrot.slane %v5503_v55, 5  ;;  %v621_v53 = vrot.slane %v619_v26, 4 }
  0x4d   : > { %4644 = vmatpush3.bf16.msra.mxu0 %v5185_v13  ;;  %v1367_v13 = vsel %vm5493_vm5, %v3806_v4, %v1366_v28  ;;  %4485 = vmatprep.subr.bf16.mxu1 %v5692_v15  ;;  %6555 = vst [vmem:[#allocation14_spill] sm:$0xff] %v5718_v25  ;;  %v1376_v28 = vrot.slane %v5466_v23, 5  ;;  %v1382_v59 = vrot.slane %v1380_v33, 4  ;;  %v624_v51 = vrot.slane %v622_v35, 5  ;;  %v5751_v31 = vld [vmem:[%s5346_s16 + $0xa0] sm:$0xf] }
  0x4e   : > { %4677 = vmatprep.subr.bf16.mxu0 %v5189_v32  ;;  %v5728_v47 = vcombine.low %v1367_v13, %v1370_v61  ;;  %v1375_v4 = vrot.slane %v1373_v16, 4  ;;  %6557 = vst [vmem:[#allocation16_spill] sm:$0xff] %v5737_v14  ;;  %v5742_v13 = vcombine.low %v5722_v22, %v5725_v6  ;;  %v5744_v23 = vrot.slane %v628_v8, 5 }
  0x4f   : > { %4422 = vmatmul.mubr.bf16.gmra.mrb[16].mxu1 %v5677_v45  ;;  %v634_v61 = vrot.slane %v632_v17, 4  ;;  %v1374_v55 = vsel %vm5493_vm5, %v3807_v10, %v1373_v16  ;;  %v1387_v35 = vrot.slane %v5529_v18, 5  ;;  %v1381_v8 = vsel %vm5493_vm5, %v3808_v58, %v1380_v33  ;;  %v5197_v17 = vld [vmem:[%s6485_s1 + $0x190] sm:$0xff]   ;;  %v5771_v18 = vld [vmem:[%s5346_s16 + $0x8] sm:$0x1] }
  0x50   : > { %4425 = vmatprep.mubr.bf16.mxu1 %v5684_v36  ;;  %6556 = vst [vmem:[#allocation15_spill] sm:$0xff] %v5728_v47  ;;  %6558 = vst [vmem:[#allocation17_spill] sm:$0xff] %v5742_v13  ;;  %v1377_v26 = vsel %vm5493_vm5, %v1375_v4, %v1376_v28  ;;  %v1394_v16 = vrot.slane %v5570_v63, 5  ;;  %v5777_v33 = vcombine.low %v5748_v48, %v5751_v31  ;;  %v5780_v28 = vld [vmem:[%s5346_s16 + $0xa8] sm:$0xf]  ;;  %v3809_v10 = vrot.slane %v5522_v7, 9 }
  0x51   : > { %v5773_v4 = vcombine.low %v1374_v55, %v1377_v26  ;;  %v5783_v58 = vld [vmem:[%s5346_s16 + $0xac] sm:$0xf]  ;;  %v1390_v55 = vrot.slane %v5536_v27, 5  ;;  %v5201_v26 = vld [vmem:[%s6485_s1 + $0x198] sm:$0xff]   ;;  %v868_v36 = vshll.u32 %v5660_v19, 16  ;;  %v892_v40 = vshll.u32 %v5715_v11, 16 }
  0x52   : > { %6560 = vst [vmem:[#allocation19_spill] sm:$0xff] %v5777_v33  ;;  %v5801_v27 = vcombine.low %v5780_v28, %v5783_v58  ;;  %v1388_v7 = vsel %vm5493_vm5, %v3809_v10, %v1387_v35  ;;  %v2333_v42 = vrot.slane %v5976_v5, 5 }
  0x53   : > { %4646 = vmatmul.mubr.bf16.vlgmr.msra.gmra.mrb[0].mxu0 %v5718_v25  ;;  %6559 = vst [vmem:[#allocation18_spill] sm:$0xff] %v5773_v4  ;;  %v3812_v25 = vrot.slane %v5643_v21, 9 }
  0x54   : > { %4678 = vmatpush3.bf16.msra.mxu0 %v5189_v32  ;;  %4649 = vmatprep.mubr.bf16.mxu0 %v5728_v47  ;;  %v1384_v32 = vsel %vm5493_vm5, %v1382_v59, %v1383_v60  ;;  %v625_v59 = vor.u32 %v624_v51, %v621_v53  ;;  %v635_v60 = vor.u32 %v634_v61, %v5744_v23  ;;  %v1389_v47 = vrot.slane %v1387_v35, 4  ;;  %v5812_v53 = vld [vmem:[%s5346_s16 + $0xb4] sm:$0xf] }
  0x55   : > { %4679 = vmatprep.subr.bf16.mxu0 %v5193_v44  ;;  %v5786_v63 = vcombine.low %v1381_v8, %v1384_v32  ;;  %v1397_v51 = vrot.slane %v5573_v0, 5  ;;  %6562 = vst [vmem:[#allocation21_spill] sm:$0xff] %v5801_v27  ;;  %v1401_v8 = vrot.slane %v5595_v39, 5  ;;  %v5827_v39 = vld [vmem:[%s5346_s16 + $0xb8] sm:$0xf] }
  0x56   : > { %v636_v32 = vrot.slane %v635_v60, 4  ;;  %v1391_v61 = vsel %vm5493_vm5, %v1389_v47, %v1390_v55  ;;  %v1408_v47 = vrot.slane %v5646_v9, 5  ;;  %v3811_v55 = vrot.slane %v5592_v38, 9 }
  0x57   : > { %4426 = vmatmul.mubr.bf16.gmra.mrb[20].mxu1 %v5737_v14  ;;  %6561 = vst [vmem:[#allocation20_spill] sm:$0xff] %v5786_v63  ;;  %v1396_v14 = vrot.slane %v1394_v16, 4  ;;  %v5832_v10 = vcombine.low %v1388_v7, %v1391_v61  ;;  %v1404_v60 = vrot.slane %v5599_v50, 5  ;;  %v5205_v7 = vld [vmem:[%s6485_s1 + $0x1a8] sm:$0xff]   ;;  %v5849_v38 = vcombine.low %v5812_v53, %v5827_v39 }
  0x58   : > { %4429 = vmatprep.mubr.bf16.mxu1 %v5742_v13  ;;  %4680 = vmatpush3.bf16.msra.mxu0 %v5193_v44  ;;  %v3810_v13 = vrot.slane %v5558_v56, 9  ;;  %v638_v44 = vshll.u32 %v5771_v18, 16  ;;  %v626_v56 = vrot.slane %v625_v59, 4  ;;  %v5203_v59 = vld [vmem:[%s6485_s1 + $0x1a0] sm:$0xff]  }
  0x59   : > { %4681 = vmatprep.subr.bf16.mxu0 %v5197_v17  ;;  %v1398_v35 = vsel %vm5493_vm5, %v1396_v14, %v1397_v51  ;;  %6563 = vst [vmem:[#allocation22_spill] sm:$0xff] %v5832_v10  ;;  %v1403_v51 = vrot.slane %v1401_v8, 4  ;;  %6565 = vst [vmem:[#allocation24_spill] sm:$0xff] %v5849_v38 }
  0x5a   : > { %v640_v0 = vrot.slane %v638_v44, 5  ;;  %v1395_v44 = vsel %vm5493_vm5, %v3810_v13, %v1394_v16  ;;  %v631_v13 = vsel %vm5405_vm2, %v626_v56, %v5744_v23  ;;  %v1410_v23 = vrot.slane %v1408_v47, 4 }
  0x5b   : > { %4650 = vmatmul.mubr.bf16.gmra.mrb[4].mxu0 %v5773_v4  ;;  %v5840_v16 = vcombine.low %v1395_v44, %v1398_v35  ;;  %v5870_v35 = vld [vmem:[%s5346_s16 + $0x80] sm:$0x1]  ;;  %v1409_v56 = vsel %vm5493_vm5, %v3812_v25, %v1408_v47  ;;  %v3813_v47 = vrot.slane %v5655_v46, 9  ;;  %v5903_v44 = vld [vmem:[%s5346_s16 + $0x98] sm:$0x1] }
  0x5c   : > { %4653 = vmatprep.mubr.bf16.mxu0 %v5786_v63  ;;  %4682 = vmatpush3.bf16.msra.mxu0 %v5197_v17  ;;  %v5830_v17 = vld [vmem:[%s5346_s16 + $0x74] sm:$0x1]  ;;  %v641_v14 = vsel %vm5405_vm2, %v636_v32, %v640_v0  ;;  %v1415_v63 = vrot.slane %v5660_v19, 5  ;;  %v5208_v4 = vld [vmem:[%s6485_s1 + $0x98] sm:$0xff]  }
  0x5d   : > { %4683 = vmatprep.subr.bf16.mxu0 %v5201_v26  ;;  %6564 = vst [vmem:[#allocation23_spill] sm:$0xff] %v5840_v16  ;;  %v1411_v61 = vrot.slane %v5830_v17, 5  ;;  %v3779_v32 = vcombine.low %v631_v13, %v641_v14  ;;  %v1402_v13 = vsel %vm5493_vm5, %v3811_v55, %v1401_v8  ;;  %v1405_v14 = vsel %vm5493_vm5, %v1403_v51, %v1404_v60  ;;  %v5883_v51 = vld [vmem:[%s5346_s16 + $0x8c] sm:$0x1] }
  0x5e   : > { %v1422_v8 = vrot.slane %v5715_v11, 5  ;;  %v5887_v25 = vcombine.low %v1402_v13, %v1405_v14  ;;  %v1417_v55 = vrot.slane %v1415_v63, 4  ;;  %v3814_v60 = vrot.slane %v5712_v3, 9  ;;  %v5204_v13 = vld [vmem:[%s6485_s1 + $0x88] sm:$0xff]  }
  0x5f   : > { %4430 = vmatmul.mubr.bf16.gmra.mrb[24].mxu1 %v5777_v33  ;;  %v1412_v0 = vsel %vm5493_vm5, %v1410_v23, %v1411_v61  ;;  %v5209_v23 = vld [vmem:[%s6485_s1 + $0x1b8] sm:$0xff]   ;;  %v1429_v14 = vrot.slane %v5725_v6, 5  ;;  %v1416_v50 = vsel %vm5493_vm5, %v3813_v47, %v1415_v63 }
  0x60   : > { %4433 = vmatprep.mubr.bf16.mxu1 %v5801_v27  ;;  %4684 = vmatpush3.bf16.msra.mxu0 %v5201_v26  ;;  %v5207_v27 = vld [vmem:[%s6485_s1 + $0x1b0] sm:$0xff]   ;;  %6566 = vst [vmem:[#allocation25_spill] sm:$0xff] %v5887_v25  ;;  %v5893_v61 = vcombine.low %v1409_v56, %v1412_v0  ;;  %v1425_v26 = vrot.slane %v5883_v51, 5  ;;  %v5906_v56 = vld [vmem:[%s5346_s16 + $0xa4] sm:$0x1] }
  0x61   : > { %4685 = vmatprep.subr.bf16.mxu0 %v5203_v59  ;;  %v5920_v0 = vld [vmem:[%s6485_s1 + $0x1c0] sm:$0xff]   ;;  %v1431_v47 = vrot.slane %v1429_v14, 4 }
  0x62   : > { %6567 = vst [vmem:[#allocation26_spill] sm:$0xff] %v5893_v61 }
  0x63   : > { %4654 = vmatmul.mubr.bf16.gmra.mrb[8].mxu0 %v5832_v10 }
  0x64   : > { %4657 = vmatprep.mubr.bf16.mxu0 %v5840_v16  ;;  %4686 = vmatpush3.bf16.msra.mxu0 %v5203_v59  ;;  %v1424_v59 = vrot.slane %v1422_v8, 4 }
  0x65   : > { %4687 = vmatprep.subr.bf16.mxu0 %v5205_v7 }
  0x66   : > { %v1426_v63 = vsel %vm5493_vm5, %v1424_v59, %v1425_v26  ;;  %v1443_v26 = vrot.slane %v5783_v58, 5 }
  0x67   : > { %4434 = vmatmul.mubr.bf16.gmra.mrb[28].mxu1 %v5849_v38  ;;  %v3815_v38 = vrot.slane %v5722_v22, 9 }
  0x68   : > { %4453 = vmatprep.mubr.bf16.mxu1 %v3779_v32  ;;  %v1418_v32 = vrot.slane %v5870_v35, 5  ;;  %4688 = vmatpush3.bf16.msra.mxu0 %v5205_v7  ;;  %v1436_v7 = vrot.slane %v5751_v31, 5 }
  0x69   : > { %4689 = vmatprep.subr.bf16.mxu0 %v5207_v27 }
  0x6a   : > { %v1419_v16 = vsel %vm5493_vm5, %v1417_v55, %v1418_v32  ;;  %v1432_v55 = vrot.slane %v5903_v44, 5  ;;  %v1438_v59 = vrot.slane %v1436_v7, 4  ;;  %v1439_v32 = vrot.slane %v5906_v56, 5 }
  0x6b   : > { %4658 = vmatmul.mubr.bf16.gmra.mrb[12].mxu0 %v5887_v25  ;;  %v5942_v25 = vld [vmem:[%s5346_s16 + $0xbc] sm:$0x1] }
  0x6c   : > { %4661 = vmatprep.mubr.bf16.mxu0 %v5893_v61  ;;  %4690 = vmatpush3.bf16.msra.mxu0 %v5207_v27  ;;  %v1423_v61 = vsel %vm5493_vm5, %v3814_v60, %v1422_v8  ;;  %v5206_v27 = vld [vmem:[%s6485_s1 + $0x90] sm:$0xff]   ;;  %v5938_v60 = vcombine.low %v1416_v50, %v1419_v16  ;;  %6569 = vst [vmem:[#allocation28_spill] sm:$0xff] %v5942_v25  ;;  %v3817_v16 = vrot.slane %v5780_v28, 9 }
  0x6d   : > { %4691 = vmatprep.subr.bf16.mxu0 %v5209_v23  ;;  %v5935_v8 = vld [vmem:[%s5346_s16 + $0xb0] sm:$0x1]  ;;  %v5944_v10 = vcombine.low %v1423_v61, %v1426_v63  ;;  %v1433_v33 = vsel %vm5493_vm5, %v1431_v47, %v1432_v55  ;;  %v5959_v61 = vld [vmem:[%s5346_s16 + $0xc4] sm:$0xf]  ;;  %v844_v63 = vshll.u32 %v5646_v9, 16  ;;  %v1453_v55 = vrot.slane %v5942_v25, 5 }
  0x6e   : > { %6568 = vst [vmem:[#allocation27_spill] sm:$0xff] %v5938_v60  ;;  %v1446_v50 = vrot.slane %v5935_v8, 5  ;;  %v1440_v45 = vsel %vm5493_vm5, %v1438_v59, %v1439_v32  ;;  %v6574_v32 = vshll.u32 %v5655_v46, 16 }
  0x6f   : > { %4454 = vmatmul.mubr.bf16.vlgmr.msra.gmra.mrb[0].mxu1 %v5440_v2  ;;  %v3816_v2 = vrot.slane %v5748_v48, 9  ;;  %6570 = vst [vmem:[#allocation29_spill] sm:$0xff] %v5944_v10 }
  0x70   : > { %4486 = vmatpush3.bf16.msra.mxu1 %v5692_v15  ;;  %4457 = vmatprep.mubr.bf16.mxu1 %v5468_v24  ;;  %v5947_v15 = vld [vmem:[%s5346_s16 + $0xc0] sm:$0xf]  ;;  %v1430_v24 = vsel %vm5493_vm5, %v3815_v38, %v1429_v14  ;;  %v3818_v38 = vrot.slane %v5812_v53, 9  ;;  %v1450_v14 = vrot.slane %v5827_v39, 5  ;;  %v864_v43 = vrot.slane %v6574_v32, 5 }
  0x71   : > { %4487 = vmatprep.subr.bf16.mxu1 %v5204_v13  ;;  %4692 = vmatpush3.bf16.msra.mxu0 %v5209_v23  ;;  %v1445_v23 = vrot.slane %v1443_v26, 4  ;;  %v1437_v47 = vsel %vm5493_vm5, %v3816_v2, %v1436_v7  ;;  %v6571_v7 = vshrl.u32 %v5643_v21, 16  ;;  %v6576_v32 = vshrl.u32 %v5660_v19, 16 }
  0x72   : > { %4725 = vmatprep.subr.bf16.mxu0 %v5920_v0 }
  0x73   : > { %4662 = vmatmul.mubr.bf16.gmra.mrb[16].mxu0 %v5938_v60  ;;  %v837_v2 = vrot.slane %v6571_v7, 4  ;;  %v1452_v60 = vrot.slane %v1450_v14, 4  ;;  %v6575_v7 = vshrl.u32 %v5646_v9, 16 }
  0x74   : > { %4488 = vmatpush3.bf16.msra.mxu1 %v5204_v13  ;;  %4665 = vmatprep.mubr.bf16.mxu0 %v5944_v10  ;;  %v5971_v13 = vcombine.low %v1430_v24, %v1433_v33  ;;  %v5210_v24 = vld [vmem:[%s6485_s1 + $0xa0] sm:$0xff]   ;;  %v6573_v33 = vshrl.u32 %v5655_v46, 16  ;;  %v5993_v10 = vrot.slane %v844_v63, 5  ;;  %v6002_v46 = vrot.slane %v868_v36, 5 }
  0x75   : > { %4489 = vmatprep.subr.bf16.mxu1 %v5206_v27  ;;  %v850_v21 = vrot.slane %v6575_v7, 4  ;;  %v6577_v63 = vshrl.u32 %v5712_v3, 16  ;;  %v6578_v7 = vshll.u32 %v5712_v3, 16  ;;  %v6017_v36 = vrot.slane %v892_v40, 5 }
  0x76   : > { %v861_v59 = vrot.slane %v6573_v33, 4  ;;  %v1447_v33 = vsel %vm5493_vm5, %v1445_v23, %v1446_v50  ;;  %v6582_v40 = vrot.slane %v5959_v61, 5 }
  0x77   : > { %4458 = vmatmul.mubr.bf16.gmra.mrb[4].mxu1 %v5517_v1  ;;  %v1444_v1 = vsel %vm5493_vm5, %v3817_v16, %v1443_v26  ;;  %v885_v9 = vrot.slane %v6577_v63, 4  ;;  %v888_v25 = vrot.slane %v6578_v7, 5  ;;  %v841_v26 = vor.u32 %v840_v62, %v837_v2 }
  0x78   : > { %4461 = vmatprep.mubr.bf16.mxu1 %v5547_v37  ;;  %4490 = vmatpush3.bf16.msra.mxu1 %v5206_v27  ;;  %v874_v27 = vrot.slane %v6576_v32, 4  ;;  %v6006_v37 = vcombine.low %v1437_v47, %v1440_v45  ;;  %v854_v16 = vshll.u32 %v5830_v17, 16  ;;  %v865_v50 = vor.u32 %v864_v43, %v861_v59 }
  0x79   : > { %4491 = vmatprep.subr.bf16.mxu1 %v5208_v4  ;;  %v6014_v23 = vcombine.low %v1444_v1, %v1447_v33  ;;  %v851_v19 = vor.u32 %v850_v21, %v5993_v10  ;;  %v6579_v45 = vshrl.u32 %v5715_v11, 16  ;;  %v878_v62 = vshll.u32 %v5870_v35, 16  ;;  %v5212_v1 = vld [vmem:[%s6485_s1 + $0xa8] sm:$0xff]  }
  0x7a   : > { %v875_v3 = vor.u32 %v874_v27, %v6002_v46  ;;  %v6580_v43 = vshrl.u32 %v5722_v22, 16  ;;  %v6581_v17 = vshll.u32 %v5722_v22, 16  ;;  %v1451_v11 = vsel %vm5493_vm5, %v3818_v38, %v1450_v14 }
  0x7b   : > { %v898_v47 = vrot.slane %v6579_v45, 4  ;;  %4666 = vmatmul.mubr.bf16.gmra.mrb[20].mxu0 %v5971_v13  ;;  %v1454_v59 = vsel %vm5493_vm5, %v1452_v60, %v1453_v55  ;;  %v889_v21 = vor.u32 %v888_v25, %v885_v9  ;;  %v902_v35 = vshll.u32 %v5883_v51, 16  ;;  %v5214_v51 = vld [vmem:[%s6485_s1 + $0xb0] sm:$0xff]  }
  0x7c   : > { %4492 = vmatpush3.bf16.msra.mxu1 %v5208_v4  ;;  %v909_v4 = vrot.slane %v6580_v43, 4  ;;  %v912_v2 = vrot.slane %v6581_v17, 5  ;;  %4669 = vmatprep.mubr.bf16.mxu0 %v6006_v37  ;;  %v2332_v33 = vrot.slane %v6582_v40, 4  ;;  %v842_v32 = vrot.slane %v841_v26, 4 }
  0x7d   : > { %4493 = vmatprep.subr.bf16.mxu1 %v5210_v24  ;;  %v856_v27 = vrot.slane %v854_v16, 5  ;;  %v866_v22 = vrot.slane %v865_v50, 4  ;;  %v852_v63 = vrot.slane %v851_v19, 4  ;;  %v899_v38 = vor.u32 %v898_v47, %v6017_v36 }
  0x7e   : > { %v916_v14 = vshll.u32 %v5725_v6, 16  ;;  %v6583_v25 = vrot.slane %v5355_v12, 5  ;;  %v6048_v55 = vcombine.low %v1451_v11, %v1454_v59  ;;  %v876_v9 = vrot.slane %v875_v3, 4 }
  0x7f   : > { %4462 = vmatmul.mubr.bf16.gmra.mrb[8].mxu1 %v5587_v30  ;;  %v880_v7 = vrot.slane %v878_v62, 5  ;;  %v913_v26 = vor.u32 %v912_v2, %v909_v4  ;;  %v6050_v16 = vrot.slane %v889_v21, 4  ;;  %v6584_v50 = vshrl.u32 %v5725_v6, 16  ;;  %v5216_v6 = vld [vmem:[%s6485_s1 + $0xb8] sm:$0xff]  }
  0x80   : > { %4465 = vmatprep.mubr.bf16.mxu1 %v5618_v34  ;;  %4494 = vmatpush3.bf16.msra.mxu1 %v5210_v24  ;;  %v1347_v60 = vrot.slane %v6583_v25, 4  ;;  %v6052_v24 = vrot.slane %v902_v35, 5  ;;  %v1348_v45 = vrot.slane %v5771_v18, 5  ;;  %v6585_v47 = vmov %v6582_v40 }
  0x81   : > { %4495 = vmatprep.subr.bf16.mxu1 %v5212_v1  ;;  %v922_v19 = vrot.slane %v6584_v50, 4  ;;  %v6586_v12 = vrot.slane %v5947_v15, 9  ;;  %v2334_v3 = vsel %vm5493_vm5, %v2332_v33, %v2333_v42  ;;  %v926_v62 = vshll.u32 %v5903_v44, 16  ;;  %v6104_v33 = vld [vmem:[%s6485_s1 + $0xc0] sm:$0xff]  }
  0x82   : > { %v6587_v4 = vshrl.u32 %v5748_v48, 16  ;;  %v847_v18 = vsel %vm5405_vm2, %v842_v32, %v5993_v10  ;;  %v6076_v2 = vrot.slane %v899_v38, 4  ;;  %v6078_v11 = vrot.slane %v916_v14, 5 }
  0x83   : > { %v2331_v43 = vsel %vm5493_vm5, %v6586_v12, %v6585_v47  ;;  %v6082_v42 = vsel %vm5493_vm5, %v1347_v60, %v1348_v45  ;;  %4670 = vmatmul.mubr.bf16.gmra.mrb[24].mxu0 %v6014_v23  ;;  %v871_v44 = vsel %vm5405_vm2, %v866_v22, %v6002_v46  ;;  %v6088_v59 = vrot.slane %v913_v26, 4 }
  0x84   : > { %v6068_v17 = vrot.slane %v6587_v4, 4  ;;  %4496 = vmatpush3.bf16.msra.mxu1 %v5212_v1  ;;  %v940_v21 = vshll.u32 %v5751_v31, 16  ;;  %v3835_v10 = vcombine.low %v5512_v57, %v6082_v42  ;;  %4673 = vmatprep.mubr.bf16.mxu0 %v6048_v55  ;;  %v857_v1 = vsel %vm5405_vm2, %v852_v63, %v856_v27  ;;  %v5229_v57 = vld [vmem:[%s6485_s1 + $0x200] sm:$0xff]  }
  0x85   : > { %4497 = vmatprep.subr.bf16.mxu1 %v5214_v51  ;;  %v881_v35 = vsel %vm5405_vm2, %v876_v9, %v880_v7  ;;  %v964_v40 = vshll.u32 %v5783_v58, 16  ;;  %v2042_v46 = vshrl.u32 %v5947_v15, 16  ;;  %v6106_v32 = vcombine.low %v2331_v43, %v2334_v3  ;;  %v6605_v42 = vld [vmem:[#allocation14_spill] sm:$0xff] }
  0x86   : > { %v923_v27 = vor.u32 %v922_v19, %v6078_v11  ;;  %v6110_v22 = vcombine.low %v847_v18, %v857_v1  ;;  %v6112_v63 = vcombine.low %v871_v44, %v881_v35  ;;  %v2045_v14 = vshll.u32 %v5947_v15, 16 }
  0x87   : > { %4466 = vmatmul.mubr.bf16.gmra.mrb[12].mxu1 %v5636_v52  ;;  %v2044_v38 = vrot.slane %v2042_v46, 4  ;;  %v928_v25 = vrot.slane %v926_v62, 5  ;;  %v2051_v60 = vshll.u32 %v5959_v61, 16  ;;  %v2055_v9 = vshrl.u32 %v5959_v61, 16 }
  0x88   : > { %4469 = vmatprep.mubr.bf16.mxu1 %v5673_v29  ;;  %4498 = vmatpush3.bf16.msra.mxu1 %v5214_v51  ;;  %v2061_v7 = vshll.u32 %v5976_v5, 16  ;;  %v6588_v26 = vshll.u32 %v5748_v48, 16  ;;  %v6120_v19 = vrot.slane %v940_v21, 5  ;;  %v6589_v51 = vshrl.u32 %v5751_v31, 16 }
  0x89   : > { %4499 = vmatprep.subr.bf16.mxu1 %v5216_v6  ;;  %v2047_v47 = vrot.slane %v2045_v14, 5  ;;  %v924_v12 = vrot.slane %v923_v27, 4  ;;  %v6590_v43 = vshrl.u32 %v5780_v28, 16  ;;  %v2053_v62 = vrot.slane %v2051_v60, 5 }
  0x8a   : > { %v936_v50 = vrot.slane %v6588_v26, 5  ;;  %v946_v45 = vrot.slane %v6589_v51, 4  ;;  %v2057_v4 = vrot.slane %v2055_v9, 4  ;;  %v6591_v5 = vshll.u32 %v5780_v28, 16 }
  0x8b   : > { %v957_v3 = vrot.slane %v6590_v43, 4  ;;  %4674 = vmatmul.mubr.bf16.gmra.mrb[28].mxu0 %v6106_v32  ;;  %v966_v48 = vrot.slane %v964_v40, 5  ;;  %v6592_v44 = vshrl.u32 %v5783_v58, 16  ;;  %v2048_v31 = vor.u32 %v2047_v47, %v2044_v38 }
  0x8c   : > { %4500 = vmatpush3.bf16.msra.mxu1 %v5216_v6  ;;  %v960_v18 = vrot.slane %v6591_v5, 5  ;;  %4693 = vmatprep.mubr.bf16.mxu0 %v5419_v54  ;;  %v895_v6 = vsel %vm5405_vm2, %v6050_v16, %v6017_v36  ;;  %v950_v1 = vshll.u32 %v5906_v56, 16  ;;  %v2058_v35 = vor.u32 %v2057_v4, %v2053_v62 }
  0x8d   : > { %v970_v21 = vrot.slane %v6592_v44, 4  ;;  %4533 = vmatprep.subr.bf16.mxu1 %v6104_v33  ;;  %v2063_v46 = vrot.slane %v2061_v7, 5  ;;  %v905_v28 = vsel %vm5405_vm2, %v6076_v2, %v6052_v24  ;;  %v919_v58 = vsel %vm5405_vm2, %v6088_v59, %v6078_v11 }
  0x8e   : > { %v937_v40 = vor.u32 %v936_v50, %v6068_v17  ;;  %v2049_v27 = vrot.slane %v2048_v31, 4  ;;  %v929_v56 = vsel %vm5405_vm2, %v924_v12, %v928_v25  ;;  %v947_v36 = vor.u32 %v946_v45, %v6120_v19  ;;  %v5213_v25 = vld [vmem:[%s6485_s1 + $0x1c8] sm:$0xff]   ;;  %v6597_v31 = vld [vmem:[#allocation28_spill] sm:$0xff] }
  0x8f   : > { %4470 = vmatmul.mubr.bf16.gmra.mrb[16].mxu1 %v6110_v22  ;;  %v988_v16 = vshll.u32 %v5827_v39, 16  ;;  %v2059_v38 = vrot.slane %v2058_v35, 4  ;;  %v961_v14 = vor.u32 %v960_v18, %v957_v3  ;;  %v971_v24 = vor.u32 %v970_v21, %v966_v48  ;;  %v6596_v18 = vld [vmem:[#allocation4_spill] sm:$0xff] }
  0x90   : > { %4473 = vmatprep.mubr.bf16.mxu1 %v6112_v63  ;;  %v974_v2 = vshll.u32 %v5935_v8, 16  ;;  %v2054_v11 = vsel %vm5405_vm2, %v2049_v27, %v2053_v62  ;;  %v6156_v59 = vcombine.low %v895_v6, %v905_v28  ;;  %v952_v17 = vrot.slane %v950_v1, 5 }
  0x91   : > { %v2064_v60 = vsel %vm5405_vm2, %v2059_v38, %v2063_v46  ;;  %v6163_v9 = vcombine.low %v919_v58, %v929_v56  ;;  %v938_v7 = vrot.slane %v937_v40, 4  ;;  %v6593_v26 = vshrl.u32 %v5812_v53, 16  ;;  %v5217_v46 = vld [vmem:[%s6485_s1 + $0x1d8] sm:$0xff]   ;;  %v6598_v56 = vld [vmem:[#allocation7_spill] sm:$0xff] }
  0x92   : > { %v6167_v8 = vcombine.low %v2054_v11, %v2064_v60  ;;  %v948_v51 = vrot.slane %v947_v36, 4  ;;  %v6594_v45 = vshll.u32 %v5812_v53, 16  ;;  %v990_v12 = vrot.slane %v988_v16, 5  ;;  %v6599_v36 = vld [vmem:[#allocation8_spill] sm:$0xff]  ;;  %v6601_v11 = vld [vmem:[#allocation10_spill] sm:$0xff]  ;;  %v5227_v60 = vld [vmem:[%s6485_s1 + $0x1f8] sm:$0xff]  }
  0x93   : > { %v981_v50 = vrot.slane %v6593_v26, 4  ;;  %v6595_v43 = vshrl.u32 %v5827_v39, 16  ;;  %4694 = vmatmul.mubr.bf16.vlgmr.msra.gmra.mrb[0].mxu0 %v5457_v20  ;;  %v962_v62 = vrot.slane %v961_v14, 4  ;;  %v972_v4 = vrot.slane %v971_v24, 4  ;;  %v5215_v39 = vld [vmem:[%s6485_s1 + $0x1d0] sm:$0xff]   ;;  %v5221_v24 = vld [vmem:[%s6485_s1 + $0x1e8] sm:$0xff]  }
  0x94   : > { %v984_v47 = vrot.slane %v6594_v45, 5  ;;  %v976_v5 = vrot.slane %v974_v2, 5  ;;  %4726 = vmatpush3.bf16.msra.mxu0 %v5920_v0  ;;  %4697 = vmatprep.mubr.bf16.mxu0 %v6596_v18  ;;  %v943_v53 = vsel %vm5405_vm2, %v938_v7, %v6120_v19  ;;  %v953_v44 = vsel %vm5405_vm2, %v948_v51, %v952_v17  ;;  %v6600_v2 = vld [vmem:[#allocation9_spill] sm:$0xff]  ;;  %v5223_v17 = vld [vmem:[%s6485_s1 + $0x1f0] sm:$0xff]   ;;  %v5220_v7 = vld [vmem:[%s6485_s1 + $0xc8] sm:$0xff]  }
  0x95   : > { %v994_v3 = vrot.slane %v6595_v43, 4  ;;  %4727 = vmatprep.subr.bf16.mxu0 %v5213_v25  ;;  %v998_v6 = vshll.u32 %v6597_v31, 16  ;;  %v967_v1 = vsel %vm5405_vm2, %v962_v62, %v966_v48  ;;  %v6191_v19 = vcombine.low %v943_v53, %v953_v44  ;;  %v5219_v48 = vld [vmem:[%s6485_s1 + $0x1e0] sm:$0xff]   ;;  %v6603_v26 = vld [vmem:[#allocation13_spill] sm:$0xff]  ;;  %v6606_v51 = vld [vmem:[#allocation16_spill] sm:$0xff] }
  0x96   : > { %v985_v21 = vor.u32 %v984_v47, %v981_v50  ;;  %v977_v35 = vsel %vm5405_vm2, %v972_v4, %v976_v5  ;;  %v6604_v50 = vld [vmem:[#allocation11_spill] sm:$0xff]  ;;  %v5225_v45 = vld [vmem:[%s6485_s1 + $0xd8] sm:$0xff]   ;;  %v5228_v43 = vld [vmem:[%s6485_s1 + $0xe0] sm:$0xff]   ;;  %v6262_v44 = vcombine.low %v5947_v15, %v5959_v61 }
  0x97   : > { %4474 = vmatmul.mubr.bf16.gmra.mrb[20].mxu1 %v6156_v59  ;;  %v995_v0 = vor.u32 %v994_v3, %v990_v12  ;;  %v6196_v28 = vcombine.low %v967_v1, %v977_v35  ;;  %v1000_v27 = vrot.slane %v998_v6, 5  ;;  %v6607_v47 = vld [vmem:[#allocation17_spill] sm:$0xff]  ;;  %v6610_v3 = vld [vmem:[#allocation19_spill] sm:$0xff]  ;;  %v6612_v5 = vld [vmem:[#allocation20_spill] sm:$0xff] }
  0x98   : > { %4477 = vmatprep.mubr.bf16.mxu1 %v6163_v9  ;;  %4728 = vmatpush3.bf16.msra.mxu0 %v5213_v25  ;;  %v986_v58 = vrot.slane %v985_v21, 4  ;;  %v6602_v25 = vld [vmem:[#allocation12_spill] sm:$0xff]  ;;  %v5230_v62 = vld [vmem:[%s6485_s1 + $0xe8] sm:$0xff]   ;;  %v6611_v4 = vld [vmem:[#allocation21_spill] sm:$0xff] }
  0x99   : > { %4729 = vmatprep.subr.bf16.mxu0 %v5215_v39  ;;  %v996_v40 = vrot.slane %v995_v0, 4  ;;  %v6613_v53 = vld [vmem:[#allocation22_spill] sm:$0xff]  ;;  %v6614_v21 = vld [vmem:[#allocation24_spill] sm:$0xff]  ;;  %v5234_v0 = vld [vmem:[%s6485_s1 + $0xf8] sm:$0xff]  }
  0x9a   : > { %v991_v16 = vsel %vm5405_vm2, %v986_v58, %v990_v12  ;;  %v6609_v12 = vld [vmem:[#allocation18_spill] sm:$0xff]  ;;  %v6270_v31 = vld [vmem:[%s5346_s16 + $0xcc] sm:$0xf]  ;;  %v6273_v6 = vld [vmem:[%s5346_s16 + $0xd0] sm:$0xf] }
  0x9b   : > { %4698 = vmatmul.mubr.bf16.gmra.mrb[4].mxu0 %v6598_v56  ;;  %v1001_v38 = vsel %vm5405_vm2, %v996_v40, %v1000_v27  ;;  %v6615_v1 = vld [vmem:[#allocation23_spill] sm:$0xff]  ;;  %v6616_v35 = vld [vmem:[#allocation25_spill] sm:$0xff]  ;;  %v3951_v15 = vcombine.low %v6270_v31, %v6273_v6  ;;  %v5240_v61 = vld [vmem:[%s6485_s1 + $0x100] sm:$0xff]   ;;  %v3150_v41 = vrot.slane %v6273_v6, 5 }
  0x9c   : > { %4701 = vmatprep.mubr.bf16.mxu0 %v6599_v36  ;;  %4730 = vmatpush3.bf16.msra.mxu0 %v5215_v39  ;;  %v6209_v14 = vcombine.low %v991_v16, %v1001_v38  ;;  %v5232_v39 = vld [vmem:[%s6485_s1 + $0xf0] sm:$0xff]   ;;  %v6618_v58 = vld [vmem:[#allocation26_spill] sm:$0xff]  ;;  %v6619_v40 = vld [vmem:[#allocation27_spill] sm:$0xff] }
  0x9d   : > { %4731 = vmatprep.subr.bf16.mxu0 %v5217_v46  ;;  %v5231_v27 = vld [vmem:[%s6485_s1 + $0x208] sm:$0xff]   ;;  %v6621_v16 = vld [vmem:[#allocation6_spill] sm:$0xff]  ;;  %v6622_v38 = vld [vmem:[#allocation29_spill] sm:$0xff] }
  0x9f   : > { %4478 = vmatmul.mubr.bf16.gmra.mrb[24].mxu1 %v6191_v19 }
  0xa0   : > { %4481 = vmatprep.mubr.bf16.mxu1 %v6196_v28  ;;  %4732 = vmatpush3.bf16.msra.mxu0 %v5217_v46  ;;  %v6617_v46 = vld [vmem:[#allocation3_spill] sm:$0xff] }
  0xa1   : > { %4733 = vmatprep.subr.bf16.mxu0 %v5219_v48 }
  0xa3   : > { %4702 = vmatmul.mubr.bf16.gmra.mrb[8].mxu0 %v6600_v2 }
  0xa4   : > { %4705 = vmatprep.mubr.bf16.mxu0 %v6601_v11  ;;  %4734 = vmatpush3.bf16.msra.mxu0 %v5219_v48  ;;  %v6620_v48 = vld [vmem:[#allocation5_spill] sm:$0xff] }
  0xa5   : > { %4735 = vmatprep.subr.bf16.mxu0 %v5221_v24 }
  0xa7   : > { %4482 = vmatmul.mubr.bf16.gmra.mrb[28].mxu1 %v6209_v14 }
  0xa8   : > { %4501 = vmatprep.mubr.bf16.mxu1 %v3835_v10  ;;  %4736 = vmatpush3.bf16.msra.mxu0 %v5221_v24  ;;  %v5222_v10 = vld [vmem:[%s6485_s1 + $0xd0] sm:$0xff]  }
  0xa9   : > { %4737 = vmatprep.subr.bf16.mxu0 %v5223_v17  ;;  %v5233_v24 = vld [vmem:[%s6485_s1 + $0x210] sm:$0xff]  }
  0xab   : > { %4706 = vmatmul.mubr.bf16.gmra.mrb[12].mxu0 %v6602_v25 }
  0xac   : > { %4709 = vmatprep.mubr.bf16.mxu0 %v6603_v26  ;;  %4738 = vmatpush3.bf16.msra.mxu0 %v5223_v17  ;;  %v5235_v17 = vld [vmem:[%s6485_s1 + $0x218] sm:$0xff]  }
  0xad   : > { %4739 = vmatprep.subr.bf16.mxu0 %v5227_v60 }
  0xaf   : > { %4502 = vmatmul.mubr.bf16.vlgmr.msra.gmra.mrb[0].mxu1 %v6604_v50  ;;  %v5239_v50 = vld [vmem:[%s6485_s1 + $0x238] sm:$0xff]  }
  0xb0   : > { %4534 = vmatpush3.bf16.msra.mxu1 %v6104_v33  ;;  %4505 = vmatprep.mubr.bf16.mxu1 %v6605_v42  ;;  %v6608_v33 = vld [vmem:[#allocation15_spill] sm:$0xff] }
  0xb1   : > { %4535 = vmatprep.subr.bf16.mxu1 %v5220_v7  ;;  %4740 = vmatpush3.bf16.msra.mxu0 %v5227_v60  ;;  %v5236_v60 = vld [vmem:[%s6485_s1 + $0x220] sm:$0xff]  }
  0xb2   : > { %4773 = vmatprep.subr.bf16.mxu0 %v5229_v57 }
  0xb3   : > { %4710 = vmatmul.mubr.bf16.gmra.mrb[16].mxu0 %v6606_v51 }
  0xb4   : > { %4536 = vmatpush3.bf16.msra.mxu1 %v5220_v7  ;;  %4713 = vmatprep.mubr.bf16.mxu0 %v6607_v47  ;;  %v5237_v7 = vld [vmem:[%s6485_s1 + $0x228] sm:$0xff]  }
  0xb5   : > { %4537 = vmatprep.subr.bf16.mxu1 %v5222_v10 }
  0xb7   : > { %4506 = vmatmul.mubr.bf16.gmra.mrb[4].mxu1 %v6608_v33 }
  0xb8   : > { %4509 = vmatprep.mubr.bf16.mxu1 %v6609_v12  ;;  %4538 = vmatpush3.bf16.msra.mxu1 %v5222_v10  ;;  %v2871_v10 = vshll.u32 %v6273_v6, 16 }
  0xb9   : > { %4539 = vmatprep.subr.bf16.mxu1 %v5225_v45 }
  0xbb   : > { %4714 = vmatmul.mubr.bf16.gmra.mrb[20].mxu0 %v6610_v3 }
  0xbc   : > { %4540 = vmatpush3.bf16.msra.mxu1 %v5225_v45  ;;  %4717 = vmatprep.mubr.bf16.mxu0 %v6611_v4  ;;  %v5243_v45 = vld [vmem:[%s6485_s1 + $0x118] sm:$0xff]  }
  0xbd   : > { %4541 = vmatprep.subr.bf16.mxu1 %v5228_v43 }
  0xbf   : > { %4510 = vmatmul.mubr.bf16.gmra.mrb[8].mxu1 %v6612_v5 }
  0xc0   : > { %4513 = vmatprep.mubr.bf16.mxu1 %v6613_v53  ;;  %4542 = vmatpush3.bf16.msra.mxu1 %v5228_v43 }
  0xc1   : > { %4543 = vmatprep.subr.bf16.mxu1 %v5230_v62 }
  0xc3   : > { %4718 = vmatmul.mubr.bf16.gmra.mrb[24].mxu0 %v6614_v21 }
  0xc4   : > { %4544 = vmatpush3.bf16.msra.mxu1 %v5230_v62  ;;  %4721 = vmatprep.mubr.bf16.mxu0 %v6262_v44 }
  0xc5   : > { %4545 = vmatprep.subr.bf16.mxu1 %v5232_v39 }
  0xc7   : > { %4514 = vmatmul.mubr.bf16.gmra.mrb[12].mxu1 %v6615_v1 }
  0xc8   : > { %4517 = vmatprep.mubr.bf16.mxu1 %v6616_v35  ;;  %4546 = vmatpush3.bf16.msra.mxu1 %v5232_v39  ;;  %v2873_v39 = vrot.slane %v2871_v10, 5 }
  0xc9   : > { %4547 = vmatprep.subr.bf16.mxu1 %v5234_v0 }
  0xcb   : > { %4722 = vmatmul.mubr.bf16.gmra.mrb[28].mxu0 %v3951_v15  ;;  %v6340_v15 = vld [vmem:[%s5346_s16 + $0xd4] sm:$0x1] }
  0xcc   : > { %4548 = vmatpush3.bf16.msra.mxu1 %v5234_v0  ;;  %4741 = vmatprep.mubr.bf16.mxu0 %v6617_v46  ;;  %v2881_v46 = vshll.u32 %v6340_v15, 16 }
  0xcd   : > { %4821 = vmatprep.subr.bf16.mxu1 %v5240_v61 }
  0xcf   : > { %4518 = vmatmul.mubr.bf16.gmra.mrb[16].mxu1 %v6618_v58 }
  0xd0   : > { %4521 = vmatprep.mubr.bf16.mxu1 %v6619_v40 }
  0xd3   : > { %4742 = vmatmul.mubr.bf16.vlgmr.msra.gmra.mrb[0].mxu0 %v6620_v48 }
  0xd4   : > { %4774 = vmatpush3.bf16.msra.mxu0 %v5229_v57  ;;  %4745 = vmatprep.mubr.bf16.mxu0 %v6621_v16  ;;  %v2865_v57 = vshll.u32 %v6270_v31, 16 }
  0xd5   : > { %4775 = vmatprep.subr.bf16.mxu0 %v5231_v27 }
  0xd6   : > { %v2867_v62 = vrot.slane %v2865_v57, 5 }
  0xd7   : > { %4522 = vmatmul.mubr.bf16.gmra.mrb[20].mxu1 %v6622_v38 }
  0xd8   : > { %4525 = vmatprep.mubr.bf16.mxu1 %v5971_v13  ;;  %4776 = vmatpush3.bf16.msra.mxu0 %v5231_v27  ;;  %v5245_v27 = vld [vmem:[%s6485_s1 + $0x128] sm:$0xff]  }
  0xd9   : > { %4777 = vmatprep.subr.bf16.mxu0 %v5233_v24 }
  0xdb   : > { %4746 = vmatmul.mubr.bf16.gmra.mrb[4].mxu0 %v5587_v30  ;;  %v5238_v30 = vld [vmem:[%s6485_s1 + $0x230] sm:$0xff]  }
  0xdc   : > { %4749 = vmatprep.mubr.bf16.mxu0 %v5618_v34  ;;  %4778 = vmatpush3.bf16.msra.mxu0 %v5233_v24  ;;  %v6623_v34 = vld [vmem:[#allocation2_spill] sm:$0xff]  ;;  %v2883_v24 = vrot.slane %v2881_v46, 5 }
  0xdd   : > { %4779 = vmatprep.subr.bf16.mxu0 %v5235_v17 }
  0xdf   : > { %4526 = vmatmul.mubr.bf16.gmra.mrb[24].mxu1 %v6006_v37 }
  0xe0   : > { %4529 = vmatprep.mubr.bf16.mxu1 %v6014_v23  ;;  %4780 = vmatpush3.bf16.msra.mxu0 %v5235_v17  ;;  %v5246_v17 = vld [vmem:[%s6485_s1 + $0x130] sm:$0xff]  }
  0xe1   : > { %4781 = vmatprep.subr.bf16.mxu0 %v5236_v60 }
  0xe3   : > { %4750 = vmatmul.mubr.bf16.gmra.mrb[8].mxu0 %v5636_v52  ;;  %v5242_v52 = vld [vmem:[%s6485_s1 + $0x110] sm:$0xff]  }
  0xe4   : > { %4753 = vmatprep.mubr.bf16.mxu0 %v5673_v29  ;;  %4782 = vmatpush3.bf16.msra.mxu0 %v5236_v60  ;;  %v5241_v29 = vld [vmem:[%s6485_s1 + $0x108] sm:$0xff]  }
  0xe5   : > { %4783 = vmatprep.subr.bf16.mxu0 %v5237_v7 }
  0xe7   : > { %4530 = vmatmul.mubr.bf16.gmra.mrb[28].mxu1 %v6048_v55 }
  0xe8   : > { %4549 = vmatprep.mubr.bf16.mxu1 %v6623_v34  ;;  %4784 = vmatpush3.bf16.msra.mxu0 %v5237_v7  ;;  %v5247_v7 = vld [vmem:[%s6485_s1 + $0x138] sm:$0xff]  }
  0xe9   : > { %4785 = vmatprep.subr.bf16.mxu0 %v5238_v30 }
  0xeb   : > { %4754 = vmatmul.mubr.bf16.gmra.mrb[12].mxu0 %v6110_v22 }
  0xec   : > { %4757 = vmatprep.mubr.bf16.mxu0 %v6112_v63  ;;  %4786 = vmatpush3.bf16.msra.mxu0 %v5238_v30 }
  0xed   : > { %4787 = vmatprep.subr.bf16.mxu0 %v5239_v50 }
  0xef   : > { %4550 = vmatmul.mubr.bf16.vlgmr.msra.gmra.mrb[0].mxu1 %v5419_v54  ;;  %v2862_v54 = vshrl.u32 %v6270_v31, 16 }
  0xf0   : > { %4829 = vmatpush3.bf16.msra.mxu1 %v5240_v61  ;;  %4553 = vmatprep.mubr.bf16.mxu1 %v5457_v20  ;;  %v2875_v20 = vshrl.u32 %v6273_v6, 16 }
  0xf1   : > { %4822 = vmatprep.subr.bf16.mxu1 %v5241_v29  ;;  %4788 = vmatpush3.bf16.msra.mxu0 %v5239_v50  ;;  %v2864_v43 = vrot.slane %v2862_v54, 4 }
  0xf2   : > { %v2877_v0 = vrot.slane %v2875_v20, 4 }
  0xf3   : > { %4758 = vmatmul.mubr.bf16.gmra.mrb[16].mxu0 %v6156_v59 }
  0xf4   : > { %4830 = vmatpush3.bf16.msra.mxu1 %v5241_v29  ;;  %4761 = vmatprep.mubr.bf16.mxu0 %v6163_v9  ;;  %v2878_v61 = vor.u32 %v2877_v0, %v2873_v39 }
  0xf5   : > { %4823 = vmatprep.subr.bf16.mxu1 %v5242_v52 }
  0xf6   : > { %v2879_v16 = vrot.slane %v2878_v61, 4 }
  0xf7   : > { %4554 = vmatmul.mubr.bf16.gmra.mrb[4].mxu1 %v6596_v18  ;;  %v5244_v18 = vld [vmem:[%s6485_s1 + $0x120] sm:$0xff]  }
  0xf8   : > { %4557 = vmatprep.mubr.bf16.mxu1 %v6598_v56  ;;  %4831 = vmatpush3.bf16.msra.mxu1 %v5242_v52  ;;  %v2868_v56 = vor.u32 %v2867_v62, %v2864_v43 }
  0xf9   : > { %4824 = vmatprep.subr.bf16.mxu1 %v5243_v45 }
  0xfa   : > { %v2869_v48 = vrot.slane %v2868_v56, 4 }
  0xfb   : > { %4762 = vmatmul.mubr.bf16.gmra.mrb[20].mxu0 %v6191_v19 }
  0xfc   : > { %4832 = vmatpush3.bf16.msra.mxu1 %v5243_v45  ;;  %4765 = vmatprep.mubr.bf16.mxu0 %v6196_v28 }
  0xfd   : > { %4825 = vmatprep.subr.bf16.mxu1 %v5244_v18 }
  0xff   : > { %4558 = vmatmul.mubr.bf16.gmra.mrb[8].mxu1 %v6599_v36  ;;  %v2874_v36 = vsel %vm5405_vm2, %v2869_v48, %v2873_v39 }
 0x100   : > { %4561 = vmatprep.mubr.bf16.mxu1 %v6600_v2  ;;  %4833 = vmatpush3.bf16.msra.mxu1 %v5244_v18  ;;  %v2884_v2 = vsel %vm5405_vm2, %v2879_v16, %v2883_v24 }
 0x101   : > { %4826 = vmatprep.subr.bf16.mxu1 %v5245_v27  ;;  %v3976_v60 = vcombine.low %v2874_v36, %v2884_v2 }
 0x103   : > { %4766 = vmatmul.mubr.bf16.gmra.mrb[24].mxu0 %v6209_v14 }
 0x104   : > { %4834 = vmatpush3.bf16.msra.mxu1 %v5245_v27  ;;  %4769 = vmatprep.mubr.bf16.mxu0 %v6167_v8 }
 0x105   : > { %4827 = vmatprep.subr.bf16.mxu1 %v5246_v17 }
 0x107   : > { %4562 = vmatmul.mubr.bf16.gmra.mrb[12].mxu1 %v6601_v11 }
 0x108   : > { %4565 = vmatprep.mubr.bf16.mxu1 %v6602_v25  ;;  %4835 = vmatpush3.bf16.msra.mxu1 %v5246_v17 }
 0x109   : > { %4828 = vmatprep.subr.bf16.mxu1 %v5247_v7 }
 0x10b   : > { %4770 = vmatmul.mubr.bf16.gmra.mrb[28].mxu0 %v3976_v60 }
 0x10c   : > { %4836 = vmatpush3.bf16.msra.mxu1 %v5247_v7  ;;  %4789 = vmatprep.mubr.bf16.mxu0 %v6605_v42 }
 0x10f   : > { %4566 = vmatmul.mubr.bf16.gmra.mrb[16].mxu1 %v6603_v26 }
 0x110   : > { %4569 = vmatprep.mubr.bf16.mxu1 %v6606_v51 }
 0x113   : > { %4790 = vmatmul.mubr.bf16.vlgmr.msra.gmra.mrb[0].mxu0 %v6608_v33 }
 0x114   : > { %4793 = vmatprep.mubr.bf16.mxu0 %v6609_v12 }
 0x117   : > { %4570 = vmatmul.mubr.bf16.gmra.mrb[20].mxu1 %v6607_v47 }
 0x118   : > { %4573 = vmatprep.mubr.bf16.mxu1 %v6610_v3  ;;  %v6415_v3 = vld [vmem:[%s6486_s2] ss:$0 sm:$0xff] }
 0x11b   : > { %4794 = vmatmul.mubr.bf16.gmra.mrb[4].mxu0 %v6612_v5 }
 0x11c   : > { %4797 = vmatprep.mubr.bf16.mxu0 %v6613_v53 }
 0x11f   : > { %4574 = vmatmul.mubr.bf16.gmra.mrb[24].mxu1 %v6611_v4 }
 0x120   : > { %4577 = vmatprep.mubr.bf16.mxu1 %v6614_v21 }
 0x123   : > { %4798 = vmatmul.mubr.bf16.gmra.mrb[8].mxu0 %v6615_v1 }
 0x124   : > { %4801 = vmatprep.mubr.bf16.mxu0 %v6616_v35 }
 0x127   : > { %4578 = vmatmul.mubr.bf16.gmra.mrb[28].mxu1 %v6262_v44 }
 0x128   : > { %4613 = vmatprep.mubr.bf16.mxu1 %v6110_v22  ;;  %v3985_v22 = vrot.slane %v6270_v31, 9 }
 0x12b   : > { %4802 = vmatmul.mubr.bf16.gmra.mrb[12].mxu0 %v6618_v58 }
 0x12c   : > { %4805 = vmatprep.mubr.bf16.mxu0 %v6619_v40 }
 0x12f   : > { %4614 = vmatmul.mubr.bf16.vlgmr.msra.gmra.mrb[16].mxu1 %v6112_v63  ;;  %v3152_v63 = vrot.slane %v3150_v41, 4 }
 0x130   : > { %4617 = vmatprep.mubr.bf16.mxu1 %v6156_v59  ;;  %v3153_v59 = vrot.slane %v6340_v15, 5 }
 0x133   : > { %4806 = vmatmul.mubr.bf16.gmra.mrb[16].mxu0 %v6622_v38 }
 0x134   : > { %4809 = vmatprep.mubr.bf16.mxu0 %v5971_v13  ;;  %v3154_v13 = vsel %vm5493_vm5, %v3152_v63, %v3153_v59 }
 0x137   : > { %4618 = vmatmul.mubr.bf16.gmra.mrb[20].mxu1 %v6163_v9 }
 0x138   : > { %4621 = vmatprep.mubr.bf16.mxu1 %v6191_v19 }
 0x13b   : > { %4810 = vmatmul.mubr.bf16.gmra.mrb[20].mxu0 %v6006_v37  ;;  %v3151_v37 = vsel %vm5493_vm5, %v3985_v22, %v3150_v41 }
 0x13c   : > { %4813 = vmatprep.mubr.bf16.mxu0 %v6014_v23  ;;  %v4002_v23 = vcombine.low %v3151_v37, %v3154_v13 }
 0x13f   : > { %4622 = vmatmul.mubr.bf16.gmra.mrb[24].mxu1 %v6196_v28 }
 0x140   : > { %4625 = vmatprep.mubr.bf16.mxu1 %v6209_v14 }
 0x143   : > { %4814 = vmatmul.mubr.bf16.gmra.mrb[24].mxu0 %v6048_v55 }
 0x144   : > { %4817 = vmatprep.mubr.bf16.mxu0 %v6106_v32 }
 0x147   : > { %4626 = vmatmul.mubr.bf16.gmra.mrb[28].mxu1 %v6167_v8 }
 0x14b   : > { %4818 = vmatmul.mubr.bf16.gmra.mrb[28].mxu0 %v4002_v23 }
 0x1c2   : > { %v4551_v9 = vpop.f32.mrb[0].mxu1 }
 0x1c3   : > { %v1882_v19 = vpop.f32.mrb[1].mxu1  ;;  %v4837_v4 = vadd.f32 %v4551_v9, %v6415_v3 }
 0x1c4   : > { %v4552_v28 = vpop.f32.mrb[2].mxu1  ;;  %v4839_v5 = vadd.f32 %v6415_v3, %v1882_v19 }
 0x1c5   : > { %v1885_v14 = vpop.f32.mrb[3].mxu1  ;;  %v4841_v44 = vadd.f32 %v4552_v28, %v6415_v3 }
 0x1c6   : > { %v4843_v6 = vadd.f32 %v6415_v3, %v1885_v14 }
 0x1ca   : > { %v4555_v11 = vpop.f32.mrb[4].mxu1 }
 0x1cb   : > { %v1898_v25 = vpop.f32.mrb[5].mxu1  ;;  %v4845_v52 = vadd.f32 %v4555_v11, %v6415_v3 }
 0x1cc   : > { %v4556_v26 = vpop.f32.mrb[6].mxu1  ;;  %v4847_v20 = vadd.f32 %v6415_v3, %v1898_v25 }
 0x1cd   : > { %v1901_v55 = vpop.f32.mrb[7].mxu1  ;;  %v4849_v62 = vadd.f32 %v4556_v26, %v6415_v3 }
 0x1ce   : > { %v4851_v18 = vadd.f32 %v6415_v3, %v1901_v55 }
 0x1d2   : > { %v4559_v42 = vpop.f32.mrb[8].mxu1 }
 0x1d3   : > { %v1914_v32 = vpop.f32.mrb[9].mxu1  ;;  %v4853_v60 = vadd.f32 %v4559_v42, %v6415_v3 }
 0x1d4   : > { %v4560_v51 = vpop.f32.mrb[10].mxu1  ;;  %v4855_v22 = vadd.f32 %v6415_v3, %v1914_v32 }
 0x1d5   : > { %v1917_v47 = vpop.f32.mrb[11].mxu1  ;;  %v4857_v13 = vadd.f32 %v4560_v51, %v6415_v3 }
 0x1d6   : > { %v4859_v28 = vadd.f32 %v6415_v3, %v1917_v47 }
 0x1da   : > { %v6404_v33 = vpop.f32.mrb[12].mxu1 }
 0x1db   : > { %v6406_v49 = vpop.f32.mrb[13].mxu1  ;;  %v4861_v51 = vadd.f32 %v6404_v33, %v6415_v3 }
 0x1dc   : > { %v6408_v12 = vpop.f32.mrb[14].mxu1  ;;  %v4863_v47 = vadd.f32 %v6415_v3, %v6406_v49 }
 0x1dd   : > { %v6410_v8 = vpop.f32.mrb[15].mxu1 }
 0x1e6   : > { %v4791_v53 = vpop.f32.mrb[0].mxu0 }
 0x1e7   : > { %v4838_v21 = vadd.f32 %v4837_v4, %v4791_v53  ;;  %v3258_v31 = vpop.f32.mrb[1].mxu0 }
 0x1e8   : > { %v4840_v1 = vadd.f32 %v4839_v5, %v3258_v31  ;;  %v4792_v35 = vpop.f32.mrb[2].mxu0 }
 0x1e9   : > { %v3419_v58 = vmul.f32 0.1, %v4838_v21  ;;  %v4842_v40 = vadd.f32 %v4841_v44, %v4792_v35  ;;  %v3261_v38 = vpop.f32.mrb[3].mxu0  ;;  %v4865_v35 = vadd.f32 %v6408_v12, %v6415_v3 }
 0x1ea   : > { %v3417_v30 = vmul.f32 0.1, %v4840_v1  ;;  %v4844_v34 = vadd.f32 %v4843_v6, %v3261_v38 }
 0x1eb   : > { %v3420_v50 = vmul.f32 0.1, %v4842_v40  ;;  %v3451_v54 = vmax.f32 %v4838_v21, %v3419_v58 }
 0x1ec   : > { %v3418_v29 = vmul.f32 0.1, %v4844_v34  ;;  %v3449_v10 = vmax.f32 %v4840_v1, %v3417_v30  ;;  %v4867_v30 = vadd.f32 %v6415_v3, %v6410_v8 }
 0x1ed   : > { %v3452_v57 = vmax.f32 %v4842_v40, %v3420_v50 }
 0x1ee   : > { %v3450_v45 = vmax.f32 %v4844_v34, %v3418_v29  ;;  %v4795_v43 = vpop.f32.mrb[4].mxu0 }
 0x1ef   : > { %v4086_v39 = vpack.c.bf16 %v3452_v57, %v3451_v54  ;;  %v4846_v0 = vadd.f32 %v4845_v52, %v4795_v43  ;;  %v3274_v15 = vpop.f32.mrb[5].mxu0 }
 0x1f0   : > { %v4081_v56 = vpack.c.bf16 %v3450_v45, %v3449_v10  ;;  %v4848_v61 = vadd.f32 %v4847_v20, %v3274_v15  ;;  %v4796_v46 = vpop.f32.mrb[6].mxu0 }
 0x1f1   : > { %4158 = vst [vmem:[%s6427_s29 + $0x8] sm:$0xff] %v4086_v39   ;;  %v3423_v27 = vmul.f32 0.1, %v4846_v0  ;;  %v4850_v48 = vadd.f32 %v4849_v62, %v4796_v46  ;;  %v3277_v16 = vpop.f32.mrb[7].mxu0 }
 0x1f2   : > { %4082 = vst [vmem:[%s6427_s29] sm:$0xff] %v4081_v56   ;;  %v3421_v24 = vmul.f32 0.1, %v4848_v61  ;;  %v4852_v17 = vadd.f32 %v4851_v18, %v3277_v16 }
 0x1f3   : > { %v3424_v36 = vmul.f32 0.1, %v4850_v48  ;;  %v3455_v7 = vmax.f32 %v4846_v0, %v3423_v27 }
 0x1f4   : > { %v3422_v2 = vmul.f32 0.1, %v4852_v17  ;;  %v3453_v63 = vmax.f32 %v4848_v61, %v3421_v24 }
 0x1f5   : > { %v3456_v41 = vmax.f32 %v4850_v48, %v3424_v36 }
 0x1f6   : > { %v3454_v59 = vmax.f32 %v4852_v17, %v3422_v2  ;;  %v4799_v37 = vpop.f32.mrb[8].mxu0 }
 0x1f7   : > { %v4096_v23 = vpack.c.bf16 %v3456_v41, %v3455_v7  ;;  %v4854_v9 = vadd.f32 %v4853_v60, %v4799_v37  ;;  %v3290_v19 = vpop.f32.mrb[9].mxu0 }
 0x1f8   : > { %v4091_v14 = vpack.c.bf16 %v3454_v59, %v3453_v63  ;;  %v4856_v11 = vadd.f32 %v4855_v22, %v3290_v19  ;;  %v4800_v25 = vpop.f32.mrb[10].mxu0 }
 0x1f9   : > { %4160 = vst [vmem:[%s6427_s29 + $0x18] sm:$0xff] %v4096_v23   ;;  %v3427_v26 = vmul.f32 0.1, %v4854_v9  ;;  %v4858_v55 = vadd.f32 %v4857_v13, %v4800_v25  ;;  %v3293_v42 = vpop.f32.mrb[11].mxu0 }
 0x1fa   : > { %4159 = vst [vmem:[%s6427_s29 + $0x10] sm:$0xff] %v4091_v14   ;;  %v3425_v32 = vmul.f32 0.1, %v4856_v11  ;;  %v4860_v4 = vadd.f32 %v4859_v28, %v3293_v42 }
 0x1fb   : > { %v3428_v5 = vmul.f32 0.1, %v4858_v55  ;;  %v3459_v44 = vmax.f32 %v4854_v9, %v3427_v26 }
 0x1fc   : > { %v3426_v53 = vmul.f32 0.1, %v4860_v4  ;;  %v3457_v31 = vmax.f32 %v4856_v11, %v3425_v32 }
 0x1fd   : > { %v3460_v21 = vmax.f32 %v4858_v55, %v3428_v5 }
 0x1fe   : > { %v3458_v6 = vmax.f32 %v4860_v4, %v3426_v53  ;;  %v4803_v1 = vpop.f32.mrb[12].mxu0 }
 0x1ff   : > { %v4106_v58 = vpack.c.bf16 %v3460_v21, %v3459_v44  ;;  %v4862_v40 = vadd.f32 %v4861_v51, %v4803_v1  ;;  %v3306_v38 = vpop.f32.mrb[13].mxu0 }
 0x200   : > { %v4101_v33 = vpack.c.bf16 %v3458_v6, %v3457_v31  ;;  %v4864_v34 = vadd.f32 %v4863_v47, %v3306_v38  ;;  %v4804_v50 = vpop.f32.mrb[14].mxu0 }
 0x201   : > { %4162 = vst [vmem:[%s6427_s29 + $0x28] sm:$0xff] %v4106_v58   ;;  %v3431_v52 = vmul.f32 0.1, %v4862_v40  ;;  %v4866_v49 = vadd.f32 %v4865_v35, %v4804_v50  ;;  %v3309_v54 = vpop.f32.mrb[15].mxu0 }
 0x202   : > { %v4615_v29 = vpop.f32.mrb[16].mxu1  ;;  %4161 = vst [vmem:[%s6427_s29 + $0x20] sm:$0xff] %v4101_v33   ;;  %v3429_v20 = vmul.f32 0.1, %v4864_v34  ;;  %v4868_v10 = vadd.f32 %v4867_v30, %v3309_v54 }
 0x203   : > { %v2232_v57 = vpop.f32.mrb[17].mxu1  ;;  %v3432_v12 = vmul.f32 0.1, %v4866_v49  ;;  %v4869_v43 = vadd.f32 %v4615_v29, %v6415_v3  ;;  %v3463_v0 = vmax.f32 %v4862_v40, %v3431_v52 }
 0x204   : > { %v4616_v45 = vpop.f32.mrb[18].mxu1  ;;  %v3430_v39 = vmul.f32 0.1, %v4868_v10  ;;  %v4871_v8 = vadd.f32 %v6415_v3, %v2232_v57  ;;  %v3461_v56 = vmax.f32 %v4864_v34, %v3429_v20 }
 0x205   : > { %v2235_v62 = vpop.f32.mrb[19].mxu1  ;;  %v3464_v15 = vmax.f32 %v4866_v49, %v3432_v12  ;;  %v4873_v18 = vadd.f32 %v4616_v45, %v6415_v3 }
 0x206   : > { %v3462_v61 = vmax.f32 %v4868_v10, %v3430_v39  ;;  %v4807_v46 = vpop.f32.mrb[16].mxu0  ;;  %v4875_v27 = vadd.f32 %v6415_v3, %v2235_v62 }
 0x207   : > { %v4116_v48 = vpack.c.bf16 %v3464_v15, %v3463_v0  ;;  %v4870_v16 = vadd.f32 %v4869_v43, %v4807_v46  ;;  %v3322_v24 = vpop.f32.mrb[17].mxu0 }
 0x208   : > { %v4111_v17 = vpack.c.bf16 %v3462_v61, %v3461_v56  ;;  %v4872_v36 = vadd.f32 %v4871_v8, %v3322_v24  ;;  %v4808_v2 = vpop.f32.mrb[18].mxu0 }
 0x209   : > { %4164 = vst [vmem:[%s6427_s29 + $0x38] sm:$0xff] %v4116_v48   ;;  %v3435_v7 = vmul.f32 0.1, %v4870_v16  ;;  %v4874_v41 = vadd.f32 %v4873_v18, %v4808_v2  ;;  %v3325_v22 = vpop.f32.mrb[19].mxu0 }
 0x20a   : > { %v4619_v60 = vpop.f32.mrb[20].mxu1  ;;  %4163 = vst [vmem:[%s6427_s29 + $0x30] sm:$0xff] %v4111_v17   ;;  %v3433_v59 = vmul.f32 0.1, %v4872_v36  ;;  %v4876_v37 = vadd.f32 %v4875_v27, %v3325_v22 }
 0x20b   : > { %v2248_v63 = vpop.f32.mrb[21].mxu1  ;;  %v3436_v23 = vmul.f32 0.1, %v4874_v41  ;;  %v4877_v9 = vadd.f32 %v4619_v60, %v6415_v3  ;;  %v3467_v11 = vmax.f32 %v4870_v16, %v3435_v7 }
 0x20c   : > { %v4620_v13 = vpop.f32.mrb[22].mxu1  ;;  %v3434_v28 = vmul.f32 0.1, %v4876_v37  ;;  %v4879_v14 = vadd.f32 %v6415_v3, %v2248_v63  ;;  %v3465_v55 = vmax.f32 %v4872_v36, %v3433_v59 }
 0x20d   : > { %v2251_v19 = vpop.f32.mrb[23].mxu1  ;;  %v3468_v25 = vmax.f32 %v4874_v41, %v3436_v23  ;;  %v4881_v26 = vadd.f32 %v4620_v13, %v6415_v3 }
 0x20e   : > { %v3466_v42 = vmax.f32 %v4876_v37, %v3434_v28  ;;  %v4811_v32 = vpop.f32.mrb[20].mxu0  ;;  %v4883_v4 = vadd.f32 %v6415_v3, %v2251_v19 }
 0x20f   : > { %v4126_v5 = vpack.c.bf16 %v3468_v25, %v3467_v11  ;;  %v4878_v53 = vadd.f32 %v4877_v9, %v4811_v32  ;;  %v3338_v51 = vpop.f32.mrb[21].mxu0 }
 0x210   : > { %v4121_v44 = vpack.c.bf16 %v3466_v42, %v3465_v55  ;;  %v4880_v21 = vadd.f32 %v4879_v14, %v3338_v51  ;;  %v4812_v47 = vpop.f32.mrb[22].mxu0 }
 0x211   : > { %4166 = vst [vmem:[%s6427_s29 + $0x48] sm:$0xff] %v4126_v5   ;;  %v3439_v6 = vmul.f32 0.1, %v4878_v53  ;;  %v4882_v1 = vadd.f32 %v4881_v26, %v4812_v47  ;;  %v3341_v35 = vpop.f32.mrb[23].mxu0 }
 0x212   : > { %v4623_v31 = vpop.f32.mrb[24].mxu1  ;;  %4165 = vst [vmem:[%s6427_s29 + $0x40] sm:$0xff] %v4121_v44   ;;  %v3437_v40 = vmul.f32 0.1, %v4880_v21  ;;  %v4884_v38 = vadd.f32 %v4883_v4, %v3341_v35 }
 0x213   : > { %v2264_v58 = vpop.f32.mrb[25].mxu1  ;;  %v3440_v33 = vmul.f32 0.1, %v4882_v1  ;;  %v4885_v34 = vadd.f32 %v4623_v31, %v6415_v3  ;;  %v3471_v49 = vmax.f32 %v4878_v53, %v3439_v6 }
 0x214   : > { %v4624_v30 = vpop.f32.mrb[26].mxu1  ;;  %v3438_v29 = vmul.f32 0.1, %v4884_v38  ;;  %v4887_v52 = vadd.f32 %v6415_v3, %v2264_v58  ;;  %v3469_v20 = vmax.f32 %v4880_v21, %v3437_v40 }
 0x215   : > { %v2267_v50 = vpop.f32.mrb[27].mxu1  ;;  %v3472_v54 = vmax.f32 %v4882_v1, %v3440_v33  ;;  %v4889_v57 = vadd.f32 %v4624_v30, %v6415_v3 }
 0x216   : > { %v3470_v10 = vmax.f32 %v4884_v38, %v3438_v29  ;;  %v4815_v45 = vpop.f32.mrb[24].mxu0  ;;  %v4891_v12 = vadd.f32 %v6415_v3, %v2267_v50 }
 0x217   : > { %v4136_v43 = vpack.c.bf16 %v3472_v54, %v3471_v49  ;;  %v4886_v62 = vadd.f32 %v4885_v34, %v4815_v45  ;;  %v3354_v39 = vpop.f32.mrb[25].mxu0 }
 0x218   : > { %v4131_v8 = vpack.c.bf16 %v3470_v10, %v3469_v20  ;;  %v4888_v0 = vadd.f32 %v4887_v52, %v3354_v39  ;;  %v4816_v15 = vpop.f32.mrb[26].mxu0 }
 0x219   : > { %4168 = vst [vmem:[%s6427_s29 + $0x58] sm:$0xff] %v4136_v43   ;;  %v3443_v56 = vmul.f32 0.1, %v4886_v62  ;;  %v4890_v61 = vadd.f32 %v4889_v57, %v4816_v15  ;;  %v3357_v46 = vpop.f32.mrb[27].mxu0 }
 0x21a   : > { %v4627_v18 = vpop.f32.mrb[28].mxu1  ;;  %4167 = vst [vmem:[%s6427_s29 + $0x50] sm:$0xff] %v4131_v8   ;;  %v3441_v48 = vmul.f32 0.1, %v4888_v0  ;;  %v4892_v16 = vadd.f32 %v4891_v12, %v3357_v46 }
 0x21b   : > { %v2280_v27 = vpop.f32.mrb[29].mxu1  ;;  %v3444_v17 = vmul.f32 0.1, %v4890_v61  ;;  %v4893_v36 = vadd.f32 %v4627_v18, %v6415_v3  ;;  %v3475_v41 = vmax.f32 %v4886_v62, %v3443_v56 }
 0x21c   : > { %v4628_v24 = vpop.f32.mrb[30].mxu1  ;;  %v3442_v60 = vmul.f32 0.1, %v4892_v16  ;;  %v4895_v7 = vadd.f32 %v6415_v3, %v2280_v27  ;;  %v3473_v59 = vmax.f32 %v4888_v0, %v3441_v48 }
 0x21d   : > { %v2283_v2 = vpop.f32.mrb[31].mxu1  ;;  %v3476_v22 = vmax.f32 %v4890_v61, %v3444_v17  ;;  %v4897_v63 = vadd.f32 %v4628_v24, %v6415_v3 }
 0x21e   : > { %v3474_v37 = vmax.f32 %v4892_v16, %v3442_v60  ;;  %v4819_v13 = vpop.f32.mrb[28].mxu0  ;;  %v4899_v23 = vadd.f32 %v6415_v3, %v2283_v2 }
 0x21f   : > { %v4146_v9 = vpack.c.bf16 %v3476_v22, %v3475_v41  ;;  %v4894_v19 = vadd.f32 %v4893_v36, %v4819_v13  ;;  %v3370_v28 = vpop.f32.mrb[29].mxu0 }
 0x220   : > { %v4141_v14 = vpack.c.bf16 %v3474_v37, %v3473_v59  ;;  %v4896_v11 = vadd.f32 %v4895_v7, %v3370_v28  ;;  %v4820_v25 = vpop.f32.mrb[30].mxu0 }
 0x221   : > { %4170 = vst [vmem:[%s6427_s29 + $0x68] sm:$0xff] %v4146_v9   ;;  %v3447_v26 = vmul.f32 0.1, %v4894_v19  ;;  %v4898_v55 = vadd.f32 %v4897_v63, %v4820_v25  ;;  %v3373_v42 = vpop.f32.mrb[31].mxu0 }
 0x222   : > { %4169 = vst [vmem:[%s6427_s29 + $0x60] sm:$0xff] %v4141_v14   ;;  %v3445_v32 = vmul.f32 0.1, %v4896_v11  ;;  %v4900_v4 = vadd.f32 %v4899_v23, %v3373_v42 }
 0x223   : > { %v3448_v5 = vmul.f32 0.1, %v4898_v55  ;;  %v3479_v51 = vmax.f32 %v4894_v19, %v3447_v26 }
 0x224   : > { %v3446_v53 = vmul.f32 0.1, %v4900_v4  ;;  %v3477_v3 = vmax.f32 %v4896_v11, %v3445_v32 }
 0x225   : > { %v3480_v44 = vmax.f32 %v4898_v55, %v3448_v5 }
 0x226   : > { %v3478_v21 = vmax.f32 %v4900_v4, %v3446_v53 }
 0x227   : > { %v4156_v47 = vpack.c.bf16 %v3480_v44, %v3479_v51 }
 0x228   : > { %v4151_v31 = vpack.c.bf16 %v3478_v21, %v3477_v3 }
 0x229   : > { %4172 = vst [vmem:[%s6427_s29 + $0x78] sm:$0xff] %v4156_v47  }
 0x22a   : > { %4171 = vst [vmem:[%s6427_s29 + $0x70] sm:$0xff] %v4151_v31  }
 0x22b PF: > { %s13_s14 = sadd.s32 1, %s5270_s14   ;;  %s6624_s12 = smov %s5266_s13 }
 0x22c   : > { %p10_p5 = scmp.ge.s32.totalorder %s13_s14, 4   ;;  %s6625_s13 = smov %s6627_s15 }
 0x22e   :  { %12 = sbr.rel (!%p10_p5) target bundleno = 2 (0x2), region = 71 }

// kernel: darknet_forward.17
= control target key start
LH: loop header
LB: loop body
LE: loop exit
PB: predicated region body
PF: predicated region fallthrough
CT: control target
= control target key end

     0   :  { %s1262_s9 = smov 0   ;;  %s1264_s10 = smov 0   ;;  %s1788_s0 = inlined_call_operand.vmem [shape: bf16[2,16,16,128], index: 0, kind: input, shape index: {}]   ;;  %s1789_s1 = inlined_call_operand.vmem [shape: f32[1,1,128], index: 1, kind: input, shape index: {}]   ;;  %s1790_s2 = inlined_call_operand.vmem [shape: f32[2,16,16,128], index: 2, kind: output, shape index: {}]  }
   0x1   :  { %s1266_s11 = smov 0  }
   0x2 LB: > { %s24_s12 = sadd.s32 1, %s1240_s10  ;;  %p884_p0 = scmp.ge.s32.totalorder %s1244_s11, 1  ;;  %s1244_s11 = sphi %s1266_s11, %s12_s11   ;;  %s1240_s10 = sphi %s1264_s10, %s1794_s10   ;;  %s1236_s9 = sphi %s1262_s9, %s1793_s9  }
   0x3   : > { %p26_p1 = scmp.ge.s32.totalorder %s24_s12, 2  ;;  %p134_p2 = scmp.lt.s32.totalorder %s1244_s11, 3 }
   0x5   : > { %s1796_s12 = smov (%p26_p1, %s24_s12), 0  ;;  %p135_p3 = pnand %p884_p0, %p134_p2 }
   0x6   : > { %p167_p4 = scmp.lt.s32.totalorder (!%p135_p3), %s1236_s9, 1  ;;  %v287_v0 = vlaneseq (!%p135_p3)  ;;  %v1246_v41 = vmov (!%p135_p3), 0.0  }
   0x7   : > { %138 = sbr.rel (%p135_p3) target bundleno = 141 (0x8d), region = 28 }
   0x8   : > { %v293_v1 = vand.u32 (!%p135_p3), 127, %v287_v0  ;;  %v288_v17 = vshrl.u32 (!%p135_p3), %v287_v0, 7 }
   0xa   : > { %v1283_v2 = vand.u32 (!%p135_p3), 7, %v293_v1  ;;  %v289_v26 = vadd.s32 (!%p135_p3), 8, %v288_v17  ;;  %v290_v29 = vcvt.s32.f32 (!%p135_p3), %v288_v17 }
   0xc   : > { %vm498_vm0 = vcmp.eq.s32.totalorder (!%p135_p3), %v1283_v2, 2  ;;  %vm499_vm1 = vcmp.eq.s32.totalorder (!%p135_p3), %v1283_v2, 3  ;;  %vm597_vm3 = vcmp.eq.s32.totalorder (!%p135_p3), %v1283_v2, 0  ;;  %vm600_vm4 = vcmp.eq.s32.totalorder (!%p135_p3), %v1283_v2, 1 }
   0xd   : > { %vm1294_vm2 = vmor (!%p135_p3), %vm498_vm0, %vm499_vm1  ;;  %v291_v35 = vcvt.s32.f32 (!%p135_p3), %v289_v26  ;;  %v1315_v38 = vsel (!%p135_p3), %vm597_vm3, %v290_v29, 0.0  ;;  %v602_v42 = vsel (!%p135_p3), %vm600_vm4, 1.0, %v1246_v41  ;;  %v603_v54 = vsel (!%p135_p3), %vm600_vm4, 2.0, %v1246_v41 }
   0xe   : > { %s1798_s9 = smov (!%p167_p4, %s1236_s9), 1  ;;  %v1327_v50 = vadd.f32 %v602_v42, %v1315_v38  ;;  %v604_v63 = vsel %vm600_vm4, 3.0, %v1246_v41 }
   0xf   : > { %s924_s13 = sshll.u32 %s1798_s9, 7  ;;  %v1324_v48 = vsel %vm597_vm3, %v291_v35, 0.0  ;;  %s925_s17 = sshll.u32 %s1798_s9, 8 }
  0x10   : > { %s1288_s16 = scalar_lea.vmem %s1788_s0, %s924_s13  ;;  %v1337_v57 = vadd.f32 %v602_v42, %v1324_v48  ;;  %v1366_v17 = vadd.f32 %v604_v63, %v1324_v48  ;;  %s1403_s22 = scalar_lea.vmem %s1790_s2, %s925_s17 }
  0x11   : > { %v927_v3 = vld [vmem:[%s1288_s16] sm:$0xff]   ;;  %v990_v4 = vld [vmem:[%s1288_s16 + $0x8] sm:$0xff]   ;;  %v991_v9 = vld [vmem:[%s1288_s16 + $0x10] sm:$0xff]  }
  0x12   : > { %v928_v5 = vunpack.c.l.bf16 %v927_v3  ;;  %v929_v7 = vunpack.c.h.bf16 %v927_v3  ;;  %v932_v8 = vunpack.c.l.bf16 %v990_v4  ;;  %v933_v13 = vunpack.c.h.bf16 %v990_v4  ;;  %v992_v22 = vld [vmem:[%s1288_s16 + $0x18] sm:$0xff]   ;;  %v993_v36 = vld [vmem:[%s1288_s16 + $0x20] sm:$0xff]   ;;  %v1340_v60 = vld [vmem:[%s1288_s16 + $0x28] sm:$0xff]  }
  0x13   : > { %v936_v16 = vunpack.c.l.bf16 %v991_v9  ;;  %v937_v21 = vunpack.c.h.bf16 %v991_v9  ;;  %v940_v28 = vunpack.c.l.bf16 %v992_v22  ;;  %v941_v34 = vunpack.c.h.bf16 %v992_v22 }
  0x14   : > { %v889_v10 = vmul.f32 -1.442695, %v928_v5  ;;  %v501_v11 = vsel %vm1294_vm2, %v928_v5, 0.0  ;;  %v890_v12 = vmul.f32 -1.442695, %v929_v7  ;;  %v502_v14 = vsel %vm1294_vm2, %v929_v7, 0.0 }
  0x15   : > { %v891_v15 = vmul.f32 -1.442695, %v932_v8  ;;  %v533_v18 = vmul.f32 1.442695, %v501_v11  ;;  %v503_v19 = vsel %vm1294_vm2, %v932_v8, 0.0  ;;  %v504_v24 = vsel %vm1294_vm2, %v933_v13, 0.0 }
  0x16   : > { %1030 = vpow2.f32 %v889_v10  ;;  %v892_v20 = vmul.f32 -1.442695, %v933_v13  ;;  %v535_v23 = vmul.f32 1.442695, %v502_v14  ;;  %v893_v25 = vmul.f32 -1.442695, %v936_v16 }
  0x17   : > { %1032 = vpow2.f32 %v890_v12  ;;  %v537_v27 = vmul.f32 1.442695, %v503_v19  ;;  %v894_v30 = vmul.f32 -1.442695, %v937_v21  ;;  %v539_v31 = vmul.f32 1.442695, %v504_v24 }
  0x18   : > { %1034 = vpow2.f32 %v891_v15  ;;  %v505_v32 = vsel %vm1294_vm2, %v936_v16, 0.0  ;;  %v895_v33 = vmul.f32 -1.442695, %v940_v28  ;;  %v506_v43 = vsel %vm1294_vm2, %v937_v21, 0.0  ;;  %v1372_v19 = vld [vmem:[%s1288_s16 + $0x30] sm:$0xff]  }
  0x19   : > { %1036 = vpow2.f32 %v533_v18  ;;  %v541_v39 = vmul.f32 1.442695, %v505_v32  ;;  %v896_v45 = vmul.f32 -1.442695, %v941_v34  ;;  %v944_v46 = vunpack.c.l.bf16 %v993_v36 }
  0x1a   : > { %1038 = vpow2.f32 %v892_v20  ;;  %v543_v51 = vmul.f32 1.442695, %v506_v43  ;;  %v507_v55 = vsel %vm1294_vm2, %v940_v28, 0.0  ;;  %v945_v59 = vunpack.c.h.bf16 %v993_v36 }
  0x1b   : > { %1040 = vpow2.f32 %v535_v23  ;;  %v897_v58 = vmul.f32 -1.442695, %v944_v46  ;;  %v508_v0 = vsel %vm1294_vm2, %v941_v34, 0.0  ;;  %v1350_v3 = vadd.f32 %v603_v54, %v1315_v38 }
  0x1c   : > { %1042 = vpow2.f32 %v893_v25  ;;  %v1353_v4 = vadd.f32 %v603_v54, %v1324_v48  ;;  %v545_v5 = vmul.f32 1.442695, %v507_v55  ;;  %v509_v9 = vsel %vm1294_vm2, %v944_v46, 0.0 }
  0x1d   : > { %1044 = vpow2.f32 %v537_v27  ;;  %v948_v10 = vunpack.c.l.bf16 %v1340_v60  ;;  %v1361_v12 = vadd.f32 %v604_v63, %v1315_v38  ;;  %v547_v13 = vmul.f32 1.442695, %v508_v0 }
  0x1e   : > { %1046 = vpow2.f32 %v894_v30  ;;  %v898_v14 = vmul.f32 -1.442695, %v945_v59  ;;  %v605_v18 = vsel %vm600_vm4, 4.0, %v1246_v41  ;;  %v549_v21 = vmul.f32 1.442695, %v509_v9 }
  0x1f   : > { %1048 = vpow2.f32 %v539_v31  ;;  %v510_v22 = vsel %vm1294_vm2, %v945_v59, 0.0  ;;  %v949_v23 = vunpack.c.h.bf16 %v1340_v60  ;;  %v899_v26 = vmul.f32 -1.442695, %v948_v10  ;;  %v1386_v30 = vld [vmem:[%s1789_s1] ss:$0 sm:$0xff] }
  0x20   : > { %v1031_v37 = vpop.eup %1030  ;;  %1050 = vpow2.f32 %v895_v33  ;;  %v511_v27 = vsel %vm1294_vm2, %v948_v10, 0.0  ;;  %v1389_v31 = vadd.f32 %v605_v18, %v1315_v38  ;;  %v952_v32 = vunpack.c.l.bf16 %v1372_v19 }
  0x21   : > { %v402_v40 = vadd.f32 1.0, %v1031_v37  ;;  %v1033_v44 = vpop.eup %1032  ;;  %v551_v34 = vmul.f32 1.442695, %v510_v22  ;;  %v1393_v35 = vadd.f32 %v605_v18, %v1324_v48  ;;  %v1398_v36 = vsel %vm600_vm4, 5.0, %v1246_v41 }
  0x22   : > { %v403_v47 = vadd.f32 1.0, %v1033_v44  ;;  %v1035_v49 = vpop.eup %1034  ;;  %v553_v42 = vmul.f32 1.442695, %v511_v27  ;;  %v900_v43 = vmul.f32 -1.442695, %v949_v23  ;;  %v512_v59 = vsel %vm1294_vm2, %v949_v23, 0.0 }
  0x23   : > { %1052 = vrcp.f32 %v402_v40  ;;  %v1329_v52 = vpop.eup %1036  ;;  %v404_v53 = vadd.f32 1.0, %v1035_v49  ;;  %v1412_v49 = vld [vmem:[%s1288_s16 + $0x38] sm:$0xff]   ;;  %v901_v54 = vmul.f32 -1.442695, %v952_v32 }
  0x24   : > { %1054 = vpow2.f32 %v541_v39  ;;  %v1039_v56 = vpop.eup %1038 }
  0x25   : > { %1056 = vrcp.f32 %v403_v47  ;;  %v1342_v61 = vpop.eup %1040  ;;  %v405_v62 = vadd.f32 1.0, %v1039_v56  ;;  %v953_v47 = vunpack.c.h.bf16 %v1372_v19 }
  0x26   : > { %1058 = vpow2.f32 %v896_v45  ;;  %v1043_v1 = vpop.eup %1042 }
  0x27   : > { %1060 = vrcp.f32 %v404_v53  ;;  %v1355_v7 = vpop.eup %1044  ;;  %v406_v8 = vadd.f32 1.0, %v1043_v1 }
  0x28   : > { %1062 = vpow2.f32 %v543_v51  ;;  %v1047_v11 = vpop.eup %1046 }
  0x29   : > { %1064 = vrcp.f32 %v405_v62  ;;  %v1363_v15 = vpop.eup %1048  ;;  %v407_v16 = vadd.f32 1.0, %v1047_v11  ;;  %v956_v62 = vunpack.c.l.bf16 %v1412_v49 }
  0x2a   : > { %1066 = vpow2.f32 %v897_v58  ;;  %v1051_v20 = vpop.eup %1050  ;;  %v1422_v58 = vadd.f32 %v1398_v36, %v1315_v38 }
  0x2b   : > { %1068 = vrcp.f32 %v406_v8  ;;  %v408_v25 = vadd.f32 1.0, %v1051_v20  ;;  %v903_v19 = vmul.f32 -1.442695, %v956_v62 }
  0x2c   : > { %1070 = vpow2.f32 %v545_v5  ;;  %v902_v5 = vmul.f32 -1.442695, %v953_v47 }
  0x2d   : > { %v1053_v24 = vpop.eup %1052  ;;  %1072 = vrcp.f32 %v407_v16  ;;  %v1443_v16 = vld [vmem:[%s1288_s16 + $0x40] sm:$0xff]  }
  0x2e   : > { %v1380_v28 = vpop.eup %1054  ;;  %v649_v29 = vadd.f32 %v1053_v24, %v1315_v38  ;;  %1074 = vpow2.f32 %v898_v14  ;;  %v957_v14 = vunpack.c.h.bf16 %v1412_v49 }
  0x2f   : > { %v1057_v33 = vpop.eup %1056  ;;  %1076 = vrcp.f32 %v408_v25 }
  0x30   : > { %v1059_v37 = vpop.eup %1058  ;;  %v681_v39 = vsel %vm1294_vm2, %v1329_v52, %v649_v29  ;;  %v650_v40 = vadd.f32 %v1057_v33, %v1324_v48  ;;  %1078 = vpow2.f32 %v899_v26  ;;  %v904_v29 = vmul.f32 -1.442695, %v957_v14 }
  0x31   : > { %v1061_v44 = vpop.eup %1060  ;;  %v720_v45 = vmul.f32 %v1386_v30, %v681_v39  ;;  %v409_v46 = vadd.f32 1.0, %v1059_v37  ;;  %1080 = vpow2.f32 %v547_v13  ;;  %v555_v13 = vmul.f32 1.442695, %v512_v59 }
  0x32   : > { %v1063_v51 = vpop.eup %1062  ;;  %v682_v53 = vsel %vm1294_vm2, %v1342_v61, %v650_v40  ;;  %v651_v52 = vadd.f32 %v1061_v44, %v1327_v50  ;;  %v1472_v40 = vadd.f32 %v1398_v36, %v1324_v48  ;;  %v608_v36 = vsel %vm600_vm4, 7.0, %v1246_v41 }
  0x33   : > { %v1065_v55 = vpop.eup %1064  ;;  %752 = vst [vmem:[%s1403_s22] sm:$0xff] %v720_v45  ;;  %v721_v56 = vmul.f32 %v1386_v30, %v682_v53  ;;  %1082 = vrcp.f32 %v409_v46  ;;  %v1514_v49 = vadd.f32 %v608_v36, %v1324_v48 }
  0x34   : > { %v1067_v60 = vpop.eup %1066  ;;  %v683_v61 = vsel %vm1294_vm2, %v1355_v7, %v651_v52  ;;  %v652_v50 = vadd.f32 %v1065_v55, %v1337_v57  ;;  %1084 = vpow2.f32 %v900_v43  ;;  %v513_v57 = vsel %vm1294_vm2, %v952_v32, 0.0  ;;  %v1476_v43 = vld [vmem:[%s1288_s16 + $0x48] sm:$0xff]  }
  0x35   : > { %v1069_v63 = vpop.eup %1068  ;;  %753 = vst [vmem:[%s1403_s22 + $0x8] sm:$0xff] %v721_v56  ;;  %v722_v0 = vmul.f32 %v1386_v30, %v683_v61  ;;  %v410_v1 = vadd.f32 1.0, %v1067_v60  ;;  %1086 = vpow2.f32 %v549_v21  ;;  %v557_v23 = vmul.f32 1.442695, %v513_v57  ;;  %v1508_v57 = vld [vmem:[%s1288_s16 + $0x50] sm:$0xff]  }
  0x36   : > { %v1071_v8 = vpop.eup %1070  ;;  %v684_v9 = vsel %vm1294_vm2, %v1363_v15, %v652_v50  ;;  %v653_v7 = vadd.f32 %v1069_v63, %v1350_v3  ;;  %1088 = vpow2.f32 %v901_v54  ;;  %v964_v56 = vunpack.c.l.bf16 %v1476_v43 }
  0x37   : > { %v1073_v10 = vpop.eup %1072  ;;  %754 = vst [vmem:[%s1403_s22 + $0x10] sm:$0xff] %v722_v0  ;;  %v723_v11 = vmul.f32 %v1386_v30, %v684_v9  ;;  %1090 = vrcp.f32 %v410_v1  ;;  %v516_v9 = vsel %vm1294_vm2, %v957_v14, 0.0 }
  0x38   : > { %v1075_v18 = vpop.eup %1074  ;;  %v685_v3 = vsel %vm1294_vm2, %v1380_v28, %v653_v7  ;;  %v654_v15 = vadd.f32 %v1073_v10, %v1353_v4  ;;  %1092 = vpow2.f32 %v551_v34  ;;  %v960_v4 = vunpack.c.l.bf16 %v1443_v16 }
  0x39   : > { %v1077_v20 = vpop.eup %1076  ;;  %755 = vst [vmem:[%s1403_s22 + $0x18] sm:$0xff] %v723_v11  ;;  %v724_v21 = vmul.f32 %v1386_v30, %v685_v3  ;;  %v411_v22 = vadd.f32 1.0, %v1075_v18  ;;  %1094 = vpow2.f32 %v902_v5  ;;  %v607_v28 = vsel %vm600_vm4, 6.0, %v1246_v41 }
  0x3a   : > { %v686_v24 = vsel %vm1294_vm2, %v1063_v51, %v654_v15  ;;  %v655_v25 = vadd.f32 %v1077_v20, %v1361_v12  ;;  %1096 = vpow2.f32 %v553_v42  ;;  %v1079_v26 = vpop.eup %1078  ;;  %v514_v34 = vsel %vm1294_vm2, %v953_v47, 0.0 }
  0x3b   : > { %756 = vst [vmem:[%s1403_s22 + $0x20] sm:$0xff] %v724_v21  ;;  %v725_v27 = vmul.f32 %v1386_v30, %v686_v24  ;;  %1098 = vrcp.f32 %v411_v22  ;;  %v1081_v32 = vpop.eup %1080  ;;  %v412_v33 = vadd.f32 1.0, %v1079_v26  ;;  %v961_v42 = vunpack.c.h.bf16 %v1443_v16 }
  0x3c   : > { %v687_v12 = vsel %vm1294_vm2, %v1071_v8, %v655_v25  ;;  %1100 = vpow2.f32 %v903_v19  ;;  %v1480_v46 = vadd.f32 %v607_v28, %v1315_v38  ;;  %v905_v47 = vmul.f32 -1.442695, %v960_v4 }
  0x3d   : > { %v1083_v37 = vpop.eup %1082  ;;  %757 = vst [vmem:[%s1403_s22 + $0x28] sm:$0xff] %v725_v27  ;;  %v726_v39 = vmul.f32 %v1386_v30, %v687_v12  ;;  %1102 = vpow2.f32 %v555_v13  ;;  %v559_v52 = vmul.f32 1.442695, %v514_v34  ;;  %v906_v50 = vmul.f32 -1.442695, %v961_v42  ;;  %v1534_v12 = vld [vmem:[%s1288_s16 + $0x58] sm:$0xff]  }
  0x3e   : > { %v1085_v44 = vpop.eup %1084  ;;  %v656_v45 = vadd.f32 %v1083_v37, %v1366_v17  ;;  %1104 = vrcp.f32 %v412_v33  ;;  %v515_v17 = vsel %vm1294_vm2, %v956_v62, 0.0  ;;  %v1496_v1 = vadd.f32 %v607_v28, %v1324_v48 }
  0x3f   : > { %v1087_v51 = vpop.eup %1086  ;;  %758 = vst [vmem:[%s1403_s22 + $0x30] sm:$0xff] %v726_v39  ;;  %v413_v53 = vadd.f32 1.0, %v1085_v44  ;;  %1106 = vpow2.f32 %v904_v29  ;;  %v1499_v5 = vadd.f32 %v608_v36, %v1315_v38  ;;  %v561_v8 = vmul.f32 1.442695, %v515_v17 }
  0x40   : > { %v1089_v54 = vpop.eup %1088  ;;  %v688_v55 = vsel %vm1294_vm2, %v1081_v32, %v656_v45  ;;  %1108 = vpow2.f32 %v557_v23  ;;  %v965_v7 = vunpack.c.h.bf16 %v1476_v43  ;;  %v907_v13 = vmul.f32 -1.442695, %v964_v56 }
  0x41   : > { %v1091_v59 = vpop.eup %1090  ;;  %v727_v60 = vmul.f32 %v1386_v30, %v688_v55  ;;  %1110 = vrcp.f32 %v413_v53  ;;  %v414_v61 = vadd.f32 1.0, %v1089_v54  ;;  %v517_v14 = vsel %vm1294_vm2, %v960_v4, 0.0 }
  0x42   : > { %v1093_v63 = vpop.eup %1092  ;;  %v657_v0 = vadd.f32 %v1091_v59, %v1389_v31  ;;  %1112 = vpow2.f32 %v905_v47  ;;  %v563_v19 = vmul.f32 1.442695, %v516_v9  ;;  %v968_v20 = vunpack.c.l.bf16 %v1508_v57 }
  0x43   : > { %v1095_v62 = vpop.eup %1094  ;;  %759 = vst [vmem:[%s1403_s22 + $0x38] sm:$0xff] %v727_v60  ;;  %1114 = vrcp.f32 %v414_v61  ;;  %v609_v23 = vsel %vm600_vm4, 8.0, %v1246_v41  ;;  %v908_v24 = vmul.f32 -1.442695, %v965_v7  ;;  %v565_v4 = vmul.f32 1.442695, %v517_v14 }
  0x44   : > { %v1097_v31 = vpop.eup %1096  ;;  %v689_v10 = vsel %vm1294_vm2, %v1087_v51, %v657_v0  ;;  %v415_v11 = vadd.f32 1.0, %v1095_v62  ;;  %1116 = vpow2.f32 %v559_v52  ;;  %v518_v26 = vsel %vm1294_vm2, %v961_v42, 0.0  ;;  %v1565_v62 = vld [vmem:[%s1288_s16 + $0x60] sm:$0xff]  }
  0x45   : > { %v1099_v16 = vpop.eup %1098  ;;  %v728_v18 = vmul.f32 %v1386_v30, %v689_v10  ;;  %1118 = vpow2.f32 %v906_v50  ;;  %v969_v32 = vunpack.c.h.bf16 %v1508_v57  ;;  %v1537_v37 = vadd.f32 %v609_v23, %v1315_v38 }
  0x46   : > { %v1101_v3 = vpop.eup %1100  ;;  %v658_v15 = vadd.f32 %v1099_v16, %v1393_v35  ;;  %1120 = vrcp.f32 %v415_v11  ;;  %v909_v39 = vmul.f32 -1.442695, %v968_v20  ;;  %v567_v44 = vmul.f32 1.442695, %v518_v26  ;;  %v1598_v26 = vld [vmem:[%s1288_s16 + $0x68] sm:$0xff]  }
  0x47   : > { %v1103_v21 = vpop.eup %1102  ;;  %760 = vst [vmem:[%s1403_s22 + $0x40] sm:$0xff] %v728_v18  ;;  %v416_v22 = vadd.f32 1.0, %v1101_v3  ;;  %1122 = vpow2.f32 %v561_v8  ;;  %v519_v45 = vsel %vm1294_vm2, %v964_v56, 0.0  ;;  %v972_v52 = vunpack.c.l.bf16 %v1534_v12 }
  0x48   : > { %v1105_v25 = vpop.eup %1104  ;;  %v690_v35 = vsel %vm1294_vm2, %v1093_v63, %v658_v15  ;;  %1124 = vpow2.f32 %v907_v13  ;;  %v1550_v55 = vadd.f32 %v609_v23, %v1324_v48  ;;  %v910_v17 = vmul.f32 -1.442695, %v969_v32 }
  0x49   : > { %v1107_v27 = vpop.eup %1106  ;;  %v729_v28 = vmul.f32 %v1386_v30, %v690_v35  ;;  %v659_v29 = vadd.f32 %v1105_v25, %v1422_v58  ;;  %1126 = vrcp.f32 %v416_v22  ;;  %v569_v60 = vmul.f32 1.442695, %v519_v45 }
  0x4a   : > { %v1109_v33 = vpop.eup %1108  ;;  %v417_v34 = vadd.f32 1.0, %v1107_v27  ;;  %1128 = vpow2.f32 %v563_v19  ;;  %v520_v63 = vsel %vm1294_vm2, %v965_v7, 0.0  ;;  %v973_v0 = vunpack.c.h.bf16 %v1534_v12 }
  0x4b   : > { %v1111_v42 = vpop.eup %1110  ;;  %761 = vst [vmem:[%s1403_s22 + $0x48] sm:$0xff] %v729_v28  ;;  %v691_v58 = vsel %vm1294_vm2, %v1097_v31, %v659_v29  ;;  %1130 = vpow2.f32 %v908_v24  ;;  %v911_v31 = vmul.f32 -1.442695, %v972_v52  ;;  %v610_v11 = vsel %vm600_vm4, 9.0, %v1246_v41 }
  0x4c   : > { %v1113_v47 = vpop.eup %1112  ;;  %v730_v51 = vmul.f32 %v1386_v30, %v691_v58  ;;  %v660_v53 = vadd.f32 %v1111_v42, %v1472_v40  ;;  %1132 = vrcp.f32 %v417_v34  ;;  %v571_v16 = vmul.f32 1.442695, %v520_v63 }
  0x4d   : > { %v1115_v36 = vpop.eup %1114  ;;  %v418_v54 = vadd.f32 1.0, %v1113_v47  ;;  %1134 = vpow2.f32 %v565_v4  ;;  %v521_v18 = vsel %vm1294_vm2, %v968_v20, 0.0  ;;  %v976_v14 = vunpack.c.l.bf16 %v1565_v62 }
  0x4e   : > { %v1117_v56 = vpop.eup %1116  ;;  %762 = vst [vmem:[%s1403_s22 + $0x50] sm:$0xff] %v730_v51  ;;  %v692_v59 = vsel %vm1294_vm2, %v1103_v21, %v660_v53  ;;  %v661_v40 = vadd.f32 %v1115_v36, %v1480_v46  ;;  %1136 = vpow2.f32 %v909_v39  ;;  %v912_v19 = vmul.f32 -1.442695, %v973_v0 }
  0x4f   : > { %v1119_v61 = vpop.eup %1118  ;;  %v731_v50 = vmul.f32 %v1386_v30, %v692_v59  ;;  %1138 = vrcp.f32 %v418_v54  ;;  %v1590_v20 = vadd.f32 %v610_v11, %v1315_v38  ;;  %v573_v25 = vmul.f32 1.442695, %v521_v18 }
  0x50   : > { %v1121_v8 = vpop.eup %1120  ;;  %v693_v9 = vsel %vm1294_vm2, %v1109_v33, %v661_v40  ;;  %v419_v46 = vadd.f32 1.0, %v1119_v61  ;;  %1140 = vpow2.f32 %v567_v44  ;;  %v522_v35 = vsel %vm1294_vm2, %v969_v32, 0.0 }
  0x51   : > { %v1123_v10 = vpop.eup %1122  ;;  %763 = vst [vmem:[%s1403_s22 + $0x58] sm:$0xff] %v731_v50  ;;  %v732_v43 = vmul.f32 %v1386_v30, %v693_v9  ;;  %v662_v7 = vadd.f32 %v1121_v8, %v1496_v1  ;;  %1142 = vpow2.f32 %v910_v17  ;;  %v977_v4 = vunpack.c.h.bf16 %v1565_v62 }
  0x52   : > { %v1125_v13 = vpop.eup %1124  ;;  %1144 = vrcp.f32 %v419_v46  ;;  %v913_v29 = vmul.f32 -1.442695, %v976_v14  ;;  %v1608_v34 = vadd.f32 %v610_v11, %v1324_v48  ;;  %v575_v42 = vmul.f32 1.442695, %v522_v35 }
  0x53   : > { %v1127_v3 = vpop.eup %1126  ;;  %764 = vst [vmem:[%s1403_s22 + $0x60] sm:$0xff] %v732_v43  ;;  %v694_v1 = vsel %vm1294_vm2, %v1117_v56, %v662_v7  ;;  %v420_v15 = vadd.f32 1.0, %v1125_v13  ;;  %1146 = vpow2.f32 %v569_v60  ;;  %v523_v58 = vsel %vm1294_vm2, %v972_v52, 0.0  ;;  %v1631_v60 = vld [vmem:[%s1288_s16 + $0x70] sm:$0xff]  }
  0x54   : > { %v1129_v21 = vpop.eup %1128  ;;  %v733_v22 = vmul.f32 %v1386_v30, %v694_v1  ;;  %v663_v23 = vadd.f32 %v1127_v3, %v1499_v5  ;;  %1148 = vpow2.f32 %v911_v31  ;;  %v980_v44 = vunpack.c.l.bf16 %v1598_v26 }
  0x55   : > { %v1131_v24 = vpop.eup %1130  ;;  %1150 = vrcp.f32 %v420_v15  ;;  %v914_v51 = vmul.f32 -1.442695, %v977_v4  ;;  %v611_v52 = vsel %vm600_vm4, 10.0, %v1246_v41  ;;  %v577_v56 = vmul.f32 1.442695, %v523_v58 }
  0x56   : > { %v1133_v27 = vpop.eup %1132  ;;  %765 = vst [vmem:[%s1403_s22 + $0x68] sm:$0xff] %v733_v22  ;;  %v695_v5 = vsel %vm1294_vm2, %v1123_v10, %v663_v23  ;;  %v421_v28 = vadd.f32 1.0, %v1131_v24  ;;  %1152 = vpow2.f32 %v571_v16  ;;  %v524_v59 = vsel %vm1294_vm2, %v973_v0, 0.0  ;;  %v1660_v22 = vld [vmem:[%s1288_s16 + $0x78] sm:$0xff]  }
  0x57   : > { %v1135_v33 = vpop.eup %1134  ;;  %v734_v57 = vmul.f32 %v1386_v30, %v695_v5  ;;  %v664_v32 = vadd.f32 %v1133_v27, %v1514_v49  ;;  %1154 = vpow2.f32 %v912_v19  ;;  %v981_v40 = vunpack.c.h.bf16 %v1598_v26 }
  0x58   : > { %v1137_v39 = vpop.eup %1136  ;;  %1156 = vrcp.f32 %v421_v28  ;;  %v915_v63 = vmul.f32 -1.442695, %v980_v44  ;;  %v637_v9 = vadd.f32 %v611_v52, %v1315_v38  ;;  %v579_v31 = vmul.f32 1.442695, %v524_v59 }
  0x59   : > { %v1139_v45 = vpop.eup %1138  ;;  %766 = vst [vmem:[%s1403_s22 + $0x70] sm:$0xff] %v734_v57  ;;  %v696_v49 = vsel %vm1294_vm2, %v1129_v21, %v664_v32  ;;  %v422_v47 = vadd.f32 1.0, %v1137_v39  ;;  %1158 = vpow2.f32 %v573_v25  ;;  %v525_v10 = vsel %vm1294_vm2, %v976_v14, 0.0 }
  0x5a   : > { %v1141_v53 = vpop.eup %1140  ;;  %v735_v36 = vmul.f32 %v1386_v30, %v696_v49  ;;  %v665_v54 = vadd.f32 %v1139_v45, %v1537_v37  ;;  %1160 = vpow2.f32 %v913_v29  ;;  %v984_v43 = vunpack.c.l.bf16 %v1631_v60 }
  0x5b   : > { %v1143_v17 = vpop.eup %1142  ;;  %1162 = vrcp.f32 %v422_v47  ;;  %v916_v13 = vmul.f32 -1.442695, %v981_v40  ;;  %v638_v14 = vadd.f32 %v611_v52, %v1324_v48  ;;  %v581_v15 = vmul.f32 1.442695, %v525_v10 }
  0x5c   : > { %v1145_v61 = vpop.eup %1144  ;;  %767 = vst [vmem:[%s1403_s22 + $0x78] sm:$0xff] %v735_v36  ;;  %v697_v37 = vsel %vm1294_vm2, %v1135_v33, %v665_v54  ;;  %v423_v50 = vadd.f32 1.0, %v1143_v17  ;;  %1164 = vpow2.f32 %v575_v42  ;;  %v526_v19 = vsel %vm1294_vm2, %v977_v4, 0.0 }
  0x5d   : > { %v1147_v8 = vpop.eup %1146  ;;  %v736_v12 = vmul.f32 %v1386_v30, %v697_v37  ;;  %v666_v0 = vadd.f32 %v1145_v61, %v1550_v55  ;;  %1166 = vpow2.f32 %v914_v51  ;;  %v985_v21 = vunpack.c.h.bf16 %v1631_v60 }
  0x5e   : > { %v1149_v46 = vpop.eup %1148  ;;  %1168 = vrcp.f32 %v423_v50  ;;  %v917_v25 = vmul.f32 -1.442695, %v984_v43  ;;  %v612_v27 = vsel %vm600_vm4, 11.0, %v1246_v41  ;;  %v583_v28 = vmul.f32 1.442695, %v526_v19 }
  0x5f   : > { %v1151_v7 = vpop.eup %1150  ;;  %768 = vst [vmem:[%s1403_s22 + $0x80] sm:$0xff] %v736_v12  ;;  %v698_v11 = vsel %vm1294_vm2, %v1141_v53, %v666_v0  ;;  %v424_v55 = vadd.f32 1.0, %v1149_v46  ;;  %1170 = vpow2.f32 %v577_v56  ;;  %v527_v29 = vsel %vm1294_vm2, %v980_v44, 0.0 }
  0x60   : > { %v1153_v16 = vpop.eup %1152  ;;  %v737_v18 = vmul.f32 %v1386_v30, %v698_v11  ;;  %v667_v3 = vadd.f32 %v1151_v7, %v1590_v20  ;;  %1172 = vpow2.f32 %v915_v63  ;;  %v988_v33 = vunpack.c.l.bf16 %v1660_v22 }
  0x61   : > { %v1155_v1 = vpop.eup %1154  ;;  %1174 = vrcp.f32 %v424_v55  ;;  %v918_v39 = vmul.f32 -1.442695, %v985_v21  ;;  %v639_v49 = vadd.f32 %v612_v27, %v1315_v38  ;;  %v585_v47 = vmul.f32 1.442695, %v527_v29 }
  0x62   : > { %v1157_v23 = vpop.eup %1156  ;;  %769 = vst [vmem:[%s1403_s22 + $0x88] sm:$0xff] %v737_v18  ;;  %v699_v20 = vsel %vm1294_vm2, %v1147_v8, %v667_v3  ;;  %v425_v24 = vadd.f32 1.0, %v1155_v1  ;;  %1176 = vpow2.f32 %v579_v31  ;;  %v528_v51 = vsel %vm1294_vm2, %v981_v40, 0.0 }
  0x63   : > { %v1159_v35 = vpop.eup %1158  ;;  %v738_v62 = vmul.f32 %v1386_v30, %v699_v20  ;;  %v668_v4 = vadd.f32 %v1157_v23, %v1608_v34  ;;  %1178 = vpow2.f32 %v916_v13  ;;  %v989_v53 = vunpack.c.h.bf16 %v1660_v22 }
  0x64   : > { %v1161_v5 = vpop.eup %1160  ;;  %1180 = vrcp.f32 %v425_v24  ;;  %v919_v17 = vmul.f32 -1.442695, %v988_v33  ;;  %v640_v61 = vadd.f32 %v612_v27, %v1324_v48  ;;  %v613_v37 = vsel %vm600_vm4, 12.0, %v1246_v41 }
  0x65   : > { %v1163_v57 = vpop.eup %1162  ;;  %770 = vst [vmem:[%s1403_s22 + $0x90] sm:$0xff] %v738_v62  ;;  %v700_v32 = vsel %vm1294_vm2, %v1153_v16, %v668_v4  ;;  %v426_v34 = vadd.f32 1.0, %v1161_v5  ;;  %1182 = vpow2.f32 %v581_v15  ;;  %v587_v50 = vmul.f32 1.442695, %v528_v51 }
  0x66   : > { %v1165_v42 = vpop.eup %1164  ;;  %v739_v58 = vmul.f32 %v1386_v30, %v700_v32  ;;  %v669_v45 = vadd.f32 %v1163_v57, %v637_v9  ;;  %1184 = vpow2.f32 %v917_v25  ;;  %v529_v63 = vsel %vm1294_vm2, %v984_v43, 0.0 }
  0x67   : > { %v1167_v44 = vpop.eup %1166  ;;  %1186 = vrcp.f32 %v426_v34  ;;  %v920_v9 = vmul.f32 -1.442695, %v989_v53  ;;  %v641_v11 = vadd.f32 %v613_v37, %v1315_v38  ;;  %v589_v43 = vmul.f32 1.442695, %v529_v63 }
  0x68   : > { %v1169_v36 = vpop.eup %1168  ;;  %771 = vst [vmem:[%s1403_s22 + $0x98] sm:$0xff] %v739_v58  ;;  %v701_v54 = vsel %vm1294_vm2, %v1159_v35, %v669_v45  ;;  %v427_v52 = vadd.f32 1.0, %v1167_v44  ;;  %1188 = vpow2.f32 %v583_v28  ;;  %v530_v18 = vsel %vm1294_vm2, %v985_v21, 0.0 }
  0x69   : > { %v1171_v56 = vpop.eup %1170  ;;  %v740_v59 = vmul.f32 %v1386_v30, %v701_v54  ;;  %v670_v26 = vadd.f32 %v1169_v36, %v638_v14  ;;  %1190 = vpow2.f32 %v918_v39  ;;  %v642_v19 = vadd.f32 %v613_v37, %v1324_v48 }
  0x6a   : > { %v1173_v40 = vpop.eup %1172  ;;  %1192 = vrcp.f32 %v427_v52  ;;  %v614_v23 = vsel %vm600_vm4, 13.0, %v1246_v41  ;;  %v591_v24 = vmul.f32 1.442695, %v530_v18  ;;  %v531_v25 = vsel %vm1294_vm2, %v988_v33, 0.0 }
  0x6b   : > { %v1175_v8 = vpop.eup %1174  ;;  %772 = vst [vmem:[%s1403_s22 + $0xa0] sm:$0xff] %v740_v59  ;;  %v702_v12 = vsel %vm1294_vm2, %v1165_v42, %v670_v26  ;;  %v428_v0 = vadd.f32 1.0, %v1173_v40  ;;  %1194 = vpow2.f32 %v585_v47  ;;  %v643_v5 = vadd.f32 %v614_v23, %v1315_v38 }
  0x6c   : > { %v1177_v46 = vpop.eup %1176  ;;  %v741_v31 = vmul.f32 %v1386_v30, %v702_v12  ;;  %v671_v10 = vadd.f32 %v1175_v8, %v639_v49  ;;  %1196 = vpow2.f32 %v919_v17  ;;  %v593_v32 = vmul.f32 1.442695, %v531_v25 }
  0x6d   : > { %v1179_v7 = vpop.eup %1178  ;;  %1198 = vrcp.f32 %v428_v0  ;;  %v532_v33 = vsel %vm1294_vm2, %v989_v53, 0.0  ;;  %v644_v45 = vadd.f32 %v614_v23, %v1324_v48  ;;  %v615_v22 = vsel %vm600_vm4, 14.0, %v1246_v41 }
  0x6e   : > { %v1181_v55 = vpop.eup %1180  ;;  %773 = vst [vmem:[%s1403_s22 + $0xa8] sm:$0xff] %v741_v31  ;;  %v703_v13 = vsel %vm1294_vm2, %v1171_v56, %v671_v10  ;;  %v429_v16 = vadd.f32 1.0, %v1179_v7  ;;  %1200 = vpow2.f32 %v587_v50  ;;  %v595_v51 = vmul.f32 1.442695, %v532_v33 }
  0x6f   : > { %v1183_v3 = vpop.eup %1182  ;;  %v742_v14 = vmul.f32 %v1386_v30, %v703_v13  ;;  %v672_v1 = vadd.f32 %v1181_v55, %v640_v61  ;;  %1202 = vpow2.f32 %v920_v9  ;;  %v645_v59 = vadd.f32 %v615_v22, %v1315_v38 }
  0x70   : > { %v1185_v15 = vpop.eup %1184  ;;  %1204 = vrcp.f32 %v429_v16  ;;  %v646_v8 = vadd.f32 %v615_v22, %v1324_v48  ;;  %v616_v12 = vsel %vm600_vm4, 15.0, %v1246_v41 }
  0x71   : > { %v1187_v20 = vpop.eup %1186  ;;  %774 = vst [vmem:[%s1403_s22 + $0xb0] sm:$0xff] %v742_v14  ;;  %v704_v60 = vsel %vm1294_vm2, %v1177_v46, %v672_v1  ;;  %v430_v21 = vadd.f32 1.0, %v1185_v15  ;;  %1206 = vpow2.f32 %v589_v43  ;;  %v647_v7 = vadd.f32 %v616_v12, %v1315_v38 }
  0x72   : > { %v1189_v35 = vpop.eup %1188  ;;  %v743_v62 = vmul.f32 %v1386_v30, %v704_v60  ;;  %v673_v4 = vadd.f32 %v1187_v20, %v641_v11  ;;  %v648_v13 = vadd.f32 %v616_v12, %v1324_v48 }
  0x73   : > { %v1191_v27 = vpop.eup %1190  ;;  %1208 = vrcp.f32 %v430_v21 }
  0x74   : > { %v1193_v28 = vpop.eup %1192  ;;  %775 = vst [vmem:[%s1403_s22 + $0xb8] sm:$0xff] %v743_v62  ;;  %v705_v29 = vsel %vm1294_vm2, %v1183_v3, %v673_v4  ;;  %v431_v57 = vadd.f32 1.0, %v1191_v27  ;;  %1210 = vpow2.f32 %v591_v24 }
  0x75   : > { %v1195_v34 = vpop.eup %1194  ;;  %v744_v39 = vmul.f32 %v1386_v30, %v705_v29  ;;  %v674_v42 = vadd.f32 %v1193_v28, %v642_v19 }
  0x76   : > { %v1197_v58 = vpop.eup %1196  ;;  %1212 = vrcp.f32 %v431_v57 }
  0x77   : > { %v1199_v49 = vpop.eup %1198  ;;  %776 = vst [vmem:[%s1403_s22 + $0xc0] sm:$0xff] %v744_v39  ;;  %v706_v44 = vsel %vm1294_vm2, %v1189_v35, %v674_v42  ;;  %v432_v47 = vadd.f32 1.0, %v1197_v58  ;;  %1214 = vpow2.f32 %v593_v32 }
  0x78   : > { %v1201_v53 = vpop.eup %1200  ;;  %v745_v36 = vmul.f32 %v1386_v30, %v706_v44  ;;  %v675_v54 = vadd.f32 %v1199_v49, %v643_v5 }
  0x79   : > { %v1203_v52 = vpop.eup %1202  ;;  %1216 = vrcp.f32 %v432_v47 }
  0x7a   : > { %v1205_v17 = vpop.eup %1204  ;;  %777 = vst [vmem:[%s1403_s22 + $0xc8] sm:$0xff] %v745_v36  ;;  %v707_v56 = vsel %vm1294_vm2, %v1195_v34, %v675_v54  ;;  %v433_v26 = vadd.f32 1.0, %v1203_v52  ;;  %1218 = vpow2.f32 %v595_v51 }
  0x7b   : > { %v746_v61 = vmul.f32 %v1386_v30, %v707_v56  ;;  %v676_v40 = vadd.f32 %v1205_v17, %v644_v45  ;;  %v1207_v37 = vpop.eup %1206 }
  0x7c   : > { %1220 = vrcp.f32 %v433_v26 }
  0x7d   : > { %v1209_v50 = vpop.eup %1208  ;;  %778 = vst [vmem:[%s1403_s22 + $0xd0] sm:$0xff] %v746_v61  ;;  %v708_v63 = vsel %vm1294_vm2, %v1201_v53, %v676_v40 }
  0x7e   : > { %v747_v0 = vmul.f32 %v1386_v30, %v708_v63  ;;  %v677_v9 = vadd.f32 %v1209_v50, %v645_v59  ;;  %v1211_v46 = vpop.eup %1210 }
  0x80   : > { %v1213_v31 = vpop.eup %1212  ;;  %779 = vst [vmem:[%s1403_s22 + $0xd8] sm:$0xff] %v747_v0  ;;  %v709_v10 = vsel %vm1294_vm2, %v1207_v37, %v677_v9 }
  0x81   : > { %v748_v11 = vmul.f32 %v1386_v30, %v709_v10  ;;  %v678_v43 = vadd.f32 %v1213_v31, %v646_v8  ;;  %v1215_v55 = vpop.eup %1214 }
  0x83   : > { %v1217_v2 = vpop.eup %1216  ;;  %780 = vst [vmem:[%s1403_s22 + $0xe0] sm:$0xff] %v748_v11  ;;  %v710_v41 = vsel %vm1294_vm2, %v1211_v46, %v678_v43 }
  0x84   : > { %v749_v16 = vmul.f32 %v1386_v30, %v710_v41  ;;  %v679_v18 = vadd.f32 %v1217_v2, %v647_v7  ;;  %v1219_v3 = vpop.eup %1218 }
  0x86   : > { %v1221_v14 = vpop.eup %1220  ;;  %781 = vst [vmem:[%s1403_s22 + $0xe8] sm:$0xff] %v749_v16  ;;  %v711_v38 = vsel %vm1294_vm2, %v1215_v55, %v679_v18 }
  0x87   : > { %v750_v1 = vmul.f32 %v1386_v30, %v711_v38  ;;  %v680_v15 = vadd.f32 %v1221_v14, %v648_v13 }
  0x89   : > { %782 = vst [vmem:[%s1403_s22 + $0xf0] sm:$0xff] %v750_v1  ;;  %v712_v19 = vsel %vm1294_vm2, %v1219_v3, %v680_v15 }
  0x8a   : > { %v751_v23 = vmul.f32 %v1386_v30, %v712_v19 }
  0x8c   : > { %783 = vst [vmem:[%s1403_s22 + $0xf8] sm:$0xff] %v751_v23 }
  0x8d PF: > { %s12_s11 = sadd.s32 1, %s1244_s11   ;;  %s1793_s9 = smov %s1240_s10 }
  0x8e   : > { %p9_p5 = scmp.ge.s32.totalorder %s12_s11, 4   ;;  %s1794_s10 = smov %s1796_s12 }
  0x90   :  { %11 = sbr.rel (!%p9_p5) target bundleno = 2 (0x2), region = 58 }

// kernel: darknet_forward.16
= control target key start
LH: loop header
LB: loop body
LE: loop exit
PB: predicated region body
PF: predicated region fallthrough
CT: control target
= control target key end

     0   :  { %s1219_s12 = smov 0   ;;  %s1221_s13 = smov 0   ;;  %s1356_s0 = inlined_call_operand.vmem [shape: bf16[2,16,16,128], index: 0, kind: input, shape index: {}]   ;;  %s1357_s1 = inlined_call_operand.vmem [shape: bf16[1,128,128], index: 1, kind: input, shape index: {}]   ;;  %s1358_s2 = inlined_call_operand.vmem [shape: f32[1,128], index: 2, kind: input, shape index: {}]   ;;  %s1359_s3 = inlined_call_operand.vmem [shape: bf16[2,16,16,128], index: 3, kind: output, shape index: {}]  }
   0x1   :  { %s1223_s14 = smov 0  }
   0x2 LB: > { %s25_s15 = sadd.s32 1, %s1193_s13  ;;  %p846_p0 = scmp.ge.s32.totalorder %s1197_s14, 1  ;;  %s1197_s14 = sphi %s1223_s14, %s13_s14   ;;  %s1193_s13 = sphi %s1221_s13, %s1361_s13   ;;  %s1189_s12 = sphi %s1219_s12, %s1360_s12  }
   0x3   : > { %p27_p1 = scmp.ge.s32.totalorder %s25_s15, 2  ;;  %p151_p2 = scmp.lt.s32.totalorder %s1197_s14, 3 }
   0x5   : > { %s1363_s15 = smov (%p27_p1, %s25_s15), 0  ;;  %p152_p3 = pnand %p846_p0, %p151_p2 }
   0x6   : > { %v1151_v0 = vld [vmem:[%s1357_s1] sm:$0xff] (!%p152_p3)   ;;  %p180_p4 = scmp.lt.s32.totalorder (!%p152_p3), %s1189_s12, 1  ;;  %v1152_v1 = vld [vmem:[%s1357_s1 + $0x8] sm:$0xff] (!%p152_p3)   ;;  %v1153_v2 = vld [vmem:[%s1357_s1 + $0x10] sm:$0xff] (!%p152_p3)  }
   0x7   : > { %155 = sbr.rel (%p152_p3) target bundleno = 283 (0x11b), region = 32  ;;  %1063 = vmatprep.subr.bf16.mxu0 (!%p152_p3), %v1151_v0  ;;  %1111 = vmatprep.subr.bf16.mxu1 (!%p152_p3), %v1151_v0  ;;  %v1154_v3 = vld [vmem:[%s1357_s1 + $0x18] sm:$0xff] (!%p152_p3)   ;;  %v1155_v6 = vld [vmem:[%s1357_s1 + $0x20] sm:$0xff] (!%p152_p3)   ;;  %v1156_v7 = vld [vmem:[%s1357_s1 + $0x28] sm:$0xff] (!%p152_p3)  }
   0x8   : > { %1064 = vmatpush3.bf16.msra.mxu0 (!%p152_p3), %v1151_v0  ;;  %1119 = vmatpush3.bf16.msra.mxu1 (!%p152_p3), %v1151_v0  ;;  %v1157_v8 = vld [vmem:[%s1357_s1 + $0x30] sm:$0xff] (!%p152_p3)   ;;  %v1158_v9 = vld [vmem:[%s1357_s1 + $0x38] sm:$0xff] (!%p152_p3)   ;;  %v1290_v24 = vld [vmem:[%s1358_s2] ss:$0 sm:$0xff] (!%p152_p3) }
   0x9   : > { %1065 = vmatprep.subr.bf16.mxu0 (!%p152_p3), %v1152_v1  ;;  %1112 = vmatprep.subr.bf16.mxu1 (!%p152_p3), %v1152_v1 }
   0xc   : > { %1066 = vmatpush3.bf16.msra.mxu0 (!%p152_p3), %v1152_v1  ;;  %1120 = vmatpush3.bf16.msra.mxu1 (!%p152_p3), %v1152_v1 }
   0xd   : > { %1067 = vmatprep.subr.bf16.mxu0 (!%p152_p3), %v1153_v2  ;;  %1113 = vmatprep.subr.bf16.mxu1 (!%p152_p3), %v1153_v2 }
   0xe   : > { %s1365_s12 = smov (!%p180_p4, %s1189_s12), 1 }
   0xf   : > { %s910_s22 = sshll.u32 %s1365_s12, 7 }
  0x10   : > { %s1254_s25 = scalar_lea.vmem %s1356_s0, %s910_s22  ;;  %1068 = vmatpush3.bf16.msra.mxu0 %v1153_v2  ;;  %1121 = vmatpush3.bf16.msra.mxu1 %v1153_v2  ;;  %s1303_s17 = scalar_lea.vmem %s1359_s3, %s910_s22 }
  0x11   : > { %v1159_v4 = vld [vmem:[%s1254_s25] sm:$0xff]   ;;  %1069 = vmatprep.subr.bf16.mxu0 %v1154_v3  ;;  %1114 = vmatprep.subr.bf16.mxu1 %v1154_v3  ;;  %v1161_v10 = vld [vmem:[%s1254_s25 + $0x8] sm:$0xff]   ;;  %v1163_v12 = vld [vmem:[%s1254_s25 + $0x10] sm:$0xff]  }
  0x12   : > { %v1160_v5 = vld [vmem:[%s1254_s25 + $0x40] sm:$0xff]   ;;  %1079 = vmatprep.mubr.bf16.mxu0 %v1159_v4  ;;  %v1162_v11 = vld [vmem:[%s1254_s25 + $0x48] sm:$0xff]   ;;  %v1164_v13 = vld [vmem:[%s1254_s25 + $0x50] sm:$0xff]  }
  0x13   : > { %1095 = vmatprep.mubr.bf16.mxu1 %v1160_v5  ;;  %v1165_v14 = vld [vmem:[%s1254_s25 + $0x18] sm:$0xff]   ;;  %v1167_v16 = vld [vmem:[%s1254_s25 + $0x20] sm:$0xff]   ;;  %v1169_v18 = vld [vmem:[%s1254_s25 + $0x28] sm:$0xff]  }
  0x14   : > { %1070 = vmatpush3.bf16.msra.mxu0 %v1154_v3  ;;  %1122 = vmatpush3.bf16.msra.mxu1 %v1154_v3  ;;  %v1166_v15 = vld [vmem:[%s1254_s25 + $0x58] sm:$0xff]   ;;  %v1168_v17 = vld [vmem:[%s1254_s25 + $0x60] sm:$0xff]   ;;  %v1170_v19 = vld [vmem:[%s1254_s25 + $0x68] sm:$0xff]  }
  0x15   : > { %1071 = vmatprep.subr.bf16.mxu0 %v1155_v6  ;;  %1115 = vmatprep.subr.bf16.mxu1 %v1155_v6  ;;  %v1171_v20 = vld [vmem:[%s1254_s25 + $0x30] sm:$0xff]   ;;  %v1173_v22 = vld [vmem:[%s1254_s25 + $0x38] sm:$0xff]  }
  0x16   : > { %v1172_v21 = vld [vmem:[%s1254_s25 + $0x70] sm:$0xff]   ;;  %v1174_v23 = vld [vmem:[%s1254_s25 + $0x78] sm:$0xff]  }
  0x18   : > { %1072 = vmatpush3.bf16.msra.mxu0 %v1155_v6  ;;  %1123 = vmatpush3.bf16.msra.mxu1 %v1155_v6 }
  0x19   : > { %1073 = vmatprep.subr.bf16.mxu0 %v1156_v7  ;;  %1116 = vmatprep.subr.bf16.mxu1 %v1156_v7 }
  0x1c   : > { %1074 = vmatpush3.bf16.msra.mxu0 %v1156_v7  ;;  %1124 = vmatpush3.bf16.msra.mxu1 %v1156_v7 }
  0x1d   : > { %1075 = vmatprep.subr.bf16.mxu0 %v1157_v8  ;;  %1117 = vmatprep.subr.bf16.mxu1 %v1157_v8 }
  0x20   : > { %1076 = vmatpush3.bf16.msra.mxu0 %v1157_v8  ;;  %1125 = vmatpush3.bf16.msra.mxu1 %v1157_v8 }
  0x21   : > { %1077 = vmatprep.subr.bf16.mxu0 %v1158_v9  ;;  %1118 = vmatprep.subr.bf16.mxu1 %v1158_v9 }
  0x24   : > { %1078 = vmatpush3.bf16.msra.mxu0 %v1158_v9  ;;  %1126 = vmatpush3.bf16.msra.mxu1 %v1158_v9 }
  0x27   : > { %1080 = vmatmul.mubr.bf16.vlgmr.msra.gmra.mrb[0].mxu0 %v1161_v10  ;;  %1096 = vmatmul.mubr.bf16.vlgmr.msra.gmra.mrb[0].mxu1 %v1162_v11 }
  0x28   : > { %1083 = vmatprep.mubr.bf16.mxu0 %v1163_v12  ;;  %1099 = vmatprep.mubr.bf16.mxu1 %v1164_v13 }
  0x2f   : > { %1084 = vmatmul.mubr.bf16.gmra.mrb[4].mxu0 %v1165_v14  ;;  %1100 = vmatmul.mubr.bf16.gmra.mrb[4].mxu1 %v1166_v15 }
  0x30   : > { %1087 = vmatprep.mubr.bf16.mxu0 %v1167_v16  ;;  %1103 = vmatprep.mubr.bf16.mxu1 %v1168_v17 }
  0x37   : > { %1088 = vmatmul.mubr.bf16.gmra.mrb[8].mxu0 %v1169_v18  ;;  %1104 = vmatmul.mubr.bf16.gmra.mrb[8].mxu1 %v1170_v19 }
  0x38   : > { %1091 = vmatprep.mubr.bf16.mxu0 %v1171_v20  ;;  %1107 = vmatprep.mubr.bf16.mxu1 %v1172_v21 }
  0x3f   : > { %1092 = vmatmul.mubr.bf16.gmra.mrb[12].mxu0 %v1173_v22  ;;  %1108 = vmatmul.mubr.bf16.gmra.mrb[12].mxu1 %v1174_v23 }
  0xfa   : > { %v1081_v25 = vpop.f32.mrb[0].mxu0  ;;  %v1097_v26 = vpop.f32.mrb[0].mxu1 }
  0xfb   : > { %v434_v27 = vpop.f32.mrb[1].mxu0  ;;  %v498_v28 = vpop.f32.mrb[1].mxu1  ;;  %v563_v31 = vadd.f32 %v1081_v25, %v1290_v24  ;;  %v579_v32 = vadd.f32 %v1097_v26, %v1290_v24 }
  0xfc   : > { %v1082_v29 = vpop.f32.mrb[2].mxu0  ;;  %v1098_v30 = vpop.f32.mrb[2].mxu1  ;;  %v561_v37 = vadd.f32 %v1290_v24, %v434_v27  ;;  %v577_v38 = vadd.f32 %v1290_v24, %v498_v28 }
  0xfd   : > { %v564_v33 = vadd.f32 %v1082_v29, %v1290_v24  ;;  %v580_v34 = vadd.f32 %v1098_v30, %v1290_v24  ;;  %v437_v35 = vpop.f32.mrb[3].mxu0  ;;  %v501_v36 = vpop.f32.mrb[3].mxu1 }
  0xfe   : > { %v562_v39 = vadd.f32 %v1290_v24, %v437_v35  ;;  %v578_v40 = vadd.f32 %v1290_v24, %v501_v36 }
  0xff   : > { %v952_v41 = vpack.c.bf16 %v564_v33, %v563_v31  ;;  %v992_v42 = vpack.c.bf16 %v580_v34, %v579_v32 }
 0x100   : > { %v947_v43 = vpack.c.bf16 %v562_v39, %v561_v37  ;;  %v987_v44 = vpack.c.bf16 %v578_v40, %v577_v38 }
 0x101   : > { %1024 = vst [vmem:[%s1303_s17 + $0x8] sm:$0xff] %v952_v41   ;;  %1032 = vst [vmem:[%s1303_s17 + $0x48] sm:$0xff] %v992_v42  }
 0x102   : > { %948 = vst [vmem:[%s1303_s17] sm:$0xff] %v947_v43   ;;  %1031 = vst [vmem:[%s1303_s17 + $0x40] sm:$0xff] %v987_v44   ;;  %v1085_v45 = vpop.f32.mrb[4].mxu0  ;;  %v1101_v46 = vpop.f32.mrb[4].mxu1 }
 0x103   : > { %v450_v47 = vpop.f32.mrb[5].mxu0  ;;  %v514_v48 = vpop.f32.mrb[5].mxu1  ;;  %v567_v51 = vadd.f32 %v1085_v45, %v1290_v24  ;;  %v583_v52 = vadd.f32 %v1101_v46, %v1290_v24 }
 0x104   : > { %v1086_v49 = vpop.f32.mrb[6].mxu0  ;;  %v1102_v50 = vpop.f32.mrb[6].mxu1  ;;  %v565_v57 = vadd.f32 %v1290_v24, %v450_v47  ;;  %v581_v58 = vadd.f32 %v1290_v24, %v514_v48 }
 0x105   : > { %v568_v53 = vadd.f32 %v1086_v49, %v1290_v24  ;;  %v584_v54 = vadd.f32 %v1102_v50, %v1290_v24  ;;  %v453_v55 = vpop.f32.mrb[7].mxu0  ;;  %v517_v56 = vpop.f32.mrb[7].mxu1 }
 0x106   : > { %v566_v59 = vadd.f32 %v1290_v24, %v453_v55  ;;  %v582_v60 = vadd.f32 %v1290_v24, %v517_v56 }
 0x107   : > { %v962_v61 = vpack.c.bf16 %v568_v53, %v567_v51  ;;  %v1002_v62 = vpack.c.bf16 %v584_v54, %v583_v52 }
 0x108   : > { %v957_v63 = vpack.c.bf16 %v566_v59, %v565_v57  ;;  %v997_v0 = vpack.c.bf16 %v582_v60, %v581_v58 }
 0x109   : > { %1026 = vst [vmem:[%s1303_s17 + $0x18] sm:$0xff] %v962_v61   ;;  %1034 = vst [vmem:[%s1303_s17 + $0x58] sm:$0xff] %v1002_v62  }
 0x10a   : > { %1025 = vst [vmem:[%s1303_s17 + $0x10] sm:$0xff] %v957_v63   ;;  %1033 = vst [vmem:[%s1303_s17 + $0x50] sm:$0xff] %v997_v0   ;;  %v1089_v1 = vpop.f32.mrb[8].mxu0  ;;  %v1105_v2 = vpop.f32.mrb[8].mxu1 }
 0x10b   : > { %v466_v3 = vpop.f32.mrb[9].mxu0  ;;  %v530_v4 = vpop.f32.mrb[9].mxu1  ;;  %v571_v7 = vadd.f32 %v1089_v1, %v1290_v24  ;;  %v587_v8 = vadd.f32 %v1105_v2, %v1290_v24 }
 0x10c   : > { %v1090_v5 = vpop.f32.mrb[10].mxu0  ;;  %v1106_v6 = vpop.f32.mrb[10].mxu1  ;;  %v569_v13 = vadd.f32 %v1290_v24, %v466_v3  ;;  %v585_v14 = vadd.f32 %v1290_v24, %v530_v4 }
 0x10d   : > { %v572_v9 = vadd.f32 %v1090_v5, %v1290_v24  ;;  %v588_v10 = vadd.f32 %v1106_v6, %v1290_v24  ;;  %v469_v11 = vpop.f32.mrb[11].mxu0  ;;  %v533_v12 = vpop.f32.mrb[11].mxu1 }
 0x10e   : > { %v570_v15 = vadd.f32 %v1290_v24, %v469_v11  ;;  %v586_v16 = vadd.f32 %v1290_v24, %v533_v12 }
 0x10f   : > { %v972_v17 = vpack.c.bf16 %v572_v9, %v571_v7  ;;  %v1012_v18 = vpack.c.bf16 %v588_v10, %v587_v8 }
 0x110   : > { %v967_v19 = vpack.c.bf16 %v570_v15, %v569_v13  ;;  %v1007_v20 = vpack.c.bf16 %v586_v16, %v585_v14 }
 0x111   : > { %1028 = vst [vmem:[%s1303_s17 + $0x28] sm:$0xff] %v972_v17   ;;  %1036 = vst [vmem:[%s1303_s17 + $0x68] sm:$0xff] %v1012_v18  }
 0x112   : > { %1027 = vst [vmem:[%s1303_s17 + $0x20] sm:$0xff] %v967_v19   ;;  %1035 = vst [vmem:[%s1303_s17 + $0x60] sm:$0xff] %v1007_v20   ;;  %v1093_v21 = vpop.f32.mrb[12].mxu0  ;;  %v1109_v22 = vpop.f32.mrb[12].mxu1 }
 0x113   : > { %v482_v23 = vpop.f32.mrb[13].mxu0  ;;  %v546_v25 = vpop.f32.mrb[13].mxu1  ;;  %v575_v28 = vadd.f32 %v1093_v21, %v1290_v24  ;;  %v591_v29 = vadd.f32 %v1109_v22, %v1290_v24 }
 0x114   : > { %v1094_v26 = vpop.f32.mrb[14].mxu0  ;;  %v1110_v27 = vpop.f32.mrb[14].mxu1  ;;  %v573_v34 = vadd.f32 %v1290_v24, %v482_v23  ;;  %v589_v35 = vadd.f32 %v1290_v24, %v546_v25 }
 0x115   : > { %v576_v30 = vadd.f32 %v1094_v26, %v1290_v24  ;;  %v592_v31 = vadd.f32 %v1110_v27, %v1290_v24  ;;  %v485_v32 = vpop.f32.mrb[15].mxu0  ;;  %v549_v33 = vpop.f32.mrb[15].mxu1 }
 0x116   : > { %v574_v36 = vadd.f32 %v1290_v24, %v485_v32  ;;  %v590_v37 = vadd.f32 %v1290_v24, %v549_v33 }
 0x117   : > { %v982_v38 = vpack.c.bf16 %v576_v30, %v575_v28  ;;  %v1022_v39 = vpack.c.bf16 %v592_v31, %v591_v29 }
 0x118   : > { %v977_v40 = vpack.c.bf16 %v574_v36, %v573_v34  ;;  %v1017_v41 = vpack.c.bf16 %v590_v37, %v589_v35 }
 0x119   : > { %1030 = vst [vmem:[%s1303_s17 + $0x38] sm:$0xff] %v982_v38   ;;  %1038 = vst [vmem:[%s1303_s17 + $0x78] sm:$0xff] %v1022_v39  }
 0x11a   : > { %1029 = vst [vmem:[%s1303_s17 + $0x30] sm:$0xff] %v977_v40   ;;  %1037 = vst [vmem:[%s1303_s17 + $0x70] sm:$0xff] %v1017_v41  }
 0x11b PF: > { %s13_s14 = sadd.s32 1, %s1197_s14   ;;  %s1360_s12 = smov %s1193_s13 }
 0x11c   : > { %p10_p5 = scmp.ge.s32.totalorder %s13_s14, 4   ;;  %s1361_s13 = smov %s1363_s15 }
 0x11e   :  { %12 = sbr.rel (!%p10_p5) target bundleno = 2 (0x2), region = 63 }

// kernel: darknet_forward.15
= control target key start
LH: loop header
LB: loop body
LE: loop exit
PB: predicated region body
PF: predicated region fallthrough
CT: control target
= control target key end

     0   :  { %s6531_s15 = smov 0   ;;  %s6533_s16 = smov 0   ;;  %s8419_s0 = inlined_call_operand.vmem [shape: bf16[2,18,18,128], index: 0, kind: input, shape index: {}]   ;;  %s8420_s1 = inlined_call_operand.vmem [shape: bf16[2,18,18,128], index: 1, kind: input, shape index: {}]   ;;  %s8421_s2 = inlined_call_operand.vmem [shape: bf16[9,256,128], index: 2, kind: input, shape index: {}]   ;;  %s8422_s3 = inlined_call_operand.vmem [shape: f32[1,128], index: 3, kind: input, shape index: {}]   ;;  %s8423_s4 = inlined_call_operand.vmem [shape: bf16[2,16,16,128], index: 4, kind: output, shape index: {}]  }
   0x1   :  { %s6535_s17 = smov 0  }
   0x2 LB: > { %s26_s18 = sadd.s32 1, %s6500_s16  ;;  %p4531_p0 = scmp.ge.s32.totalorder %s6504_s17, 1  ;;  %s6504_s17 = sphi %s6535_s17, %s14_s17   ;;  %s6500_s16 = sphi %s6533_s16, %s8736_s16   ;;  %s6496_s15 = sphi %s6531_s15, %s8735_s15  }
   0x3   : > { %p28_p1 = scmp.ge.s32.totalorder %s26_s18, 2  ;;  %p186_p2 = scmp.lt.s32.totalorder %s6504_s17, 3 }
   0x5   : > { %s8738_s18 = smov (%p28_p1, %s26_s18), 0  ;;  %p187_p3 = pnand %p4531_p0, %p186_p2 }
   0x7   : > { %190 = sbr.rel (%p187_p3) target bundleno = 843 (0x34b), region = 36 }
   0xe   : > { %v6220_v0 = vld [vmem:[%s8421_s2 + $0x40] sm:$0xff]   ;;  %p222_p4 = scmp.lt.s32.totalorder %s6496_s15, 1  ;;  %v6222_v2 = vld [vmem:[%s8421_s2 + $0x48] sm:$0xff]   ;;  %v6224_v4 = vld [vmem:[%s8421_s2 + $0x50] sm:$0xff]   ;;  %vm1749_vm0 = vcmask 1046528  }
   0xf   : > { %v6221_v1 = vld [vmem:[%s8421_s2] sm:$0xff]   ;;  %5171 = vmatprep.subr.bf16.mxu0 %v6220_v0  ;;  %6179 = vmatprep.subr.bf16.mxu1 %v6220_v0  ;;  %v6223_v3 = vld [vmem:[%s8421_s2 + $0x8] sm:$0xff]   ;;  %v6225_v5 = vld [vmem:[%s8421_s2 + $0x10] sm:$0xff]   ;;  %vm1010_vm1 = vsmask.f32 7424 }
  0x10   : > { %5172 = vmatpush3.bf16.msra.mxu0 %v6221_v1  ;;  %6187 = vmatpush3.bf16.msra.mxu1 %v6221_v1  ;;  %s8740_s15 = smov (!%p222_p4, %s6496_s15), 1  ;;  %v6226_v6 = vld [vmem:[%s8421_s2 + $0x58] sm:$0xff]   ;;  %v6228_v8 = vld [vmem:[%s8421_s2 + $0x60] sm:$0xff]   ;;  %v6230_v10 = vld [vmem:[%s8421_s2 + $0x68] sm:$0xff]  }
  0x11   : > { %5173 = vmatprep.subr.bf16.mxu0 %v6222_v2  ;;  %6180 = vmatprep.subr.bf16.mxu1 %v6222_v2  ;;  %s6195_s7 = smul.u32 216, %s8740_s15  ;;  %v6227_v7 = vld [vmem:[%s8421_s2 + $0x18] sm:$0xff]   ;;  %v6229_v9 = vld [vmem:[%s8421_s2 + $0x20] sm:$0xff]   ;;  %v6231_v13 = vld [vmem:[%s8421_s2 + $0x28] sm:$0xff]  }
  0x12   : > { %v6232_v14 = vld [vmem:[%s8421_s2 + $0x70] sm:$0xff]   ;;  %v6234_v16 = vld [vmem:[%s8421_s2 + $0x78] sm:$0xff]   ;;  %v6240_v18 = vld [vmem:[%s8421_s2 + $0xc0] sm:$0xff]  }
  0x13   : > { %s6582_s14 = scalar_lea.vmem %s8420_s1, %s6195_s7  ;;  %s6597_s25 = scalar_lea.vmem %s8419_s0, %s6195_s7  ;;  %v6233_v15 = vld [vmem:[%s8421_s2 + $0x30] sm:$0xff]   ;;  %v6235_v17 = vld [vmem:[%s8421_s2 + $0x38] sm:$0xff]   ;;  %v6242_v21 = vld [vmem:[%s8421_s2 + $0x140] sm:$0xff]  }
  0x14   : > { %5174 = vmatpush3.bf16.msra.mxu0 %v6223_v3  ;;  %6188 = vmatpush3.bf16.msra.mxu1 %v6223_v3  ;;  %v6591_v11 = vld [vmem:[%s6582_s14] sm:$0xff]   ;;  %v6632_v24 = vld [vmem:[%s6582_s14 + $0xc] sm:$0xff]   ;;  %v6657_v33 = vld [vmem:[%s6582_s14 + $0x18] sm:$0xff]  }
  0x15   : > { %5175 = vmatprep.subr.bf16.mxu0 %v6224_v4  ;;  %6181 = vmatprep.subr.bf16.mxu1 %v6224_v4  ;;  %v6237_v12 = vld [vmem:[%s6582_s14 + $0x60] sm:$0xff]   ;;  %v6245_v25 = vld [vmem:[%s6582_s14 + $0x6c] sm:$0xff]   ;;  %v6253_v34 = vld [vmem:[%s6582_s14 + $0x78] sm:$0xff]  }
  0x16   : > { %849 = vmatprep.mubr.bf16.mxu0 %v6591_v11  ;;  %913 = vmatprep.mubr.bf16.mxu1 %v6237_v12  ;;  %v6619_v19 = vld [vmem:[%s6597_s25] sm:$0xff]   ;;  %v6248_v26 = vld [vmem:[%s8421_s2 + $0xc8] sm:$0xff]   ;;  %v6256_v32 = vld [vmem:[%s8421_s2 + $0xd0] sm:$0xff]  }
  0x17   : > { %v6239_v20 = vld [vmem:[%s6597_s25 + $0x60] sm:$0xff]   ;;  %v6250_v27 = vld [vmem:[%s8421_s2 + $0x148] sm:$0xff]   ;;  %v6258_v35 = vld [vmem:[%s8421_s2 + $0x150] sm:$0xff]  }
  0x18   : > { %5176 = vmatpush3.bf16.msra.mxu0 %v6225_v5  ;;  %6189 = vmatpush3.bf16.msra.mxu1 %v6225_v5  ;;  %v6241_v22 = vld [vmem:[%s8421_s2 + $0x80] sm:$0xff]   ;;  %v6249_v28 = vld [vmem:[%s8421_s2 + $0x88] sm:$0xff]   ;;  %v6257_v36 = vld [vmem:[%s8421_s2 + $0x90] sm:$0xff]  }
  0x19   : > { %5177 = vmatprep.subr.bf16.mxu0 %v6226_v6  ;;  %6182 = vmatprep.subr.bf16.mxu1 %v6226_v6  ;;  %v6243_v23 = vld [vmem:[%s8421_s2 + $0x100] sm:$0xff]   ;;  %v6251_v29 = vld [vmem:[%s8421_s2 + $0x108] sm:$0xff]   ;;  %v6259_v37 = vld [vmem:[%s8421_s2 + $0x110] sm:$0xff]   ;;  %v1026_v6 = vshll.u32 %v6591_v11, 16 }
  0x1a   : > { %v6650_v30 = vld [vmem:[%s6597_s25 + $0xc] sm:$0xff]   ;;  %v6672_v38 = vld [vmem:[%s6597_s25 + $0x18] sm:$0xff]   ;;  %v6679_v41 = vld [vmem:[%s6582_s14 + $0x24] sm:$0xff]  }
  0x1b   : > { %v6247_v31 = vld [vmem:[%s6597_s25 + $0x6c] sm:$0xff]   ;;  %v6255_v39 = vld [vmem:[%s6597_s25 + $0x78] sm:$0xff]   ;;  %v6261_v42 = vld [vmem:[%s6582_s14 + $0x84] sm:$0xff]  }
  0x1c   : > { %5178 = vmatpush3.bf16.msra.mxu0 %v6227_v7  ;;  %6190 = vmatpush3.bf16.msra.mxu1 %v6227_v7  ;;  %v6264_v40 = vld [vmem:[%s8421_s2 + $0xd8] sm:$0xff]   ;;  %v6694_v46 = vld [vmem:[%s6597_s25 + $0x24] sm:$0xff]   ;;  %v6701_v49 = vld [vmem:[%s6582_s14 + $0x30] sm:$0xff]  }
  0x1d   : > { %5179 = vmatprep.subr.bf16.mxu0 %v6228_v8  ;;  %6183 = vmatprep.subr.bf16.mxu1 %v6228_v8  ;;  %v6265_v43 = vld [vmem:[%s8421_s2 + $0x98] sm:$0xff]   ;;  %v6263_v47 = vld [vmem:[%s6597_s25 + $0x84] sm:$0xff]   ;;  %v6269_v50 = vld [vmem:[%s6582_s14 + $0x90] sm:$0xff]  }
  0x1e   : > { %v6266_v44 = vld [vmem:[%s8421_s2 + $0x158] sm:$0xff]   ;;  %v6272_v48 = vld [vmem:[%s8421_s2 + $0xe0] sm:$0xff]   ;;  %v6716_v54 = vld [vmem:[%s6597_s25 + $0x30] sm:$0xff]  }
  0x1f   : > { %v6267_v45 = vld [vmem:[%s8421_s2 + $0x118] sm:$0xff]   ;;  %v6273_v51 = vld [vmem:[%s8421_s2 + $0xa0] sm:$0xff]   ;;  %v6271_v55 = vld [vmem:[%s6597_s25 + $0x90] sm:$0xff]  }
  0x20   : > { %5180 = vmatpush3.bf16.msra.mxu0 %v6229_v9  ;;  %6191 = vmatpush3.bf16.msra.mxu1 %v6229_v9  ;;  %v6274_v52 = vld [vmem:[%s8421_s2 + $0x160] sm:$0xff]   ;;  %v6280_v56 = vld [vmem:[%s8421_s2 + $0xe8] sm:$0xff]   ;;  %v6288_v0 = vld [vmem:[%s8421_s2 + $0xf0] sm:$0xff]  }
  0x21   : > { %5181 = vmatprep.subr.bf16.mxu0 %v6230_v10  ;;  %6184 = vmatprep.subr.bf16.mxu1 %v6230_v10  ;;  %v6275_v53 = vld [vmem:[%s8421_s2 + $0x120] sm:$0xff]   ;;  %v6281_v59 = vld [vmem:[%s8421_s2 + $0xa8] sm:$0xff]   ;;  %v6289_v3 = vld [vmem:[%s8421_s2 + $0xb0] sm:$0xff]  }
  0x22   : > { %v6723_v57 = vld [vmem:[%s6582_s14 + $0x3c] sm:$0xff]   ;;  %v6282_v60 = vld [vmem:[%s8421_s2 + $0x168] sm:$0xff]   ;;  %v6290_v4 = vld [vmem:[%s8421_s2 + $0x170] sm:$0xff]  }
  0x23   : > { %v6277_v58 = vld [vmem:[%s6582_s14 + $0x9c] sm:$0xff]   ;;  %v6283_v61 = vld [vmem:[%s8421_s2 + $0x128] sm:$0xff]   ;;  %v6291_v5 = vld [vmem:[%s8421_s2 + $0x130] sm:$0xff]  }
  0x24   : > { %5182 = vmatpush3.bf16.msra.mxu0 %v6231_v13  ;;  %6192 = vmatpush3.bf16.msra.mxu1 %v6231_v13  ;;  %v6738_v62 = vld [vmem:[%s6597_s25 + $0x3c] sm:$0xff]   ;;  %v6745_v1 = vld [vmem:[%s6582_s14 + $0x48] sm:$0xff]   ;;  %v6768_v10 = vld [vmem:[%s6582_s14 + $0x54] sm:$0xff]  }
  0x25   : > { %5183 = vmatprep.subr.bf16.mxu0 %v6232_v14  ;;  %6185 = vmatprep.subr.bf16.mxu1 %v6232_v14  ;;  %v6279_v63 = vld [vmem:[%s6597_s25 + $0x9c] sm:$0xff]   ;;  %v6285_v2 = vld [vmem:[%s6582_s14 + $0xa8] sm:$0xff]   ;;  %v6293_v12 = vld [vmem:[%s6582_s14 + $0xb4] sm:$0xff]   ;;  %v1024_v14 = vshrl.u32 %v6591_v11, 16 }
  0x26   : > { %v6761_v7 = vld [vmem:[%s6597_s25 + $0x48] sm:$0xff]   ;;  %v6296_v9 = vld [vmem:[%s8421_s2 + $0xf8] sm:$0xff]  }
  0x27   : > { %v6287_v8 = vld [vmem:[%s6597_s25 + $0xa8] sm:$0xff]   ;;  %v6297_v13 = vld [vmem:[%s8421_s2 + $0xb8] sm:$0xff]  }
  0x28   : > { %5184 = vmatpush3.bf16.msra.mxu0 %v6233_v15  ;;  %6193 = vmatpush3.bf16.msra.mxu1 %v6233_v15  ;;  %v6298_v15 = vld [vmem:[%s8421_s2 + $0x178] sm:$0xff]  }
  0x29   : > { %5185 = vmatprep.subr.bf16.mxu0 %v6234_v16  ;;  %6186 = vmatprep.subr.bf16.mxu1 %v6234_v16  ;;  %v1753_v16 = vrot.slane %v6591_v11, 1 }
  0x2c   : > { %5186 = vmatpush3.bf16.msra.mxu0 %v6235_v17  ;;  %6194 = vmatpush3.bf16.msra.mxu1 %v6235_v17  ;;  %v6299_v17 = vld [vmem:[%s8421_s2 + $0x138] sm:$0xff]  }
  0x2d   : > { %5283 = vmatprep.subr.bf16.mxu1 %v6240_v18  ;;  %5395 = vmatprep.subr.bf16.mxu0 %v6242_v21  ;;  %v1028_v18 = vrot.slane %v1026_v6, 1  ;;  %v6302_v21 = vld [vmem:[%s8421_s2 + $0x1c0] sm:$0xff]  }
  0x2f   : > { %850 = vmatmul.mubr.bf16.vlgmr.msra.gmra.mrb[0].mxu0 %v6619_v19  ;;  %914 = vmatmul.mubr.bf16.vlgmr.msra.gmra.mrb[0].mxu1 %v6239_v20  ;;  %v6300_v20 = vld [vmem:[%s6582_s14 + $0x8] ss:$0 sps:$4 sm:$0x11]  }
  0x30   : > { %5284 = vmatpush3.bf16.msra.mxu1 %v6241_v22  ;;  %5396 = vmatpush3.bf16.msra.mxu0 %v6243_v23  ;;  %v1014_v22 = vshll.u32 %v6619_v19, 16  ;;  %v1050_v23 = vshll.u32 %v6632_v24, 16  ;;  %v1031_v11 = vshll.u32 %v6300_v20, 16 }
  0x31   : > { %857 = vmatprep.mubr.bf16.mxu0 %v6632_v24  ;;  %921 = vmatprep.mubr.bf16.mxu1 %v6245_v25  ;;  %v6301_v25 = vld [vmem:[%s6597_s25 + $0x8] ss:$0 sps:$4 sm:$0x11]  }
  0x32   : > { %5285 = vmatprep.subr.bf16.mxu1 %v6248_v26  ;;  %5397 = vmatprep.subr.bf16.mxu0 %v6250_v27  ;;  %v6792_v26 = vld [vmem:[%s6597_s25 + $0x54] sm:$0xff]   ;;  %v1029_v27 = vor.u32 %v1028_v18, %v1024_v14  ;;  %v6837_v18 = vld [vmem:[%s6597_s25 + $0x20] ss:$0 sps:$4 sm:$0x11]  }
  0x34   : > { %5286 = vmatpush3.bf16.msra.mxu1 %v6249_v28  ;;  %5398 = vmatpush3.bf16.msra.mxu0 %v6251_v29  ;;  %v1033_v28 = vrot.slane %v1031_v11, 1  ;;  %v1754_v29 = vrot.slane %v6300_v20, 1  ;;  %v6311_v20 = vld [vmem:[%s8421_s2 + $0x188] sm:$0xff]  }
  0x35   : > { %5287 = vmatprep.subr.bf16.mxu1 %v6256_v32  ;;  %5399 = vmatprep.subr.bf16.mxu0 %v6258_v35  ;;  %v6295_v32 = vld [vmem:[%s6597_s25 + $0xb4] sm:$0xff]   ;;  %v1016_v35 = vrot.slane %v1014_v22, 1  ;;  %v6313_v22 = vld [vmem:[%s8421_s2 + $0x208] sm:$0xff]  }
  0x37   : > { %858 = vmatmul.mubr.bf16.gmra.mrb[4].mxu0 %v6650_v30  ;;  %922 = vmatmul.mubr.bf16.gmra.mrb[4].mxu1 %v6247_v31  ;;  %v6304_v31 = vld [vmem:[%s8421_s2 + $0x240] sm:$0xff]  }
  0x38   : > { %865 = vmatprep.mubr.bf16.mxu0 %v6657_v33  ;;  %929 = vmatprep.mubr.bf16.mxu1 %v6253_v34  ;;  %v1012_v34 = vshrl.u32 %v6619_v19, 16 }
  0x39   : > { %5288 = vmatpush3.bf16.msra.mxu1 %v6257_v36  ;;  %5400 = vmatpush3.bf16.msra.mxu0 %v6259_v37  ;;  %v1019_v36 = vshll.u32 %v6301_v25, 16  ;;  %v1750_v37 = vrot.slane %v6619_v19, 1  ;;  %v6308_v19 = vld [vmem:[%s6582_s14 + $0x20] ss:$0 sps:$4 sm:$0x11]  }
  0x3a   : > { %5289 = vmatprep.subr.bf16.mxu1 %v6264_v40  ;;  %5401 = vmatprep.subr.bf16.mxu0 %v6266_v44  ;;  %v1034_v40 = vsel %vm1010_vm1, %v1029_v27, %v1033_v28  ;;  %v1759_v44 = vrot.slane %v6632_v24, 1  ;;  %v1766_v27 = vrot.slane %v6308_v19, 1  ;;  %v6318_v28 = vld [vmem:[%s8421_s2 + $0x1d0] sm:$0xff]  }
  0x3d   : > { %5290 = vmatpush3.bf16.msra.mxu1 %v6265_v43  ;;  %5402 = vmatpush3.bf16.msra.mxu0 %v6267_v45  ;;  %v1048_v43 = vshrl.u32 %v6632_v24, 16  ;;  %v1052_v45 = vrot.slane %v1050_v23, 1  ;;  %v1756_v24 = vrot.slane %v6650_v30, 1  ;;  %v6314_v23 = vld [vmem:[%s6582_s14 + $0x2c] ss:$0 sps:$4 sm:$0x11]  }
  0x3e   : > { %5291 = vmatprep.subr.bf16.mxu1 %v6272_v48  ;;  %5403 = vmatprep.subr.bf16.mxu0 %v6274_v52  ;;  %v1036_v48 = vshrl.u32 %v6650_v30, 16  ;;  %v1017_v52 = vor.u32 %v1016_v35, %v1012_v34  ;;  %v1067_v35 = vshll.u32 %v6837_v18, 16 }
  0x3f   : > { %866 = vmatmul.mubr.bf16.gmra.mrb[8].mxu0 %v6672_v38  ;;  %930 = vmatmul.mubr.bf16.gmra.mrb[8].mxu1 %v6255_v39  ;;  %v6306_v39 = vld [vmem:[%s6582_s14 + $0x14] ss:$0 sps:$4 sm:$0x11]  }
  0x40   : > { %873 = vmatprep.mubr.bf16.mxu0 %v6679_v41  ;;  %937 = vmatprep.mubr.bf16.mxu1 %v6261_v42  ;;  %v1755_v42 = vsel %vm1749_vm0, %v1753_v16, %v1754_v29  ;;  %v6320_v29 = vld [vmem:[%s8421_s2 + $0x250] sm:$0xff]  }
  0x41   : > { %5292 = vmatpush3.bf16.msra.mxu1 %v6273_v51  ;;  %5404 = vmatpush3.bf16.msra.mxu0 %v6275_v53  ;;  %v6307_v51 = vld [vmem:[%s6597_s25 + $0x14] ss:$0 sps:$4 sm:$0x11]   ;;  %v1021_v53 = vrot.slane %v1019_v36, 1 }
  0x42   : > { %5293 = vmatprep.subr.bf16.mxu1 %v6280_v56  ;;  %5405 = vmatprep.subr.bf16.mxu0 %v6282_v60  ;;  %v1053_v60 = vor.u32 %v1052_v45, %v1048_v43  ;;  %v6319_v45 = vld [vmem:[%s8421_s2 + $0x190] sm:$0xff]  }
  0x45   : > { %5294 = vmatpush3.bf16.msra.mxu1 %v6281_v59  ;;  %5406 = vmatpush3.bf16.msra.mxu0 %v6283_v61  ;;  %v1074_v59 = vshll.u32 %v6657_v33, 16 }
  0x46   : > { %5295 = vmatprep.subr.bf16.mxu1 %v6288_v0  ;;  %5407 = vmatprep.subr.bf16.mxu0 %v6290_v4  ;;  %v1022_v0 = vsel %vm1010_vm1, %v1017_v52, %v1021_v53  ;;  %v6305_v4 = vld [vmem:[%s8421_s2 + $0x200] sm:$0xff]   ;;  %v1763_v52 = vrot.slane %v6837_v18, 1  ;;  %v1134_v18 = vshll.u32 %v6738_v62, 16 }
  0x47   : > { %874 = vmatmul.mubr.bf16.gmra.mrb[12].mxu0 %v6694_v46  ;;  %938 = vmatmul.mubr.bf16.gmra.mrb[12].mxu1 %v6263_v47  ;;  %v1055_v47 = vshll.u32 %v6306_v39, 16  ;;  %v1076_v6 = vrot.slane %v1074_v59, 1  ;;  %v1772_v59 = vrot.slane %v6314_v23, 1 }
  0x48   : > { %881 = vmatprep.mubr.bf16.mxu0 %v6701_v49  ;;  %945 = vmatprep.mubr.bf16.mxu1 %v6269_v50  ;;  %v1038_v50 = vshll.u32 %v6650_v30, 16  ;;  %v1072_v30 = vshrl.u32 %v6657_v33, 16 }
  0x49   : > { %5296 = vmatpush3.bf16.msra.mxu1 %v6289_v3  ;;  %5408 = vmatpush3.bf16.msra.mxu0 %v6291_v5  ;;  %v1057_v56 = vrot.slane %v1055_v47, 1  ;;  %v6303_v3 = vld [vmem:[%s8421_s2 + $0x180] sm:$0xff]   ;;  %v1765_v5 = vrot.slane %v6657_v33, 1  ;;  %v1098_v33 = vshll.u32 %v6679_v41, 16  ;;  %v1086_v47 = vshll.u32 %v6694_v46, 16 }
  0x4a   : > { %5297 = vmatprep.subr.bf16.mxu1 %v6296_v9  ;;  %5409 = vmatprep.subr.bf16.mxu0 %v6298_v15  ;;  %v1040_v61 = vrot.slane %v1038_v50, 1  ;;  %v1062_v9 = vshll.u32 %v6672_v38, 16  ;;  %v6312_v15 = vld [vmem:[%s8421_s2 + $0x248] sm:$0xff]   ;;  %v1077_v11 = vor.u32 %v1076_v6, %v1072_v30  ;;  %v6326_v50 = vld [vmem:[%s8421_s2 + $0x1d8] sm:$0xff]  }
  0x4b   : > { %v1100_v43 = vrot.slane %v1098_v33, 1  ;;  %v1777_v33 = vrot.slane %v6701_v49, 1 }
  0x4c   : > { %v1064_v34 = vrot.slane %v1062_v9, 1 }
  0x4d   : > { %5298 = vmatpush3.bf16.msra.mxu1 %v6297_v13  ;;  %5410 = vmatpush3.bf16.msra.mxu0 %v6299_v17  ;;  %v6827_v13 = vsel %vm1010_vm1, %v1053_v60, %v1057_v56  ;;  %v1757_v17 = vrot.slane %v6307_v51, 1  ;;  %v6316_v56 = vld [vmem:[%s6582_s14 + $0x38] ss:$0 sps:$4 sm:$0x11]  }
  0x4e   : > { %5507 = vmatprep.subr.bf16.mxu1 %v6302_v21  ;;  %5619 = vmatprep.subr.bf16.mxu0 %v6304_v31  ;;  %v1041_v21 = vor.u32 %v1040_v61, %v1036_v48  ;;  %v1060_v31 = vshrl.u32 %v6672_v38, 16  ;;  %v1122_v48 = vshll.u32 %v6701_v49, 16  ;;  %v6327_v60 = vld [vmem:[%s8421_s2 + $0x198] sm:$0xff]  }
  0x4f   : > { %882 = vmatmul.mubr.bf16.gmra.mrb[16].mxu0 %v6716_v54  ;;  %946 = vmatmul.mubr.bf16.gmra.mrb[16].mxu1 %v6271_v55  ;;  %v1751_v55 = vrot.slane %v6301_v25, 1  ;;  %v6329_v61 = vld [vmem:[%s8421_s2 + $0x218] sm:$0xff]  }
  0x50   : > { %889 = vmatprep.mubr.bf16.mxu0 %v6723_v57  ;;  %953 = vmatprep.mubr.bf16.mxu1 %v6277_v58  ;;  %v1760_v58 = vrot.slane %v6306_v39, 1  ;;  %v1096_v39 = vshrl.u32 %v6679_v41, 16  ;;  %v1065_v53 = vor.u32 %v1064_v34, %v1060_v31  ;;  %v6322_v31 = vld [vmem:[%s6582_s14 + $0x44] ss:$0 sps:$4 sm:$0x11]  }
  0x52   : > { %v6830_v14 = vsel %vm1749_vm0, %v1759_v44, %v1760_v58  ;;  %v1103_v44 = vshll.u32 %v6314_v23, 16  ;;  %v1101_v58 = vor.u32 %v1100_v43, %v1096_v39  ;;  %v1780_v39 = vrot.slane %v6738_v62, 1 }
  0x53   : > { %8521 = vst [vmem:[#allocation2_spill] sm:$0xff] %v6830_v14  ;;  %v1168_v43 = vshrl.u32 %v6745_v1, 16 }
  0x57   : > { %890 = vmatmul.mubr.bf16.gmra.mrb[20].mxu0 %v6738_v62  ;;  %954 = vmatmul.mubr.bf16.gmra.mrb[20].mxu1 %v6279_v63  ;;  %v1043_v63 = vshll.u32 %v6307_v51, 16  ;;  %v6328_v51 = vld [vmem:[%s8421_s2 + $0x258] sm:$0xff]  }
  0x58   : > { %897 = vmatprep.mubr.bf16.mxu0 %v6745_v1  ;;  %961 = vmatprep.mubr.bf16.mxu1 %v6285_v2  ;;  %v1752_v2 = vsel %vm1749_vm0, %v1750_v37, %v1751_v55  ;;  %v6861_v37 = vsel %vm1749_vm0, %v1756_v24, %v1757_v17  ;;  %v6315_v55 = vld [vmem:[%s6597_s25 + $0x2c] ss:$0 sps:$4 sm:$0x11]   ;;  %v1105_v24 = vrot.slane %v1103_v44, 1  ;;  %v1146_v17 = vshll.u32 %v6723_v57, 16 }
  0x59   : > { %v1045_v16 = vrot.slane %v1043_v63, 1  ;;  %8522 = vst [vmem:[#allocation3_spill] sm:$0xff] %v6861_v37  ;;  %v1084_v63 = vshrl.u32 %v6694_v46, 16  ;;  %v1091_v6 = vshll.u32 %v6315_v55, 16  ;;  %v1769_v23 = vrot.slane %v6315_v55, 1  ;;  %v6337_v55 = vld [vmem:[%s8421_s2 + $0x220] sm:$0xff]  }
  0x5a   : > { %v1148_v34 = vrot.slane %v1146_v17, 1  ;;  %v1170_v44 = vshll.u32 %v6745_v1, 16 }
  0x5b   : > { %v6858_v36 = vsel %vm1010_vm1, %v1041_v21, %v1045_v16  ;;  %v1108_v16 = vshrl.u32 %v6716_v54, 16  ;;  %v6317_v21 = vld [vmem:[%s6597_s25 + $0x38] ss:$0 sps:$4 sm:$0x11]  }
  0x5f   : > { %898 = vmatmul.mubr.bf16.gmra.mrb[24].mxu0 %v6761_v7  ;;  %962 = vmatmul.mubr.bf16.gmra.mrb[24].mxu1 %v6287_v8  ;;  %v1079_v8 = vshll.u32 %v6308_v19, 16  ;;  %v1069_v19 = vrot.slane %v1067_v35, 1  ;;  %v1132_v35 = vshrl.u32 %v6738_v62, 16 }
  0x60   : > { %905 = vmatprep.mubr.bf16.mxu0 %v6768_v10  ;;  %969 = vmatprep.mubr.bf16.mxu1 %v6293_v12  ;;  %v6310_v12 = vld [vmem:[%s8421_s2 + $0x1c8] sm:$0xff]  }
  0x61   : > { %v1081_v25 = vrot.slane %v1079_v8, 1  ;;  %v6905_v30 = vsel %vm1010_vm1, %v1065_v53, %v1069_v19  ;;  %v1110_v8 = vshll.u32 %v6716_v54, 16  ;;  %v1151_v19 = vshll.u32 %v6322_v31, 16 }
  0x62   : > { %8525 = vst [vmem:[#allocation6_spill] sm:$0xff] %v6905_v30  ;;  %v1158_v53 = vshll.u32 %v6761_v7, 16 }
  0x67   : > { %906 = vmatmul.mubr.bf16.gmra.mrb[28].mxu0 %v6792_v26  ;;  %970 = vmatmul.mubr.bf16.gmra.mrb[28].mxu1 %v6295_v32  ;;  %v1762_v32 = vrot.slane %v6672_v38, 1  ;;  %v6869_v38 = vsel %vm1749_vm0, %v1765_v5, %v1766_v27 }
  0x68   : > { %1588 = vmatprep.mubr.bf16.mxu1 %v1034_v40  ;;  %2039 = vmatprep.mubr.bf16.mxu0 %v1755_v42  ;;  %v1771_v40 = vrot.slane %v6679_v41, 1  ;;  %v6866_v42 = vsel %vm1010_vm1, %v1077_v11, %v1081_v25  ;;  %8524 = vst [vmem:[#allocation5_spill] sm:$0xff] %v6869_v38  ;;  %v6321_v41 = vld [vmem:[%s8421_s2 + $0x210] sm:$0xff]   ;;  %v1112_v11 = vrot.slane %v1110_v8, 1  ;;  %v1144_v25 = vshrl.u32 %v6723_v57, 16 }
  0x69   : > { %8523 = vst [vmem:[#allocation4_spill] sm:$0xff] %v6866_v42  ;;  %v6908_v5 = vsel %vm1749_vm0, %v1762_v32, %v1763_v52  ;;  %v1783_v32 = vrot.slane %v6723_v57, 1  ;;  %v1789_v52 = vrot.slane %v6745_v1, 1  ;;  %v1160_v8 = vrot.slane %v1158_v53, 1  ;;  %v6345_v53 = vld [vmem:[%s8421_s2 + $0x228] sm:$0xff]  }
  0x6a   : > { %8526 = vst [vmem:[#allocation7_spill] sm:$0xff] %v6908_v5  ;;  %v6915_v9 = vsel %vm1749_vm0, %v1771_v40, %v1772_v59  ;;  %v1115_v40 = vshll.u32 %v6317_v21, 16  ;;  %v1194_v59 = vshll.u32 %v6768_v10, 16 }
  0x6b   : > { %8528 = vst [vmem:[#allocation9_spill] sm:$0xff] %v6915_v9 }
  0x6c   : > { %v1117_v1 = vrot.slane %v1115_v40, 1  ;;  %v1196_v17 = vrot.slane %v1194_v59, 1  ;;  %v1792_v59 = vrot.slane %v6792_v26, 1 }
  0x6f   : > { %1589 = vmatmul.mubr.bf16.vlgmr.msra.gmra.mrb[32].mxu1 %v1022_v0  ;;  %2040 = vmatmul.mubr.bf16.vlgmr.msra.gmra.mrb[32].mxu0 %v1752_v2  ;;  %v1768_v0 = vrot.slane %v6694_v46, 1  ;;  %v6334_v2 = vld [vmem:[%s8421_s2 + $0x1e0] sm:$0xff]   ;;  %v6912_v46 = vsel %vm1010_vm1, %v1101_v58, %v1105_v24  ;;  %v1775_v58 = vrot.slane %v6317_v21, 1  ;;  %v1784_v24 = vrot.slane %v6322_v31, 1 }
  0x70   : > { %5508 = vmatpush3.bf16.msra.mxu1 %v6303_v3  ;;  %5620 = vmatpush3.bf16.msra.mxu0 %v6305_v4  ;;  %v1088_v3 = vrot.slane %v1086_v47, 1  ;;  %v1120_v4 = vshrl.u32 %v6701_v49, 16  ;;  %8527 = vst [vmem:[#allocation8_spill] sm:$0xff] %v6912_v46  ;;  %v1093_v49 = vrot.slane %v1091_v6, 1 }
  0x71   : > { %1596 = vmatprep.mubr.bf16.mxu1 %v6827_v13  ;;  %2047 = vmatprep.mubr.bf16.mxu0 %v6830_v14  ;;  %v6941_v57 = vsel %vm1749_vm0, %v1768_v0, %v1769_v23  ;;  %v6944_v47 = vld [vmem:[%s6597_s25 + $0x44] ss:$0 sps:$4 sm:$0x11]   ;;  %v6970_v6 = vld [vmem:[%s6597_s25 + $0x50] ss:$0 sps:$4 sm:$0x11]   ;;  %v6985_v21 = vsel %vm1749_vm0, %v1783_v32, %v1784_v24 }
  0x72   : > { %5509 = vmatprep.subr.bf16.mxu1 %v6310_v12  ;;  %5621 = vmatprep.subr.bf16.mxu0 %v6312_v15  ;;  %v1124_v12 = vrot.slane %v1122_v48, 1  ;;  %v1127_v15 = vshll.u32 %v6316_v56, 16  ;;  %8530 = vst [vmem:[#allocation11_spill] sm:$0xff] %v6941_v57  ;;  %v6336_v48 = vld [vmem:[%s8421_s2 + $0x260] sm:$0xff]   ;;  %v1139_v0 = vshll.u32 %v6944_v47, 16  ;;  %8536 = vst [vmem:[#allocation17_spill] sm:$0xff] %v6985_v21 }
  0x73   : > { %v6988_v23 = vld [vmem:[%s6582_s14 + $0x5c] ss:$0 sps:$4 sm:$0x11]   ;;  %v1787_v40 = vrot.slane %v6970_v6, 1 }
  0x74   : > { %5510 = vmatpush3.bf16.msra.mxu1 %v6311_v20  ;;  %5622 = vmatpush3.bf16.msra.mxu0 %v6313_v22  ;;  %v1089_v20 = vor.u32 %v1088_v3, %v1084_v63  ;;  %v1774_v22 = vrot.slane %v6716_v54, 1  ;;  %v1125_v27 = vor.u32 %v1124_v12, %v1120_v4  ;;  %v1136_v54 = vrot.slane %v1134_v18, 1  ;;  %v6324_v63 = vld [vmem:[%s6582_s14 + $0x50] ss:$0 sps:$4 sm:$0x11]  }
  0x75   : > { %5511 = vmatprep.subr.bf16.mxu1 %v6318_v28  ;;  %5623 = vmatprep.subr.bf16.mxu0 %v6320_v29  ;;  %v1129_v28 = vrot.slane %v1127_v15, 1  ;;  %v1778_v29 = vrot.slane %v6316_v56, 1  ;;  %v1113_v56 = vor.u32 %v1112_v11, %v1108_v16  ;;  %v1156_v3 = vshrl.u32 %v6761_v7, 16  ;;  %v7001_v32 = vld [vmem:[%s6597_s25 + $0x5c] ss:$0 sps:$4 sm:$0x11]  }
  0x76   : > { %v1786_v4 = vrot.slane %v6761_v7, 1  ;;  %v1192_v12 = vshrl.u32 %v6768_v10, 16  ;;  %v1795_v15 = vrot.slane %v6768_v10, 1  ;;  %v6978_v16 = vsel %vm1749_vm0, %v1774_v22, %v1775_v58  ;;  %v6342_v22 = vld [vmem:[%s8421_s2 + $0x1e8] sm:$0xff]  }
  0x77   : > { %1597 = vmatmul.mubr.bf16.gmra.mrb[36].mxu1 %v6858_v36  ;;  %2048 = vmatmul.mubr.bf16.gmra.mrb[36].mxu0 %v6861_v37  ;;  %8534 = vst [vmem:[#allocation15_spill] sm:$0xff] %v6978_v16  ;;  %v1182_v18 = vshll.u32 %v6792_v26, 16  ;;  %v1180_v11 = vshrl.u32 %v6792_v26, 16  ;;  %v1790_v31 = vrot.slane %v6324_v63, 1 }
  0x78   : > { %1604 = vmatprep.mubr.bf16.mxu1 %v6866_v42  ;;  %2055 = vmatprep.mubr.bf16.mxu0 %v6869_v38  ;;  %v7031_v58 = vld [vmem:[%s6582_s14 + $0x68] ss:$0 sps:$4 sm:$0x11]  }
  0x79   : > { %5512 = vmatpush3.bf16.msra.mxu1 %v6319_v45  ;;  %5624 = vmatpush3.bf16.msra.mxu0 %v6321_v41  ;;  %v6335_v45 = vld [vmem:[%s8421_s2 + $0x1a0] sm:$0xff]   ;;  %v6938_v41 = vsel %vm1010_vm1, %v1089_v20, %v1093_v49  ;;  %v1175_v49 = vshll.u32 %v6324_v63, 16 }
  0x7a   : > { %5513 = vmatprep.subr.bf16.mxu1 %v6326_v50  ;;  %5625 = vmatprep.subr.bf16.mxu0 %v6328_v51  ;;  %8529 = vst [vmem:[#allocation10_spill] sm:$0xff] %v6938_v41  ;;  %v6950_v50 = vsel %vm1010_vm1, %v1125_v27, %v1129_v28  ;;  %v6953_v51 = vsel %vm1749_vm0, %v1777_v33, %v1778_v29  ;;  %v1781_v27 = vrot.slane %v6944_v47, 1  ;;  %v6343_v28 = vld [vmem:[%s8421_s2 + $0x1a8] sm:$0xff]  }
  0x7b   : > { %8531 = vst [vmem:[#allocation12_spill] sm:$0xff] %v6950_v50  ;;  %8532 = vst [vmem:[#allocation13_spill] sm:$0xff] %v6953_v51  ;;  %v6975_v33 = vsel %vm1010_vm1, %v1113_v56, %v1117_v1  ;;  %v1137_v29 = vor.u32 %v1136_v54, %v1132_v35  ;;  %v7011_v35 = vld [vmem:[%s6582_s14 + $0x60] sm:$0xff]   ;;  %v7027_v56 = vsel %vm1749_vm0, %v1789_v52, %v1790_v31  ;;  %v1187_v1 = vshll.u32 %v7001_v32, 16 }
  0x7c   : > { %8533 = vst [vmem:[#allocation14_spill] sm:$0xff] %v6975_v33  ;;  %v1218_v54 = vshll.u32 %v7011_v35, 16  ;;  %8539 = vst [vmem:[#allocation20_spill] sm:$0xff] %v7027_v56  ;;  %v7065_v31 = vld [vmem:[%s6597_s25 + $0x74] ss:$0 sps:$4 sm:$0x11]  }
  0x7d   : > { %5514 = vmatpush3.bf16.msra.mxu1 %v6327_v60  ;;  %5626 = vmatpush3.bf16.msra.mxu0 %v6329_v61  ;;  %v1149_v60 = vor.u32 %v1148_v34, %v1144_v25  ;;  %v1153_v61 = vrot.slane %v1151_v19, 1  ;;  %v1141_v25 = vrot.slane %v1139_v0, 1  ;;  %v1163_v34 = vshll.u32 %v6970_v6, 16 }
  0x7e   : > { %5515 = vmatprep.subr.bf16.mxu1 %v6334_v2  ;;  %5627 = vmatprep.subr.bf16.mxu0 %v6336_v48  ;;  %v1172_v2 = vrot.slane %v1170_v44, 1  ;;  %v1184_v44 = vrot.slane %v1182_v18, 1  ;;  %v1177_v48 = vrot.slane %v1175_v49, 1  ;;  %v1199_v19 = vshll.u32 %v6988_v23, 16 }
  0x7f   : > { %1605 = vmatmul.mubr.bf16.gmra.mrb[40].mxu1 %v6905_v30  ;;  %2056 = vmatmul.mubr.bf16.gmra.mrb[40].mxu0 %v6908_v5  ;;  %v6982_v20 = vsel %vm1010_vm1, %v1149_v60, %v1153_v61  ;;  %v1165_v24 = vrot.slane %v1163_v34, 1  ;;  %v1216_v60 = vshrl.u32 %v7011_v35, 16  ;;  %v7036_v61 = vld [vmem:[%s6597_s25 + $0x60] sm:$0xff]   ;;  %v1220_v52 = vrot.slane %v1218_v54, 1 }
  0x80   : > { %1612 = vmatprep.mubr.bf16.mxu1 %v6912_v46  ;;  %2063 = vmatprep.mubr.bf16.mxu0 %v6915_v9  ;;  %8535 = vst [vmem:[#allocation16_spill] sm:$0xff] %v6982_v20  ;;  %v1173_v47 = vor.u32 %v1172_v2, %v1168_v43  ;;  %v7024_v43 = vsel %vm1749_vm0, %v1780_v39, %v1781_v27  ;;  %v1206_v63 = vshll.u32 %v7036_v61, 16  ;;  %v1796_v39 = vrot.slane %v6988_v23, 1  ;;  %v7045_v2 = vld [vmem:[%s6597_s25 + $0x68] ss:$0 sps:$4 sm:$0x11]  }
  0x81   : > { %5516 = vmatpush3.bf16.msra.mxu1 %v6335_v45  ;;  %5628 = vmatpush3.bf16.msra.mxu0 %v6337_v55  ;;  %v6344_v45 = vld [vmem:[%s8421_s2 + $0x268] sm:$0xff]   ;;  %v7019_v55 = vsel %vm1010_vm1, %v1137_v29, %v1141_v25  ;;  %8538 = vst [vmem:[#allocation19_spill] sm:$0xff] %v7024_v43  ;;  %v1801_v0 = vrot.slane %v7011_v35, 1  ;;  %v1204_v26 = vshrl.u32 %v7036_v61, 16  ;;  %v1201_v6 = vrot.slane %v1199_v19, 1  ;;  %v6352_v19 = vld [vmem:[%s8421_s2 + $0x270] sm:$0xff]  }
  0x82   : > { %5517 = vmatprep.subr.bf16.mxu1 %v6342_v22  ;;  %5629 = vmatprep.subr.bf16.mxu0 %v6344_v45  ;;  %8537 = vst [vmem:[#allocation18_spill] sm:$0xff] %v7019_v55  ;;  %v7040_v62 = vsel %vm1010_vm1, %v1173_v47, %v1177_v48  ;;  %v1189_v18 = vrot.slane %v1187_v1, 1  ;;  %v1793_v49 = vrot.slane %v7001_v32, 1  ;;  %v1223_v23 = vshll.u32 %v7031_v58, 16  ;;  %v6360_v35 = vld [vmem:[%s8421_s2 + $0x278] sm:$0xff]  }
  0x83   : > { %8540 = vst [vmem:[#allocation21_spill] sm:$0xff] %v7040_v62  ;;  %v1161_v25 = vor.u32 %v1160_v8, %v1156_v3  ;;  %v1802_v27 = vrot.slane %v7031_v58, 1  ;;  %v7057_v22 = vrot.slane %v1206_v63, 1  ;;  %v7062_v29 = vld [vmem:[%s6582_s14 + $0x74] ss:$0 sps:$4 sm:$0x11]   ;;  %v1185_v32 = vor.u32 %v1184_v44, %v1180_v11 }
  0x84   : > { %v1211_v34 = vshll.u32 %v7045_v2, 16  ;;  %v7070_v47 = vld [vmem:[%s6582_s14 + $0x80] ss:$0 sps:$4 sm:$0x11]   ;;  %v6350_v3 = vld [vmem:[%s8421_s2 + $0x1f0] sm:$0xff]   ;;  %v7088_v48 = vsel %vm1749_vm0, %v1786_v4, %v1787_v40  ;;  %v7102_v1 = vsel %vm1749_vm0, %v1795_v15, %v1796_v39  ;;  %v1221_v7 = vor.u32 %v1220_v52, %v1216_v60 }
  0x85   : > { %5518 = vmatpush3.bf16.msra.mxu1 %v6343_v28  ;;  %5630 = vmatpush3.bf16.msra.mxu0 %v6345_v53  ;;  %v1197_v28 = vor.u32 %v1196_v17, %v1192_v12  ;;  %v6351_v8 = vld [vmem:[%s8421_s2 + $0x1b0] sm:$0xff]   ;;  %v1225_v12 = vrot.slane %v1223_v23, 1  ;;  %v7083_v44 = vsel %vm1010_vm1, %v1161_v25, %v1165_v24  ;;  %8542 = vst [vmem:[#allocation23_spill] sm:$0xff] %v7088_v48  ;;  %v7091_v54 = vld [vmem:[%s6597_s25 + $0x80] ss:$0 sps:$4 sm:$0x11]  }
  0x86   : > { %v7079_v17 = vld [vmem:[%s6582_s14 + $0x6c] sm:$0xff]   ;;  %8541 = vst [vmem:[#allocation22_spill] sm:$0xff] %v7083_v44  ;;  %5519 = vmatprep.subr.bf16.mxu1 %v6350_v3  ;;  %8544 = vst [vmem:[#allocation25_spill] sm:$0xff] %v7102_v1  ;;  %v1247_v4 = vshll.u32 %v7062_v29, 16  ;;  %v7109_v58 = vsel %vm1010_vm1, %v1185_v32, %v1189_v18  ;;  %v7112_v24 = vsel %vm1749_vm0, %v1792_v59, %v1793_v49  ;;  %v1235_v15 = vshll.u32 %v7065_v31, 16  ;;  %v7126_v59 = vld [vmem:[%s6582_s14 + $0x78] sm:$0xff]  }
  0x87   : > { %1613 = vmatmul.mubr.bf16.gmra.mrb[44].mxu1 %v6938_v41  ;;  %2064 = vmatmul.mubr.bf16.gmra.mrb[44].mxu0 %v6941_v57  ;;  %v1242_v11 = vshll.u32 %v7079_v17, 16  ;;  %v7097_v53 = vsel %vm1010_vm1, %v1197_v28, %v1201_v6  ;;  %v6353_v40 = vld [vmem:[%s8421_s2 + $0x230] sm:$0xff]   ;;  %8545 = vst [vmem:[#allocation26_spill] sm:$0xff] %v7109_v58  ;;  %8546 = vst [vmem:[#allocation27_spill] sm:$0xff] %v7112_v24  ;;  %v7121_v60 = vrot.slane %v1211_v34, 1  ;;  %v1240_v52 = vshrl.u32 %v7079_v17, 16 }
  0x88   : > { %1620 = vmatprep.mubr.bf16.mxu1 %v6950_v50  ;;  %2071 = vmatprep.mubr.bf16.mxu0 %v6953_v51  ;;  %8543 = vst [vmem:[#allocation24_spill] sm:$0xff] %v7097_v53  ;;  %v7115_v63 = vld [vmem:[%s6597_s25 + $0x6c] sm:$0xff]   ;;  %v1266_v6 = vshll.u32 %v7126_v59, 16  ;;  %v1807_v49 = vrot.slane %v7079_v17, 1  ;;  %v1271_v25 = vshll.u32 %v7070_v47, 16  ;;  %v1808_v28 = vrot.slane %v7062_v29, 1 }
  0x89   : > { %5520 = vmatpush3.bf16.msra.mxu1 %v6351_v8  ;;  %v1230_v10 = vshll.u32 %v7115_v63, 16  ;;  %5631 = vmatprep.subr.bf16.mxu0 %v6352_v19  ;;  %v1244_v18 = vrot.slane %v1242_v11, 1  ;;  %v7137_v34 = vld [vmem:[%s6597_s25 + $0x78] sm:$0xff]   ;;  %v1259_v8 = vshll.u32 %v7091_v54, 16  ;;  %v1249_v19 = vrot.slane %v1247_v4, 1 }
  0x8a   : > { %v1254_v3 = vshll.u32 %v7137_v34, 16  ;;  %5632 = vmatpush3.bf16.msra.mxu0 %v6353_v40  ;;  %v7141_v11 = vrot.slane %v1235_v15, 1  ;;  %v7147_v23 = vsel %vm1749_vm0, %v1801_v0, %v1802_v27  ;;  %v1264_v29 = vshrl.u32 %v7126_v59, 16  ;;  %v6358_v4 = vld [vmem:[%s8421_s2 + $0x1f8] sm:$0xff]  }
  0x8b   : > { %v1232_v45 = vrot.slane %v1230_v10, 1  ;;  %8547 = vst [vmem:[#allocation28_spill] sm:$0xff] %v7147_v23  ;;  %v1268_v32 = vrot.slane %v1266_v6, 1  ;;  %v7154_v40 = vrot.slane %v1271_v25, 1  ;;  %v6359_v27 = vld [vmem:[%s8421_s2 + $0x1b8] sm:$0xff]   ;;  %v7163_v15 = vsel %vm1010_vm1, %v1221_v7, %v1225_v12  ;;  %5521 = vmatprep.subr.bf16.mxu1 %v6358_v4  ;;  %v7182_v12 = vld [vmem:[%s6582_s14 + $0x84] sm:$0xff]   ;;  %5633 = vmatprep.subr.bf16.mxu0 %v6360_v35 }
  0x8c   : > { %8548 = vst [vmem:[#allocation29_spill] sm:$0xff] %v7163_v15  ;;  %v7165_v6 = vrot.slane %v1254_v3, 1  ;;  %v7167_v39 = vrot.slane %v1259_v8, 1  ;;  %v7174_v10 = vld [vmem:[%s6582_s14 + $0x8c] ss:$0 sps:$4 sm:$0x11]   ;;  %v1209_v4 = vor.u32 %v7057_v22, %v1204_v26  ;;  %v1245_v17 = vor.u32 %v1244_v18, %v1240_v52 }
  0x8d   : > { %5522 = vmatpush3.bf16.msra.mxu1 %v6359_v27  ;;  %v6361_v0 = vld [vmem:[%s8421_s2 + $0x238] sm:$0xff]   ;;  %v1290_v7 = vshll.u32 %v7182_v12, 16  ;;  %v7186_v3 = vld [vmem:[%s6597_s25 + $0x84] sm:$0xff]   ;;  %v7206_v22 = vld [vmem:[%s6582_s14 + $0x90] sm:$0xff]   ;;  %v8550_v35 = vrot.slane %v7045_v2, 1  ;;  %v8551_v25 = vrot.slane %v7036_v61, 1  ;;  %v7230_v26 = vsel %vm1749_vm0, %v1807_v49, %v1808_v28 }
  0x8e   : > { %v1278_v8 = vshll.u32 %v7186_v3, 16  ;;  %5634 = vmatpush3.bf16.msra.mxu0 %v6361_v0  ;;  %v1314_v52 = vshll.u32 %v7206_v22, 16  ;;  %v7211_v18 = vsel %vm1010_vm1, %v1209_v4, %v7121_v60  ;;  %v7221_v0 = vld [vmem:[%s6582_s14 + $0x98] ss:$0 sps:$4 sm:$0x11]   ;;  %8554 = vst [vmem:[#allocation33_spill] sm:$0xff] %v7230_v26 }
  0x8f   : > { %1621 = vmatmul.mubr.bf16.gmra.mrb[48].mxu1 %v6975_v33  ;;  %2072 = vmatmul.mubr.bf16.gmra.mrb[48].mxu0 %v6978_v16  ;;  %8549 = vst [vmem:[#allocation30_spill] sm:$0xff] %v7211_v18  ;;  %v7234_v2 = vld [vmem:[%s6597_s25 + $0x98] ss:$0 sps:$4 sm:$0x11]   ;;  %v8555_v49 = vshrl.u32 %v7115_v63, 16  ;;  %v7252_v4 = vld [vmem:[%s6597_s25 + $0x90] sm:$0xff]  }
  0x90   : > { %1628 = vmatprep.mubr.bf16.mxu1 %v6982_v20  ;;  %2079 = vmatprep.mubr.bf16.mxu0 %v6985_v21  ;;  %v7261_v27 = vld [vmem:[%s6582_s14 + $0xa4] ss:$0 sps:$4 sm:$0x11]   ;;  %v7321_v21 = vld [vmem:[%s6597_s25 + $0xb0] ss:$0 sps:$4 sm:$0x11]  }
  0x91   : > { %v1233_v28 = vor.u32 %v1232_v45, %v8555_v49  ;;  %v8569_v16 = vrot.slane %v7137_v34, 1  ;;  %v8572_v9 = vrot.slane %v7174_v10, 1  ;;  %v8573_v5 = vrot.slane %v7182_v12, 1 }
  0x92   : > { %v8580_v37 = vrot.slane %v7186_v3, 1  ;;  %v8584_v14 = vrot.slane %v7206_v22, 1 }
  0x97   : > { %1629 = vmatmul.mubr.bf16.gmra.mrb[52].mxu1 %v7019_v55  ;;  %2080 = vmatmul.mubr.bf16.gmra.mrb[52].mxu0 %v7024_v43  ;;  %v7202_v43 = vrot.slane %v1278_v8, 1  ;;  %v7227_v8 = vsel %vm1010_vm1, %v1245_v17, %v1249_v19  ;;  %v7240_v19 = vrot.slane %v1314_v52, 1  ;;  %v6366_v17 = vld [vmem:[%s8421_s2 + $0x340] sm:$0xff]   ;;  %v1302_v52 = vshll.u32 %v7252_v4, 16 }
  0x98   : > { %1636 = vmatprep.mubr.bf16.mxu1 %v7040_v62  ;;  %2087 = vmatprep.mubr.bf16.mxu0 %v7027_v56  ;;  %v1292_v56 = vrot.slane %v1290_v7, 1  ;;  %v6364_v7 = vld [vmem:[%s8421_s2 + $0x2c0] sm:$0xff]   ;;  %8553 = vst [vmem:[#allocation32_spill] sm:$0xff] %v7227_v8 }
  0x99   : > { %5731 = vmatprep.subr.bf16.mxu1 %v6364_v7  ;;  %5843 = vmatprep.subr.bf16.mxu0 %v6366_v17  ;;  %v8558_v7 = vrot.slane %v7115_v63, 1  ;;  %v7289_v63 = vrot.slane %v1302_v52, 1  ;;  %v7308_v52 = vld [vmem:[%s6597_s25 + $0x9c] sm:$0xff]  }
  0x9f   : > { %1637 = vmatmul.mubr.bf16.gmra.mrb[56].mxu1 %v7083_v44  ;;  %2088 = vmatmul.mubr.bf16.gmra.mrb[56].mxu0 %v7088_v48  ;;  %v7199_v48 = vld [vmem:[%s6597_s25 + $0x8c] ss:$0 sps:$4 sm:$0x11]  }
  0xa0   : > { %1644 = vmatprep.mubr.bf16.mxu1 %v7097_v53  ;;  %2095 = vmatprep.mubr.bf16.mxu0 %v7102_v1  ;;  %v1307_v1 = vshll.u32 %v7234_v2, 16 }
  0xa7   : > { %1645 = vmatmul.mubr.bf16.gmra.mrb[60].mxu1 %v7109_v58  ;;  %2096 = vmatmul.mubr.bf16.gmra.mrb[60].mxu0 %v7112_v24  ;;  %v1295_v24 = vshll.u32 %v7174_v10, 16 }
  0xa8   : > { %1652 = vmatprep.mubr.bf16.mxu1 %v7163_v15  ;;  %2103 = vmatprep.mubr.bf16.mxu0 %v7147_v23  ;;  %v7218_v23 = vsel %vm1749_vm0, %v8551_v25, %v8550_v35  ;;  %v1283_v25 = vshll.u32 %v7199_v48, 16  ;;  %v1269_v35 = vor.u32 %v1268_v32, %v1264_v29  ;;  %v7265_v32 = vsel %vm1010_vm1, %v1233_v28, %v7141_v11 }
  0xa9   : > { %8552 = vst [vmem:[#allocation31_spill] sm:$0xff] %v7218_v23  ;;  %v1297_v61 = vrot.slane %v1295_v24, 1  ;;  %v1319_v24 = vshll.u32 %v7221_v0, 16  ;;  %8556 = vst [vmem:[#allocation34_spill] sm:$0xff] %v7265_v32  ;;  %v8557_v29 = vrot.slane %v7065_v31, 1  ;;  %v8561_v11 = vrot.slane %v7070_v47, 1 }
  0xaa   : > { %v7255_v60 = vrot.slane %v1283_v25, 1  ;;  %v7280_v49 = vsel %vm1010_vm1, %v1269_v35, %v7154_v40  ;;  %v8562_v28 = vrot.slane %v7126_v59, 1  ;;  %v8564_v40 = vshrl.u32 %v7137_v34, 16 }
  0xab   : > { %v7272_v25 = vsel %vm1749_vm0, %v8558_v7, %v8557_v29  ;;  %8560 = vst [vmem:[#allocation36_spill] sm:$0xff] %v7280_v49  ;;  %v7293_v7 = vld [vmem:[%s6597_s25 + $0xa4] ss:$0 sps:$4 sm:$0x11]   ;;  %v7295_v29 = vrot.slane %v1307_v1, 1  ;;  %v1343_v59 = vshll.u32 %v7261_v27, 16 }
  0xac   : > { %8559 = vst [vmem:[#allocation35_spill] sm:$0xff] %v7272_v25  ;;  %v7287_v31 = vsel %vm1749_vm0, %v8562_v28, %v8561_v11  ;;  %v1257_v1 = vor.u32 %v7165_v6, %v8564_v40  ;;  %v1326_v11 = vshll.u32 %v7308_v52, 16  ;;  %v7312_v28 = vld [vmem:[%s6582_s14 + $0xb0] ss:$0 sps:$4 sm:$0x11]   ;;  %v1324_v47 = vshrl.u32 %v7308_v52, 16 }
  0xad   : > { %8563 = vst [vmem:[#allocation37_spill] sm:$0xff] %v7287_v31  ;;  %v1331_v6 = vshll.u32 %v7293_v7, 16  ;;  %v1829_v34 = vrot.slane %v7293_v7, 1  ;;  %v8577_v7 = vshrl.u32 %v7206_v22, 16 }
  0xaf   : > { %1653 = vmatmul.mubr.bf16.gmra.mrb[64].mxu1 %v7211_v18  ;;  %2104 = vmatmul.mubr.bf16.gmra.mrb[64].mxu0 %v7218_v23  ;;  %v7275_v23 = vld [vmem:[%s6582_s14 + $0x9c] sm:$0xff]  }
  0xb0   : > { %1660 = vmatprep.mubr.bf16.mxu1 %v7227_v8  ;;  %2111 = vmatprep.mubr.bf16.mxu0 %v7230_v26  ;;  %v1321_v26 = vrot.slane %v1319_v24, 1  ;;  %v1338_v17 = vshll.u32 %v7275_v23, 16  ;;  %v8565_v24 = vshrl.u32 %v7182_v12, 16  ;;  %v7359_v12 = vld [vmem:[%s6597_s25 + $0xa8] sm:$0xff]  }
  0xb1   : > { %8576 = vst [vmem:[#allocation43_spill] sm:$0xff] %v7359_v12 }
  0xb2   : > { %v1340_v35 = vrot.slane %v1338_v17, 1  ;;  %v1293_v45 = vor.u32 %v1292_v56, %v8565_v24  ;;  %v7325_v17 = vld [vmem:[%s6582_s14 + $0xa8] sm:$0xff]   ;;  %v7330_v56 = vsel %vm1010_vm1, %v1257_v1, %v7167_v39  ;;  %v8568_v24 = vrot.slane %v7091_v54, 1 }
  0xb3   : > { %8566 = vst [vmem:[#allocation38_spill] sm:$0xff] %v7325_v17  ;;  %v1360_v40 = vshrl.u32 %v7325_v17, 16  ;;  %8567 = vst [vmem:[#allocation39_spill] sm:$0xff] %v7330_v56  ;;  %v1362_v51 = vshll.u32 %v7325_v17, 16  ;;  %v7348_v39 = vsel %vm1749_vm0, %v8573_v5, %v8572_v9  ;;  %v1345_v54 = vrot.slane %v1343_v59, 1 }
  0xb4   : > { %v7341_v57 = vsel %vm1010_vm1, %v1293_v45, %v1297_v61  ;;  %8574 = vst [vmem:[#allocation42_spill] sm:$0xff] %v7348_v39  ;;  %v1367_v1 = vshll.u32 %v7312_v28, 16  ;;  %v8575_v61 = vshrl.u32 %v7186_v3, 16  ;;  %v1333_v45 = vrot.slane %v1331_v6, 1 }
  0xb5   : > { %8571 = vst [vmem:[#allocation41_spill] sm:$0xff] %v7341_v57  ;;  %v1350_v5 = vshll.u32 %v7359_v12, 16  ;;  %v6362_v9 = vld [vmem:[%s6582_s14 + $0xbc] ss:$0 sps:$4 sm:$0x11]   ;;  %v1317_v59 = vor.u32 %v7240_v19, %v8577_v7  ;;  %v1348_v6 = vshrl.u32 %v7359_v12, 16 }
  0xb6   : > { %v1281_v10 = vor.u32 %v7202_v43, %v8575_v61  ;;  %v1838_v43 = vrot.slane %v7312_v28, 1  ;;  %v1369_v61 = vrot.slane %v1367_v1, 1  ;;  %v1835_v28 = vrot.slane %v7321_v21, 1 }
  0xb7   : > { %1661 = vmatmul.mubr.bf16.gmra.mrb[68].mxu1 %v7265_v32  ;;  %2112 = vmatmul.mubr.bf16.gmra.mrb[68].mxu0 %v7272_v25  ;;  %v1328_v25 = vrot.slane %v1326_v11, 1  ;;  %v1364_v11 = vrot.slane %v1362_v51, 1  ;;  %v1352_v19 = vrot.slane %v1350_v5, 1  ;;  %v7385_v7 = vsel %vm1010_vm1, %v1317_v59, %v1321_v26  ;;  %v7401_v26 = vld [vmem:[%s6597_s25 + $0xb4] sm:$0xff]  }
  0xb8   : > { %1668 = vmatprep.mubr.bf16.mxu1 %v7280_v49  ;;  %2119 = vmatprep.mubr.bf16.mxu0 %v7287_v31  ;;  %v1832_v31 = vrot.slane %v7261_v27, 1  ;;  %v7337_v27 = vsel %vm1749_vm0, %v8569_v16, %v8568_v24  ;;  %v1837_v16 = vrot.slane %v7325_v17, 1  ;;  %v1355_v24 = vshll.u32 %v7321_v21, 16  ;;  %8582 = vst [vmem:[#allocation46_spill] sm:$0xff] %v7385_v7 }
  0xb9   : > { %8570 = vst [vmem:[#allocation40_spill] sm:$0xff] %v7337_v27  ;;  %v7374_v38 = vsel %vm1010_vm1, %v1281_v10, %v7255_v60  ;;  %v8583_v1 = vrot.slane %v7221_v0, 1  ;;  %v1374_v0 = vshll.u32 %v7401_v26, 16  ;;  %v8588_v59 = vshrl.u32 %v7275_v23, 16 }
  0xba   : > { %8578 = vst [vmem:[#allocation44_spill] sm:$0xff] %v7374_v38  ;;  %v1357_v10 = vrot.slane %v1355_v24, 1  ;;  %v6363_v17 = vld [vmem:[%s6597_s25 + $0xbc] ss:$0 sps:$4 sm:$0x11]  }
  0xbb   : > { %v7392_v60 = vsel %vm1749_vm0, %v8584_v14, %v8583_v1  ;;  %v8587_v14 = vshrl.u32 %v7252_v4, 16  ;;  %v1341_v24 = vor.u32 %v1340_v35, %v8588_v59  ;;  %v1376_v59 = vrot.slane %v1374_v0, 1  ;;  %v7504_v0 = vld [vmem:[%s6582_s14 + $0x18] sm:$0xff]  }
  0xbc   : > { %8585 = vst [vmem:[#allocation47_spill] sm:$0xff] %v7392_v60 }
  0xbd   : > { %v1305_v5 = vor.u32 %v7289_v63, %v8587_v14  ;;  %v8594_v63 = vrot.slane %v7275_v23, 1 }
  0xbf   : > { %1669 = vmatmul.mubr.bf16.gmra.mrb[72].mxu1 %v7330_v56  ;;  %2120 = vmatmul.mubr.bf16.gmra.mrb[72].mxu0 %v7337_v27  ;;  %v1834_v27 = vrot.slane %v7359_v12, 1  ;;  %v7415_v1 = vsel %vm1010_vm1, %v1305_v5, %v7295_v29  ;;  %v8591_v12 = vrot.slane %v7252_v4, 1  ;;  %v7431_v14 = vsel %vm1749_vm0, %v8594_v63, %v1832_v31 }
  0xc0   : > { %1676 = vmatprep.mubr.bf16.mxu1 %v7341_v57  ;;  %2127 = vmatprep.mubr.bf16.mxu0 %v7348_v39  ;;  %v8579_v39 = vrot.slane %v7199_v48, 1  ;;  %v7395_v48 = vld [vmem:[%s6582_s14 + $0xb4] sm:$0xff]   ;;  %8589 = vst [vmem:[#allocation49_spill] sm:$0xff] %v7415_v1  ;;  %8595 = vst [vmem:[#allocation52_spill] sm:$0xff] %v7431_v14  ;;  %v1365_v29 = vor.u32 %v1364_v11, %v1360_v40 }
  0xc1   : > { %8586 = vst [vmem:[#allocation48_spill] sm:$0xff] %v7395_v48  ;;  %v1386_v3 = vshll.u32 %v7395_v48, 16  ;;  %v1843_v21 = vrot.slane %v7395_v48, 1 }
  0xc2   : > { %v7381_v51 = vsel %vm1749_vm0, %v8580_v37, %v8579_v39  ;;  %v1384_v37 = vshrl.u32 %v7395_v48, 16  ;;  %v1391_v39 = vshll.u32 %v6362_v9, 16  ;;  %v8590_v48 = vrot.slane %v7234_v2, 1 }
  0xc3   : > { %8581 = vst [vmem:[#allocation45_spill] sm:$0xff] %v7381_v51  ;;  %v1329_v2 = vor.u32 %v1328_v25, %v1324_v47  ;;  %v1388_v35 = vrot.slane %v1386_v3, 1  ;;  %v7450_v25 = vsel %vm1749_vm0, %v1837_v16, %v1838_v43  ;;  %v1353_v47 = vor.u32 %v1352_v19, %v1348_v6  ;;  %v6370_v3 = vld [vmem:[%s8421_s2 + $0x348] sm:$0xff]  }
  0xc4   : > { %v1393_v5 = vrot.slane %v1391_v39, 1  ;;  %8600 = vst [vmem:[#allocation56_spill] sm:$0xff] %v7450_v25  ;;  %v1841_v6 = vrot.slane %v6363_v17, 1  ;;  %v6453_v39 = vld [vmem:[%s6597_s25 + $0xc] sm:$0xff]  }
  0xc5   : > { %v7439_v31 = vsel %vm1010_vm1, %v1329_v2, %v1333_v45  ;;  %v1389_v40 = vor.u32 %v1388_v35, %v1384_v37  ;;  %v7457_v45 = vsel %vm1010_vm1, %v1353_v47, %v1357_v10  ;;  %v6365_v10 = vld [vmem:[%s8421_s2 + $0x280] sm:$0xff]   ;;  %v6368_v37 = vld [vmem:[%s8421_s2 + $0x2c8] sm:$0xff]   ;;  %v6374_v2 = vld [vmem:[%s8421_s2 + $0x350] sm:$0xff]  }
  0xc6   : > { %8596 = vst [vmem:[#allocation53_spill] sm:$0xff] %v7439_v31  ;;  %8601 = vst [vmem:[#allocation57_spill] sm:$0xff] %v7457_v45  ;;  %v6375_v35 = vld [vmem:[%s8421_s2 + $0x310] sm:$0xff]   ;;  %v6380_v47 = vld [vmem:[%s8421_s2 + $0x2e0] sm:$0xff]  }
  0xc7   : > { %1677 = vmatmul.mubr.bf16.gmra.mrb[76].mxu1 %v7374_v38  ;;  %2128 = vmatmul.mubr.bf16.gmra.mrb[76].mxu0 %v7381_v51  ;;  %v7422_v51 = vsel %vm1749_vm0, %v8591_v12, %v8590_v48  ;;  %v1844_v12 = vrot.slane %v6362_v9, 1  ;;  %v1379_v48 = vshll.u32 %v6363_v17, 16  ;;  %v7463_v16 = vsel %vm1010_vm1, %v1389_v40, %v1393_v5  ;;  %v6367_v17 = vld [vmem:[%s8421_s2 + $0x300] sm:$0xff]  }
  0xc8   : > { %1684 = vmatprep.mubr.bf16.mxu1 %v7385_v7  ;;  %2135 = vmatprep.mubr.bf16.mxu0 %v7392_v60  ;;  %8592 = vst [vmem:[#allocation50_spill] sm:$0xff] %v7422_v51  ;;  %v7426_v60 = vsel %vm1010_vm1, %v1341_v24, %v1345_v54  ;;  %v1372_v54 = vshrl.u32 %v7401_v26, 16  ;;  %v8597_v24 = vrot.slane %v7308_v52, 1  ;;  %8603 = vst [vmem:[#allocation59_spill] sm:$0xff] %v7463_v16  ;;  %v7532_v5 = vld [vmem:[%s6582_s14 + $0x24] sm:$0xff]  }
  0xc9   : > { %8593 = vst [vmem:[#allocation51_spill] sm:$0xff] %v7426_v60  ;;  %v7466_v9 = vsel %vm1749_vm0, %v1843_v21, %v1844_v12  ;;  %v1381_v43 = vrot.slane %v1379_v48, 1  ;;  %v6371_v21 = vld [vmem:[%s8421_s2 + $0x308] sm:$0xff]   ;;  %v6376_v12 = vld [vmem:[%s8421_s2 + $0x2d8] sm:$0xff]   ;;  %v6382_v40 = vld [vmem:[%s8421_s2 + $0x360] sm:$0xff]  }
  0xca   : > { %v7444_v63 = vsel %vm1749_vm0, %v8597_v24, %v1829_v34  ;;  %v7460_v34 = vsel %vm1749_vm0, %v1834_v27, %v1835_v28  ;;  %8604 = vst [vmem:[#allocation60_spill] sm:$0xff] %v7466_v9  ;;  %v1377_v11 = vor.u32 %v1376_v59, %v1372_v54  ;;  %v1840_v27 = vrot.slane %v7401_v26, 1  ;;  %v6452_v28 = vld [vmem:[%s6582_s14 + $0xc] sm:$0xff]   ;;  %v6378_v54 = vld [vmem:[%s8421_s2 + $0x358] sm:$0xff]  }
  0xcb   : > { %8598 = vst [vmem:[#allocation54_spill] sm:$0xff] %v7444_v63  ;;  %8602 = vst [vmem:[#allocation58_spill] sm:$0xff] %v7460_v34  ;;  %v7527_v48 = vld [vmem:[%s6597_s25 + $0x18] sm:$0xff]  }
  0xcc   : > { %v7477_v19 = vsel %vm1749_vm0, %v1840_v27, %v1841_v6  ;;  %v6377_v59 = vld [vmem:[%s8421_s2 + $0x298] sm:$0xff]   ;;  %v6384_v27 = vld [vmem:[%s8421_s2 + $0x2e8] sm:$0xff]  }
  0xcd   : > { %8606 = vst [vmem:[#allocation62_spill] sm:$0xff] %v7477_v19  ;;  %v6379_v24 = vld [vmem:[%s8421_s2 + $0x318] sm:$0xff]   ;;  %v6386_v6 = vld [vmem:[%s8421_s2 + $0x368] sm:$0xff]  }
  0xcf   : > { %1685 = vmatmul.mubr.bf16.gmra.mrb[80].mxu1 %v7415_v1  ;;  %2136 = vmatmul.mubr.bf16.gmra.mrb[80].mxu0 %v7422_v51  ;;  %v7447_v51 = vsel %vm1010_vm1, %v1365_v29, %v1369_v61  ;;  %v7474_v61 = vsel %vm1010_vm1, %v1377_v11, %v1381_v43  ;;  %v6373_v29 = vld [vmem:[%s8421_s2 + $0x290] sm:$0xff]   ;;  %v6381_v11 = vld [vmem:[%s8421_s2 + $0x2a0] sm:$0xff]  }
  0xd0   : > { %1692 = vmatprep.mubr.bf16.mxu1 %v7426_v60  ;;  %2143 = vmatprep.mubr.bf16.mxu0 %v7431_v14  ;;  %8599 = vst [vmem:[#allocation55_spill] sm:$0xff] %v7447_v51  ;;  %8605 = vst [vmem:[#allocation61_spill] sm:$0xff] %v7474_v61  ;;  %v6383_v43 = vld [vmem:[%s8421_s2 + $0x320] sm:$0xff]  }
  0xd7   : > { %1693 = vmatmul.mubr.bf16.gmra.mrb[84].mxu1 %v7439_v31  ;;  %2144 = vmatmul.mubr.bf16.gmra.mrb[84].mxu0 %v7444_v63 }
  0xd8   : > { %1700 = vmatprep.mubr.bf16.mxu1 %v7447_v51  ;;  %2151 = vmatprep.mubr.bf16.mxu0 %v7450_v25 }
  0xdf   : > { %1701 = vmatmul.mubr.bf16.gmra.mrb[88].mxu1 %v7457_v45  ;;  %2152 = vmatmul.mubr.bf16.gmra.mrb[88].mxu0 %v7460_v34  ;;  %v7684_v34 = vld [vmem:[%s6582_s14 + $0x60] sm:$0xff]  }
  0xe0   : > { %1708 = vmatprep.mubr.bf16.mxu1 %v7463_v16  ;;  %2159 = vmatprep.mubr.bf16.mxu0 %v7466_v9 }
  0xe7   : > { %1709 = vmatmul.mubr.bf16.gmra.mrb[92].mxu1 %v7474_v61  ;;  %2160 = vmatmul.mubr.bf16.gmra.mrb[92].mxu0 %v7477_v19 }
  0xe8   : > { %2361 = vmatprep.mubr.bf16.mxu1 %v6452_v28  ;;  %2709 = vmatprep.mubr.bf16.mxu0 %v6827_v13  ;;  %v6369_v13 = vld [vmem:[%s8421_s2 + $0x288] sm:$0xff]  }
  0xe9   : > { %v7561_v28 = vld [vmem:[%s6597_s25 + $0x24] sm:$0xff]  }
  0xef   : > { %2362 = vmatmul.mubr.bf16.vlgmr.msra.gmra.mrb[96].mxu1 %v6453_v39  ;;  %2710 = vmatmul.mubr.bf16.vlgmr.msra.gmra.mrb[96].mxu0 %v6858_v36  ;;  %v6372_v36 = vld [vmem:[%s8421_s2 + $0x2d0] sm:$0xff]  }
  0xf0   : > { %5732 = vmatpush3.bf16.msra.mxu1 %v6365_v10  ;;  %5844 = vmatpush3.bf16.msra.mxu0 %v6367_v17  ;;  %v7566_v10 = vld [vmem:[%s6582_s14 + $0x30] sm:$0xff]   ;;  %v6385_v17 = vld [vmem:[%s8421_s2 + $0x2a8] sm:$0xff]  }
  0xf1   : > { %2369 = vmatprep.mubr.bf16.mxu1 %v7504_v0  ;;  %2717 = vmatprep.mubr.bf16.mxu0 %v6866_v42 }
  0xf2   : > { %5733 = vmatprep.subr.bf16.mxu1 %v6368_v37  ;;  %5845 = vmatprep.subr.bf16.mxu0 %v6370_v3  ;;  %v6387_v37 = vld [vmem:[%s8421_s2 + $0x328] sm:$0xff]  }
  0xf4   : > { %5734 = vmatpush3.bf16.msra.mxu1 %v6369_v13  ;;  %5846 = vmatpush3.bf16.msra.mxu0 %v6371_v21  ;;  %v6388_v13 = vld [vmem:[%s8421_s2 + $0x2f0] sm:$0xff]  }
  0xf5   : > { %5735 = vmatprep.subr.bf16.mxu1 %v6372_v36  ;;  %5847 = vmatprep.subr.bf16.mxu0 %v6374_v2  ;;  %v6390_v21 = vld [vmem:[%s8421_s2 + $0x370] sm:$0xff]  }
  0xf7   : > { %2370 = vmatmul.mubr.bf16.gmra.mrb[100].mxu1 %v7527_v48  ;;  %2718 = vmatmul.mubr.bf16.gmra.mrb[100].mxu0 %v6905_v30  ;;  %v7664_v30 = vld [vmem:[%s6582_s14 + $0x54] sm:$0xff]  }
  0xf8   : > { %2377 = vmatprep.mubr.bf16.mxu1 %v7532_v5  ;;  %2725 = vmatprep.mubr.bf16.mxu0 %v6912_v46 }
  0xf9   : > { %5736 = vmatpush3.bf16.msra.mxu1 %v6373_v29  ;;  %5848 = vmatpush3.bf16.msra.mxu0 %v6375_v35 }
  0xfa   : > { %5737 = vmatprep.subr.bf16.mxu1 %v6376_v12  ;;  %5849 = vmatprep.subr.bf16.mxu0 %v6378_v54 }
  0xfd   : > { %5738 = vmatpush3.bf16.msra.mxu1 %v6377_v59  ;;  %5850 = vmatpush3.bf16.msra.mxu0 %v6379_v24  ;;  %v7587_v59 = vld [vmem:[%s8422_s3] ss:$0 sm:$0xff] }
  0xfe   : > { %5739 = vmatprep.subr.bf16.mxu1 %v6380_v47  ;;  %5851 = vmatprep.subr.bf16.mxu0 %v6382_v40  ;;  %v6389_v40 = vld [vmem:[%s8421_s2 + $0x2b0] sm:$0xff]  }
  0xff   : > { %2378 = vmatmul.mubr.bf16.gmra.mrb[104].mxu1 %v7561_v28  ;;  %2726 = vmatmul.mubr.bf16.gmra.mrb[104].mxu0 %v6938_v41  ;;  %v7636_v41 = vld [vmem:[%s6597_s25 + $0x3c] sm:$0xff]  }
 0x100   : > { %2385 = vmatprep.mubr.bf16.mxu1 %v7566_v10  ;;  %2733 = vmatprep.mubr.bf16.mxu0 %v6950_v50 }
 0x101   : > { %5740 = vmatpush3.bf16.msra.mxu1 %v6381_v11  ;;  %5852 = vmatpush3.bf16.msra.mxu0 %v6383_v43  ;;  %v6391_v11 = vld [vmem:[%s8421_s2 + $0x330] sm:$0xff]  }
 0x102   : > { %v5187_v3 = vpop.f32.mrb[0].mxu0  ;;  %v5235_v39 = vpop.f32.mrb[0].mxu1  ;;  %5741 = vmatprep.subr.bf16.mxu1 %v6384_v27  ;;  %5853 = vmatprep.subr.bf16.mxu0 %v6386_v6  ;;  %v6392_v6 = vld [vmem:[%s8421_s2 + $0x2f8] sm:$0xff]  }
 0x103   : > { %v5188_v36 = vpop.f32.mrb[1].mxu0  ;;  %v5236_v2 = vpop.f32.mrb[1].mxu1 }
 0x104   : > { %v7582_v29 = vadd.f32 %v5188_v36, %v5187_v3  ;;  %v5237_v35 = vadd.f32 %v5236_v2, %v5235_v39  ;;  %v5190_v12 = vpop.f32.mrb[2].mxu0  ;;  %v5238_v54 = vpop.f32.mrb[2].mxu1  ;;  %v7612_v39 = vld [vmem:[%s6582_s14 + $0x3c] sm:$0xff]  }
 0x105   : > { %v5191_v24 = vpop.f32.mrb[3].mxu0  ;;  %v5239_v47 = vpop.f32.mrb[3].mxu1  ;;  %5742 = vmatpush3.bf16.msra.mxu1 %v6385_v17  ;;  %5854 = vmatpush3.bf16.msra.mxu0 %v6387_v37  ;;  %v6394_v17 = vld [vmem:[%s8421_s2 + $0x378] sm:$0xff]   ;;  %v7604_v37 = vld [vmem:[%s6597_s25 + $0x30] sm:$0xff]  }
 0x106   : > { %v7595_v43 = vadd.f32 %v5191_v24, %v5190_v12  ;;  %v5240_v27 = vadd.f32 %v5239_v47, %v5238_v54  ;;  %5743 = vmatprep.subr.bf16.mxu1 %v6388_v13  ;;  %5855 = vmatprep.subr.bf16.mxu0 %v6390_v21  ;;  %v7609_v3 = vadd.f32 %v5237_v35, %v7587_v59  ;;  %v6393_v21 = vld [vmem:[%s8421_s2 + $0x2b8] sm:$0xff]   ;;  %v6400_v12 = vld [vmem:[%s8421_s2 + $0x3c0] sm:$0xff]  }
 0x107   : > { %2386 = vmatmul.mubr.bf16.gmra.mrb[108].mxu1 %v7604_v37  ;;  %2734 = vmatmul.mubr.bf16.gmra.mrb[108].mxu0 %v6975_v33  ;;  %v6395_v36 = vld [vmem:[%s8421_s2 + $0x338] sm:$0xff]   ;;  %v6402_v54 = vld [vmem:[%s8421_s2 + $0x440] sm:$0xff]  }
 0x108   : > { %2393 = vmatprep.mubr.bf16.mxu1 %v7612_v39  ;;  %2741 = vmatprep.mubr.bf16.mxu0 %v6982_v20  ;;  %v7617_v13 = vadd.f32 %v5240_v27, %v7587_v59 }
 0x109   : > { %5744 = vmatpush3.bf16.msra.mxu1 %v6389_v40  ;;  %5856 = vmatpush3.bf16.msra.mxu0 %v6391_v11 }
 0x10a   : > { %v5193_v2 = vpop.f32.mrb[4].mxu0  ;;  %v5241_v35 = vpop.f32.mrb[4].mxu1  ;;  %5745 = vmatprep.subr.bf16.mxu1 %v6392_v6  ;;  %5857 = vmatprep.subr.bf16.mxu0 %v6394_v17 }
 0x10b   : > { %v5194_v24 = vpop.f32.mrb[5].mxu0  ;;  %v5242_v47 = vpop.f32.mrb[5].mxu1 }
 0x10c   : > { %v7631_v40 = vadd.f32 %v5194_v24, %v5193_v2  ;;  %v5243_v11 = vadd.f32 %v5242_v47, %v5241_v35  ;;  %v5196_v27 = vpop.f32.mrb[6].mxu0  ;;  %v5244_v20 = vpop.f32.mrb[6].mxu1  ;;  %v7644_v35 = vld [vmem:[%s6582_s14 + $0x48] sm:$0xff]  }
 0x10d   : > { %v5197_v33 = vpop.f32.mrb[7].mxu0  ;;  %v5245_v6 = vpop.f32.mrb[7].mxu1  ;;  %5746 = vmatpush3.bf16.msra.mxu1 %v6393_v21  ;;  %5858 = vmatpush3.bf16.msra.mxu0 %v6395_v36 }
 0x10e   : > { %v7633_v17 = vadd.f32 %v5197_v33, %v5196_v27  ;;  %v5246_v50 = vadd.f32 %v5245_v6, %v5244_v20  ;;  %5955 = vmatprep.subr.bf16.mxu1 %v6400_v12  ;;  %6067 = vmatprep.subr.bf16.mxu0 %v6402_v54  ;;  %v7641_v2 = vadd.f32 %v5243_v11, %v7587_v59 }
 0x10f   : > { %2394 = vmatmul.mubr.bf16.gmra.mrb[112].mxu1 %v7636_v41  ;;  %2742 = vmatmul.mubr.bf16.gmra.mrb[112].mxu0 %v7019_v55 }
 0x110   : > { %2401 = vmatprep.mubr.bf16.mxu1 %v7644_v35  ;;  %2749 = vmatprep.mubr.bf16.mxu0 %v7040_v62  ;;  %v7649_v33 = vadd.f32 %v5246_v50, %v7587_v59  ;;  %v7659_v50 = vld [vmem:[%s6597_s25 + $0x48] sm:$0xff]  }
 0x112   : > { %v5199_v20 = vpop.f32.mrb[8].mxu0  ;;  %v5247_v21 = vpop.f32.mrb[8].mxu1 }
 0x113   : > { %v5200_v36 = vpop.f32.mrb[9].mxu0  ;;  %v5248_v12 = vpop.f32.mrb[9].mxu1 }
 0x114   : > { %v7651_v54 = vadd.f32 %v5200_v36, %v5199_v20  ;;  %v5249_v24 = vadd.f32 %v5248_v12, %v5247_v21  ;;  %v5202_v47 = vpop.f32.mrb[10].mxu0  ;;  %v5250_v11 = vpop.f32.mrb[10].mxu1 }
 0x115   : > { %v5203_v27 = vpop.f32.mrb[11].mxu0  ;;  %v5251_v6 = vpop.f32.mrb[11].mxu1 }
 0x116   : > { %v7653_v55 = vadd.f32 %v5203_v27, %v5202_v47  ;;  %v5252_v46 = vadd.f32 %v5251_v6, %v5250_v11  ;;  %v7656_v62 = vadd.f32 %v5249_v24, %v7587_v59 }
 0x117   : > { %2402 = vmatmul.mubr.bf16.gmra.mrb[116].mxu1 %v7659_v50  ;;  %2750 = vmatmul.mubr.bf16.gmra.mrb[116].mxu0 %v7083_v44 }
 0x118   : > { %2409 = vmatprep.mubr.bf16.mxu1 %v7664_v30  ;;  %2757 = vmatprep.mubr.bf16.mxu0 %v7097_v53  ;;  %v7669_v20 = vadd.f32 %v5252_v46, %v7587_v59  ;;  %v7679_v46 = vld [vmem:[%s6597_s25 + $0x54] sm:$0xff]  }
 0x11a   : > { %v5205_v21 = vpop.f32.mrb[12].mxu0  ;;  %v5253_v36 = vpop.f32.mrb[12].mxu1 }
 0x11b   : > { %v5206_v12 = vpop.f32.mrb[13].mxu0  ;;  %v5254_v24 = vpop.f32.mrb[13].mxu1 }
 0x11c   : > { %v7671_v47 = vadd.f32 %v5206_v12, %v5205_v21  ;;  %v5255_v11 = vadd.f32 %v5254_v24, %v5253_v36  ;;  %v5208_v27 = vpop.f32.mrb[14].mxu0  ;;  %v5256_v6 = vpop.f32.mrb[14].mxu1 }
 0x11d   : > { %v5209_v44 = vpop.f32.mrb[15].mxu0  ;;  %v5257_v42 = vpop.f32.mrb[15].mxu1 }
 0x11e   : > { %v7673_v19 = vadd.f32 %v5209_v44, %v5208_v27  ;;  %v5258_v9 = vadd.f32 %v5257_v42, %v5256_v6  ;;  %v7676_v53 = vadd.f32 %v5255_v11, %v7587_v59 }
 0x11f   : > { %2410 = vmatmul.mubr.bf16.gmra.mrb[120].mxu1 %v7679_v46  ;;  %2758 = vmatmul.mubr.bf16.gmra.mrb[120].mxu0 %v7109_v58 }
 0x120   : > { %8607 = vst [vmem:[#allocation63_spill] sm:$0xff] %v7676_v53  ;;  %2417 = vmatprep.mubr.bf16.mxu1 %v7684_v34  ;;  %2765 = vmatprep.mubr.bf16.mxu0 %v7163_v15  ;;  %v7689_v44 = vadd.f32 %v5258_v9, %v7587_v59  ;;  %v7699_v9 = vld [vmem:[%s6597_s25 + $0x60] sm:$0xff]  }
 0x121   : > { %8610 = vst [vmem:[#allocation66_spill] sm:$0xff] %v7699_v9 }
 0x122   : > { %8608 = vst [vmem:[#allocation64_spill] sm:$0xff] %v7689_v44  ;;  %v5211_v42 = vpop.f32.mrb[16].mxu0  ;;  %v5259_v21 = vpop.f32.mrb[16].mxu1  ;;  %v7704_v44 = vld [vmem:[%s6582_s14 + $0x6c] sm:$0xff]  }
 0x123   : > { %v5212_v36 = vpop.f32.mrb[17].mxu0  ;;  %v5260_v12 = vpop.f32.mrb[17].mxu1  ;;  %8611 = vst [vmem:[#allocation67_spill] sm:$0xff] %v7704_v44 }
 0x124   : > { %v7691_v24 = vadd.f32 %v5212_v36, %v5211_v42  ;;  %v5261_v11 = vadd.f32 %v5260_v12, %v5259_v21  ;;  %v5214_v27 = vpop.f32.mrb[18].mxu0  ;;  %v5262_v6 = vpop.f32.mrb[18].mxu1 }
 0x125   : > { %v5215_v58 = vpop.f32.mrb[19].mxu0  ;;  %v5263_v25 = vpop.f32.mrb[19].mxu1 }
 0x126   : > { %v7693_v63 = vadd.f32 %v5215_v58, %v5214_v27  ;;  %v5264_v14 = vadd.f32 %v5263_v25, %v5262_v6  ;;  %v7696_v15 = vadd.f32 %v5261_v11, %v7587_v59 }
 0x127   : > { %2418 = vmatmul.mubr.bf16.gmra.mrb[124].mxu1 %v7699_v9  ;;  %2766 = vmatmul.mubr.bf16.gmra.mrb[124].mxu0 %v7211_v18 }
 0x128   : > { %8609 = vst [vmem:[#allocation65_spill] sm:$0xff] %v7696_v15  ;;  %2425 = vmatprep.mubr.bf16.mxu1 %v7704_v44  ;;  %2773 = vmatprep.mubr.bf16.mxu0 %v7227_v8  ;;  %v7709_v58 = vadd.f32 %v5264_v14, %v7587_v59  ;;  %v7719_v14 = vld [vmem:[%s6597_s25 + $0x6c] sm:$0xff]  }
 0x129   : > { %8614 = vst [vmem:[#allocation70_spill] sm:$0xff] %v7719_v14 }
 0x12a   : > { %8612 = vst [vmem:[#allocation68_spill] sm:$0xff] %v7709_v58  ;;  %v5217_v25 = vpop.f32.mrb[20].mxu0  ;;  %v5265_v42 = vpop.f32.mrb[20].mxu1  ;;  %v7724_v58 = vld [vmem:[%s6582_s14 + $0x78] sm:$0xff]  }
 0x12b   : > { %v5218_v21 = vpop.f32.mrb[21].mxu0  ;;  %v5266_v36 = vpop.f32.mrb[21].mxu1  ;;  %8615 = vst [vmem:[#allocation71_spill] sm:$0xff] %v7724_v58 }
 0x12c   : > { %v7711_v12 = vadd.f32 %v5218_v21, %v5217_v25  ;;  %v5267_v11 = vadd.f32 %v5266_v36, %v5265_v42  ;;  %v5220_v27 = vpop.f32.mrb[22].mxu0  ;;  %v5268_v6 = vpop.f32.mrb[22].mxu1 }
 0x12d   : > { %v5221_v18 = vpop.f32.mrb[23].mxu0  ;;  %v5269_v15 = vpop.f32.mrb[23].mxu1 }
 0x12e   : > { %v7713_v9 = vadd.f32 %v5221_v18, %v5220_v27  ;;  %v5270_v44 = vadd.f32 %v5269_v15, %v5268_v6  ;;  %v7716_v8 = vadd.f32 %v5267_v11, %v7587_v59 }
 0x12f   : > { %2426 = vmatmul.mubr.bf16.gmra.mrb[128].mxu1 %v7719_v14  ;;  %2774 = vmatmul.mubr.bf16.gmra.mrb[128].mxu0 %v7265_v32 }
 0x130   : > { %8613 = vst [vmem:[#allocation69_spill] sm:$0xff] %v7716_v8  ;;  %2433 = vmatprep.mubr.bf16.mxu1 %v7724_v58  ;;  %2781 = vmatprep.mubr.bf16.mxu0 %v7280_v49  ;;  %v7729_v18 = vadd.f32 %v5270_v44, %v7587_v59  ;;  %v7739_v44 = vld [vmem:[%s6597_s25 + $0x78] sm:$0xff]  }
 0x131   : > { %8618 = vst [vmem:[#allocation74_spill] sm:$0xff] %v7739_v44 }
 0x132   : > { %8616 = vst [vmem:[#allocation72_spill] sm:$0xff] %v7729_v18  ;;  %v5223_v15 = vpop.f32.mrb[24].mxu0  ;;  %v5271_v25 = vpop.f32.mrb[24].mxu1  ;;  %v7744_v18 = vld [vmem:[%s6582_s14 + $0x84] sm:$0xff]  }
 0x133   : > { %v5224_v42 = vpop.f32.mrb[25].mxu0  ;;  %v5272_v21 = vpop.f32.mrb[25].mxu1  ;;  %8619 = vst [vmem:[#allocation75_spill] sm:$0xff] %v7744_v18 }
 0x134   : > { %v7731_v36 = vadd.f32 %v5224_v42, %v5223_v15  ;;  %v5273_v11 = vadd.f32 %v5272_v21, %v5271_v25  ;;  %v5226_v27 = vpop.f32.mrb[26].mxu0  ;;  %v5274_v6 = vpop.f32.mrb[26].mxu1 }
 0x135   : > { %v5227_v32 = vpop.f32.mrb[27].mxu0  ;;  %v5275_v8 = vpop.f32.mrb[27].mxu1 }
 0x136   : > { %v7733_v14 = vadd.f32 %v5227_v32, %v5226_v27  ;;  %v5276_v58 = vadd.f32 %v5275_v8, %v5274_v6  ;;  %v7736_v49 = vadd.f32 %v5273_v11, %v7587_v59 }
 0x137   : > { %2434 = vmatmul.mubr.bf16.gmra.mrb[132].mxu1 %v7739_v44  ;;  %2782 = vmatmul.mubr.bf16.gmra.mrb[132].mxu0 %v7330_v56 }
 0x138   : > { %8617 = vst [vmem:[#allocation73_spill] sm:$0xff] %v7736_v49  ;;  %2441 = vmatprep.mubr.bf16.mxu1 %v7744_v18  ;;  %2789 = vmatprep.mubr.bf16.mxu0 %v7341_v57  ;;  %v7749_v32 = vadd.f32 %v5276_v58, %v7587_v59  ;;  %v7759_v57 = vld [vmem:[%s6597_s25 + $0x84] sm:$0xff]  }
 0x13a   : > { %8620 = vst [vmem:[#allocation76_spill] sm:$0xff] %v7749_v32  ;;  %v5229_v8 = vpop.f32.mrb[28].mxu0  ;;  %v5277_v15 = vpop.f32.mrb[28].mxu1 }
 0x13b   : > { %v5230_v25 = vpop.f32.mrb[29].mxu0  ;;  %v5278_v42 = vpop.f32.mrb[29].mxu1 }
 0x13c   : > { %v7751_v21 = vadd.f32 %v5230_v25, %v5229_v8  ;;  %v5279_v11 = vadd.f32 %v5278_v42, %v5277_v15  ;;  %v5232_v27 = vpop.f32.mrb[30].mxu0  ;;  %v5280_v6 = vpop.f32.mrb[30].mxu1  ;;  %v978_v25 = vadd.f32 %v7582_v29, %v7587_v59 }
 0x13d   : > { %v5233_v56 = vpop.f32.mrb[31].mxu0  ;;  %v5281_v49 = vpop.f32.mrb[31].mxu1 }
 0x13e   : > { %v7753_v44 = vadd.f32 %v5233_v56, %v5232_v27  ;;  %v5282_v18 = vadd.f32 %v5281_v49, %v5280_v6  ;;  %v7756_v53 = vadd.f32 %v5279_v11, %v7587_v59 }
 0x13f   : > { %2442 = vmatmul.mubr.bf16.gmra.mrb[136].mxu1 %v7759_v57  ;;  %2790 = vmatmul.mubr.bf16.gmra.mrb[136].mxu0 %v7374_v38 }
 0x140   : > { %8621 = vst [vmem:[#allocation77_spill] sm:$0xff] %v7756_v53  ;;  %2449 = vmatprep.mubr.bf16.mxu1 %v7206_v22  ;;  %2797 = vmatprep.mubr.bf16.mxu0 %v7385_v7  ;;  %v7766_v58 = vadd.f32 %v5282_v18, %v7587_v59  ;;  %v979_v22 = vadd.f32 %v7595_v43, %v7587_v59 }
 0x142   : > { %8622 = vst [vmem:[#allocation78_spill] sm:$0xff] %v7766_v58  ;;  %v5299_v8 = vpop.f32.mrb[32].mxu1  ;;  %v5411_v56 = vpop.f32.mrb[32].mxu0 }
 0x143   : > { %v5300_v15 = vpop.f32.mrb[33].mxu1  ;;  %v5412_v49 = vpop.f32.mrb[33].mxu0 }
 0x144   : > { %v5301_v42 = vadd.f32 %v5300_v15, %v5299_v8  ;;  %v5413_v11 = vadd.f32 %v5412_v49, %v5411_v56  ;;  %v5302_v27 = vpop.f32.mrb[34].mxu1  ;;  %v5414_v6 = vpop.f32.mrb[34].mxu0 }
 0x145   : > { %v5303_v53 = vpop.f32.mrb[35].mxu1  ;;  %v5415_v38 = vpop.f32.mrb[35].mxu0 }
 0x146   : > { %v1717_v32 = vadd.f32 %v5301_v42, %v978_v25  ;;  %v5304_v7 = vadd.f32 %v5303_v53, %v5302_v27  ;;  %v5416_v18 = vadd.f32 %v5415_v38, %v5414_v6  ;;  %v980_v38 = vadd.f32 %v7631_v40, %v7587_v59 }
 0x147   : > { %2450 = vmatmul.mubr.bf16.gmra.mrb[140].mxu1 %v7252_v4  ;;  %2798 = vmatmul.mubr.bf16.gmra.mrb[140].mxu0 %v7415_v1  ;;  %v981_v27 = vadd.f32 %v7633_v17, %v7587_v59  ;;  %v8624_v1 = vld [vmem:[#allocation43_spill] sm:$0xff] }
 0x148   : > { %v7774_v58 = vadd.f32 %v5413_v11, %v1717_v32  ;;  %v1718_v29 = vadd.f32 %v5304_v7, %v979_v22  ;;  %2457 = vmatprep.mubr.bf16.mxu1 %v7275_v23  ;;  %2805 = vmatprep.mubr.bf16.mxu0 %v7426_v60  ;;  %v7783_v11 = vld [vmem:[%s6582_s14 + $0xc0] sm:$0xff]  }
 0x14a   : > { %v7778_v8 = vadd.f32 %v5416_v18, %v1718_v29  ;;  %v5305_v56 = vpop.f32.mrb[36].mxu1  ;;  %v5417_v15 = vpop.f32.mrb[36].mxu0  ;;  %v8623_v29 = vld [vmem:[#allocation38_spill] sm:$0xff] }
 0x14b   : > { %v5306_v49 = vpop.f32.mrb[37].mxu1  ;;  %v5418_v43 = vpop.f32.mrb[37].mxu0 }
 0x14c   : > { %v5307_v53 = vadd.f32 %v5306_v49, %v5305_v56  ;;  %v5419_v4 = vadd.f32 %v5418_v43, %v5417_v15  ;;  %v5308_v32 = vpop.f32.mrb[38].mxu1  ;;  %v5420_v25 = vpop.f32.mrb[38].mxu0  ;;  %v7794_v56 = vld [vmem:[%s6582_s14 + $0xc8] ss:$0 sps:$4 sm:$0x11]   ;;  %v2537_v15 = vshll.u32 %v7783_v11, 16 }
 0x14d   : > { %v5309_v42 = vpop.f32.mrb[39].mxu1  ;;  %v5421_v7 = vpop.f32.mrb[39].mxu0 }
 0x14e   : > { %v1719_v23 = vadd.f32 %v5307_v53, %v980_v38  ;;  %v5310_v6 = vadd.f32 %v5309_v42, %v5308_v32  ;;  %v5422_v22 = vadd.f32 %v5421_v7, %v5420_v25 }
 0x14f   : > { %2458 = vmatmul.mubr.bf16.gmra.mrb[144].mxu1 %v7308_v52  ;;  %2806 = vmatmul.mubr.bf16.gmra.mrb[144].mxu0 %v7439_v31  ;;  %v7800_v52 = vld [vmem:[%s6597_s25 + $0xc0] sm:$0xff]  }
 0x150   : > { %v7789_v40 = vadd.f32 %v5419_v4, %v1719_v23  ;;  %v1720_v18 = vadd.f32 %v5310_v6, %v981_v27  ;;  %2465 = vmatprep.mubr.bf16.mxu1 %v8623_v29  ;;  %2813 = vmatprep.mubr.bf16.mxu0 %v7447_v51  ;;  %v982_v4 = vadd.f32 %v7651_v54, %v7587_v59  ;;  %v2535_v6 = vshrl.u32 %v7783_v11, 16 }
 0x151   : > { %v983_v51 = vadd.f32 %v7653_v55, %v7587_v59  ;;  %v2525_v54 = vshll.u32 %v7800_v52, 16 }
 0x152   : > { %v7797_v49 = vadd.f32 %v5422_v22, %v1720_v18  ;;  %v5311_v17 = vpop.f32.mrb[40].mxu1  ;;  %v5423_v43 = vpop.f32.mrb[40].mxu0  ;;  %v2539_v22 = vrot.slane %v2537_v15, 1  ;;  %v2542_v18 = vshll.u32 %v7794_v56, 16 }
 0x153   : > { %v5312_v38 = vpop.f32.mrb[41].mxu1  ;;  %v5424_v53 = vpop.f32.mrb[41].mxu0  ;;  %v7816_v15 = vld [vmem:[%s6597_s25 + $0xc8] ss:$0 sps:$4 sm:$0x11]  }
 0x154   : > { %v5313_v32 = vadd.f32 %v5312_v38, %v5311_v17  ;;  %v5425_v25 = vadd.f32 %v5424_v53, %v5423_v43  ;;  %v5314_v42 = vpop.f32.mrb[42].mxu1  ;;  %v5426_v7 = vpop.f32.mrb[42].mxu0  ;;  %v8625_v38 = vld [vmem:[#allocation48_spill] sm:$0xff]  ;;  %v2540_v53 = vor.u32 %v2539_v22, %v2535_v6 }
 0x155   : > { %v5315_v23 = vpop.f32.mrb[43].mxu1  ;;  %v5427_v27 = vpop.f32.mrb[43].mxu0 }
 0x156   : > { %v1721_v29 = vadd.f32 %v5313_v32, %v982_v4  ;;  %v5316_v31 = vadd.f32 %v5315_v23, %v5314_v42  ;;  %v5428_v60 = vadd.f32 %v5427_v27, %v5426_v7  ;;  %v2544_v4 = vrot.slane %v2542_v18, 1 }
 0x157   : > { %2466 = vmatmul.mubr.bf16.gmra.mrb[148].mxu1 %v8624_v1  ;;  %2814 = vmatmul.mubr.bf16.gmra.mrb[148].mxu0 %v7457_v45  ;;  %v2523_v23 = vshrl.u32 %v7800_v52, 16  ;;  %v2527_v27 = vrot.slane %v2525_v54, 1 }
 0x158   : > { %v7811_v17 = vadd.f32 %v5425_v25, %v1721_v29  ;;  %v1722_v43 = vadd.f32 %v5316_v31, %v983_v51  ;;  %2473 = vmatprep.mubr.bf16.mxu1 %v8625_v38  ;;  %2821 = vmatprep.mubr.bf16.mxu0 %v7463_v16  ;;  %v984_v51 = vadd.f32 %v7671_v47, %v7587_v59  ;;  %v2530_v16 = vshll.u32 %v7816_v15, 16 }
 0x15a   : > { %v7818_v55 = vadd.f32 %v5428_v60, %v1722_v43  ;;  %v5317_v32 = vpop.f32.mrb[44].mxu1  ;;  %v5429_v42 = vpop.f32.mrb[44].mxu0  ;;  %v7825_v60 = vsel %vm1010_vm1, %v2540_v53, %v2544_v4  ;;  %v985_v43 = vadd.f32 %v7673_v19, %v7587_v59  ;;  %v2532_v53 = vrot.slane %v2530_v16, 1 }
 0x15b   : > { %v5318_v1 = vpop.f32.mrb[45].mxu1  ;;  %v5430_v7 = vpop.f32.mrb[45].mxu0  ;;  %8626 = vst [vmem:[#allocation38_spill] sm:$0xff] %v7825_v60  ;;  %v987_v16 = vadd.f32 %v7693_v63, %v7587_v59  ;;  %v988_v63 = vadd.f32 %v7711_v12, %v7587_v59 }
 0x15c   : > { %v5319_v31 = vadd.f32 %v5318_v1, %v5317_v32  ;;  %v5431_v25 = vadd.f32 %v5430_v7, %v5429_v42  ;;  %v5320_v29 = vpop.f32.mrb[46].mxu1  ;;  %v5432_v38 = vpop.f32.mrb[46].mxu0  ;;  %v2528_v42 = vor.u32 %v2527_v27, %v2523_v23 }
 0x15d   : > { %v5321_v6 = vpop.f32.mrb[47].mxu1  ;;  %v5433_v22 = vpop.f32.mrb[47].mxu0 }
 0x15e   : > { %v1723_v18 = vadd.f32 %v5319_v31, %v984_v51  ;;  %v5322_v45 = vadd.f32 %v5321_v6, %v5320_v29  ;;  %v5434_v54 = vadd.f32 %v5433_v22, %v5432_v38 }
 0x15f   : > { %2474 = vmatmul.mubr.bf16.gmra.mrb[152].mxu1 %v7401_v26  ;;  %2822 = vmatmul.mubr.bf16.gmra.mrb[152].mxu0 %v7474_v61  ;;  %v986_v26 = vadd.f32 %v7691_v24, %v7587_v59 }
 0x160   : > { %v7831_v47 = vadd.f32 %v5431_v25, %v1723_v18  ;;  %v1724_v32 = vadd.f32 %v5322_v45, %v985_v43  ;;  %2481 = vmatprep.mubr.bf16.mxu1 %v7783_v11  ;;  %2829 = vmatprep.mubr.bf16.mxu0 %v7825_v60  ;;  %v7840_v45 = vsel %vm1010_vm1, %v2528_v42, %v2532_v53 }
 0x161   : > { %8627 = vst [vmem:[#allocation43_spill] sm:$0xff] %v7840_v45 }
 0x162   : > { %v7835_v4 = vadd.f32 %v5434_v54, %v1724_v32  ;;  %v5323_v1 = vpop.f32.mrb[48].mxu1  ;;  %v5435_v7 = vpop.f32.mrb[48].mxu0  ;;  %v8628_v54 = vld [vmem:[#allocation2_spill] sm:$0xff] }
 0x163   : > { %v5324_v19 = vpop.f32.mrb[49].mxu1  ;;  %v5436_v51 = vpop.f32.mrb[49].mxu0 }
 0x164   : > { %v5325_v31 = vadd.f32 %v5324_v19, %v5323_v1  ;;  %v5437_v29 = vadd.f32 %v5436_v51, %v5435_v7  ;;  %v5326_v25 = vpop.f32.mrb[50].mxu1  ;;  %v5438_v38 = vpop.f32.mrb[50].mxu0 }
 0x165   : > { %v5327_v6 = vpop.f32.mrb[51].mxu1  ;;  %v5439_v22 = vpop.f32.mrb[51].mxu0 }
 0x166   : > { %v1725_v23 = vadd.f32 %v5325_v31, %v986_v26  ;;  %v5328_v27 = vadd.f32 %v5327_v6, %v5326_v25  ;;  %v5440_v18 = vadd.f32 %v5439_v22, %v5438_v38  ;;  %v989_v22 = vadd.f32 %v7713_v9, %v7587_v59  ;;  %v6405_v9 = vld [vmem:[%s8421_s2 + $0x388] sm:$0xff]  }
 0x167   : > { %2482 = vmatmul.mubr.bf16.gmra.mrb[156].mxu1 %v7800_v52  ;;  %2830 = vmatmul.mubr.bf16.gmra.mrb[156].mxu0 %v7840_v45  ;;  %v8652_v45 = vld [vmem:[#allocation33_spill] sm:$0xff] }
 0x168   : > { %v7846_v24 = vadd.f32 %v5437_v29, %v1725_v23  ;;  %v1726_v43 = vadd.f32 %v5328_v27, %v987_v16  ;;  %3039 = vmatprep.mubr.bf16.mxu1 %v8628_v54  ;;  %3361 = vmatprep.mubr.bf16.mxu0 %v7504_v0  ;;  %v6401_v29 = vld [vmem:[%s8421_s2 + $0x380] sm:$0xff]   ;;  %v6404_v16 = vld [vmem:[%s8421_s2 + $0x3c8] sm:$0xff]  }
 0x169   : > { %v6403_v0 = vld [vmem:[%s8421_s2 + $0x400] sm:$0xff]   ;;  %v6406_v27 = vld [vmem:[%s8421_s2 + $0x448] sm:$0xff]  }
 0x16a   : > { %v7850_v32 = vadd.f32 %v5440_v18, %v1726_v43  ;;  %v5329_v42 = vpop.f32.mrb[52].mxu1  ;;  %v5441_v53 = vpop.f32.mrb[52].mxu0  ;;  %v8629_v18 = vld [vmem:[#allocation3_spill] sm:$0xff] }
 0x16b   : > { %v5330_v1 = vpop.f32.mrb[53].mxu1  ;;  %v5442_v7 = vpop.f32.mrb[53].mxu0 }
 0x16c   : > { %v5331_v19 = vadd.f32 %v5330_v1, %v5329_v42  ;;  %v5443_v51 = vadd.f32 %v5442_v7, %v5441_v53  ;;  %v5332_v26 = vpop.f32.mrb[54].mxu1  ;;  %v5444_v31 = vpop.f32.mrb[54].mxu0  ;;  %v6407_v42 = vld [vmem:[%s8421_s2 + $0x408] sm:$0xff]   ;;  %v8630_v53 = vld [vmem:[#allocation5_spill] sm:$0xff]  ;;  %v6410_v1 = vld [vmem:[%s8421_s2 + $0x450] sm:$0xff]  }
 0x16d   : > { %v5333_v25 = vpop.f32.mrb[55].mxu1  ;;  %v5445_v38 = vpop.f32.mrb[55].mxu0 }
 0x16e   : > { %v1727_v6 = vadd.f32 %v5331_v19, %v988_v63  ;;  %v5334_v23 = vadd.f32 %v5333_v25, %v5332_v26  ;;  %v5446_v12 = vadd.f32 %v5445_v38, %v5444_v31  ;;  %v990_v31 = vadd.f32 %v7731_v36, %v7587_v59 }
 0x16f   : > { %3040 = vmatmul.mubr.bf16.vlgmr.msra.gmra.mrb[160].mxu1 %v8629_v18  ;;  %3362 = vmatmul.mubr.bf16.vlgmr.msra.gmra.mrb[160].mxu0 %v7527_v48  ;;  %v6408_v48 = vld [vmem:[%s8421_s2 + $0x3d0] sm:$0xff]   ;;  %v991_v36 = vadd.f32 %v7733_v14, %v7587_v59  ;;  %v6412_v18 = vld [vmem:[%s8421_s2 + $0x3d8] sm:$0xff]  }
 0x170   : > { %v7870_v43 = vadd.f32 %v5443_v51, %v1727_v6  ;;  %v1728_v54 = vadd.f32 %v5334_v23, %v989_v22  ;;  %5956 = vmatpush3.bf16.msra.mxu1 %v6401_v29  ;;  %6068 = vmatpush3.bf16.msra.mxu0 %v6403_v0  ;;  %v6409_v22 = vld [vmem:[%s8421_s2 + $0x390] sm:$0xff]   ;;  %v6413_v14 = vld [vmem:[%s8421_s2 + $0x398] sm:$0xff]  }
 0x171   : > { %3047 = vmatprep.mubr.bf16.mxu1 %v8630_v53  ;;  %3369 = vmatprep.mubr.bf16.mxu0 %v7532_v5  ;;  %v6411_v23 = vld [vmem:[%s8421_s2 + $0x410] sm:$0xff]  }
 0x172   : > { %v7886_v7 = vadd.f32 %v5446_v12, %v1728_v54  ;;  %v5335_v63 = vpop.f32.mrb[56].mxu1  ;;  %v5447_v19 = vpop.f32.mrb[56].mxu0  ;;  %5957 = vmatprep.subr.bf16.mxu1 %v6404_v16  ;;  %6069 = vmatprep.subr.bf16.mxu0 %v6406_v27  ;;  %v6414_v54 = vld [vmem:[%s8421_s2 + $0x458] sm:$0xff]  }
 0x173   : > { %v5336_v51 = vpop.f32.mrb[57].mxu1  ;;  %v5448_v26 = vpop.f32.mrb[57].mxu0 }
 0x174   : > { %v5337_v5 = vadd.f32 %v5336_v51, %v5335_v63  ;;  %v5449_v29 = vadd.f32 %v5448_v26, %v5447_v19  ;;  %v5338_v0 = vpop.f32.mrb[58].mxu1  ;;  %v5450_v25 = vpop.f32.mrb[58].mxu0  ;;  %5958 = vmatpush3.bf16.msra.mxu1 %v6405_v9  ;;  %6070 = vmatpush3.bf16.msra.mxu0 %v6407_v42  ;;  %v8631_v9 = vld [vmem:[#allocation7_spill] sm:$0xff]  ;;  %v6415_v63 = vld [vmem:[%s8421_s2 + $0x418] sm:$0xff]   ;;  %v6418_v26 = vld [vmem:[%s8421_s2 + $0x460] sm:$0xff]  }
 0x175   : > { %v5339_v38 = vpop.f32.mrb[59].mxu1  ;;  %v5451_v6 = vpop.f32.mrb[59].mxu0  ;;  %5959 = vmatprep.subr.bf16.mxu1 %v6408_v48  ;;  %6071 = vmatprep.subr.bf16.mxu0 %v6410_v1  ;;  %v8632_v1 = vld [vmem:[#allocation9_spill] sm:$0xff] }
 0x176   : > { %v1729_v12 = vadd.f32 %v5337_v5, %v990_v31  ;;  %v5340_v16 = vadd.f32 %v5339_v38, %v5338_v0  ;;  %v5452_v27 = vadd.f32 %v5451_v6, %v5450_v25 }
 0x177   : > { %3048 = vmatmul.mubr.bf16.gmra.mrb[164].mxu1 %v8631_v9  ;;  %3370 = vmatmul.mubr.bf16.gmra.mrb[164].mxu0 %v7561_v28 }
 0x178   : > { %v7906_v42 = vadd.f32 %v5449_v29, %v1729_v12  ;;  %v1730_v48 = vadd.f32 %v5340_v16, %v991_v36  ;;  %3055 = vmatprep.mubr.bf16.mxu1 %v8632_v1  ;;  %3377 = vmatprep.mubr.bf16.mxu0 %v7566_v10  ;;  %v6416_v10 = vld [vmem:[%s8421_s2 + $0x3e0] sm:$0xff]   ;;  %v992_v29 = vadd.f32 %v7751_v21, %v7587_v59 }
 0x179   : > { %5960 = vmatpush3.bf16.msra.mxu1 %v6409_v22  ;;  %6072 = vmatpush3.bf16.msra.mxu0 %v6411_v23  ;;  %v993_v22 = vadd.f32 %v7753_v44, %v7587_v59  ;;  %v6417_v36 = vld [vmem:[%s8421_s2 + $0x3a0] sm:$0xff]   ;;  %v6420_v59 = vld [vmem:[%s8421_s2 + $0x3e8] sm:$0xff]  }
 0x17a   : > { %v7916_v19 = vadd.f32 %v5452_v27, %v1730_v48  ;;  %v5341_v28 = vpop.f32.mrb[60].mxu1  ;;  %v5453_v51 = vpop.f32.mrb[60].mxu0  ;;  %5961 = vmatprep.subr.bf16.mxu1 %v6412_v18  ;;  %6073 = vmatprep.subr.bf16.mxu0 %v6414_v54  ;;  %v6419_v16 = vld [vmem:[%s8421_s2 + $0x420] sm:$0xff]   ;;  %v6422_v44 = vld [vmem:[%s8421_s2 + $0x468] sm:$0xff]  }
 0x17b   : > { %v5342_v31 = vpop.f32.mrb[61].mxu1  ;;  %v5454_v5 = vpop.f32.mrb[61].mxu0  ;;  %v8633_v54 = vld [vmem:[#allocation11_spill] sm:$0xff] }
 0x17c   : > { %v5343_v0 = vadd.f32 %v5342_v31, %v5341_v28  ;;  %v5455_v25 = vadd.f32 %v5454_v5, %v5453_v51  ;;  %v5344_v38 = vpop.f32.mrb[62].mxu1  ;;  %v5456_v6 = vpop.f32.mrb[62].mxu0  ;;  %v6421_v28 = vld [vmem:[%s8421_s2 + $0x3a8] sm:$0xff]   ;;  %v6426_v31 = vld [vmem:[%s8421_s2 + $0x470] sm:$0xff]  }
 0x17d   : > { %v5345_v23 = vpop.f32.mrb[63].mxu1  ;;  %v5457_v12 = vpop.f32.mrb[63].mxu0  ;;  %5962 = vmatpush3.bf16.msra.mxu1 %v6413_v14  ;;  %6074 = vmatpush3.bf16.msra.mxu0 %v6415_v63  ;;  %v8634_v63 = vld [vmem:[#allocation13_spill] sm:$0xff]  ;;  %v6423_v51 = vld [vmem:[%s8421_s2 + $0x428] sm:$0xff]  }
 0x17e   : > { %v1731_v21 = vadd.f32 %v5343_v0, %v992_v29  ;;  %v5346_v27 = vadd.f32 %v5345_v23, %v5344_v38  ;;  %v5458_v18 = vadd.f32 %v5457_v12, %v5456_v6  ;;  %5963 = vmatprep.subr.bf16.mxu1 %v6416_v10  ;;  %6075 = vmatprep.subr.bf16.mxu0 %v6418_v26  ;;  %v6425_v12 = vld [vmem:[%s8421_s2 + $0x3b0] sm:$0xff]  }
 0x17f   : > { %3056 = vmatmul.mubr.bf16.gmra.mrb[168].mxu1 %v8633_v54  ;;  %3378 = vmatmul.mubr.bf16.gmra.mrb[168].mxu0 %v7604_v37 }
 0x180   : > { %v7942_v48 = vadd.f32 %v5455_v25, %v1731_v21  ;;  %v1732_v14 = vadd.f32 %v5346_v27, %v993_v22  ;;  %3063 = vmatprep.mubr.bf16.mxu1 %v8634_v63  ;;  %3385 = vmatprep.mubr.bf16.mxu0 %v7612_v39  ;;  %v6424_v39 = vld [vmem:[%s8421_s2 + $0x3f0] sm:$0xff]  }
 0x181   : > { %5964 = vmatpush3.bf16.msra.mxu1 %v6417_v36  ;;  %6076 = vmatpush3.bf16.msra.mxu0 %v6419_v16  ;;  %v6427_v36 = vld [vmem:[%s8421_s2 + $0x430] sm:$0xff]  }
 0x182   : > { %v7952_v10 = vadd.f32 %v5458_v18, %v1732_v14  ;;  %v5347_v37 = vpop.f32.mrb[64].mxu1  ;;  %v5459_v26 = vpop.f32.mrb[64].mxu0  ;;  %5965 = vmatprep.subr.bf16.mxu1 %v6420_v59  ;;  %6077 = vmatprep.subr.bf16.mxu0 %v6422_v44  ;;  %v6428_v18 = vld [vmem:[%s8421_s2 + $0x3f8] sm:$0xff]   ;;  %v8635_v44 = vld [vmem:[#allocation15_spill] sm:$0xff] }
 0x183   : > { %v5348_v5 = vpop.f32.mrb[65].mxu1  ;;  %v5460_v29 = vpop.f32.mrb[65].mxu0  ;;  %v6430_v59 = vld [vmem:[%s8421_s2 + $0x478] sm:$0xff]  }
 0x184   : > { %v5349_v0 = vadd.f32 %v5348_v5, %v5347_v37  ;;  %v5461_v25 = vadd.f32 %v5460_v29, %v5459_v26  ;;  %v5350_v38 = vpop.f32.mrb[66].mxu1  ;;  %v5462_v6 = vpop.f32.mrb[66].mxu0  ;;  %v6431_v37 = vld [vmem:[%s8421_s2 + $0x438] sm:$0xff]  }
 0x185   : > { %v5351_v22 = vpop.f32.mrb[67].mxu1  ;;  %v5463_v23 = vpop.f32.mrb[67].mxu0  ;;  %5966 = vmatpush3.bf16.msra.mxu1 %v6421_v28  ;;  %6078 = vmatpush3.bf16.msra.mxu0 %v6423_v51  ;;  %v8636_v28 = vld [vmem:[#allocation17_spill] sm:$0xff] }
 0x186   : > { %v1733_v16 = vadd.f32 %v5349_v0, %v7609_v3  ;;  %v5352_v21 = vadd.f32 %v5351_v22, %v5350_v38  ;;  %v5464_v27 = vadd.f32 %v5463_v23, %v5462_v6  ;;  %5967 = vmatprep.subr.bf16.mxu1 %v6424_v39  ;;  %6079 = vmatprep.subr.bf16.mxu0 %v6426_v31  ;;  %v6429_v51 = vld [vmem:[%s8421_s2 + $0x3b8] sm:$0xff]  }
 0x187   : > { %3064 = vmatmul.mubr.bf16.gmra.mrb[172].mxu1 %v8635_v44  ;;  %3386 = vmatmul.mubr.bf16.gmra.mrb[172].mxu0 %v7636_v41 }
 0x188   : > { %v7975_v14 = vadd.f32 %v5461_v25, %v1733_v16  ;;  %v1734_v3 = vadd.f32 %v5352_v21, %v7617_v13  ;;  %3071 = vmatprep.mubr.bf16.mxu1 %v8636_v28  ;;  %3393 = vmatprep.mubr.bf16.mxu0 %v7644_v35  ;;  %v8638_v21 = vld [vmem:[#allocation20_spill] sm:$0xff] }
 0x189   : > { %5968 = vmatpush3.bf16.msra.mxu1 %v6425_v12  ;;  %6080 = vmatpush3.bf16.msra.mxu0 %v6427_v36  ;;  %v8637_v12 = vld [vmem:[#allocation19_spill] sm:$0xff] }
 0x18a   : > { %v7986_v26 = vadd.f32 %v5464_v27, %v1734_v3  ;;  %v5353_v41 = vpop.f32.mrb[68].mxu1  ;;  %v5465_v39 = vpop.f32.mrb[68].mxu0  ;;  %5969 = vmatprep.subr.bf16.mxu1 %v6428_v18  ;;  %6081 = vmatprep.subr.bf16.mxu0 %v6430_v59 }
 0x18b   : > { %v5354_v13 = vpop.f32.mrb[69].mxu1  ;;  %v5466_v31 = vpop.f32.mrb[69].mxu0 }
 0x18c   : > { %v5355_v5 = vadd.f32 %v5354_v13, %v5353_v41  ;;  %v5467_v35 = vadd.f32 %v5466_v31, %v5465_v39  ;;  %v5356_v29 = vpop.f32.mrb[70].mxu1  ;;  %v5468_v0 = vpop.f32.mrb[70].mxu0 }
 0x18d   : > { %v5357_v25 = vpop.f32.mrb[71].mxu1  ;;  %v5469_v38 = vpop.f32.mrb[71].mxu0  ;;  %5970 = vmatpush3.bf16.msra.mxu1 %v6429_v51  ;;  %6082 = vmatpush3.bf16.msra.mxu0 %v6431_v37 }
 0x18e   : > { %v1735_v6 = vadd.f32 %v5355_v5, %v7641_v2  ;;  %v5358_v22 = vadd.f32 %v5357_v25, %v5356_v29  ;;  %v5470_v23 = vadd.f32 %v5469_v38, %v5468_v0  ;;  %v8640_v0 = vld [vmem:[#allocation25_spill] sm:$0xff] }
 0x18f   : > { %3072 = vmatmul.mubr.bf16.gmra.mrb[176].mxu1 %v8637_v12  ;;  %3394 = vmatmul.mubr.bf16.gmra.mrb[176].mxu0 %v7659_v50 }
 0x190   : > { %v7991_v36 = vadd.f32 %v5467_v35, %v1735_v6  ;;  %v1736_v16 = vadd.f32 %v5358_v22, %v7649_v33  ;;  %3079 = vmatprep.mubr.bf16.mxu1 %v8638_v21  ;;  %3401 = vmatprep.mubr.bf16.mxu0 %v7664_v30  ;;  %v8639_v35 = vld [vmem:[#allocation23_spill] sm:$0xff] }
 0x192   : > { %v7996_v27 = vadd.f32 %v5470_v23, %v1736_v16  ;;  %v5359_v18 = vpop.f32.mrb[72].mxu1  ;;  %v5471_v59 = vpop.f32.mrb[72].mxu0 }
 0x193   : > { %v5360_v3 = vpop.f32.mrb[73].mxu1  ;;  %v5472_v2 = vpop.f32.mrb[73].mxu0 }
 0x194   : > { %v5361_v51 = vadd.f32 %v5360_v3, %v5359_v18  ;;  %v5473_v37 = vadd.f32 %v5472_v2, %v5471_v59  ;;  %v5362_v41 = vpop.f32.mrb[74].mxu1  ;;  %v5474_v39 = vpop.f32.mrb[74].mxu0  ;;  %v8641_v2 = vld [vmem:[#allocation63_spill] sm:$0xff] }
 0x195   : > { %v5363_v13 = vpop.f32.mrb[75].mxu1  ;;  %v5475_v50 = vpop.f32.mrb[75].mxu0 }
 0x196   : > { %v1737_v31 = vadd.f32 %v5361_v51, %v7656_v62  ;;  %v5364_v5 = vadd.f32 %v5363_v13, %v5362_v41  ;;  %v5476_v33 = vadd.f32 %v5475_v50, %v5474_v39  ;;  %v8642_v41 = vld [vmem:[#allocation27_spill] sm:$0xff]  ;;  %v8643_v39 = vld [vmem:[#allocation66_spill] sm:$0xff]  ;;  %v8644_v13 = vld [vmem:[#allocation64_spill] sm:$0xff] }
 0x197   : > { %3080 = vmatmul.mubr.bf16.gmra.mrb[180].mxu1 %v8639_v35  ;;  %3402 = vmatmul.mubr.bf16.gmra.mrb[180].mxu0 %v7679_v46 }
 0x198   : > { %v8001_v30 = vadd.f32 %v5473_v37, %v1737_v31  ;;  %v1738_v29 = vadd.f32 %v5364_v5, %v7669_v20  ;;  %3087 = vmatprep.mubr.bf16.mxu1 %v8640_v0  ;;  %3409 = vmatprep.mubr.bf16.mxu0 %v7684_v34  ;;  %v8645_v31 = vld [vmem:[#allocation28_spill] sm:$0xff]  ;;  %v8646_v5 = vld [vmem:[#allocation67_spill] sm:$0xff] }
 0x19a   : > { %v8006_v25 = vadd.f32 %v5476_v33, %v1738_v29  ;;  %v5365_v38 = vpop.f32.mrb[76].mxu1  ;;  %v5477_v6 = vpop.f32.mrb[76].mxu0 }
 0x19b   : > { %v5366_v22 = vpop.f32.mrb[77].mxu1  ;;  %v5478_v62 = vpop.f32.mrb[77].mxu0 }
 0x19c   : > { %v5367_v23 = vadd.f32 %v5366_v22, %v5365_v38  ;;  %v5479_v16 = vadd.f32 %v5478_v62, %v5477_v6  ;;  %v5368_v18 = vpop.f32.mrb[78].mxu1  ;;  %v5480_v59 = vpop.f32.mrb[78].mxu0 }
 0x19d   : > { %v5369_v3 = vpop.f32.mrb[79].mxu1  ;;  %v5481_v46 = vpop.f32.mrb[79].mxu0 }
 0x19e   : > { %v1739_v51 = vadd.f32 %v5367_v23, %v8641_v2  ;;  %v5370_v37 = vadd.f32 %v5369_v3, %v5368_v18  ;;  %v5482_v20 = vadd.f32 %v5481_v46, %v5480_v59 }
 0x19f   : > { %3088 = vmatmul.mubr.bf16.gmra.mrb[184].mxu1 %v8642_v41  ;;  %3410 = vmatmul.mubr.bf16.gmra.mrb[184].mxu0 %v8643_v39  ;;  %v8648_v39 = vld [vmem:[#allocation31_spill] sm:$0xff] }
 0x1a0   : > { %v8011_v34 = vadd.f32 %v5479_v16, %v1739_v51  ;;  %v1740_v50 = vadd.f32 %v5370_v37, %v8644_v13  ;;  %3095 = vmatprep.mubr.bf16.mxu1 %v8645_v31  ;;  %3417 = vmatprep.mubr.bf16.mxu0 %v8646_v5  ;;  %v8647_v16 = vld [vmem:[#allocation65_spill] sm:$0xff]  ;;  %v8649_v13 = vld [vmem:[#allocation70_spill] sm:$0xff] }
 0x1a2   : > { %v8016_v33 = vadd.f32 %v5482_v20, %v1740_v50  ;;  %v5371_v29 = vpop.f32.mrb[80].mxu1  ;;  %v5483_v38 = vpop.f32.mrb[80].mxu0  ;;  %v8651_v50 = vld [vmem:[#allocation68_spill] sm:$0xff] }
 0x1a3   : > { %v5372_v6 = vpop.f32.mrb[81].mxu1  ;;  %v5484_v22 = vpop.f32.mrb[81].mxu0 }
 0x1a4   : > { %v5373_v62 = vadd.f32 %v5372_v6, %v5371_v29  ;;  %v5485_v23 = vadd.f32 %v5484_v22, %v5483_v38  ;;  %v5374_v18 = vpop.f32.mrb[82].mxu1  ;;  %v5486_v59 = vpop.f32.mrb[82].mxu0  ;;  %v8653_v29 = vld [vmem:[#allocation71_spill] sm:$0xff] }
 0x1a5   : > { %v5375_v3 = vpop.f32.mrb[83].mxu1  ;;  %v5487_v46 = vpop.f32.mrb[83].mxu0 }
 0x1a6   : > { %v1741_v2 = vadd.f32 %v5373_v62, %v8647_v16  ;;  %v5376_v51 = vadd.f32 %v5375_v3, %v5374_v18  ;;  %v5488_v37 = vadd.f32 %v5487_v46, %v5486_v59 }
 0x1a7   : > { %3096 = vmatmul.mubr.bf16.gmra.mrb[188].mxu1 %v8648_v39  ;;  %3418 = vmatmul.mubr.bf16.gmra.mrb[188].mxu0 %v8649_v13 }
 0x1a8   : > { %v8021_v20 = vadd.f32 %v5485_v23, %v1741_v2  ;;  %v1742_v5 = vadd.f32 %v5376_v51, %v8651_v50  ;;  %3103 = vmatprep.mubr.bf16.mxu1 %v8652_v45  ;;  %3425 = vmatprep.mubr.bf16.mxu0 %v8653_v29  ;;  %v8655_v23 = vld [vmem:[#allocation69_spill] sm:$0xff]  ;;  %v8656_v50 = vld [vmem:[#allocation35_spill] sm:$0xff] }
 0x1aa   : > { %8650 = vst [vmem:[#allocation48_spill] sm:$0xff] %v8021_v20  ;;  %v8026_v38 = vadd.f32 %v5488_v37, %v1742_v5  ;;  %v5377_v6 = vpop.f32.mrb[84].mxu1  ;;  %v5489_v22 = vpop.f32.mrb[84].mxu0  ;;  %v8657_v20 = vld [vmem:[#allocation74_spill] sm:$0xff]  ;;  %v8659_v5 = vld [vmem:[#allocation72_spill] sm:$0xff] }
 0x1ab   : > { %v5378_v60 = vpop.f32.mrb[85].mxu1  ;;  %v5490_v62 = vpop.f32.mrb[85].mxu0 }
 0x1ac   : > { %8654 = vst [vmem:[#allocation2_spill] sm:$0xff] %v8026_v38  ;;  %v5379_v18 = vadd.f32 %v5378_v60, %v5377_v6  ;;  %v5491_v59 = vadd.f32 %v5490_v62, %v5489_v22  ;;  %v5380_v3 = vpop.f32.mrb[86].mxu1  ;;  %v5492_v46 = vpop.f32.mrb[86].mxu0  ;;  %v8660_v38 = vld [vmem:[#allocation37_spill] sm:$0xff]  ;;  %v8661_v60 = vld [vmem:[#allocation75_spill] sm:$0xff] }
 0x1ad   : > { %v5381_v16 = vpop.f32.mrb[87].mxu1  ;;  %v5493_v13 = vpop.f32.mrb[87].mxu0 }
 0x1ae   : > { %v1743_v2 = vadd.f32 %v5379_v18, %v8655_v23  ;;  %v5382_v61 = vadd.f32 %v5381_v16, %v5380_v3  ;;  %v5494_v51 = vadd.f32 %v5493_v13, %v5492_v46  ;;  %v8663_v23 = vld [vmem:[#allocation73_spill] sm:$0xff] }
 0x1af   : > { %3104 = vmatmul.mubr.bf16.gmra.mrb[192].mxu1 %v8656_v50  ;;  %3426 = vmatmul.mubr.bf16.gmra.mrb[192].mxu0 %v8657_v20 }
 0x1b0   : > { %v8031_v37 = vadd.f32 %v5491_v59, %v1743_v2  ;;  %v1744_v29 = vadd.f32 %v5382_v61, %v8659_v5  ;;  %3111 = vmatprep.mubr.bf16.mxu1 %v8660_v38  ;;  %3433 = vmatprep.mubr.bf16.mxu0 %v8661_v60 }
 0x1b2   : > { %8658 = vst [vmem:[#allocation3_spill] sm:$0xff] %v8031_v37  ;;  %v8036_v6 = vadd.f32 %v5494_v51, %v1744_v29  ;;  %v5383_v22 = vpop.f32.mrb[88].mxu1  ;;  %v5495_v62 = vpop.f32.mrb[88].mxu0  ;;  %v8664_v37 = vld [vmem:[#allocation40_spill] sm:$0xff] }
 0x1b3   : > { %v5384_v45 = vpop.f32.mrb[89].mxu1  ;;  %v5496_v18 = vpop.f32.mrb[89].mxu0  ;;  %v8666_v29 = vld [vmem:[#allocation76_spill] sm:$0xff] }
 0x1b4   : > { %8662 = vst [vmem:[#allocation5_spill] sm:$0xff] %v8036_v6  ;;  %v5385_v3 = vadd.f32 %v5384_v45, %v5383_v22  ;;  %v5497_v46 = vadd.f32 %v5496_v18, %v5495_v62  ;;  %v5386_v16 = vpop.f32.mrb[90].mxu1  ;;  %v5498_v13 = vpop.f32.mrb[90].mxu0  ;;  %v8667_v6 = vld [vmem:[#allocation42_spill] sm:$0xff]  ;;  %v6474_v45 = vld [vmem:[%s6582_s14 + $0x90] sm:$0xff]  }
 0x1b5   : > { %v5387_v20 = vpop.f32.mrb[91].mxu1  ;;  %v5499_v59 = vpop.f32.mrb[91].mxu0 }
 0x1b6   : > { %v1745_v2 = vadd.f32 %v5385_v3, %v8663_v23  ;;  %v5388_v61 = vadd.f32 %v5387_v20, %v5386_v16  ;;  %v5500_v5 = vadd.f32 %v5499_v59, %v5498_v13 }
 0x1b7   : > { %3112 = vmatmul.mubr.bf16.gmra.mrb[196].mxu1 %v8664_v37  ;;  %3434 = vmatmul.mubr.bf16.gmra.mrb[196].mxu0 %v7759_v57  ;;  %v8673_v37 = vld [vmem:[#allocation47_spill] sm:$0xff] }
 0x1b8   : > { %v8041_v51 = vadd.f32 %v5497_v46, %v1745_v2  ;;  %v1746_v60 = vadd.f32 %v5388_v61, %v8666_v29  ;;  %3119 = vmatprep.mubr.bf16.mxu1 %v8667_v6  ;;  %3441 = vmatprep.mubr.bf16.mxu0 %v6474_v45  ;;  %v8669_v2 = vld [vmem:[#allocation77_spill] sm:$0xff]  ;;  %v6475_v45 = vld [vmem:[%s6597_s25 + $0x90] sm:$0xff]  }
 0x1b9   : > { %v8670_v6 = vld [vmem:[#allocation45_spill] sm:$0xff] }
 0x1ba   : > { %8665 = vst [vmem:[#allocation7_spill] sm:$0xff] %v8041_v51  ;;  %v8046_v22 = vadd.f32 %v5500_v5, %v1746_v60  ;;  %v5389_v62 = vpop.f32.mrb[92].mxu1  ;;  %v5501_v18 = vpop.f32.mrb[92].mxu0  ;;  %v8672_v60 = vld [vmem:[#allocation78_spill] sm:$0xff] }
 0x1bb   : > { %v5390_v3 = vpop.f32.mrb[93].mxu1  ;;  %v5502_v16 = vpop.f32.mrb[93].mxu0 }
 0x1bc   : > { %8668 = vst [vmem:[#allocation9_spill] sm:$0xff] %v8046_v22  ;;  %v5391_v13 = vadd.f32 %v5390_v3, %v5389_v62  ;;  %v5503_v20 = vadd.f32 %v5502_v16, %v5501_v18  ;;  %v5392_v59 = vpop.f32.mrb[94].mxu1  ;;  %v5504_v57 = vpop.f32.mrb[94].mxu0  ;;  %v6476_v62 = vld [vmem:[%s6582_s14 + $0x9c] sm:$0xff]  }
 0x1bd   : > { %v5393_v46 = vpop.f32.mrb[95].mxu1  ;;  %v5505_v23 = vpop.f32.mrb[95].mxu0 }
 0x1be   : > { %v1747_v61 = vadd.f32 %v5391_v13, %v8669_v2  ;;  %v5394_v29 = vadd.f32 %v5393_v46, %v5392_v59  ;;  %v5506_v51 = vadd.f32 %v5505_v23, %v5504_v57 }
 0x1bf   : > { %3120 = vmatmul.mubr.bf16.gmra.mrb[200].mxu1 %v8670_v6  ;;  %3442 = vmatmul.mubr.bf16.gmra.mrb[200].mxu0 %v6475_v45 }
 0x1c0   : > { %v8051_v5 = vadd.f32 %v5503_v20, %v1747_v61  ;;  %v1748_v22 = vadd.f32 %v5394_v29, %v8672_v60  ;;  %3127 = vmatprep.mubr.bf16.mxu1 %v8673_v37  ;;  %3449 = vmatprep.mubr.bf16.mxu0 %v6476_v62  ;;  %v6477_v62 = vld [vmem:[%s6597_s25 + $0x9c] sm:$0xff]  }
 0x1c2   : > { %8671 = vst [vmem:[#allocation11_spill] sm:$0xff] %v8051_v5  ;;  %v8056_v18 = vadd.f32 %v5506_v51, %v1748_v22  ;;  %v5523_v3 = vpop.f32.mrb[96].mxu1  ;;  %v5635_v16 = vpop.f32.mrb[96].mxu0  ;;  %v8675_v5 = vld [vmem:[#allocation50_spill] sm:$0xff] }
 0x1c3   : > { %v5524_v13 = vpop.f32.mrb[97].mxu1  ;;  %v5636_v59 = vpop.f32.mrb[97].mxu0 }
 0x1c4   : > { %8674 = vst [vmem:[#allocation13_spill] sm:$0xff] %v8056_v18  ;;  %v5525_v57 = vadd.f32 %v5524_v13, %v5523_v3  ;;  %v5637_v46 = vadd.f32 %v5636_v59, %v5635_v16  ;;  %v5526_v23 = vpop.f32.mrb[98].mxu1  ;;  %v5638_v2 = vpop.f32.mrb[98].mxu0  ;;  %v8677_v18 = vld [vmem:[#allocation52_spill] sm:$0xff]  ;;  %v6478_v3 = vld [vmem:[%s6582_s14 + $0xa8] sm:$0xff]  }
 0x1c5   : > { %v5527_v20 = vpop.f32.mrb[99].mxu1  ;;  %v5639_v61 = vpop.f32.mrb[99].mxu0 }
 0x1c6   : > { %v2490_v29 = vadd.f32 %v5525_v57, %v7774_v58  ;;  %v5528_v45 = vadd.f32 %v5527_v20, %v5526_v23  ;;  %v5640_v60 = vadd.f32 %v5639_v61, %v5638_v2 }
 0x1c7   : > { %3128 = vmatmul.mubr.bf16.gmra.mrb[204].mxu1 %v8675_v5  ;;  %3450 = vmatmul.mubr.bf16.gmra.mrb[204].mxu0 %v6477_v62 }
 0x1c8   : > { %v8061_v51 = vadd.f32 %v5637_v46, %v2490_v29  ;;  %v2491_v22 = vadd.f32 %v5528_v45, %v7778_v8  ;;  %3135 = vmatprep.mubr.bf16.mxu1 %v8677_v18  ;;  %3457 = vmatprep.mubr.bf16.mxu0 %v6478_v3  ;;  %v6479_v3 = vld [vmem:[%s6597_s25 + $0xa8] sm:$0xff]  }
 0x1ca   : > { %8676 = vst [vmem:[#allocation15_spill] sm:$0xff] %v8061_v51  ;;  %v8066_v16 = vadd.f32 %v5640_v60, %v2491_v22  ;;  %v5529_v13 = vpop.f32.mrb[100].mxu1  ;;  %v5641_v59 = vpop.f32.mrb[100].mxu0  ;;  %v8679_v51 = vld [vmem:[#allocation54_spill] sm:$0xff] }
 0x1cb   : > { %v5530_v58 = vpop.f32.mrb[101].mxu1  ;;  %v5642_v57 = vpop.f32.mrb[101].mxu0 }
 0x1cc   : > { %8678 = vst [vmem:[#allocation17_spill] sm:$0xff] %v8066_v16  ;;  %v5531_v23 = vadd.f32 %v5530_v58, %v5529_v13  ;;  %v5643_v2 = vadd.f32 %v5642_v57, %v5641_v59  ;;  %v5532_v20 = vpop.f32.mrb[102].mxu1  ;;  %v5644_v61 = vpop.f32.mrb[102].mxu0  ;;  %v8681_v16 = vld [vmem:[#allocation56_spill] sm:$0xff] }
 0x1cd   : > { %v5533_v46 = vpop.f32.mrb[103].mxu1  ;;  %v5645_v29 = vpop.f32.mrb[103].mxu0  ;;  %v6480_v13 = vld [vmem:[%s6582_s14 + $0xb4] sm:$0xff]  }
 0x1ce   : > { %v2492_v8 = vadd.f32 %v5531_v23, %v7789_v40  ;;  %v5534_v45 = vadd.f32 %v5533_v46, %v5532_v20  ;;  %v5646_v62 = vadd.f32 %v5645_v29, %v5644_v61 }
 0x1cf   : > { %3136 = vmatmul.mubr.bf16.gmra.mrb[208].mxu1 %v8679_v51  ;;  %3458 = vmatmul.mubr.bf16.gmra.mrb[208].mxu0 %v6479_v3 }
 0x1d0   : > { %v8071_v60 = vadd.f32 %v5643_v2, %v2492_v8  ;;  %v2493_v22 = vadd.f32 %v5534_v45, %v7797_v49  ;;  %3143 = vmatprep.mubr.bf16.mxu1 %v8681_v16  ;;  %3465 = vmatprep.mubr.bf16.mxu0 %v6480_v13  ;;  %v6481_v13 = vld [vmem:[%s6597_s25 + $0xb4] sm:$0xff]  }
 0x1d2   : > { %8680 = vst [vmem:[#allocation19_spill] sm:$0xff] %v8071_v60  ;;  %v8076_v59 = vadd.f32 %v5646_v62, %v2493_v22  ;;  %v5535_v58 = vpop.f32.mrb[104].mxu1  ;;  %v5647_v57 = vpop.f32.mrb[104].mxu0  ;;  %v8683_v60 = vld [vmem:[#allocation58_spill] sm:$0xff] }
 0x1d3   : > { %v5536_v40 = vpop.f32.mrb[105].mxu1  ;;  %v5648_v23 = vpop.f32.mrb[105].mxu0 }
 0x1d4   : > { %8682 = vst [vmem:[#allocation20_spill] sm:$0xff] %v8076_v59  ;;  %v5537_v20 = vadd.f32 %v5536_v40, %v5535_v58  ;;  %v5649_v61 = vadd.f32 %v5648_v23, %v5647_v57  ;;  %v5538_v46 = vpop.f32.mrb[106].mxu1  ;;  %v5650_v29 = vpop.f32.mrb[106].mxu0  ;;  %v8684_v59 = vld [vmem:[#allocation60_spill] sm:$0xff]  ;;  %v2873_v58 = vrot.slane %v7783_v11, 1  ;;  %v2874_v57 = vrot.slane %v7794_v56, 1 }
 0x1d5   : > { %v5539_v3 = vpop.f32.mrb[107].mxu1  ;;  %v5651_v2 = vpop.f32.mrb[107].mxu0 }
 0x1d6   : > { %v2494_v8 = vadd.f32 %v5537_v20, %v7811_v17  ;;  %v5540_v49 = vadd.f32 %v5539_v3, %v5538_v46  ;;  %v5652_v45 = vadd.f32 %v5651_v2, %v5650_v29 }
 0x1d7   : > { %3144 = vmatmul.mubr.bf16.gmra.mrb[212].mxu1 %v8683_v60  ;;  %3466 = vmatmul.mubr.bf16.gmra.mrb[212].mxu0 %v6481_v13  ;;  %v8094_v13 = vsel %vm1749_vm0, %v2873_v58, %v2874_v57  ;;  %v2870_v58 = vrot.slane %v7800_v52, 1  ;;  %v2871_v57 = vrot.slane %v7816_v15, 1 }
 0x1d8   : > { %v8081_v62 = vadd.f32 %v5649_v61, %v2494_v8  ;;  %v2495_v22 = vadd.f32 %v5540_v49, %v7818_v55  ;;  %3151 = vmatprep.mubr.bf16.mxu1 %v8684_v59  ;;  %3473 = vmatprep.mubr.bf16.mxu0 %v7783_v11  ;;  %v8091_v8 = vld [vmem:[%s6582_s14 + $0xcc] sm:$0xff]  }
 0x1da   : > { %v8088_v17 = vadd.f32 %v5652_v45, %v2495_v22  ;;  %v5541_v40 = vpop.f32.mrb[108].mxu1  ;;  %v5653_v23 = vpop.f32.mrb[108].mxu0  ;;  %v8685_v22 = vld [vmem:[#allocation62_spill] sm:$0xff] }
 0x1db   : > { %v5542_v20 = vpop.f32.mrb[109].mxu1  ;;  %v5654_v46 = vpop.f32.mrb[109].mxu0 }
 0x1dc   : > { %v5543_v29 = vadd.f32 %v5542_v20, %v5541_v40  ;;  %v5655_v3 = vadd.f32 %v5654_v46, %v5653_v23  ;;  %v5544_v61 = vpop.f32.mrb[110].mxu1  ;;  %v5656_v2 = vpop.f32.mrb[110].mxu0 }
 0x1dd   : > { %v5545_v55 = vpop.f32.mrb[111].mxu1  ;;  %v5657_v49 = vpop.f32.mrb[111].mxu0 }
 0x1de   : > { %v2496_v11 = vadd.f32 %v5543_v29, %v7831_v47  ;;  %v5546_v56 = vadd.f32 %v5545_v55, %v5544_v61  ;;  %v5658_v45 = vadd.f32 %v5657_v49, %v5656_v2  ;;  %v8109_v2 = vld [vmem:[%s6597_s25 + $0xcc] sm:$0xff]  }
 0x1df   : > { %3152 = vmatmul.mubr.bf16.gmra.mrb[216].mxu1 %v8685_v22  ;;  %3474 = vmatmul.mubr.bf16.gmra.mrb[216].mxu0 %v7800_v52 }
 0x1e0   : > { %v8099_v40 = vadd.f32 %v5655_v3, %v2496_v11  ;;  %v2497_v23 = vadd.f32 %v5546_v56, %v7835_v4  ;;  %3159 = vmatprep.mubr.bf16.mxu1 %v8094_v13  ;;  %3481 = vmatprep.mubr.bf16.mxu0 %v8091_v8  ;;  %v8112_v11 = vsel %vm1749_vm0, %v2870_v58, %v2871_v57 }
 0x1e2   : > { %8686 = vst [vmem:[#allocation23_spill] sm:$0xff] %v8099_v40  ;;  %v8106_v47 = vadd.f32 %v5658_v45, %v2497_v23  ;;  %v5547_v20 = vpop.f32.mrb[112].mxu1  ;;  %v5659_v46 = vpop.f32.mrb[112].mxu0 }
 0x1e3   : > { %v5548_v29 = vpop.f32.mrb[113].mxu1  ;;  %v5660_v61 = vpop.f32.mrb[113].mxu0 }
 0x1e4   : > { %8687 = vst [vmem:[#allocation25_spill] sm:$0xff] %v8106_v47  ;;  %v5549_v3 = vadd.f32 %v5548_v29, %v5547_v20  ;;  %v5661_v55 = vadd.f32 %v5660_v61, %v5659_v46  ;;  %v5550_v49 = vpop.f32.mrb[114].mxu1  ;;  %v5662_v4 = vpop.f32.mrb[114].mxu0  ;;  %v8688_v46 = vld [vmem:[#allocation4_spill] sm:$0xff] }
 0x1e5   : > { %v5551_v56 = vpop.f32.mrb[115].mxu1  ;;  %v5663_v40 = vpop.f32.mrb[115].mxu0 }
 0x1e6   : > { %v2498_v52 = vadd.f32 %v5549_v3, %v7846_v24  ;;  %v5552_v15 = vadd.f32 %v5551_v56, %v5550_v49  ;;  %v5664_v45 = vadd.f32 %v5663_v40, %v5662_v4 }
 0x1e7   : > { %3160 = vmatmul.mubr.bf16.gmra.mrb[220].mxu1 %v8112_v11  ;;  %3482 = vmatmul.mubr.bf16.gmra.mrb[220].mxu0 %v8109_v2 }
 0x1e8   : > { %v8117_v23 = vadd.f32 %v5661_v55, %v2498_v52  ;;  %v2499_v20 = vadd.f32 %v5552_v15, %v7850_v32  ;;  %3709 = vmatprep.mubr.bf16.mxu1 %v8688_v46  ;;  %4039 = vmatprep.mubr.bf16.mxu0 %v8630_v53  ;;  %v8689_v15 = vld [vmem:[#allocation6_spill] sm:$0xff] }
 0x1ea   : > { %v8122_v58 = vadd.f32 %v5664_v45, %v2499_v20  ;;  %v5553_v57 = vpop.f32.mrb[116].mxu1  ;;  %v5665_v29 = vpop.f32.mrb[116].mxu0  ;;  %v8690_v20 = vld [vmem:[#allocation8_spill] sm:$0xff] }
 0x1eb   : > { %v5554_v61 = vpop.f32.mrb[117].mxu1  ;;  %v5666_v24 = vpop.f32.mrb[117].mxu0 }
 0x1ec   : > { %v5555_v3 = vadd.f32 %v5554_v61, %v5553_v57  ;;  %v5667_v40 = vadd.f32 %v5666_v24, %v5665_v29  ;;  %v5556_v49 = vpop.f32.mrb[118].mxu1  ;;  %v5668_v4 = vpop.f32.mrb[118].mxu0 }
 0x1ed   : > { %v5557_v56 = vpop.f32.mrb[119].mxu1  ;;  %v5669_v47 = vpop.f32.mrb[119].mxu0 }
 0x1ee   : > { %v2500_v55 = vadd.f32 %v5555_v3, %v7870_v43  ;;  %v5558_v52 = vadd.f32 %v5557_v56, %v5556_v49  ;;  %v5670_v32 = vadd.f32 %v5669_v47, %v5668_v4 }
 0x1ef   : > { %3710 = vmatmul.mubr.bf16.vlgmr.msra.gmra.mrb[224].mxu1 %v8689_v15  ;;  %4040 = vmatmul.mubr.bf16.vlgmr.msra.gmra.mrb[224].mxu0 %v8631_v9 }
 0x1f0   : > { %v8127_v53 = vadd.f32 %v5667_v40, %v2500_v55  ;;  %v2501_v45 = vadd.f32 %v5558_v52, %v7886_v7  ;;  %3717 = vmatprep.mubr.bf16.mxu1 %v8690_v20  ;;  %4047 = vmatprep.mubr.bf16.mxu0 %v8632_v1  ;;  %v8691_v55 = vld [vmem:[#allocation10_spill] sm:$0xff] }
 0x1f2   : > { %v8132_v46 = vadd.f32 %v5670_v32, %v2501_v45  ;;  %v5559_v57 = vpop.f32.mrb[120].mxu1  ;;  %v5671_v29 = vpop.f32.mrb[120].mxu0  ;;  %v8692_v32 = vld [vmem:[#allocation12_spill] sm:$0xff] }
 0x1f3   : > { %v5560_v61 = vpop.f32.mrb[121].mxu1  ;;  %v5672_v43 = vpop.f32.mrb[121].mxu0 }
 0x1f4   : > { %v5561_v24 = vadd.f32 %v5560_v61, %v5559_v57  ;;  %v5673_v47 = vadd.f32 %v5672_v43, %v5671_v29  ;;  %v5562_v3 = vpop.f32.mrb[122].mxu1  ;;  %v5674_v49 = vpop.f32.mrb[122].mxu0 }
 0x1f5   : > { %v5563_v4 = vpop.f32.mrb[123].mxu1  ;;  %v5675_v9 = vpop.f32.mrb[123].mxu0 }
 0x1f6   : > { %v2502_v40 = vadd.f32 %v5561_v24, %v7906_v42  ;;  %v5564_v56 = vadd.f32 %v5563_v4, %v5562_v3  ;;  %v5676_v7 = vadd.f32 %v5675_v9, %v5674_v49  ;;  %v8693_v4 = vld [vmem:[#allocation14_spill] sm:$0xff] }
 0x1f7   : > { %3718 = vmatmul.mubr.bf16.gmra.mrb[228].mxu1 %v8691_v55  ;;  %4048 = vmatmul.mubr.bf16.gmra.mrb[228].mxu0 %v8633_v54 }
 0x1f8   : > { %v8137_v1 = vadd.f32 %v5673_v47, %v2502_v40  ;;  %v2503_v52 = vadd.f32 %v5564_v56, %v7916_v19  ;;  %3725 = vmatprep.mubr.bf16.mxu1 %v8692_v32  ;;  %4055 = vmatprep.mubr.bf16.mxu0 %v8634_v63  ;;  %v8694_v40 = vld [vmem:[#allocation16_spill] sm:$0xff] }
 0x1fa   : > { %v8142_v15 = vadd.f32 %v5676_v7, %v2503_v52  ;;  %v5565_v45 = vpop.f32.mrb[124].mxu1  ;;  %v5677_v20 = vpop.f32.mrb[124].mxu0 }
 0x1fb   : > { %v5566_v57 = vpop.f32.mrb[125].mxu1  ;;  %v5678_v42 = vpop.f32.mrb[125].mxu0 }
 0x1fc   : > { %v5567_v29 = vadd.f32 %v5566_v57, %v5565_v45  ;;  %v5679_v61 = vadd.f32 %v5678_v42, %v5677_v20  ;;  %v5568_v43 = vpop.f32.mrb[126].mxu1  ;;  %v5680_v24 = vpop.f32.mrb[126].mxu0 }
 0x1fd   : > { %v5569_v3 = vpop.f32.mrb[127].mxu1  ;;  %v5681_v54 = vpop.f32.mrb[127].mxu0 }
 0x1fe   : > { %v2504_v47 = vadd.f32 %v5567_v29, %v7942_v48  ;;  %v5570_v49 = vadd.f32 %v5569_v3, %v5568_v43  ;;  %v5682_v19 = vadd.f32 %v5681_v54, %v5680_v24  ;;  %v8695_v43 = vld [vmem:[#allocation18_spill] sm:$0xff]  ;;  %v8696_v3 = vld [vmem:[#allocation21_spill] sm:$0xff] }
 0x1ff   : > { %3726 = vmatmul.mubr.bf16.gmra.mrb[232].mxu1 %v8693_v4  ;;  %4056 = vmatmul.mubr.bf16.gmra.mrb[232].mxu0 %v8635_v44 }
 0x200   : > { %v8147_v63 = vadd.f32 %v5679_v61, %v2504_v47  ;;  %v2505_v9 = vadd.f32 %v5570_v49, %v7952_v10  ;;  %3733 = vmatprep.mubr.bf16.mxu1 %v8694_v40  ;;  %4063 = vmatprep.mubr.bf16.mxu0 %v8636_v28 }
 0x202   : > { %v8152_v56 = vadd.f32 %v5682_v19, %v2505_v9  ;;  %v5571_v7 = vpop.f32.mrb[128].mxu1  ;;  %v5683_v55 = vpop.f32.mrb[128].mxu0 }
 0x203   : > { %v5572_v52 = vpop.f32.mrb[129].mxu1  ;;  %v5684_v48 = vpop.f32.mrb[129].mxu0 }
 0x204   : > { %v5573_v32 = vadd.f32 %v5572_v52, %v5571_v7  ;;  %v5685_v45 = vadd.f32 %v5684_v48, %v5683_v55  ;;  %v5574_v20 = vpop.f32.mrb[130].mxu1  ;;  %v5686_v57 = vpop.f32.mrb[130].mxu0 }
 0x205   : > { %v5575_v42 = vpop.f32.mrb[131].mxu1  ;;  %v5687_v44 = vpop.f32.mrb[131].mxu0 }
 0x206   : > { %v2506_v29 = vadd.f32 %v5573_v32, %v7975_v14  ;;  %v5576_v61 = vadd.f32 %v5575_v42, %v5574_v20  ;;  %v5688_v10 = vadd.f32 %v5687_v44, %v5686_v57  ;;  %v8697_v32 = vld [vmem:[#allocation22_spill] sm:$0xff]  ;;  %v8698_v20 = vld [vmem:[#allocation24_spill] sm:$0xff] }
 0x207   : > { %3734 = vmatmul.mubr.bf16.gmra.mrb[236].mxu1 %v8695_v43  ;;  %4064 = vmatmul.mubr.bf16.gmra.mrb[236].mxu0 %v8637_v12 }
 0x208   : > { %v8157_v28 = vadd.f32 %v5685_v45, %v2506_v29  ;;  %v2507_v24 = vadd.f32 %v5576_v61, %v7986_v26  ;;  %3741 = vmatprep.mubr.bf16.mxu1 %v8696_v3  ;;  %4071 = vmatprep.mubr.bf16.mxu0 %v8638_v21 }
 0x20a   : > { %v8162_v54 = vadd.f32 %v5688_v10, %v2507_v24  ;;  %v5577_v47 = vpop.f32.mrb[132].mxu1  ;;  %v5689_v49 = vpop.f32.mrb[132].mxu0 }
 0x20b   : > { %v5578_v19 = vpop.f32.mrb[133].mxu1  ;;  %v5690_v14 = vpop.f32.mrb[133].mxu0 }
 0x20c   : > { %v5579_v4 = vadd.f32 %v5578_v19, %v5577_v47  ;;  %v5691_v9 = vadd.f32 %v5690_v14, %v5689_v49  ;;  %v5580_v40 = vpop.f32.mrb[134].mxu1  ;;  %v5692_v7 = vpop.f32.mrb[134].mxu0  ;;  %v8699_v19 = vld [vmem:[#allocation26_spill] sm:$0xff] }
 0x20d   : > { %v5581_v55 = vpop.f32.mrb[135].mxu1  ;;  %v5693_v12 = vpop.f32.mrb[135].mxu0 }
 0x20e   : > { %v2508_v52 = vadd.f32 %v5579_v4, %v7991_v36  ;;  %v5582_v48 = vadd.f32 %v5581_v55, %v5580_v40  ;;  %v5694_v26 = vadd.f32 %v5693_v12, %v5692_v7  ;;  %v8700_v4 = vld [vmem:[#allocation29_spill] sm:$0xff] }
 0x20f   : > { %3742 = vmatmul.mubr.bf16.gmra.mrb[240].mxu1 %v8697_v32  ;;  %4072 = vmatmul.mubr.bf16.gmra.mrb[240].mxu0 %v8639_v35 }
 0x210   : > { %v8167_v21 = vadd.f32 %v5691_v9, %v2508_v52  ;;  %v2509_v45 = vadd.f32 %v5582_v48, %v7996_v27  ;;  %3749 = vmatprep.mubr.bf16.mxu1 %v8698_v20  ;;  %4079 = vmatprep.mubr.bf16.mxu0 %v8640_v0 }
 0x212   : > { %v8172_v57 = vadd.f32 %v5694_v26, %v2509_v45  ;;  %v5583_v42 = vpop.f32.mrb[136].mxu1  ;;  %v5695_v44 = vpop.f32.mrb[136].mxu0 }
 0x213   : > { %v5584_v29 = vpop.f32.mrb[137].mxu1  ;;  %v5696_v36 = vpop.f32.mrb[137].mxu0 }
 0x214   : > { %v5585_v61 = vadd.f32 %v5584_v29, %v5583_v42  ;;  %v5697_v10 = vadd.f32 %v5696_v36, %v5695_v44  ;;  %v5586_v43 = vpop.f32.mrb[138].mxu1  ;;  %v5698_v24 = vpop.f32.mrb[138].mxu0  ;;  %v8701_v42 = vld [vmem:[#allocation30_spill] sm:$0xff]  ;;  %v8702_v29 = vld [vmem:[#allocation32_spill] sm:$0xff]  ;;  %v8703_v36 = vld [vmem:[#allocation33_spill] sm:$0xff] }
 0x215   : > { %v5587_v3 = vpop.f32.mrb[139].mxu1  ;;  %v5699_v35 = vpop.f32.mrb[139].mxu0 }
 0x216   : > { %v2510_v47 = vadd.f32 %v5585_v61, %v8001_v30  ;;  %v5588_v49 = vadd.f32 %v5587_v3, %v5586_v43  ;;  %v5700_v27 = vadd.f32 %v5699_v35, %v5698_v24 }
 0x217   : > { %3750 = vmatmul.mubr.bf16.gmra.mrb[244].mxu1 %v8699_v19  ;;  %4080 = vmatmul.mubr.bf16.gmra.mrb[244].mxu0 %v8642_v41  ;;  %v8704_v19 = vld [vmem:[#allocation48_spill] sm:$0xff] }
 0x218   : > { %v8177_v0 = vadd.f32 %v5697_v10, %v2510_v47  ;;  %v2511_v14 = vadd.f32 %v5588_v49, %v8006_v25  ;;  %3757 = vmatprep.mubr.bf16.mxu1 %v8700_v4  ;;  %4087 = vmatprep.mubr.bf16.mxu0 %v8645_v31 }
 0x21a   : > { %v8182_v9 = vadd.f32 %v5700_v27, %v2511_v14  ;;  %v5589_v40 = vpop.f32.mrb[140].mxu1  ;;  %v5701_v7 = vpop.f32.mrb[140].mxu0 }
 0x21b   : > { %v5590_v55 = vpop.f32.mrb[141].mxu1  ;;  %v5702_v30 = vpop.f32.mrb[141].mxu0 }
 0x21c   : > { %v5591_v12 = vadd.f32 %v5590_v55, %v5589_v40  ;;  %v5703_v52 = vadd.f32 %v5702_v30, %v5701_v7  ;;  %v5592_v48 = vpop.f32.mrb[142].mxu1  ;;  %v5704_v26 = vpop.f32.mrb[142].mxu0  ;;  %v8705_v40 = vld [vmem:[#allocation34_spill] sm:$0xff] }
 0x21d   : > { %v5593_v32 = vpop.f32.mrb[143].mxu1  ;;  %v5705_v41 = vpop.f32.mrb[143].mxu0  ;;  %v8706_v55 = vld [vmem:[#allocation2_spill] sm:$0xff] }
 0x21e   : > { %v2512_v45 = vadd.f32 %v5591_v12, %v8011_v34  ;;  %v5594_v20 = vadd.f32 %v5593_v32, %v5592_v48  ;;  %v5706_v25 = vadd.f32 %v5705_v41, %v5704_v26  ;;  %v8707_v12 = vld [vmem:[#allocation36_spill] sm:$0xff] }
 0x21f   : > { %3758 = vmatmul.mubr.bf16.gmra.mrb[248].mxu1 %v8701_v42  ;;  %4088 = vmatmul.mubr.bf16.gmra.mrb[248].mxu0 %v8648_v39 }
 0x220   : > { %v8187_v31 = vadd.f32 %v5703_v52, %v2512_v45  ;;  %v2513_v44 = vadd.f32 %v5594_v20, %v8016_v33  ;;  %3765 = vmatprep.mubr.bf16.mxu1 %v8702_v29  ;;  %4095 = vmatprep.mubr.bf16.mxu0 %v8703_v36  ;;  %v8708_v29 = vld [vmem:[#allocation3_spill] sm:$0xff] }
 0x222   : > { %v8192_v61 = vadd.f32 %v5706_v25, %v2513_v44  ;;  %v5595_v10 = vpop.f32.mrb[144].mxu1  ;;  %v5707_v43 = vpop.f32.mrb[144].mxu0 }
 0x223   : > { %v5596_v24 = vpop.f32.mrb[145].mxu1  ;;  %v5708_v34 = vpop.f32.mrb[145].mxu0 }
 0x224   : > { %v5597_v3 = vadd.f32 %v5596_v24, %v5595_v10  ;;  %v5709_v35 = vadd.f32 %v5708_v34, %v5707_v43  ;;  %v5598_v47 = vpop.f32.mrb[146].mxu1  ;;  %v5710_v49 = vpop.f32.mrb[146].mxu0  ;;  %v8709_v24 = vld [vmem:[#allocation39_spill] sm:$0xff]  ;;  %v8710_v34 = vld [vmem:[#allocation40_spill] sm:$0xff] }
 0x225   : > { %v5599_v27 = vpop.f32.mrb[147].mxu1  ;;  %v5711_v39 = vpop.f32.mrb[147].mxu0 }
 0x226   : > { %v2514_v14 = vadd.f32 %v5597_v3, %v8704_v19  ;;  %v5600_v4 = vadd.f32 %v5599_v27, %v5598_v47  ;;  %v5712_v33 = vadd.f32 %v5711_v39, %v5710_v49  ;;  %v8711_v3 = vld [vmem:[#allocation5_spill] sm:$0xff]  ;;  %v8713_v49 = vld [vmem:[#allocation42_spill] sm:$0xff] }
 0x227   : > { %3766 = vmatmul.mubr.bf16.gmra.mrb[252].mxu1 %v8705_v40  ;;  %4096 = vmatmul.mubr.bf16.gmra.mrb[252].mxu0 %v8656_v50  ;;  %v8712_v47 = vld [vmem:[#allocation41_spill] sm:$0xff] }
 0x228   : > { %v8197_v7 = vadd.f32 %v5709_v35, %v2514_v14  ;;  %v2515_v30 = vadd.f32 %v5600_v4, %v8706_v55  ;;  %3773 = vmatprep.mubr.bf16.mxu1 %v8707_v12  ;;  %4103 = vmatprep.mubr.bf16.mxu0 %v8660_v38 }
 0x22a   : > { %v8202_v52 = vadd.f32 %v5712_v33, %v2515_v30  ;;  %v5601_v48 = vpop.f32.mrb[148].mxu1  ;;  %v5713_v26 = vpop.f32.mrb[148].mxu0 }
 0x22b   : > { %v5602_v32 = vpop.f32.mrb[149].mxu1  ;;  %v5714_v41 = vpop.f32.mrb[149].mxu0 }
 0x22c   : > { %v5603_v45 = vadd.f32 %v5602_v32, %v5601_v48  ;;  %v5715_v20 = vadd.f32 %v5714_v41, %v5713_v26  ;;  %v5604_v25 = vpop.f32.mrb[150].mxu1  ;;  %v5716_v42 = vpop.f32.mrb[150].mxu0  ;;  %v8714_v26 = vld [vmem:[#allocation7_spill] sm:$0xff] }
 0x22d   : > { %v5605_v44 = vpop.f32.mrb[151].mxu1  ;;  %v5717_v50 = vpop.f32.mrb[151].mxu0 }
 0x22e   : > { %v2516_v36 = vadd.f32 %v5603_v45, %v8708_v29  ;;  %v5606_v10 = vadd.f32 %v5605_v44, %v5604_v25  ;;  %v5718_v43 = vadd.f32 %v5717_v50, %v5716_v42  ;;  %v8716_v42 = vld [vmem:[#allocation9_spill] sm:$0xff]  ;;  %v8717_v50 = vld [vmem:[#allocation46_spill] sm:$0xff] }
 0x22f   : > { %3774 = vmatmul.mubr.bf16.gmra.mrb[0].mxu1 %v8709_v24  ;;  %4104 = vmatmul.mubr.bf16.gmra.mrb[0].mxu0 %v8710_v34 }
 0x230   : > { %v8207_v38 = vadd.f32 %v5715_v20, %v2516_v36  ;;  %v2517_v35 = vadd.f32 %v5606_v10, %v8711_v3  ;;  %3781 = vmatprep.mubr.bf16.mxu1 %v8712_v47  ;;  %4111 = vmatprep.mubr.bf16.mxu0 %v8713_v49  ;;  %v8715_v20 = vld [vmem:[#allocation44_spill] sm:$0xff] }
 0x232   : > { %v8212_v27 = vadd.f32 %v5718_v43, %v2517_v35  ;;  %v5607_v39 = vpop.f32.mrb[152].mxu1  ;;  %v5719_v19 = vpop.f32.mrb[152].mxu0 }
 0x233   : > { %v5608_v14 = vpop.f32.mrb[153].mxu1  ;;  %v5720_v4 = vpop.f32.mrb[153].mxu0 }
 0x234   : > { %v5609_v33 = vadd.f32 %v5608_v14, %v5607_v39  ;;  %v5721_v40 = vadd.f32 %v5720_v4, %v5719_v19  ;;  %v5610_v55 = vpop.f32.mrb[154].mxu1  ;;  %v5722_v30 = vpop.f32.mrb[154].mxu0  ;;  %v8718_v39 = vld [vmem:[#allocation11_spill] sm:$0xff] }
 0x235   : > { %v5611_v12 = vpop.f32.mrb[155].mxu1  ;;  %v5723_v48 = vpop.f32.mrb[155].mxu0 }
 0x236   : > { %v2518_v32 = vadd.f32 %v5609_v33, %v8714_v26  ;;  %v5612_v41 = vadd.f32 %v5611_v12, %v5610_v55  ;;  %v5724_v45 = vadd.f32 %v5723_v48, %v5722_v30  ;;  %v8719_v33 = vld [vmem:[#allocation49_spill] sm:$0xff]  ;;  %v8721_v30 = vld [vmem:[#allocation51_spill] sm:$0xff] }
 0x237   : > { %3782 = vmatmul.mubr.bf16.gmra.mrb[4].mxu1 %v8715_v20  ;;  %4112 = vmatmul.mubr.bf16.gmra.mrb[4].mxu0 %v8670_v6 }
 0x238   : > { %v8217_v25 = vadd.f32 %v5721_v40, %v2518_v32  ;;  %v2519_v44 = vadd.f32 %v5612_v41, %v8716_v42  ;;  %3789 = vmatprep.mubr.bf16.mxu1 %v8717_v50  ;;  %4119 = vmatprep.mubr.bf16.mxu0 %v8673_v37  ;;  %v8720_v40 = vld [vmem:[#allocation13_spill] sm:$0xff] }
 0x23a   : > { %v8222_v29 = vadd.f32 %v5724_v45, %v2519_v44  ;;  %v5613_v36 = vpop.f32.mrb[156].mxu1  ;;  %v5725_v10 = vpop.f32.mrb[156].mxu0 }
 0x23b   : > { %v5614_v43 = vpop.f32.mrb[157].mxu1  ;;  %v5726_v24 = vpop.f32.mrb[157].mxu0 }
 0x23c   : > { %v5615_v34 = vadd.f32 %v5614_v43, %v5613_v36  ;;  %v5727_v3 = vadd.f32 %v5726_v24, %v5725_v10  ;;  %v5616_v35 = vpop.f32.mrb[158].mxu1  ;;  %v5728_v47 = vpop.f32.mrb[158].mxu0  ;;  %v8722_v36 = vld [vmem:[#allocation15_spill] sm:$0xff] }
 0x23d   : > { %v5617_v49 = vpop.f32.mrb[159].mxu1  ;;  %v5729_v6 = vpop.f32.mrb[159].mxu0 }
 0x23e   : > { %v2520_v19 = vadd.f32 %v5615_v34, %v8718_v39  ;;  %v5618_v14 = vadd.f32 %v5617_v49, %v5616_v35  ;;  %v5730_v4 = vadd.f32 %v5729_v6, %v5728_v47  ;;  %v8723_v34 = vld [vmem:[#allocation53_spill] sm:$0xff]  ;;  %v8725_v47 = vld [vmem:[#allocation55_spill] sm:$0xff] }
 0x23f   : > { %3790 = vmatmul.mubr.bf16.gmra.mrb[8].mxu1 %v8719_v33  ;;  %4120 = vmatmul.mubr.bf16.gmra.mrb[8].mxu0 %v8675_v5 }
 0x240   : > { %v8227_v37 = vadd.f32 %v5727_v3, %v2520_v19  ;;  %v2521_v55 = vadd.f32 %v5618_v14, %v8720_v40  ;;  %3797 = vmatprep.mubr.bf16.mxu1 %v8721_v30  ;;  %4127 = vmatprep.mubr.bf16.mxu0 %v8677_v18  ;;  %v8724_v3 = vld [vmem:[#allocation17_spill] sm:$0xff] }
 0x242   : > { %v8232_v12 = vadd.f32 %v5730_v4, %v2521_v55  ;;  %v5747_v48 = vpop.f32.mrb[160].mxu1  ;;  %v5859_v26 = vpop.f32.mrb[160].mxu0 }
 0x243   : > { %v5748_v32 = vpop.f32.mrb[161].mxu1  ;;  %v5860_v41 = vpop.f32.mrb[161].mxu0 }
 0x244   : > { %v5749_v45 = vadd.f32 %v5748_v32, %v5747_v48  ;;  %v5861_v20 = vadd.f32 %v5860_v41, %v5859_v26  ;;  %v5750_v42 = vpop.f32.mrb[162].mxu1  ;;  %v5862_v44 = vpop.f32.mrb[162].mxu0  ;;  %v8726_v48 = vld [vmem:[#allocation19_spill] sm:$0xff] }
 0x245   : > { %v5751_v50 = vpop.f32.mrb[163].mxu1  ;;  %v5863_v5 = vpop.f32.mrb[163].mxu0 }
 0x246   : > { %v3168_v10 = vadd.f32 %v5749_v45, %v8722_v36  ;;  %v5752_v43 = vadd.f32 %v5751_v50, %v5750_v42  ;;  %v5864_v24 = vadd.f32 %v5863_v5, %v5862_v44  ;;  %v8727_v45 = vld [vmem:[#allocation57_spill] sm:$0xff]  ;;  %v8729_v44 = vld [vmem:[#allocation59_spill] sm:$0xff]  ;;  %v6434_v50 = vld [vmem:[%s6582_s14 + $0xd4] ss:$0 sps:$4 sm:$0x11]   ;;  %v3537_v5 = vshll.u32 %v8091_v8, 16 }
 0x247   : > { %3798 = vmatmul.mubr.bf16.gmra.mrb[12].mxu1 %v8723_v34  ;;  %4128 = vmatmul.mubr.bf16.gmra.mrb[12].mxu0 %v8679_v51  ;;  %s5043_s14 = sshll.u32 %s8740_s15, 7 }
 0x248   : > { %v8237_v18 = vadd.f32 %v5861_v20, %v3168_v10  ;;  %v3169_v35 = vadd.f32 %v5752_v43, %v8724_v3  ;;  %3805 = vmatprep.mubr.bf16.mxu1 %v8725_v47  ;;  %4135 = vmatprep.mubr.bf16.mxu0 %v8681_v16  ;;  %v8728_v20 = vld [vmem:[#allocation20_spill] sm:$0xff]  ;;  %s8363_s9 = scalar_lea.vmem %s8423_s4, %s5043_s14 }
 0x24a   : > { %v8242_v49 = vadd.f32 %v5864_v24, %v3169_v35  ;;  %v5753_v6 = vpop.f32.mrb[164].mxu1  ;;  %v5865_v39 = vpop.f32.mrb[164].mxu0 }
 0x24b   : > { %v5754_v19 = vpop.f32.mrb[165].mxu1  ;;  %v5866_v14 = vpop.f32.mrb[165].mxu0 }
 0x24c   : > { %v5755_v4 = vadd.f32 %v5754_v19, %v5753_v6  ;;  %v5867_v33 = vadd.f32 %v5866_v14, %v5865_v39  ;;  %v5756_v40 = vpop.f32.mrb[166].mxu1  ;;  %v5868_v55 = vpop.f32.mrb[166].mxu0  ;;  %v3535_v19 = vshrl.u32 %v8091_v8, 16  ;;  %v3539_v14 = vrot.slane %v3537_v5, 1 }
 0x24d   : > { %v5757_v51 = vpop.f32.mrb[167].mxu1  ;;  %v5869_v30 = vpop.f32.mrb[167].mxu0 }
 0x24e   : > { %v3170_v26 = vadd.f32 %v5755_v4, %v8726_v48  ;;  %v5758_v32 = vadd.f32 %v5757_v51, %v5756_v40  ;;  %v5870_v41 = vadd.f32 %v5869_v30, %v5868_v55  ;;  %v3525_v55 = vshll.u32 %v8109_v2, 16  ;;  %v8730_v51 = vld [vmem:[#allocation61_spill] sm:$0xff] }
 0x24f   : > { %3806 = vmatmul.mubr.bf16.gmra.mrb[16].mxu1 %v8727_v45  ;;  %4136 = vmatmul.mubr.bf16.gmra.mrb[16].mxu0 %v8683_v60 }
 0x250   : > { %v8247_v16 = vadd.f32 %v5867_v33, %v3170_v26  ;;  %v3171_v42 = vadd.f32 %v5758_v32, %v8728_v20  ;;  %3813 = vmatprep.mubr.bf16.mxu1 %v8729_v44  ;;  %4143 = vmatprep.mubr.bf16.mxu0 %v8684_v59  ;;  %v3542_v59 = vshll.u32 %v6434_v50, 16  ;;  %v8731_v26 = vld [vmem:[#allocation38_spill] sm:$0xff]  ;;  %v6435_v32 = vld [vmem:[%s6597_s25 + $0xd4] ss:$0 sps:$4 sm:$0x11]   ;;  %v3874_v20 = vrot.slane %v6434_v50, 1 }
 0x251   : > { %v8732_v50 = vld [vmem:[#allocation23_spill] sm:$0xff] }
 0x252   : > { %v8254_v36 = vadd.f32 %v5870_v41, %v3171_v42  ;;  %v5759_v10 = vpop.f32.mrb[168].mxu1  ;;  %v5871_v43 = vpop.f32.mrb[168].mxu0  ;;  %v3540_v41 = vor.u32 %v3539_v14, %v3535_v19  ;;  %v3544_v45 = vrot.slane %v3542_v59, 1  ;;  %v3870_v59 = vrot.slane %v8109_v2, 1 }
 0x253   : > { %v5760_v24 = vpop.f32.mrb[169].mxu1  ;;  %v5872_v34 = vpop.f32.mrb[169].mxu0 }
 0x254   : > { %v5761_v3 = vadd.f32 %v5760_v24, %v5759_v10  ;;  %v5873_v35 = vadd.f32 %v5872_v34, %v5871_v43  ;;  %v5762_v60 = vpop.f32.mrb[170].mxu1  ;;  %v5874_v47 = vpop.f32.mrb[170].mxu0  ;;  %v3527_v10 = vrot.slane %v3525_v55, 1  ;;  %v8734_v55 = vld [vmem:[#allocation25_spill] sm:$0xff] }
 0x255   : > { %v5763_v6 = vpop.f32.mrb[171].mxu1  ;;  %v5875_v39 = vpop.f32.mrb[171].mxu0 }
 0x256   : > { %v3172_v4 = vadd.f32 %v5761_v3, %v8081_v62  ;;  %v5764_v33 = vadd.f32 %v5763_v6, %v5762_v60  ;;  %v5876_v40 = vadd.f32 %v5875_v39, %v5874_v47  ;;  %v3873_v62 = vrot.slane %v8091_v8, 1 }
 0x257   : > { %3814 = vmatmul.mubr.bf16.gmra.mrb[20].mxu1 %v8730_v51  ;;  %4144 = vmatmul.mubr.bf16.gmra.mrb[20].mxu0 %v8685_v22  ;;  %v3523_v22 = vshrl.u32 %v8109_v2, 16  ;;  %v3545_v6 = vsel %vm1010_vm1, %v3540_v41, %v3544_v45 }
 0x258   : > { %v8261_v30 = vadd.f32 %v5873_v35, %v3172_v4  ;;  %v3173_v48 = vadd.f32 %v5764_v33, %v8088_v17  ;;  %3821 = vmatprep.mubr.bf16.mxu1 %v8731_v26  ;;  %4151 = vmatprep.mubr.bf16.mxu0 %v8094_v13  ;;  %v3530_v13 = vshll.u32 %v6435_v32, 16  ;;  %v3875_v8 = vsel %vm1749_vm0, %v3873_v62, %v3874_v20  ;;  %v8733_v4 = vld [vmem:[#allocation43_spill] sm:$0xff] }
 0x259   : > { %v3528_v33 = vor.u32 %v3527_v10, %v3523_v22  ;;  %v3871_v26 = vrot.slane %v6435_v32, 1 }
 0x25a   : > { %v8268_v42 = vadd.f32 %v5876_v40, %v3173_v48  ;;  %v5765_v44 = vpop.f32.mrb[172].mxu1  ;;  %v5877_v5 = vpop.f32.mrb[172].mxu0  ;;  %v3532_v48 = vrot.slane %v3530_v13, 1 }
 0x25b   : > { %v5766_v43 = vpop.f32.mrb[173].mxu1  ;;  %v5878_v24 = vpop.f32.mrb[173].mxu0  ;;  %v3872_v22 = vsel %vm1749_vm0, %v3870_v59, %v3871_v26 }
 0x25c   : > { %v5767_v17 = vadd.f32 %v5766_v43, %v5765_v44  ;;  %v5879_v34 = vadd.f32 %v5878_v24, %v5877_v5  ;;  %v5768_v3 = vpop.f32.mrb[174].mxu1  ;;  %v5880_v35 = vpop.f32.mrb[174].mxu0 }
 0x25d   : > { %v5769_v60 = vpop.f32.mrb[175].mxu1  ;;  %v5881_v47 = vpop.f32.mrb[175].mxu0 }
 0x25e   : > { %v3174_v39 = vadd.f32 %v5767_v17, %v8732_v50  ;;  %v5770_v19 = vadd.f32 %v5769_v60, %v5768_v3  ;;  %v5882_v14 = vadd.f32 %v5881_v47, %v5880_v35 }
 0x25f   : > { %3822 = vmatmul.mubr.bf16.gmra.mrb[24].mxu1 %v8733_v4  ;;  %4152 = vmatmul.mubr.bf16.gmra.mrb[24].mxu0 %v8112_v11  ;;  %v3533_v11 = vsel %vm1010_vm1, %v3528_v33, %v3532_v48 }
 0x260   : > { %v8277_v40 = vadd.f32 %v5879_v34, %v3174_v39  ;;  %v3175_v51 = vadd.f32 %v5770_v19, %v8734_v55  ;;  %3829 = vmatprep.mubr.bf16.mxu1 %v3545_v6  ;;  %4159 = vmatprep.mubr.bf16.mxu0 %v3875_v8 }
 0x262   : > { %v8280_v41 = vadd.f32 %v5882_v14, %v3175_v51  ;;  %v5771_v45 = vpop.f32.mrb[176].mxu1  ;;  %v5883_v62 = vpop.f32.mrb[176].mxu0 }
 0x263   : > { %v5772_v20 = vpop.f32.mrb[177].mxu1  ;;  %v5884_v44 = vpop.f32.mrb[177].mxu0 }
 0x264   : > { %v5773_v2 = vadd.f32 %v5772_v20, %v5771_v45  ;;  %v5885_v5 = vadd.f32 %v5884_v44, %v5883_v62  ;;  %v5774_v43 = vpop.f32.mrb[178].mxu1  ;;  %v5886_v24 = vpop.f32.mrb[178].mxu0 }
 0x265   : > { %v5775_v10 = vpop.f32.mrb[179].mxu1  ;;  %v5887_v17 = vpop.f32.mrb[179].mxu0 }
 0x266   : > { %v3176_v34 = vadd.f32 %v5773_v2, %v8117_v23  ;;  %v5776_v3 = vadd.f32 %v5775_v10, %v5774_v43  ;;  %v5888_v32 = vadd.f32 %v5887_v17, %v5886_v24 }
 0x267   : > { %3830 = vmatmul.mubr.bf16.gmra.mrb[28].mxu1 %v3533_v11  ;;  %4160 = vmatmul.mubr.bf16.gmra.mrb[28].mxu0 %v3872_v22 }
 0x268   : > { %v8285_v35 = vadd.f32 %v5885_v5, %v3176_v34  ;;  %v3177_v13 = vadd.f32 %v5776_v3, %v8122_v58 }
 0x26a   : > { %v8288_v60 = vadd.f32 %v5888_v32, %v3177_v13  ;;  %v5777_v47 = vpop.f32.mrb[180].mxu1  ;;  %v5889_v6 = vpop.f32.mrb[180].mxu0 }
 0x26b   : > { %v5778_v8 = vpop.f32.mrb[181].mxu1  ;;  %v5890_v50 = vpop.f32.mrb[181].mxu0 }
 0x26c   : > { %v5779_v39 = vadd.f32 %v5778_v8, %v5777_v47  ;;  %v5891_v19 = vadd.f32 %v5890_v50, %v5889_v6  ;;  %v5780_v14 = vpop.f32.mrb[182].mxu1  ;;  %v5892_v59 = vpop.f32.mrb[182].mxu0 }
 0x26d   : > { %v5781_v4 = vpop.f32.mrb[183].mxu1  ;;  %v5893_v23 = vpop.f32.mrb[183].mxu0 }
 0x26e   : > { %v3178_v33 = vadd.f32 %v5779_v39, %v8127_v53  ;;  %v5782_v55 = vadd.f32 %v5781_v4, %v5780_v14  ;;  %v5894_v51 = vadd.f32 %v5893_v23, %v5892_v59 }
 0x270   : > { %v8291_v48 = vadd.f32 %v5891_v19, %v3178_v33  ;;  %v3179_v58 = vadd.f32 %v5782_v55, %v8132_v46 }
 0x272   : > { %v8294_v26 = vadd.f32 %v5894_v51, %v3179_v58  ;;  %v5783_v45 = vpop.f32.mrb[184].mxu1  ;;  %v5895_v62 = vpop.f32.mrb[184].mxu0 }
 0x273   : > { %v5784_v20 = vpop.f32.mrb[185].mxu1  ;;  %v5896_v44 = vpop.f32.mrb[185].mxu0 }
 0x274   : > { %v5785_v2 = vadd.f32 %v5784_v20, %v5783_v45  ;;  %v5897_v5 = vadd.f32 %v5896_v44, %v5895_v62  ;;  %v5786_v43 = vpop.f32.mrb[186].mxu1  ;;  %v5898_v24 = vpop.f32.mrb[186].mxu0 }
 0x275   : > { %v5787_v11 = vpop.f32.mrb[187].mxu1  ;;  %v5899_v22 = vpop.f32.mrb[187].mxu0 }
 0x276   : > { %v3180_v53 = vadd.f32 %v5785_v2, %v8137_v1  ;;  %v5788_v10 = vadd.f32 %v5787_v11, %v5786_v43  ;;  %v5900_v17 = vadd.f32 %v5899_v22, %v5898_v24 }
 0x278   : > { %v8297_v34 = vadd.f32 %v5897_v5, %v3180_v53  ;;  %v3181_v46 = vadd.f32 %v5788_v10, %v8142_v15 }
 0x27a   : > { %v8300_v3 = vadd.f32 %v5900_v17, %v3181_v46  ;;  %v5789_v32 = vpop.f32.mrb[188].mxu1  ;;  %v5901_v13 = vpop.f32.mrb[188].mxu0 }
 0x27b   : > { %v5790_v47 = vpop.f32.mrb[189].mxu1  ;;  %v5902_v6 = vpop.f32.mrb[189].mxu0 }
 0x27c   : > { %v5791_v8 = vadd.f32 %v5790_v47, %v5789_v32  ;;  %v5903_v50 = vadd.f32 %v5902_v6, %v5901_v13  ;;  %v5792_v39 = vpop.f32.mrb[190].mxu1  ;;  %v5904_v19 = vpop.f32.mrb[190].mxu0 }
 0x27d   : > { %v5793_v14 = vpop.f32.mrb[191].mxu1  ;;  %v5905_v59 = vpop.f32.mrb[191].mxu0 }
 0x27e   : > { %v3182_v1 = vadd.f32 %v5791_v8, %v8147_v63  ;;  %v5794_v4 = vadd.f32 %v5793_v14, %v5792_v39  ;;  %v5906_v23 = vadd.f32 %v5905_v59, %v5904_v19 }
 0x280   : > { %v8303_v33 = vadd.f32 %v5903_v50, %v3182_v1  ;;  %v3183_v15 = vadd.f32 %v5794_v4, %v8152_v56 }
 0x282   : > { %v8306_v55 = vadd.f32 %v5906_v23, %v3183_v15  ;;  %v5795_v51 = vpop.f32.mrb[192].mxu1  ;;  %v5907_v58 = vpop.f32.mrb[192].mxu0 }
 0x283   : > { %v5796_v45 = vpop.f32.mrb[193].mxu1  ;;  %v5908_v62 = vpop.f32.mrb[193].mxu0 }
 0x284   : > { %v5797_v20 = vadd.f32 %v5796_v45, %v5795_v51  ;;  %v5909_v44 = vadd.f32 %v5908_v62, %v5907_v58  ;;  %v5798_v2 = vpop.f32.mrb[194].mxu1  ;;  %v5910_v5 = vpop.f32.mrb[194].mxu0 }
 0x285   : > { %v5799_v43 = vpop.f32.mrb[195].mxu1  ;;  %v5911_v24 = vpop.f32.mrb[195].mxu0 }
 0x286   : > { %v3184_v63 = vadd.f32 %v5797_v20, %v8157_v28  ;;  %v5800_v11 = vadd.f32 %v5799_v43, %v5798_v2  ;;  %v5912_v22 = vadd.f32 %v5911_v24, %v5910_v5 }
 0x288   : > { %v8309_v53 = vadd.f32 %v5909_v44, %v3184_v63  ;;  %v3185_v56 = vadd.f32 %v5800_v11, %v8162_v54 }
 0x28a   : > { %v8312_v10 = vadd.f32 %v5912_v22, %v3185_v56  ;;  %v5801_v17 = vpop.f32.mrb[196].mxu1  ;;  %v5913_v46 = vpop.f32.mrb[196].mxu0 }
 0x28b   : > { %v5802_v32 = vpop.f32.mrb[197].mxu1  ;;  %v5914_v13 = vpop.f32.mrb[197].mxu0 }
 0x28c   : > { %v5803_v47 = vadd.f32 %v5802_v32, %v5801_v17  ;;  %v5915_v6 = vadd.f32 %v5914_v13, %v5913_v46  ;;  %v5804_v8 = vpop.f32.mrb[198].mxu1  ;;  %v5916_v50 = vpop.f32.mrb[198].mxu0 }
 0x28d   : > { %v5805_v39 = vpop.f32.mrb[199].mxu1  ;;  %v5917_v19 = vpop.f32.mrb[199].mxu0 }
 0x28e   : > { %v3186_v28 = vadd.f32 %v5803_v47, %v8167_v21  ;;  %v5806_v14 = vadd.f32 %v5805_v39, %v5804_v8  ;;  %v5918_v59 = vadd.f32 %v5917_v19, %v5916_v50 }
 0x290   : > { %v8315_v1 = vadd.f32 %v5915_v6, %v3186_v28  ;;  %v3187_v54 = vadd.f32 %v5806_v14, %v8172_v57 }
 0x292   : > { %v8318_v4 = vadd.f32 %v5918_v59, %v3187_v54  ;;  %v5807_v23 = vpop.f32.mrb[200].mxu1  ;;  %v5919_v15 = vpop.f32.mrb[200].mxu0 }
 0x293   : > { %v5808_v51 = vpop.f32.mrb[201].mxu1  ;;  %v5920_v58 = vpop.f32.mrb[201].mxu0 }
 0x294   : > { %v5809_v45 = vadd.f32 %v5808_v51, %v5807_v23  ;;  %v5921_v62 = vadd.f32 %v5920_v58, %v5919_v15  ;;  %v5810_v20 = vpop.f32.mrb[202].mxu1  ;;  %v5922_v44 = vpop.f32.mrb[202].mxu0 }
 0x295   : > { %v5811_v2 = vpop.f32.mrb[203].mxu1  ;;  %v5923_v5 = vpop.f32.mrb[203].mxu0 }
 0x296   : > { %v3188_v21 = vadd.f32 %v5809_v45, %v8177_v0  ;;  %v5812_v43 = vadd.f32 %v5811_v2, %v5810_v20  ;;  %v5924_v24 = vadd.f32 %v5923_v5, %v5922_v44 }
 0x298   : > { %v8321_v63 = vadd.f32 %v5921_v62, %v3188_v21  ;;  %v3189_v57 = vadd.f32 %v5812_v43, %v8182_v9 }
 0x29a   : > { %v8324_v11 = vadd.f32 %v5924_v24, %v3189_v57  ;;  %v5813_v22 = vpop.f32.mrb[204].mxu1  ;;  %v5925_v56 = vpop.f32.mrb[204].mxu0 }
 0x29b   : > { %v5814_v17 = vpop.f32.mrb[205].mxu1  ;;  %v5926_v46 = vpop.f32.mrb[205].mxu0 }
 0x29c   : > { %v5815_v32 = vadd.f32 %v5814_v17, %v5813_v22  ;;  %v5927_v13 = vadd.f32 %v5926_v46, %v5925_v56  ;;  %v5816_v47 = vpop.f32.mrb[206].mxu1  ;;  %v5928_v6 = vpop.f32.mrb[206].mxu0 }
 0x29d   : > { %v5817_v8 = vpop.f32.mrb[207].mxu1  ;;  %v5929_v50 = vpop.f32.mrb[207].mxu0 }
 0x29e   : > { %v3190_v0 = vadd.f32 %v5815_v32, %v8187_v31  ;;  %v5818_v39 = vadd.f32 %v5817_v8, %v5816_v47  ;;  %v5930_v19 = vadd.f32 %v5929_v50, %v5928_v6 }
 0x2a0   : > { %v8327_v28 = vadd.f32 %v5927_v13, %v3190_v0  ;;  %v3191_v9 = vadd.f32 %v5818_v39, %v8192_v61 }
 0x2a2   : > { %v8330_v14 = vadd.f32 %v5930_v19, %v3191_v9  ;;  %v5819_v59 = vpop.f32.mrb[208].mxu1  ;;  %v5931_v54 = vpop.f32.mrb[208].mxu0 }
 0x2a3   : > { %v5820_v23 = vpop.f32.mrb[209].mxu1  ;;  %v5932_v15 = vpop.f32.mrb[209].mxu0 }
 0x2a4   : > { %v5821_v51 = vadd.f32 %v5820_v23, %v5819_v59  ;;  %v5933_v58 = vadd.f32 %v5932_v15, %v5931_v54  ;;  %v5822_v45 = vpop.f32.mrb[210].mxu1  ;;  %v5934_v62 = vpop.f32.mrb[210].mxu0 }
 0x2a5   : > { %v5823_v20 = vpop.f32.mrb[211].mxu1  ;;  %v5935_v44 = vpop.f32.mrb[211].mxu0 }
 0x2a6   : > { %v3192_v31 = vadd.f32 %v5821_v51, %v8197_v7  ;;  %v5824_v2 = vadd.f32 %v5823_v20, %v5822_v45  ;;  %v5936_v5 = vadd.f32 %v5935_v44, %v5934_v62 }
 0x2a8   : > { %v8333_v21 = vadd.f32 %v5933_v58, %v3192_v31  ;;  %v3193_v61 = vadd.f32 %v5824_v2, %v8202_v52 }
 0x2aa   : > { %v8336_v43 = vadd.f32 %v5936_v5, %v3193_v61  ;;  %v5825_v24 = vpop.f32.mrb[212].mxu1  ;;  %v5937_v57 = vpop.f32.mrb[212].mxu0 }
 0x2ab   : > { %v5826_v22 = vpop.f32.mrb[213].mxu1  ;;  %v5938_v56 = vpop.f32.mrb[213].mxu0 }
 0x2ac   : > { %v5827_v17 = vadd.f32 %v5826_v22, %v5825_v24  ;;  %v5939_v46 = vadd.f32 %v5938_v56, %v5937_v57  ;;  %v5828_v32 = vpop.f32.mrb[214].mxu1  ;;  %v5940_v13 = vpop.f32.mrb[214].mxu0 }
 0x2ad   : > { %v5829_v47 = vpop.f32.mrb[215].mxu1  ;;  %v5941_v6 = vpop.f32.mrb[215].mxu0 }
 0x2ae   : > { %v3194_v7 = vadd.f32 %v5827_v17, %v8207_v38  ;;  %v5830_v8 = vadd.f32 %v5829_v47, %v5828_v32  ;;  %v5942_v50 = vadd.f32 %v5941_v6, %v5940_v13 }
 0x2b0   : > { %v8339_v0 = vadd.f32 %v5939_v46, %v3194_v7  ;;  %v3195_v52 = vadd.f32 %v5830_v8, %v8212_v27 }
 0x2b2   : > { %v8342_v39 = vadd.f32 %v5942_v50, %v3195_v52  ;;  %v5831_v19 = vpop.f32.mrb[216].mxu1  ;;  %v5943_v9 = vpop.f32.mrb[216].mxu0 }
 0x2b3   : > { %v5832_v59 = vpop.f32.mrb[217].mxu1  ;;  %v5944_v54 = vpop.f32.mrb[217].mxu0 }
 0x2b4   : > { %v5833_v23 = vadd.f32 %v5832_v59, %v5831_v19  ;;  %v5945_v15 = vadd.f32 %v5944_v54, %v5943_v9  ;;  %v5834_v51 = vpop.f32.mrb[218].mxu1  ;;  %v5946_v58 = vpop.f32.mrb[218].mxu0 }
 0x2b5   : > { %v5835_v45 = vpop.f32.mrb[219].mxu1  ;;  %v5947_v62 = vpop.f32.mrb[219].mxu0 }
 0x2b6   : > { %v3196_v38 = vadd.f32 %v5833_v23, %v8217_v25  ;;  %v5836_v20 = vadd.f32 %v5835_v45, %v5834_v51  ;;  %v5948_v44 = vadd.f32 %v5947_v62, %v5946_v58 }
 0x2b8   : > { %v8345_v31 = vadd.f32 %v5945_v15, %v3196_v38  ;;  %v3197_v27 = vadd.f32 %v5836_v20, %v8222_v29 }
 0x2ba   : > { %v8348_v2 = vadd.f32 %v5948_v44, %v3197_v27  ;;  %v5837_v5 = vpop.f32.mrb[220].mxu1  ;;  %v5949_v61 = vpop.f32.mrb[220].mxu0 }
 0x2bb   : > { %v5838_v24 = vpop.f32.mrb[221].mxu1  ;;  %v5950_v57 = vpop.f32.mrb[221].mxu0 }
 0x2bc   : > { %v5839_v22 = vadd.f32 %v5838_v24, %v5837_v5  ;;  %v5951_v56 = vadd.f32 %v5950_v57, %v5949_v61  ;;  %v5840_v17 = vpop.f32.mrb[222].mxu1  ;;  %v5952_v46 = vpop.f32.mrb[222].mxu0 }
 0x2bd   : > { %v5841_v32 = vpop.f32.mrb[223].mxu1  ;;  %v5953_v13 = vpop.f32.mrb[223].mxu0 }
 0x2be   : > { %v3198_v25 = vadd.f32 %v5839_v22, %v8227_v37  ;;  %v5842_v47 = vadd.f32 %v5841_v32, %v5840_v17  ;;  %v5954_v6 = vadd.f32 %v5953_v13, %v5952_v46 }
 0x2c0   : > { %v8351_v7 = vadd.f32 %v5951_v56, %v3198_v25  ;;  %v3199_v29 = vadd.f32 %v5842_v47, %v8232_v12 }
 0x2c2   : > { %v8354_v8 = vadd.f32 %v5954_v6, %v3199_v29  ;;  %v5971_v50 = vpop.f32.mrb[224].mxu1  ;;  %v6083_v52 = vpop.f32.mrb[224].mxu0 }
 0x2c3   : > { %v5972_v19 = vpop.f32.mrb[225].mxu1  ;;  %v6084_v9 = vpop.f32.mrb[225].mxu0 }
 0x2c4   : > { %v5973_v59 = vadd.f32 %v5972_v19, %v5971_v50  ;;  %v6085_v54 = vadd.f32 %v6084_v9, %v6083_v52  ;;  %v5974_v23 = vpop.f32.mrb[226].mxu1  ;;  %v6086_v15 = vpop.f32.mrb[226].mxu0 }
 0x2c5   : > { %v5975_v51 = vpop.f32.mrb[227].mxu1  ;;  %v6087_v58 = vpop.f32.mrb[227].mxu0 }
 0x2c6   : > { %v3838_v37 = vadd.f32 %v5973_v59, %v8237_v18  ;;  %v5976_v45 = vadd.f32 %v5975_v51, %v5974_v23  ;;  %v6088_v62 = vadd.f32 %v6087_v58, %v6086_v15 }
 0x2c8   : > { %v4168_v38 = vadd.f32 %v6085_v54, %v3838_v37  ;;  %v3839_v12 = vadd.f32 %v5976_v45, %v8242_v49 }
 0x2ca   : > { %v4200_v20 = vmul.f32 0.1, %v4168_v38  ;;  %v4169_v44 = vadd.f32 %v6088_v62, %v3839_v12  ;;  %v5977_v27 = vpop.f32.mrb[228].mxu1  ;;  %v6089_v5 = vpop.f32.mrb[228].mxu0 }
 0x2cb   : > { %v5978_v61 = vpop.f32.mrb[229].mxu1  ;;  %v6090_v24 = vpop.f32.mrb[229].mxu0 }
 0x2cc   : > { %v4201_v57 = vmul.f32 0.1, %v4169_v44  ;;  %v5979_v22 = vadd.f32 %v5978_v61, %v5977_v27  ;;  %v6091_v56 = vadd.f32 %v6090_v24, %v6089_v5  ;;  %v5980_v17 = vpop.f32.mrb[230].mxu1  ;;  %v6092_v46 = vpop.f32.mrb[230].mxu0  ;;  %v4232_v32 = vmax.f32 %v4168_v38, %v4200_v20 }
 0x2cd   : > { %v5981_v13 = vpop.f32.mrb[231].mxu1  ;;  %v6093_v18 = vpop.f32.mrb[231].mxu0 }
 0x2ce   : > { %v4233_v25 = vmax.f32 %v4169_v44, %v4201_v57  ;;  %v3840_v47 = vadd.f32 %v5979_v22, %v8247_v16  ;;  %v5982_v6 = vadd.f32 %v5981_v13, %v5980_v17  ;;  %v6094_v49 = vadd.f32 %v6093_v18, %v6092_v46 }
 0x2d0   : > { %v5079_v29 = vpack.c.bf16 %v4233_v25, %v4232_v32  ;;  %v4170_v50 = vadd.f32 %v6091_v56, %v3840_v47  ;;  %v3841_v52 = vadd.f32 %v5982_v6, %v8254_v36 }
 0x2d2   : > { %5080 = vst [vmem:[%s8363_s9] sm:$0xff] %v5079_v29   ;;  %v4202_v19 = vmul.f32 0.1, %v4170_v50  ;;  %v4171_v9 = vadd.f32 %v6094_v49, %v3841_v52  ;;  %v5983_v59 = vpop.f32.mrb[232].mxu1  ;;  %v6095_v54 = vpop.f32.mrb[232].mxu0 }
 0x2d3   : > { %v5984_v23 = vpop.f32.mrb[233].mxu1  ;;  %v6096_v15 = vpop.f32.mrb[233].mxu0 }
 0x2d4   : > { %v4203_v16 = vmul.f32 0.1, %v4171_v9  ;;  %v5985_v51 = vadd.f32 %v5984_v23, %v5983_v59  ;;  %v6097_v58 = vadd.f32 %v6096_v15, %v6095_v54  ;;  %v5986_v37 = vpop.f32.mrb[234].mxu1  ;;  %v6098_v45 = vpop.f32.mrb[234].mxu0  ;;  %v4234_v62 = vmax.f32 %v4170_v50, %v4202_v19 }
 0x2d5   : > { %v5987_v38 = vpop.f32.mrb[235].mxu1  ;;  %v6099_v12 = vpop.f32.mrb[235].mxu0 }
 0x2d6   : > { %v4235_v20 = vmax.f32 %v4171_v9, %v4203_v16  ;;  %v3842_v44 = vadd.f32 %v5985_v51, %v8261_v30  ;;  %v5988_v36 = vadd.f32 %v5987_v38, %v5986_v37  ;;  %v6100_v27 = vadd.f32 %v6099_v12, %v6098_v45 }
 0x2d8   : > { %v5084_v5 = vpack.c.bf16 %v4235_v20, %v4234_v62  ;;  %v4172_v61 = vadd.f32 %v6097_v58, %v3842_v44  ;;  %v3843_v24 = vadd.f32 %v5988_v36, %v8268_v42 }
 0x2da   : > { %5156 = vst [vmem:[%s8363_s9 + $0x8] sm:$0xff] %v5084_v5   ;;  %v4204_v57 = vmul.f32 0.1, %v4172_v61  ;;  %v4173_v22 = vadd.f32 %v6100_v27, %v3843_v24  ;;  %v5989_v56 = vpop.f32.mrb[236].mxu1  ;;  %v6101_v17 = vpop.f32.mrb[236].mxu0 }
 0x2db   : > { %v5990_v46 = vpop.f32.mrb[237].mxu1  ;;  %v6102_v32 = vpop.f32.mrb[237].mxu0 }
 0x2dc   : > { %v4205_v13 = vmul.f32 0.1, %v4173_v22  ;;  %v5991_v18 = vadd.f32 %v5990_v46, %v5989_v56  ;;  %v6103_v25 = vadd.f32 %v6102_v32, %v6101_v17  ;;  %v5992_v47 = vpop.f32.mrb[238].mxu1  ;;  %v6104_v6 = vpop.f32.mrb[238].mxu0  ;;  %v4236_v30 = vmax.f32 %v4172_v61, %v4204_v57 }
 0x2dd   : > { %v5993_v49 = vpop.f32.mrb[239].mxu1  ;;  %v6105_v29 = vpop.f32.mrb[239].mxu0 }
 0x2de   : > { %v4237_v50 = vmax.f32 %v4173_v22, %v4205_v13  ;;  %v3844_v52 = vadd.f32 %v5991_v18, %v8277_v40  ;;  %v5994_v42 = vadd.f32 %v5993_v49, %v5992_v47  ;;  %v6106_v19 = vadd.f32 %v6105_v29, %v6104_v6 }
 0x2e0   : > { %v5089_v9 = vpack.c.bf16 %v4237_v50, %v4236_v30  ;;  %v4174_v59 = vadd.f32 %v6103_v25, %v3844_v52  ;;  %v3845_v54 = vadd.f32 %v5994_v42, %v8280_v41 }
 0x2e2   : > { %5157 = vst [vmem:[%s8363_s9 + $0x10] sm:$0xff] %v5089_v9   ;;  %v4206_v23 = vmul.f32 0.1, %v4174_v59  ;;  %v4175_v15 = vadd.f32 %v6106_v19, %v3845_v54  ;;  %v5995_v16 = vpop.f32.mrb[240].mxu1  ;;  %v6107_v51 = vpop.f32.mrb[240].mxu0 }
 0x2e3   : > { %v5996_v58 = vpop.f32.mrb[241].mxu1  ;;  %v6108_v37 = vpop.f32.mrb[241].mxu0 }
 0x2e4   : > { %v4207_v45 = vmul.f32 0.1, %v4175_v15  ;;  %v5997_v62 = vadd.f32 %v5996_v58, %v5995_v16  ;;  %v6109_v38 = vadd.f32 %v6108_v37, %v6107_v51  ;;  %v5998_v12 = vpop.f32.mrb[242].mxu1  ;;  %v6110_v20 = vpop.f32.mrb[242].mxu0  ;;  %v4238_v40 = vmax.f32 %v4174_v59, %v4206_v23 }
 0x2e5   : > { %v5999_v44 = vpop.f32.mrb[243].mxu1  ;;  %v6111_v36 = vpop.f32.mrb[243].mxu0 }
 0x2e6   : > { %v4239_v27 = vmax.f32 %v4175_v15, %v4207_v45  ;;  %v3846_v5 = vadd.f32 %v5997_v62, %v8285_v35  ;;  %v6000_v41 = vadd.f32 %v5999_v44, %v5998_v12  ;;  %v6112_v61 = vadd.f32 %v6111_v36, %v6110_v20 }
 0x2e8   : > { %v5094_v24 = vpack.c.bf16 %v4239_v27, %v4238_v40  ;;  %v4176_v57 = vadd.f32 %v6109_v38, %v3846_v5  ;;  %v3847_v22 = vadd.f32 %v6000_v41, %v8288_v60 }
 0x2ea   : > { %5158 = vst [vmem:[%s8363_s9 + $0x18] sm:$0xff] %v5094_v24   ;;  %v4208_v56 = vmul.f32 0.1, %v4176_v57  ;;  %v4177_v17 = vadd.f32 %v6112_v61, %v3847_v22  ;;  %v6001_v46 = vpop.f32.mrb[244].mxu1  ;;  %v6113_v32 = vpop.f32.mrb[244].mxu0 }
 0x2eb   : > { %v6002_v13 = vpop.f32.mrb[245].mxu1  ;;  %v6114_v18 = vpop.f32.mrb[245].mxu0 }
 0x2ec   : > { %v4209_v25 = vmul.f32 0.1, %v4177_v17  ;;  %v6003_v47 = vadd.f32 %v6002_v13, %v6001_v46  ;;  %v6115_v6 = vadd.f32 %v6114_v18, %v6113_v32  ;;  %v6004_v30 = vpop.f32.mrb[246].mxu1  ;;  %v6116_v49 = vpop.f32.mrb[246].mxu0  ;;  %v4240_v35 = vmax.f32 %v4176_v57, %v4208_v56 }
 0x2ed   : > { %v6005_v29 = vpop.f32.mrb[247].mxu1  ;;  %v6117_v50 = vpop.f32.mrb[247].mxu0 }
 0x2ee   : > { %v4241_v52 = vmax.f32 %v4177_v17, %v4209_v25  ;;  %v3848_v42 = vadd.f32 %v6003_v47, %v8291_v48  ;;  %v6006_v60 = vadd.f32 %v6005_v29, %v6004_v30  ;;  %v6118_v19 = vadd.f32 %v6117_v50, %v6116_v49 }
 0x2f0   : > { %v5099_v9 = vpack.c.bf16 %v4241_v52, %v4240_v35  ;;  %v4178_v59 = vadd.f32 %v6115_v6, %v3848_v42  ;;  %v3849_v54 = vadd.f32 %v6006_v60, %v8294_v26 }
 0x2f2   : > { %5159 = vst [vmem:[%s8363_s9 + $0x20] sm:$0xff] %v5099_v9   ;;  %v4210_v23 = vmul.f32 0.1, %v4178_v59  ;;  %v4179_v15 = vadd.f32 %v6118_v19, %v3849_v54  ;;  %v6007_v16 = vpop.f32.mrb[248].mxu1  ;;  %v6119_v51 = vpop.f32.mrb[248].mxu0 }
 0x2f3   : > { %v6008_v58 = vpop.f32.mrb[249].mxu1  ;;  %v6120_v37 = vpop.f32.mrb[249].mxu0 }
 0x2f4   : > { %v4211_v45 = vmul.f32 0.1, %v4179_v15  ;;  %v6009_v62 = vadd.f32 %v6008_v58, %v6007_v16  ;;  %v6121_v38 = vadd.f32 %v6120_v37, %v6119_v51  ;;  %v6010_v12 = vpop.f32.mrb[250].mxu1  ;;  %v6122_v20 = vpop.f32.mrb[250].mxu0  ;;  %v4242_v48 = vmax.f32 %v4178_v59, %v4210_v23 }
 0x2f5   : > { %v6011_v40 = vpop.f32.mrb[251].mxu1  ;;  %v6123_v44 = vpop.f32.mrb[251].mxu0 }
 0x2f6   : > { %v4243_v36 = vmax.f32 %v4179_v15, %v4211_v45  ;;  %v3850_v27 = vadd.f32 %v6009_v62, %v8297_v34  ;;  %v6012_v26 = vadd.f32 %v6011_v40, %v6010_v12  ;;  %v6124_v5 = vadd.f32 %v6123_v44, %v6122_v20 }
 0x2f8   : > { %v5104_v41 = vpack.c.bf16 %v4243_v36, %v4242_v48  ;;  %v4180_v61 = vadd.f32 %v6121_v38, %v3850_v27  ;;  %v3851_v24 = vadd.f32 %v6012_v26, %v8300_v3 }
 0x2fa   : > { %5160 = vst [vmem:[%s8363_s9 + $0x28] sm:$0xff] %v5104_v41   ;;  %v4212_v57 = vmul.f32 0.1, %v4180_v61  ;;  %v4181_v22 = vadd.f32 %v6124_v5, %v3851_v24  ;;  %v6013_v56 = vpop.f32.mrb[252].mxu1  ;;  %v6125_v17 = vpop.f32.mrb[252].mxu0 }
 0x2fb   : > { %v6014_v46 = vpop.f32.mrb[253].mxu1  ;;  %v6126_v32 = vpop.f32.mrb[253].mxu0 }
 0x2fc   : > { %v4213_v13 = vmul.f32 0.1, %v4181_v22  ;;  %v6015_v18 = vadd.f32 %v6014_v46, %v6013_v56  ;;  %v6127_v25 = vadd.f32 %v6126_v32, %v6125_v17  ;;  %v6016_v47 = vpop.f32.mrb[254].mxu1  ;;  %v6128_v6 = vpop.f32.mrb[254].mxu0  ;;  %v4244_v34 = vmax.f32 %v4180_v61, %v4212_v57 }
 0x2fd   : > { %v6017_v30 = vpop.f32.mrb[255].mxu1  ;;  %v6129_v49 = vpop.f32.mrb[255].mxu0 }
 0x2fe   : > { %v4245_v35 = vmax.f32 %v4181_v22, %v4213_v13  ;;  %v3852_v29 = vadd.f32 %v6015_v18, %v8303_v33  ;;  %v6018_v3 = vadd.f32 %v6017_v30, %v6016_v47  ;;  %v6130_v50 = vadd.f32 %v6129_v49, %v6128_v6 }
 0x300   : > { %v5109_v52 = vpack.c.bf16 %v4245_v35, %v4244_v34  ;;  %v4182_v42 = vadd.f32 %v6127_v25, %v3852_v29  ;;  %v3853_v60 = vadd.f32 %v6018_v3, %v8306_v55 }
 0x302   : > { %5161 = vst [vmem:[%s8363_s9 + $0x30] sm:$0xff] %v5109_v52   ;;  %v4214_v19 = vmul.f32 0.1, %v4182_v42  ;;  %v4183_v9 = vadd.f32 %v6130_v50, %v3853_v60  ;;  %v6019_v59 = vpop.f32.mrb[0].mxu1  ;;  %v6131_v54 = vpop.f32.mrb[0].mxu0 }
 0x303   : > { %v6020_v23 = vpop.f32.mrb[1].mxu1  ;;  %v6132_v15 = vpop.f32.mrb[1].mxu0 }
 0x304   : > { %v4215_v16 = vmul.f32 0.1, %v4183_v9  ;;  %v6021_v51 = vadd.f32 %v6020_v23, %v6019_v59  ;;  %v6133_v58 = vadd.f32 %v6132_v15, %v6131_v54  ;;  %v6022_v37 = vpop.f32.mrb[2].mxu1  ;;  %v6134_v45 = vpop.f32.mrb[2].mxu0  ;;  %v4246_v33 = vmax.f32 %v4182_v42, %v4214_v19 }
 0x305   : > { %v6023_v62 = vpop.f32.mrb[3].mxu1  ;;  %v6135_v38 = vpop.f32.mrb[3].mxu0 }
 0x306   : > { %v4247_v12 = vmax.f32 %v4183_v9, %v4215_v16  ;;  %v3854_v20 = vadd.f32 %v6021_v51, %v8309_v53  ;;  %v6024_v55 = vadd.f32 %v6023_v62, %v6022_v37  ;;  %v6136_v48 = vadd.f32 %v6135_v38, %v6134_v45 }
 0x308   : > { %v5114_v40 = vpack.c.bf16 %v4247_v12, %v4246_v33  ;;  %v4184_v44 = vadd.f32 %v6133_v58, %v3854_v20  ;;  %v3855_v36 = vadd.f32 %v6024_v55, %v8312_v10 }
 0x30a   : > { %5162 = vst [vmem:[%s8363_s9 + $0x38] sm:$0xff] %v5114_v40   ;;  %v4216_v27 = vmul.f32 0.1, %v4184_v44  ;;  %v4185_v26 = vadd.f32 %v6136_v48, %v3855_v36  ;;  %v6025_v5 = vpop.f32.mrb[4].mxu1  ;;  %v6137_v41 = vpop.f32.mrb[4].mxu0 }
 0x30b   : > { %v6026_v61 = vpop.f32.mrb[5].mxu1  ;;  %v6138_v24 = vpop.f32.mrb[5].mxu0 }
 0x30c   : > { %v4217_v57 = vmul.f32 0.1, %v4185_v26  ;;  %v6027_v22 = vadd.f32 %v6026_v61, %v6025_v5  ;;  %v6139_v56 = vadd.f32 %v6138_v24, %v6137_v41  ;;  %v6028_v17 = vpop.f32.mrb[6].mxu1  ;;  %v6140_v46 = vpop.f32.mrb[6].mxu0  ;;  %v4248_v53 = vmax.f32 %v4184_v44, %v4216_v27 }
 0x30d   : > { %v6029_v32 = vpop.f32.mrb[7].mxu1  ;;  %v6141_v13 = vpop.f32.mrb[7].mxu0 }
 0x30e   : > { %v4249_v18 = vmax.f32 %v4185_v26, %v4217_v57  ;;  %v3856_v25 = vadd.f32 %v6027_v22, %v8315_v1  ;;  %v6030_v10 = vadd.f32 %v6029_v32, %v6028_v17  ;;  %v6142_v47 = vadd.f32 %v6141_v13, %v6140_v46 }
 0x310   : > { %v5119_v6 = vpack.c.bf16 %v4249_v18, %v4248_v53  ;;  %v4186_v34 = vadd.f32 %v6139_v56, %v3856_v25  ;;  %v3857_v30 = vadd.f32 %v6030_v10, %v8318_v4 }
 0x312   : > { %5163 = vst [vmem:[%s8363_s9 + $0x40] sm:$0xff] %v5119_v6   ;;  %v4218_v49 = vmul.f32 0.1, %v4186_v34  ;;  %v4187_v35 = vadd.f32 %v6142_v47, %v3857_v30  ;;  %v6031_v29 = vpop.f32.mrb[8].mxu1  ;;  %v6143_v3 = vpop.f32.mrb[8].mxu0 }
 0x313   : > { %v6032_v50 = vpop.f32.mrb[9].mxu1  ;;  %v6144_v52 = vpop.f32.mrb[9].mxu0 }
 0x314   : > { %v4219_v42 = vmul.f32 0.1, %v4187_v35  ;;  %v6033_v60 = vadd.f32 %v6032_v50, %v6031_v29  ;;  %v6145_v19 = vadd.f32 %v6144_v52, %v6143_v3  ;;  %v6034_v9 = vpop.f32.mrb[10].mxu1  ;;  %v6146_v59 = vpop.f32.mrb[10].mxu0  ;;  %v4250_v1 = vmax.f32 %v4186_v34, %v4218_v49 }
 0x315   : > { %v6035_v54 = vpop.f32.mrb[11].mxu1  ;;  %v6147_v23 = vpop.f32.mrb[11].mxu0 }
 0x316   : > { %v4251_v15 = vmax.f32 %v4187_v35, %v4219_v42  ;;  %v3858_v16 = vadd.f32 %v6033_v60, %v8321_v63  ;;  %v6036_v4 = vadd.f32 %v6035_v54, %v6034_v9  ;;  %v6148_v51 = vadd.f32 %v6147_v23, %v6146_v59 }
 0x318   : > { %v5124_v58 = vpack.c.bf16 %v4251_v15, %v4250_v1  ;;  %v4188_v37 = vadd.f32 %v6145_v19, %v3858_v16  ;;  %v3859_v45 = vadd.f32 %v6036_v4, %v8324_v11 }
 0x31a   : > { %5164 = vst [vmem:[%s8363_s9 + $0x48] sm:$0xff] %v5124_v58   ;;  %v4220_v33 = vmul.f32 0.1, %v4188_v37  ;;  %v4189_v62 = vadd.f32 %v6148_v51, %v3859_v45  ;;  %v6037_v38 = vpop.f32.mrb[12].mxu1  ;;  %v6149_v12 = vpop.f32.mrb[12].mxu0 }
 0x31b   : > { %v6038_v20 = vpop.f32.mrb[13].mxu1  ;;  %v6150_v55 = vpop.f32.mrb[13].mxu0 }
 0x31c   : > { %v4221_v48 = vmul.f32 0.1, %v4189_v62  ;;  %v6039_v40 = vadd.f32 %v6038_v20, %v6037_v38  ;;  %v6151_v44 = vadd.f32 %v6150_v55, %v6149_v12  ;;  %v6040_v36 = vpop.f32.mrb[14].mxu1  ;;  %v6152_v27 = vpop.f32.mrb[14].mxu0  ;;  %v4252_v63 = vmax.f32 %v4188_v37, %v4220_v33 }
 0x31d   : > { %v6041_v26 = vpop.f32.mrb[15].mxu1  ;;  %v6153_v5 = vpop.f32.mrb[15].mxu0 }
 0x31e   : > { %v4253_v41 = vmax.f32 %v4189_v62, %v4221_v48  ;;  %v3860_v61 = vadd.f32 %v6039_v40, %v8327_v28  ;;  %v6042_v11 = vadd.f32 %v6041_v26, %v6040_v36  ;;  %v6154_v24 = vadd.f32 %v6153_v5, %v6152_v27 }
 0x320   : > { %v5129_v57 = vpack.c.bf16 %v4253_v41, %v4252_v63  ;;  %v4190_v22 = vadd.f32 %v6151_v44, %v3860_v61  ;;  %v3861_v56 = vadd.f32 %v6042_v11, %v8330_v14 }
 0x322   : > { %5165 = vst [vmem:[%s8363_s9 + $0x50] sm:$0xff] %v5129_v57   ;;  %v4222_v17 = vmul.f32 0.1, %v4190_v22  ;;  %v4191_v46 = vadd.f32 %v6154_v24, %v3861_v56  ;;  %v6043_v53 = vpop.f32.mrb[16].mxu1  ;;  %v6155_v32 = vpop.f32.mrb[16].mxu0 }
 0x323   : > { %v6044_v13 = vpop.f32.mrb[17].mxu1  ;;  %v6156_v18 = vpop.f32.mrb[17].mxu0 }
 0x324   : > { %v4223_v25 = vmul.f32 0.1, %v4191_v46  ;;  %v6045_v10 = vadd.f32 %v6044_v13, %v6043_v53  ;;  %v6157_v47 = vadd.f32 %v6156_v18, %v6155_v32  ;;  %v6046_v6 = vpop.f32.mrb[18].mxu1  ;;  %v6158_v34 = vpop.f32.mrb[18].mxu0  ;;  %v4254_v28 = vmax.f32 %v4190_v22, %v4222_v17 }
 0x325   : > { %v6047_v30 = vpop.f32.mrb[19].mxu1  ;;  %v6159_v49 = vpop.f32.mrb[19].mxu0 }
 0x326   : > { %v4255_v35 = vmax.f32 %v4191_v46, %v4223_v25  ;;  %v3862_v29 = vadd.f32 %v6045_v10, %v8333_v21  ;;  %v6048_v14 = vadd.f32 %v6047_v30, %v6046_v6  ;;  %v6160_v3 = vadd.f32 %v6159_v49, %v6158_v34 }
 0x328   : > { %v5134_v50 = vpack.c.bf16 %v4255_v35, %v4254_v28  ;;  %v4192_v52 = vadd.f32 %v6157_v47, %v3862_v29  ;;  %v3863_v42 = vadd.f32 %v6048_v14, %v8336_v43 }
 0x32a   : > { %5166 = vst [vmem:[%s8363_s9 + $0x58] sm:$0xff] %v5134_v50   ;;  %v4224_v60 = vmul.f32 0.1, %v4192_v52  ;;  %v4193_v19 = vadd.f32 %v6160_v3, %v3863_v42  ;;  %v6049_v9 = vpop.f32.mrb[20].mxu1  ;;  %v6161_v59 = vpop.f32.mrb[20].mxu0 }
 0x32b   : > { %v6050_v1 = vpop.f32.mrb[21].mxu1  ;;  %v6162_v54 = vpop.f32.mrb[21].mxu0 }
 0x32c   : > { %v4225_v23 = vmul.f32 0.1, %v4193_v19  ;;  %v6051_v15 = vadd.f32 %v6050_v1, %v6049_v9  ;;  %v6163_v16 = vadd.f32 %v6162_v54, %v6161_v59  ;;  %v6052_v4 = vpop.f32.mrb[22].mxu1  ;;  %v6164_v51 = vpop.f32.mrb[22].mxu0  ;;  %v4256_v21 = vmax.f32 %v4192_v52, %v4224_v60 }
 0x32d   : > { %v6053_v58 = vpop.f32.mrb[23].mxu1  ;;  %v6165_v37 = vpop.f32.mrb[23].mxu0 }
 0x32e   : > { %v4257_v45 = vmax.f32 %v4193_v19, %v4225_v23  ;;  %v3864_v33 = vadd.f32 %v6051_v15, %v8339_v0  ;;  %v6054_v43 = vadd.f32 %v6053_v58, %v6052_v4  ;;  %v6166_v62 = vadd.f32 %v6165_v37, %v6164_v51 }
 0x330   : > { %v5139_v38 = vpack.c.bf16 %v4257_v45, %v4256_v21  ;;  %v4194_v12 = vadd.f32 %v6163_v16, %v3864_v33  ;;  %v3865_v20 = vadd.f32 %v6054_v43, %v8342_v39 }
 0x332   : > { %5167 = vst [vmem:[%s8363_s9 + $0x60] sm:$0xff] %v5139_v38   ;;  %v4226_v55 = vmul.f32 0.1, %v4194_v12  ;;  %v4195_v48 = vadd.f32 %v6166_v62, %v3865_v20  ;;  %v6055_v40 = vpop.f32.mrb[24].mxu1  ;;  %v6167_v44 = vpop.f32.mrb[24].mxu0 }
 0x333   : > { %v6056_v36 = vpop.f32.mrb[25].mxu1  ;;  %v6168_v27 = vpop.f32.mrb[25].mxu0 }
 0x334   : > { %v4227_v63 = vmul.f32 0.1, %v4195_v48  ;;  %v6057_v26 = vadd.f32 %v6056_v36, %v6055_v40  ;;  %v6169_v5 = vadd.f32 %v6168_v27, %v6167_v44  ;;  %v6058_v41 = vpop.f32.mrb[26].mxu1  ;;  %v6170_v61 = vpop.f32.mrb[26].mxu0  ;;  %v4258_v0 = vmax.f32 %v4194_v12, %v4226_v55 }
 0x335   : > { %v6059_v11 = vpop.f32.mrb[27].mxu1  ;;  %v6171_v24 = vpop.f32.mrb[27].mxu0 }
 0x336   : > { %v4259_v57 = vmax.f32 %v4195_v48, %v4227_v63  ;;  %v3866_v22 = vadd.f32 %v6057_v26, %v8345_v31  ;;  %v6060_v39 = vadd.f32 %v6059_v11, %v6058_v41  ;;  %v6172_v56 = vadd.f32 %v6171_v24, %v6170_v61 }
 0x338   : > { %v5144_v17 = vpack.c.bf16 %v4259_v57, %v4258_v0  ;;  %v4196_v46 = vadd.f32 %v6169_v5, %v3866_v22  ;;  %v3867_v53 = vadd.f32 %v6060_v39, %v8348_v2 }
 0x33a   : > { %5168 = vst [vmem:[%s8363_s9 + $0x68] sm:$0xff] %v5144_v17   ;;  %v4228_v32 = vmul.f32 0.1, %v4196_v46  ;;  %v4197_v13 = vadd.f32 %v6172_v56, %v3867_v53  ;;  %v6061_v18 = vpop.f32.mrb[28].mxu1  ;;  %v6173_v25 = vpop.f32.mrb[28].mxu0 }
 0x33b   : > { %v6062_v10 = vpop.f32.mrb[29].mxu1  ;;  %v6174_v47 = vpop.f32.mrb[29].mxu0 }
 0x33c   : > { %v4229_v6 = vmul.f32 0.1, %v4197_v13  ;;  %v6063_v34 = vadd.f32 %v6062_v10, %v6061_v18  ;;  %v6175_v28 = vadd.f32 %v6174_v47, %v6173_v25  ;;  %v6064_v30 = vpop.f32.mrb[30].mxu1  ;;  %v6176_v49 = vpop.f32.mrb[30].mxu0  ;;  %v4260_v31 = vmax.f32 %v4196_v46, %v4228_v32 }
 0x33d   : > { %v6065_v35 = vpop.f32.mrb[31].mxu1  ;;  %v6177_v29 = vpop.f32.mrb[31].mxu0 }
 0x33e   : > { %v4261_v14 = vmax.f32 %v4197_v13, %v4229_v6  ;;  %v3868_v2 = vadd.f32 %v6063_v34, %v8351_v7  ;;  %v6066_v3 = vadd.f32 %v6065_v35, %v6064_v30  ;;  %v6178_v50 = vadd.f32 %v6177_v29, %v6176_v49 }
 0x340   : > { %v5149_v52 = vpack.c.bf16 %v4261_v14, %v4260_v31  ;;  %v4198_v42 = vadd.f32 %v6175_v28, %v3868_v2  ;;  %v3869_v60 = vadd.f32 %v6066_v3, %v8354_v8 }
 0x342   : > { %5169 = vst [vmem:[%s8363_s9 + $0x70] sm:$0xff] %v5149_v52   ;;  %v4230_v19 = vmul.f32 0.1, %v4198_v42  ;;  %v4199_v9 = vadd.f32 %v6178_v50, %v3869_v60 }
 0x344   : > { %v4231_v59 = vmul.f32 0.1, %v4199_v9  ;;  %v4262_v1 = vmax.f32 %v4198_v42, %v4230_v19 }
 0x346   : > { %v4263_v54 = vmax.f32 %v4199_v9, %v4231_v59 }
 0x348   : > { %v5154_v23 = vpack.c.bf16 %v4263_v54, %v4262_v1 }
 0x34a   : > { %5170 = vst [vmem:[%s8363_s9 + $0x78] sm:$0xff] %v5154_v23  }
 0x34b PF: > { %s14_s17 = sadd.s32 1, %s6504_s17   ;;  %s8735_s15 = smov %s6500_s16 }
 0x34c   : > { %p11_p5 = scmp.ge.s32.totalorder %s14_s17, 4   ;;  %s8736_s16 = smov %s8738_s18 }
 0x34e   :  { %13 = sbr.rel (!%p11_p5) target bundleno = 2 (0x2), region = 79 }

</bundles_post_ra>
